<compile_context>
chip_gen: v7x
topology: tpu7x:2x2x1
jax: 0.10.0
libtpu: 0.0.40
codegen_flags: <defaults>
</compile_context>

<pallas_src>
import functools

import jax
import jax.numpy as jnp
from jax import lax
from jax.experimental import pallas as pl
from jax.experimental.pallas import tpu as pltpu


_R = 1024   # per-sample lane region (32 * 32 spatial positions of the input)
_KH = 5
_KW = 5


def _ru(x, m):
    return (x + m - 1) // m * m


def _widths(n):
    """Lane extents of every stage of the fused kernel for batch size n."""
    w2 = (n - 1) * _R + 768                # conv2 output working width
    wa2 = _ru(w2 + 64 * 4 + 2 * 4, 128)    # pool1 output width (conv2 input)
    w1 = _ru(wa2 + 33, 128)                # conv1 output working width
    wx = _ru(w1 + 32 * 4 + 4, 128)         # zero-padded input width
    wp2 = w2 - 130                         # pool2 output width
    wc3 = (n - 1) * _R + 128               # compacted pooled-feature width
    return wx, w1, wa2, w2, wp2, wc3


# ---------------------------------------------------------------------------
# The fused kernel
# ---------------------------------------------------------------------------
def _lenet5_kernel(n, x_ref, w1_ref, b1_ref, w2_ref, b2_ref,
                   w5_ref, b5_ref, w6_ref, b6_ref, w7_ref, b7_ref, out_ref):
    _, w1, wa2, w2, wp2, wc3 = _widths(n)
    f32 = jnp.float32

    # ---- conv1 (3->6, 5x5, valid): 25 per-tap MXU matmuls on lane-shifted
    #      windows of the flat (C=8pad, wx) input slab. Row pitch = 32.
    acc1 = jnp.zeros((8, w1), f32)
    for kh in range(_KH):
        for kw in range(_KW):
            t = kh * _KW + kw
            rhs = x_ref[:, pl.ds(kh * 32 + kw, w1)]              # (8, w1)
            acc1 = acc1 + jnp.dot(w1_ref[t], rhs,
                                  preferred_element_type=f32)
    out1 = acc1 + b1_ref[...]                                    # (8, w1)

    # ---- pool1: 2x2 / stride 2 via shifted-slice maxima.
    #      Valid pooled values land on anchors n*R + 64*ph + 2*pw.
    h1 = jnp.maximum(out1[:, 0:wa2 + 32], out1[:, 1:wa2 + 33])
    a2 = jnp.maximum(h1[:, 0:wa2], h1[:, 32:wa2 + 32])           # (8, wa2)

    # ---- conv2 (6->16, 5x5, valid) on the strided pooled grid:
    #      tap (kh, kw) is a lane shift of 64*kh + 2*kw.
    acc2 = jnp.zeros((16, w2), f32)
    for kh in range(_KH):
        for kw in range(_KW):
            t = kh * _KW + kw
            s = kh * 64 + kw * 2
            rhs = a2[:, s:s + w2]                                # (8, w2)
            acc2 = acc2 + jnp.dot(w2_ref[t], rhs,
                                  preferred_element_type=f32)
    out2 = acc2 + b2_ref[...]                                    # (16, w2)

    # ---- pool2: anchors move to n*R + 128*i + 4*j (i, j in [0, 5)).
    h2 = jnp.maximum(out2[:, 0:wp2 + 128], out2[:, 2:wp2 + 130])
    p2 = jnp.maximum(h2[:, 0:wp2], h2[:, 128:wp2 + 128])         # (16, wp2)

    # ---- compact the 5 pooled rows of every sample into one 128-lane window:
    #      target lane 20*i + 4*j (within a sample)  <-  source 128*i + 4*j.
    lane = lax.broadcasted_iota(jnp.int32, (16, wc3), 1) & (_R - 1)
    c3 = p2[:, 0:wc3]
    for i in range(1, 5):
        shifted = p2[:, 108 * i:108 * i + wc3]
        band = (lane >= 20 * i) & (lane < 20 * i + 20)
        c3 = jnp.where(band, shifted, c3)                        # (16, wc3)

    # ---- f5 (400 -> 120): 16 per-channel matmuls against the pre-scattered
    #      weight (zeros at non-feature lanes), output padded to 128 lanes.
    acc5 = jnp.zeros((n, 128), f32)
    for c in range(16):
        rows = [c3[c:c + 1, s * _R:s * _R + 128] for s in range(n)]
        lhs = jnp.concatenate(rows, axis=0)                      # (n, 128)
        acc5 = acc5 + jnp.dot(lhs, w5_ref[c], preferred_element_type=f32)
    y5 = acc5 + b5_ref[...]                                      # (n, 128)

    # ---- f6, f7 (weights zero-padded to 128x128 -> pad lanes stay zero).
    y6 = jnp.dot(y5, w6_ref[...], preferred_element_type=f32) + b6_ref[...]
    y7 = jnp.dot(y6, w7_ref[...], preferred_element_type=f32) + b7_ref[...]
    out_ref[...] = y7                                            # (n, 128)


# ---------------------------------------------------------------------------
# Wrapper: weight / input layout plumbing (tiny, one-shot XLA ops)
# ---------------------------------------------------------------------------
def _prep_inputs(params, x):
    n = x.shape[0]
    wx, *_ = _widths(n)
    f32 = jnp.float32

    # input NCHW -> channel-major flat-spatial slab, channels padded to 8.
    xf = x.astype(f32).transpose(1, 0, 2, 3).reshape(3, n * _R)
    xf = jnp.pad(xf, ((0, 5), (0, wx - n * _R)))                 # (8, wx)

    # conv weights: one (OC_pad, IC_pad) matrix per (kh, kw) tap.
    w1 = params["c1_w"].astype(f32).transpose(2, 3, 0, 1).reshape(25, 6, 3)
    w1 = jnp.pad(w1, ((0, 0), (0, 2), (0, 5)))                   # (25, 8, 8)
    b1 = jnp.pad(params["c1_b"].astype(f32), (0, 2)).reshape(8, 1)

    w2 = params["c3_w"].astype(f32).transpose(2, 3, 0, 1).reshape(25, 16, 6)
    w2 = jnp.pad(w2, ((0, 0), (0, 0), (0, 2)))                   # (25, 16, 8)
    b2 = params["c3_b"].astype(f32).reshape(16, 1)

    # f5: scatter the (120, 400) weight onto the compacted pooled layout:
    #     lane 4*(5*i + j) of channel c  <->  torch feature c*25 + 5*i + j.
    w5 = params["f5_w"].astype(f32).reshape(120, 16, 25).transpose(1, 2, 0)
    w5s = jnp.zeros((16, 128, 128), f32).at[:, 0:100:4, 0:120].set(w5)
    b5 = jnp.pad(params["f5_b"].astype(f32), (0, 8)).reshape(1, 128)

    w6 = jnp.zeros((128, 128), f32).at[0:120, 0:84].set(
        params["f6_w"].astype(f32).T)
    b6 = jnp.pad(params["f6_b"].astype(f32), (0, 44)).reshape(1, 128)

    w7 = jnp.zeros((128, 128), f32).at[0:84, 0:10].set(
        params["f7_w"].astype(f32).T)
    b7 = jnp.pad(params["f7_b"].astype(f32), (0, 118)).reshape(1, 128)

    return xf, w1, b1, w2, b2, w5s, b5, w6, b6, w7, b7


def lenet5_forward(params, x):
    """x: (N, 3, 32, 32) float32 -> logits (N, 10) float32."""
    n = x.shape[0]
    ins = _prep_inputs(params, x)
    out = pl.pallas_call(
        functools.partial(_lenet5_kernel, n),
        out_shape=jax.ShapeDtypeStruct((n, 128), jnp.float32),
        in_specs=[pl.BlockSpec(memory_space=pltpu.MemorySpace.VMEM)] * len(ins),
        out_specs=pl.BlockSpec(memory_space=pltpu.MemorySpace.VMEM),
    )(*ins)
    return out[:, :10]


# ---------------------------------------------------------------------------
# Deterministic parameter init (PyTorch-like uniform(-1/sqrt(fan_in), ...))
# ---------------------------------------------------------------------------
def init_params(key):
    def uni(k, shape, fan_in):
        bound = 1.0 / jnp.sqrt(jnp.float32(fan_in))
        return jax.random.uniform(k, shape, jnp.float32, -bound, bound)

    ks = jax.random.split(key, 10)
    return {
        "c1_w": uni(ks[0], (6, 3, 5, 5), 3 * 5 * 5),
        "c1_b": uni(ks[1], (6,), 3 * 5 * 5),
        "c3_w": uni(ks[2], (16, 6, 5, 5), 6 * 5 * 5),
        "c3_b": uni(ks[3], (16,), 6 * 5 * 5),
        "f5_w": uni(ks[4], (120, 400), 400),
        "f5_b": uni(ks[5], (120,), 400),
        "f6_w": uni(ks[6], (84, 120), 120),
        "f6_b": uni(ks[7], (84,), 120),
        "f7_w": uni(ks[8], (10, 84), 84),
        "f7_b": uni(ks[9], (10,), 84),
    }


if __name__ == "__main__":
    key = jax.random.PRNGKey(0)
    kx, kp = jax.random.split(key)
    # LeNet-5 needs 3x32x32 inputs so that flatten yields 400 features.
    x = jax.random.normal(kx, (2, 3, 32, 32), jnp.float32)
    params = init_params(kp)

    logits = jax.jit(lenet5_forward)(params, x)
    jax.block_until_ready(logits)
    assert logits.shape == (2, 10) and logits.dtype == jnp.float32
    print("KERNEL_OK")
</pallas_src>

<mosaic_0001>
module attributes {stable_mosaic.version = 11 : i64} {
  func.func @_lenet5_kernel(%arg0: memref<8x2560xf32, #tpu.memory_space<vmem>>, %arg1: memref<25x8x8xf32, #tpu.memory_space<vmem>>, %arg2: memref<8x1xf32, #tpu.memory_space<vmem>>, %arg3: memref<25x16x8xf32, #tpu.memory_space<vmem>>, %arg4: memref<16x1xf32, #tpu.memory_space<vmem>>, %arg5: memref<16x128x128xf32, #tpu.memory_space<vmem>>, %arg6: memref<1x128xf32, #tpu.memory_space<vmem>>, %arg7: memref<128x128xf32, #tpu.memory_space<vmem>>, %arg8: memref<1x128xf32, #tpu.memory_space<vmem>>, %arg9: memref<128x128xf32, #tpu.memory_space<vmem>>, %arg10: memref<1x128xf32, #tpu.memory_space<vmem>>, %arg11: memref<2x128xf32, #tpu.memory_space<vmem>>) attributes {dimension_semantics = [], scalar_prefetch = 0 : i64, scratch_operands = 0 : i64, tpu.core_type = #tpu.core_type<tc>} {
    %cst = arith.constant 0.000000e+00 : f32
    %0 = vector.broadcast %cst : f32 to vector<8x2304xf32>
    %c0 = arith.constant 0 : index
    %c0_0 = arith.constant 0 : index
    %1 = vector.load %arg0[%c0, %c0_0] : memref<8x2560xf32, #tpu.memory_space<vmem>>, vector<8x2304xf32>
    %c0_1 = arith.constant 0 : index
    %c0_2 = arith.constant 0 : index
    %c0_3 = arith.constant 0 : index
    %2 = vector.load %arg1[%c0_1, %c0_2, %c0_3] : memref<25x8x8xf32, #tpu.memory_space<vmem>>, vector<1x8x8xf32>
    %3 = vector.shape_cast %2 : vector<1x8x8xf32> to vector<8x8xf32>
    %cst_4 = arith.constant dense<0.000000e+00> : vector<8x2304xf32>
    %4 = tpu.matmul %3, %1, %cst_4 {dimension_numbers = #tpu.dot_dimension_numbers<[1], [0], [0], [1], [0, 0, 1, 1], [], []>} : vector<8x8xf32>, vector<8x2304xf32>, vector<8x2304xf32> -> vector<8x2304xf32>
    %5 = arith.addf %0, %4 : vector<8x2304xf32>
    %c0_5 = arith.constant 0 : index
    %c1 = arith.constant 1 : index
    %6 = vector.load %arg0[%c0_5, %c1] : memref<8x2560xf32, #tpu.memory_space<vmem>>, vector<8x2304xf32>
    %c1_6 = arith.constant 1 : index
    %c0_7 = arith.constant 0 : index
    %c0_8 = arith.constant 0 : index
    %7 = vector.load %arg1[%c1_6, %c0_7, %c0_8] : memref<25x8x8xf32, #tpu.memory_space<vmem>>, vector<1x8x8xf32>
    %8 = vector.shape_cast %7 : vector<1x8x8xf32> to vector<8x8xf32>
    %cst_9 = arith.constant dense<0.000000e+00> : vector<8x2304xf32>
    %9 = tpu.matmul %8, %6, %cst_9 {dimension_numbers = #tpu.dot_dimension_numbers<[1], [0], [0], [1], [0, 0, 1, 1], [], []>} : vector<8x8xf32>, vector<8x2304xf32>, vector<8x2304xf32> -> vector<8x2304xf32>
    %10 = arith.addf %5, %9 : vector<8x2304xf32>
    %c0_10 = arith.constant 0 : index
    %c2 = arith.constant 2 : index
    %11 = vector.load %arg0[%c0_10, %c2] : memref<8x2560xf32, #tpu.memory_space<vmem>>, vector<8x2304xf32>
    %c2_11 = arith.constant 2 : index
    %c0_12 = arith.constant 0 : index
    %c0_13 = arith.constant 0 : index
    %12 = vector.load %arg1[%c2_11, %c0_12, %c0_13] : memref<25x8x8xf32, #tpu.memory_space<vmem>>, vector<1x8x8xf32>
    %13 = vector.shape_cast %12 : vector<1x8x8xf32> to vector<8x8xf32>
    %cst_14 = arith.constant dense<0.000000e+00> : vector<8x2304xf32>
    %14 = tpu.matmul %13, %11, %cst_14 {dimension_numbers = #tpu.dot_dimension_numbers<[1], [0], [0], [1], [0, 0, 1, 1], [], []>} : vector<8x8xf32>, vector<8x2304xf32>, vector<8x2304xf32> -> vector<8x2304xf32>
    %15 = arith.addf %10, %14 : vector<8x2304xf32>
    %c0_15 = arith.constant 0 : index
    %c3 = arith.constant 3 : index
    %16 = vector.load %arg0[%c0_15, %c3] : memref<8x2560xf32, #tpu.memory_space<vmem>>, vector<8x2304xf32>
    %c3_16 = arith.constant 3 : index
    %c0_17 = arith.constant 0 : index
    %c0_18 = arith.constant 0 : index
    %17 = vector.load %arg1[%c3_16, %c0_17, %c0_18] : memref<25x8x8xf32, #tpu.memory_space<vmem>>, vector<1x8x8xf32>
    %18 = vector.shape_cast %17 : vector<1x8x8xf32> to vector<8x8xf32>
    %cst_19 = arith.constant dense<0.000000e+00> : vector<8x2304xf32>
    %19 = tpu.matmul %18, %16, %cst_19 {dimension_numbers = #tpu.dot_dimension_numbers<[1], [0], [0], [1], [0, 0, 1, 1], [], []>} : vector<8x8xf32>, vector<8x2304xf32>, vector<8x2304xf32> -> vector<8x2304xf32>
    %20 = arith.addf %15, %19 : vector<8x2304xf32>
    %c0_20 = arith.constant 0 : index
    %c4 = arith.constant 4 : index
    %21 = vector.load %arg0[%c0_20, %c4] : memref<8x2560xf32, #tpu.memory_space<vmem>>, vector<8x2304xf32>
    %c4_21 = arith.constant 4 : index
    %c0_22 = arith.constant 0 : index
    %c0_23 = arith.constant 0 : index
    %22 = vector.load %arg1[%c4_21, %c0_22, %c0_23] : memref<25x8x8xf32, #tpu.memory_space<vmem>>, vector<1x8x8xf32>
    %23 = vector.shape_cast %22 : vector<1x8x8xf32> to vector<8x8xf32>
    %cst_24 = arith.constant dense<0.000000e+00> : vector<8x2304xf32>
    %24 = tpu.matmul %23, %21, %cst_24 {dimension_numbers = #tpu.dot_dimension_numbers<[1], [0], [0], [1], [0, 0, 1, 1], [], []>} : vector<8x8xf32>, vector<8x2304xf32>, vector<8x2304xf32> -> vector<8x2304xf32>
    %25 = arith.addf %20, %24 : vector<8x2304xf32>
    %c0_25 = arith.constant 0 : index
    %c32 = arith.constant 32 : index
    %26 = vector.load %arg0[%c0_25, %c32] : memref<8x2560xf32, #tpu.memory_space<vmem>>, vector<8x2304xf32>
    %c5 = arith.constant 5 : index
    %c0_26 = arith.constant 0 : index
    %c0_27 = arith.constant 0 : index
    %27 = vector.load %arg1[%c5, %c0_26, %c0_27] : memref<25x8x8xf32, #tpu.memory_space<vmem>>, vector<1x8x8xf32>
    %28 = vector.shape_cast %27 : vector<1x8x8xf32> to vector<8x8xf32>
    %cst_28 = arith.constant dense<0.000000e+00> : vector<8x2304xf32>
    %29 = tpu.matmul %28, %26, %cst_28 {dimension_numbers = #tpu.dot_dimension_numbers<[1], [0], [0], [1], [0, 0, 1, 1], [], []>} : vector<8x8xf32>, vector<8x2304xf32>, vector<8x2304xf32> -> vector<8x2304xf32>
    %30 = arith.addf %25, %29 : vector<8x2304xf32>
    %c0_29 = arith.constant 0 : index
    %c33 = arith.constant 33 : index
    %31 = vector.load %arg0[%c0_29, %c33] : memref<8x2560xf32, #tpu.memory_space<vmem>>, vector<8x2304xf32>
    %c6 = arith.constant 6 : index
    %c0_30 = arith.constant 0 : index
    %c0_31 = arith.constant 0 : index
    %32 = vector.load %arg1[%c6, %c0_30, %c0_31] : memref<25x8x8xf32, #tpu.memory_space<vmem>>, vector<1x8x8xf32>
    %33 = vector.shape_cast %32 : vector<1x8x8xf32> to vector<8x8xf32>
    %cst_32 = arith.constant dense<0.000000e+00> : vector<8x2304xf32>
    %34 = tpu.matmul %33, %31, %cst_32 {dimension_numbers = #tpu.dot_dimension_numbers<[1], [0], [0], [1], [0, 0, 1, 1], [], []>} : vector<8x8xf32>, vector<8x2304xf32>, vector<8x2304xf32> -> vector<8x2304xf32>
    %35 = arith.addf %30, %34 : vector<8x2304xf32>
    %c0_33 = arith.constant 0 : index
    %c34 = arith.constant 34 : index
    %36 = vector.load %arg0[%c0_33, %c34] : memref<8x2560xf32, #tpu.memory_space<vmem>>, vector<8x2304xf32>
    %c7 = arith.constant 7 : index
    %c0_34 = arith.constant 0 : index
    %c0_35 = arith.constant 0 : index
    %37 = vector.load %arg1[%c7, %c0_34, %c0_35] : memref<25x8x8xf32, #tpu.memory_space<vmem>>, vector<1x8x8xf32>
    %38 = vector.shape_cast %37 : vector<1x8x8xf32> to vector<8x8xf32>
    %cst_36 = arith.constant dense<0.000000e+00> : vector<8x2304xf32>
    %39 = tpu.matmul %38, %36, %cst_36 {dimension_numbers = #tpu.dot_dimension_numbers<[1], [0], [0], [1], [0, 0, 1, 1], [], []>} : vector<8x8xf32>, vector<8x2304xf32>, vector<8x2304xf32> -> vector<8x2304xf32>
    %40 = arith.addf %35, %39 : vector<8x2304xf32>
    %c0_37 = arith.constant 0 : index
    %c35 = arith.constant 35 : index
    %41 = vector.load %arg0[%c0_37, %c35] : memref<8x2560xf32, #tpu.memory_space<vmem>>, vector<8x2304xf32>
    %c8 = arith.constant 8 : index
    %c0_38 = arith.constant 0 : index
    %c0_39 = arith.constant 0 : index
    %42 = vector.load %arg1[%c8, %c0_38, %c0_39] : memref<25x8x8xf32, #tpu.memory_space<vmem>>, vector<1x8x8xf32>
    %43 = vector.shape_cast %42 : vector<1x8x8xf32> to vector<8x8xf32>
    %cst_40 = arith.constant dense<0.000000e+00> : vector<8x2304xf32>
    %44 = tpu.matmul %43, %41, %cst_40 {dimension_numbers = #tpu.dot_dimension_numbers<[1], [0], [0], [1], [0, 0, 1, 1], [], []>} : vector<8x8xf32>, vector<8x2304xf32>, vector<8x2304xf32> -> vector<8x2304xf32>
    %45 = arith.addf %40, %44 : vector<8x2304xf32>
    %c0_41 = arith.constant 0 : index
    %c36 = arith.constant 36 : index
    %46 = vector.load %arg0[%c0_41, %c36] : memref<8x2560xf32, #tpu.memory_space<vmem>>, vector<8x2304xf32>
    %c9 = arith.constant 9 : index
    %c0_42 = arith.constant 0 : index
    %c0_43 = arith.constant 0 : index
    %47 = vector.load %arg1[%c9, %c0_42, %c0_43] : memref<25x8x8xf32, #tpu.memory_space<vmem>>, vector<1x8x8xf32>
    %48 = vector.shape_cast %47 : vector<1x8x8xf32> to vector<8x8xf32>
    %cst_44 = arith.constant dense<0.000000e+00> : vector<8x2304xf32>
    %49 = tpu.matmul %48, %46, %cst_44 {dimension_numbers = #tpu.dot_dimension_numbers<[1], [0], [0], [1], [0, 0, 1, 1], [], []>} : vector<8x8xf32>, vector<8x2304xf32>, vector<8x2304xf32> -> vector<8x2304xf32>
    %50 = arith.addf %45, %49 : vector<8x2304xf32>
    %c0_45 = arith.constant 0 : index
    %c64 = arith.constant 64 : index
    %51 = vector.load %arg0[%c0_45, %c64] : memref<8x2560xf32, #tpu.memory_space<vmem>>, vector<8x2304xf32>
    %c10 = arith.constant 10 : index
    %c0_46 = arith.constant 0 : index
    %c0_47 = arith.constant 0 : index
    %52 = vector.load %arg1[%c10, %c0_46, %c0_47] : memref<25x8x8xf32, #tpu.memory_space<vmem>>, vector<1x8x8xf32>
    %53 = vector.shape_cast %52 : vector<1x8x8xf32> to vector<8x8xf32>
    %cst_48 = arith.constant dense<0.000000e+00> : vector<8x2304xf32>
    %54 = tpu.matmul %53, %51, %cst_48 {dimension_numbers = #tpu.dot_dimension_numbers<[1], [0], [0], [1], [0, 0, 1, 1], [], []>} : vector<8x8xf32>, vector<8x2304xf32>, vector<8x2304xf32> -> vector<8x2304xf32>
    %55 = arith.addf %50, %54 : vector<8x2304xf32>
    %c0_49 = arith.constant 0 : index
    %c65 = arith.constant 65 : index
    %56 = vector.load %arg0[%c0_49, %c65] : memref<8x2560xf32, #tpu.memory_space<vmem>>, vector<8x2304xf32>
    %c11 = arith.constant 11 : index
    %c0_50 = arith.constant 0 : index
    %c0_51 = arith.constant 0 : index
    %57 = vector.load %arg1[%c11, %c0_50, %c0_51] : memref<25x8x8xf32, #tpu.memory_space<vmem>>, vector<1x8x8xf32>
    %58 = vector.shape_cast %57 : vector<1x8x8xf32> to vector<8x8xf32>
    %cst_52 = arith.constant dense<0.000000e+00> : vector<8x2304xf32>
    %59 = tpu.matmul %58, %56, %cst_52 {dimension_numbers = #tpu.dot_dimension_numbers<[1], [0], [0], [1], [0, 0, 1, 1], [], []>} : vector<8x8xf32>, vector<8x2304xf32>, vector<8x2304xf32> -> vector<8x2304xf32>
    %60 = arith.addf %55, %59 : vector<8x2304xf32>
    %c0_53 = arith.constant 0 : index
    %c66 = arith.constant 66 : index
    %61 = vector.load %arg0[%c0_53, %c66] : memref<8x2560xf32, #tpu.memory_space<vmem>>, vector<8x2304xf32>
    %c12 = arith.constant 12 : index
    %c0_54 = arith.constant 0 : index
    %c0_55 = arith.constant 0 : index
    %62 = vector.load %arg1[%c12, %c0_54, %c0_55] : memref<25x8x8xf32, #tpu.memory_space<vmem>>, vector<1x8x8xf32>
    %63 = vector.shape_cast %62 : vector<1x8x8xf32> to vector<8x8xf32>
    %cst_56 = arith.constant dense<0.000000e+00> : vector<8x2304xf32>
    %64 = tpu.matmul %63, %61, %cst_56 {dimension_numbers = #tpu.dot_dimension_numbers<[1], [0], [0], [1], [0, 0, 1, 1], [], []>} : vector<8x8xf32>, vector<8x2304xf32>, vector<8x2304xf32> -> vector<8x2304xf32>
    %65 = arith.addf %60, %64 : vector<8x2304xf32>
    %c0_57 = arith.constant 0 : index
    %c67 = arith.constant 67 : index
    %66 = vector.load %arg0[%c0_57, %c67] : memref<8x2560xf32, #tpu.memory_space<vmem>>, vector<8x2304xf32>
    %c13 = arith.constant 13 : index
    %c0_58 = arith.constant 0 : index
    %c0_59 = arith.constant 0 : index
    %67 = vector.load %arg1[%c13, %c0_58, %c0_59] : memref<25x8x8xf32, #tpu.memory_space<vmem>>, vector<1x8x8xf32>
    %68 = vector.shape_cast %67 : vector<1x8x8xf32> to vector<8x8xf32>
    %cst_60 = arith.constant dense<0.000000e+00> : vector<8x2304xf32>
    %69 = tpu.matmul %68, %66, %cst_60 {dimension_numbers = #tpu.dot_dimension_numbers<[1], [0], [0], [1], [0, 0, 1, 1], [], []>} : vector<8x8xf32>, vector<8x2304xf32>, vector<8x2304xf32> -> vector<8x2304xf32>
    %70 = arith.addf %65, %69 : vector<8x2304xf32>
    %c0_61 = arith.constant 0 : index
    %c68 = arith.constant 68 : index
    %71 = vector.load %arg0[%c0_61, %c68] : memref<8x2560xf32, #tpu.memory_space<vmem>>, vector<8x2304xf32>
    %c14 = arith.constant 14 : index
    %c0_62 = arith.constant 0 : index
    %c0_63 = arith.constant 0 : index
    %72 = vector.load %arg1[%c14, %c0_62, %c0_63] : memref<25x8x8xf32, #tpu.memory_space<vmem>>, vector<1x8x8xf32>
    %73 = vector.shape_cast %72 : vector<1x8x8xf32> to vector<8x8xf32>
    %cst_64 = arith.constant dense<0.000000e+00> : vector<8x2304xf32>
    %74 = tpu.matmul %73, %71, %cst_64 {dimension_numbers = #tpu.dot_dimension_numbers<[1], [0], [0], [1], [0, 0, 1, 1], [], []>} : vector<8x8xf32>, vector<8x2304xf32>, vector<8x2304xf32> -> vector<8x2304xf32>
    %75 = arith.addf %70, %74 : vector<8x2304xf32>
    %c0_65 = arith.constant 0 : index
    %c96 = arith.constant 96 : index
    %76 = vector.load %arg0[%c0_65, %c96] : memref<8x2560xf32, #tpu.memory_space<vmem>>, vector<8x2304xf32>
    %c15 = arith.constant 15 : index
    %c0_66 = arith.constant 0 : index
    %c0_67 = arith.constant 0 : index
    %77 = vector.load %arg1[%c15, %c0_66, %c0_67] : memref<25x8x8xf32, #tpu.memory_space<vmem>>, vector<1x8x8xf32>
    %78 = vector.shape_cast %77 : vector<1x8x8xf32> to vector<8x8xf32>
    %cst_68 = arith.constant dense<0.000000e+00> : vector<8x2304xf32>
    %79 = tpu.matmul %78, %76, %cst_68 {dimension_numbers = #tpu.dot_dimension_numbers<[1], [0], [0], [1], [0, 0, 1, 1], [], []>} : vector<8x8xf32>, vector<8x2304xf32>, vector<8x2304xf32> -> vector<8x2304xf32>
    %80 = arith.addf %75, %79 : vector<8x2304xf32>
    %c0_69 = arith.constant 0 : index
    %c97 = arith.constant 97 : index
    %81 = vector.load %arg0[%c0_69, %c97] : memref<8x2560xf32, #tpu.memory_space<vmem>>, vector<8x2304xf32>
    %c16 = arith.constant 16 : index
    %c0_70 = arith.constant 0 : index
    %c0_71 = arith.constant 0 : index
    %82 = vector.load %arg1[%c16, %c0_70, %c0_71] : memref<25x8x8xf32, #tpu.memory_space<vmem>>, vector<1x8x8xf32>
    %83 = vector.shape_cast %82 : vector<1x8x8xf32> to vector<8x8xf32>
    %cst_72 = arith.constant dense<0.000000e+00> : vector<8x2304xf32>
    %84 = tpu.matmul %83, %81, %cst_72 {dimension_numbers = #tpu.dot_dimension_numbers<[1], [0], [0], [1], [0, 0, 1, 1], [], []>} : vector<8x8xf32>, vector<8x2304xf32>, vector<8x2304xf32> -> vector<8x2304xf32>
    %85 = arith.addf %80, %84 : vector<8x2304xf32>
    %c0_73 = arith.constant 0 : index
    %c98 = arith.constant 98 : index
    %86 = vector.load %arg0[%c0_73, %c98] : memref<8x2560xf32, #tpu.memory_space<vmem>>, vector<8x2304xf32>
    %c17 = arith.constant 17 : index
    %c0_74 = arith.constant 0 : index
    %c0_75 = arith.constant 0 : index
    %87 = vector.load %arg1[%c17, %c0_74, %c0_75] : memref<25x8x8xf32, #tpu.memory_space<vmem>>, vector<1x8x8xf32>
    %88 = vector.shape_cast %87 : vector<1x8x8xf32> to vector<8x8xf32>
    %cst_76 = arith.constant dense<0.000000e+00> : vector<8x2304xf32>
    %89 = tpu.matmul %88, %86, %cst_76 {dimension_numbers = #tpu.dot_dimension_numbers<[1], [0], [0], [1], [0, 0, 1, 1], [], []>} : vector<8x8xf32>, vector<8x2304xf32>, vector<8x2304xf32> -> vector<8x2304xf32>
    %90 = arith.addf %85, %89 : vector<8x2304xf32>
    %c0_77 = arith.constant 0 : index
    %c99 = arith.constant 99 : index
    %91 = vector.load %arg0[%c0_77, %c99] : memref<8x2560xf32, #tpu.memory_space<vmem>>, vector<8x2304xf32>
    %c18 = arith.constant 18 : index
    %c0_78 = arith.constant 0 : index
    %c0_79 = arith.constant 0 : index
    %92 = vector.load %arg1[%c18, %c0_78, %c0_79] : memref<25x8x8xf32, #tpu.memory_space<vmem>>, vector<1x8x8xf32>
    %93 = vector.shape_cast %92 : vector<1x8x8xf32> to vector<8x8xf32>
    %cst_80 = arith.constant dense<0.000000e+00> : vector<8x2304xf32>
    %94 = tpu.matmul %93, %91, %cst_80 {dimension_numbers = #tpu.dot_dimension_numbers<[1], [0], [0], [1], [0, 0, 1, 1], [], []>} : vector<8x8xf32>, vector<8x2304xf32>, vector<8x2304xf32> -> vector<8x2304xf32>
    %95 = arith.addf %90, %94 : vector<8x2304xf32>
    %c0_81 = arith.constant 0 : index
    %c100 = arith.constant 100 : index
    %96 = vector.load %arg0[%c0_81, %c100] : memref<8x2560xf32, #tpu.memory_space<vmem>>, vector<8x2304xf32>
    %c19 = arith.constant 19 : index
    %c0_82 = arith.constant 0 : index
    %c0_83 = arith.constant 0 : index
    %97 = vector.load %arg1[%c19, %c0_82, %c0_83] : memref<25x8x8xf32, #tpu.memory_space<vmem>>, vector<1x8x8xf32>
    %98 = vector.shape_cast %97 : vector<1x8x8xf32> to vector<8x8xf32>
    %cst_84 = arith.constant dense<0.000000e+00> : vector<8x2304xf32>
    %99 = tpu.matmul %98, %96, %cst_84 {dimension_numbers = #tpu.dot_dimension_numbers<[1], [0], [0], [1], [0, 0, 1, 1], [], []>} : vector<8x8xf32>, vector<8x2304xf32>, vector<8x2304xf32> -> vector<8x2304xf32>
    %100 = arith.addf %95, %99 : vector<8x2304xf32>
    %c0_85 = arith.constant 0 : index
    %c128 = arith.constant 128 : index
    %101 = vector.load %arg0[%c0_85, %c128] : memref<8x2560xf32, #tpu.memory_space<vmem>>, vector<8x2304xf32>
    %c20 = arith.constant 20 : index
    %c0_86 = arith.constant 0 : index
    %c0_87 = arith.constant 0 : index
    %102 = vector.load %arg1[%c20, %c0_86, %c0_87] : memref<25x8x8xf32, #tpu.memory_space<vmem>>, vector<1x8x8xf32>
    %103 = vector.shape_cast %102 : vector<1x8x8xf32> to vector<8x8xf32>
    %cst_88 = arith.constant dense<0.000000e+00> : vector<8x2304xf32>
    %104 = tpu.matmul %103, %101, %cst_88 {dimension_numbers = #tpu.dot_dimension_numbers<[1], [0], [0], [1], [0, 0, 1, 1], [], []>} : vector<8x8xf32>, vector<8x2304xf32>, vector<8x2304xf32> -> vector<8x2304xf32>
    %105 = arith.addf %100, %104 : vector<8x2304xf32>
    %c0_89 = arith.constant 0 : index
    %c129 = arith.constant 129 : index
    %106 = vector.load %arg0[%c0_89, %c129] : memref<8x2560xf32, #tpu.memory_space<vmem>>, vector<8x2304xf32>
    %c21 = arith.constant 21 : index
    %c0_90 = arith.constant 0 : index
    %c0_91 = arith.constant 0 : index
    %107 = vector.load %arg1[%c21, %c0_90, %c0_91] : memref<25x8x8xf32, #tpu.memory_space<vmem>>, vector<1x8x8xf32>
    %108 = vector.shape_cast %107 : vector<1x8x8xf32> to vector<8x8xf32>
    %cst_92 = arith.constant dense<0.000000e+00> : vector<8x2304xf32>
    %109 = tpu.matmul %108, %106, %cst_92 {dimension_numbers = #tpu.dot_dimension_numbers<[1], [0], [0], [1], [0, 0, 1, 1], [], []>} : vector<8x8xf32>, vector<8x2304xf32>, vector<8x2304xf32> -> vector<8x2304xf32>
    %110 = arith.addf %105, %109 : vector<8x2304xf32>
    %c0_93 = arith.constant 0 : index
    %c130 = arith.constant 130 : index
    %111 = vector.load %arg0[%c0_93, %c130] : memref<8x2560xf32, #tpu.memory_space<vmem>>, vector<8x2304xf32>
    %c22 = arith.constant 22 : index
    %c0_94 = arith.constant 0 : index
    %c0_95 = arith.constant 0 : index
    %112 = vector.load %arg1[%c22, %c0_94, %c0_95] : memref<25x8x8xf32, #tpu.memory_space<vmem>>, vector<1x8x8xf32>
    %113 = vector.shape_cast %112 : vector<1x8x8xf32> to vector<8x8xf32>
    %cst_96 = arith.constant dense<0.000000e+00> : vector<8x2304xf32>
    %114 = tpu.matmul %113, %111, %cst_96 {dimension_numbers = #tpu.dot_dimension_numbers<[1], [0], [0], [1], [0, 0, 1, 1], [], []>} : vector<8x8xf32>, vector<8x2304xf32>, vector<8x2304xf32> -> vector<8x2304xf32>
    %115 = arith.addf %110, %114 : vector<8x2304xf32>
    %c0_97 = arith.constant 0 : index
    %c131 = arith.constant 131 : index
    %116 = vector.load %arg0[%c0_97, %c131] : memref<8x2560xf32, #tpu.memory_space<vmem>>, vector<8x2304xf32>
    %c23 = arith.constant 23 : index
    %c0_98 = arith.constant 0 : index
    %c0_99 = arith.constant 0 : index
    %117 = vector.load %arg1[%c23, %c0_98, %c0_99] : memref<25x8x8xf32, #tpu.memory_space<vmem>>, vector<1x8x8xf32>
    %118 = vector.shape_cast %117 : vector<1x8x8xf32> to vector<8x8xf32>
    %cst_100 = arith.constant dense<0.000000e+00> : vector<8x2304xf32>
    %119 = tpu.matmul %118, %116, %cst_100 {dimension_numbers = #tpu.dot_dimension_numbers<[1], [0], [0], [1], [0, 0, 1, 1], [], []>} : vector<8x8xf32>, vector<8x2304xf32>, vector<8x2304xf32> -> vector<8x2304xf32>
    %120 = arith.addf %115, %119 : vector<8x2304xf32>
    %c0_101 = arith.constant 0 : index
    %c132 = arith.constant 132 : index
    %121 = vector.load %arg0[%c0_101, %c132] : memref<8x2560xf32, #tpu.memory_space<vmem>>, vector<8x2304xf32>
    %c24 = arith.constant 24 : index
    %c0_102 = arith.constant 0 : index
    %c0_103 = arith.constant 0 : index
    %122 = vector.load %arg1[%c24, %c0_102, %c0_103] : memref<25x8x8xf32, #tpu.memory_space<vmem>>, vector<1x8x8xf32>
    %123 = vector.shape_cast %122 : vector<1x8x8xf32> to vector<8x8xf32>
    %cst_104 = arith.constant dense<0.000000e+00> : vector<8x2304xf32>
    %124 = tpu.matmul %123, %121, %cst_104 {dimension_numbers = #tpu.dot_dimension_numbers<[1], [0], [0], [1], [0, 0, 1, 1], [], []>} : vector<8x8xf32>, vector<8x2304xf32>, vector<8x2304xf32> -> vector<8x2304xf32>
    %125 = arith.addf %120, %124 : vector<8x2304xf32>
    %c0_105 = arith.constant 0 : index
    %c0_106 = arith.constant 0 : index
    %126 = vector.load %arg2[%c0_105, %c0_106] : memref<8x1xf32, #tpu.memory_space<vmem>>, vector<8x1xf32>
    %127 = vector.broadcast %126 : vector<8x1xf32> to vector<8x2304xf32>
    %128 = arith.addf %125, %127 : vector<8x2304xf32>
    %129 = vector.extract_strided_slice %128 {offsets = [0, 0], sizes = [8, 2208], strides = [1, 1]} : vector<8x2304xf32> to vector<8x2208xf32>
    %130 = vector.extract_strided_slice %128 {offsets = [0, 1], sizes = [8, 2208], strides = [1, 1]} : vector<8x2304xf32> to vector<8x2208xf32>
    %131 = arith.maximumf %129, %130 : vector<8x2208xf32>
    %132 = vector.extract_strided_slice %131 {offsets = [0, 0], sizes = [8, 2176], strides = [1, 1]} : vector<8x2208xf32> to vector<8x2176xf32>
    %133 = vector.extract_strided_slice %131 {offsets = [0, 32], sizes = [8, 2176], strides = [1, 1]} : vector<8x2208xf32> to vector<8x2176xf32>
    %134 = arith.maximumf %132, %133 : vector<8x2176xf32>
    %cst_107 = arith.constant 0.000000e+00 : f32
    %135 = vector.broadcast %cst_107 : f32 to vector<16x1792xf32>
    %136 = vector.extract_strided_slice %134 {offsets = [0, 0], sizes = [8, 1792], strides = [1, 1]} : vector<8x2176xf32> to vector<8x1792xf32>
    %c0_108 = arith.constant 0 : index
    %c0_109 = arith.constant 0 : index
    %c0_110 = arith.constant 0 : index
    %137 = vector.load %arg3[%c0_108, %c0_109, %c0_110] : memref<25x16x8xf32, #tpu.memory_space<vmem>>, vector<1x16x8xf32>
    %138 = vector.shape_cast %137 : vector<1x16x8xf32> to vector<16x8xf32>
    %cst_111 = arith.constant dense<0.000000e+00> : vector<16x1792xf32>
    %139 = tpu.matmul %138, %136, %cst_111 {dimension_numbers = #tpu.dot_dimension_numbers<[1], [0], [0], [1], [0, 0, 1, 1], [], []>} : vector<16x8xf32>, vector<8x1792xf32>, vector<16x1792xf32> -> vector<16x1792xf32>
    %140 = arith.addf %135, %139 : vector<16x1792xf32>
    %141 = vector.extract_strided_slice %134 {offsets = [0, 2], sizes = [8, 1792], strides = [1, 1]} : vector<8x2176xf32> to vector<8x1792xf32>
    %c1_112 = arith.constant 1 : index
    %c0_113 = arith.constant 0 : index
    %c0_114 = arith.constant 0 : index
    %142 = vector.load %arg3[%c1_112, %c0_113, %c0_114] : memref<25x16x8xf32, #tpu.memory_space<vmem>>, vector<1x16x8xf32>
    %143 = vector.shape_cast %142 : vector<1x16x8xf32> to vector<16x8xf32>
    %cst_115 = arith.constant dense<0.000000e+00> : vector<16x1792xf32>
    %144 = tpu.matmul %143, %141, %cst_115 {dimension_numbers = #tpu.dot_dimension_numbers<[1], [0], [0], [1], [0, 0, 1, 1], [], []>} : vector<16x8xf32>, vector<8x1792xf32>, vector<16x1792xf32> -> vector<16x1792xf32>
    %145 = arith.addf %140, %144 : vector<16x1792xf32>
    %146 = vector.extract_strided_slice %134 {offsets = [0, 4], sizes = [8, 1792], strides = [1, 1]} : vector<8x2176xf32> to vector<8x1792xf32>
    %c2_116 = arith.constant 2 : index
    %c0_117 = arith.constant 0 : index
    %c0_118 = arith.constant 0 : index
    %147 = vector.load %arg3[%c2_116, %c0_117, %c0_118] : memref<25x16x8xf32, #tpu.memory_space<vmem>>, vector<1x16x8xf32>
    %148 = vector.shape_cast %147 : vector<1x16x8xf32> to vector<16x8xf32>
    %cst_119 = arith.constant dense<0.000000e+00> : vector<16x1792xf32>
    %149 = tpu.matmul %148, %146, %cst_119 {dimension_numbers = #tpu.dot_dimension_numbers<[1], [0], [0], [1], [0, 0, 1, 1], [], []>} : vector<16x8xf32>, vector<8x1792xf32>, vector<16x1792xf32> -> vector<16x1792xf32>
    %150 = arith.addf %145, %149 : vector<16x1792xf32>
    %151 = vector.extract_strided_slice %134 {offsets = [0, 6], sizes = [8, 1792], strides = [1, 1]} : vector<8x2176xf32> to vector<8x1792xf32>
    %c3_120 = arith.constant 3 : index
    %c0_121 = arith.constant 0 : index
    %c0_122 = arith.constant 0 : index
    %152 = vector.load %arg3[%c3_120, %c0_121, %c0_122] : memref<25x16x8xf32, #tpu.memory_space<vmem>>, vector<1x16x8xf32>
    %153 = vector.shape_cast %152 : vector<1x16x8xf32> to vector<16x8xf32>
    %cst_123 = arith.constant dense<0.000000e+00> : vector<16x1792xf32>
    %154 = tpu.matmul %153, %151, %cst_123 {dimension_numbers = #tpu.dot_dimension_numbers<[1], [0], [0], [1], [0, 0, 1, 1], [], []>} : vector<16x8xf32>, vector<8x1792xf32>, vector<16x1792xf32> -> vector<16x1792xf32>
    %155 = arith.addf %150, %154 : vector<16x1792xf32>
    %156 = vector.extract_strided_slice %134 {offsets = [0, 8], sizes = [8, 1792], strides = [1, 1]} : vector<8x2176xf32> to vector<8x1792xf32>
    %c4_124 = arith.constant 4 : index
    %c0_125 = arith.constant 0 : index
    %c0_126 = arith.constant 0 : index
    %157 = vector.load %arg3[%c4_124, %c0_125, %c0_126] : memref<25x16x8xf32, #tpu.memory_space<vmem>>, vector<1x16x8xf32>
    %158 = vector.shape_cast %157 : vector<1x16x8xf32> to vector<16x8xf32>
    %cst_127 = arith.constant dense<0.000000e+00> : vector<16x1792xf32>
    %159 = tpu.matmul %158, %156, %cst_127 {dimension_numbers = #tpu.dot_dimension_numbers<[1], [0], [0], [1], [0, 0, 1, 1], [], []>} : vector<16x8xf32>, vector<8x1792xf32>, vector<16x1792xf32> -> vector<16x1792xf32>
    %160 = arith.addf %155, %159 : vector<16x1792xf32>
    %161 = vector.extract_strided_slice %134 {offsets = [0, 64], sizes = [8, 1792], strides = [1, 1]} : vector<8x2176xf32> to vector<8x1792xf32>
    %c5_128 = arith.constant 5 : index
    %c0_129 = arith.constant 0 : index
    %c0_130 = arith.constant 0 : index
    %162 = vector.load %arg3[%c5_128, %c0_129, %c0_130] : memref<25x16x8xf32, #tpu.memory_space<vmem>>, vector<1x16x8xf32>
    %163 = vector.shape_cast %162 : vector<1x16x8xf32> to vector<16x8xf32>
    %cst_131 = arith.constant dense<0.000000e+00> : vector<16x1792xf32>
    %164 = tpu.matmul %163, %161, %cst_131 {dimension_numbers = #tpu.dot_dimension_numbers<[1], [0], [0], [1], [0, 0, 1, 1], [], []>} : vector<16x8xf32>, vector<8x1792xf32>, vector<16x1792xf32> -> vector<16x1792xf32>
    %165 = arith.addf %160, %164 : vector<16x1792xf32>
    %166 = vector.extract_strided_slice %134 {offsets = [0, 66], sizes = [8, 1792], strides = [1, 1]} : vector<8x2176xf32> to vector<8x1792xf32>
    %c6_132 = arith.constant 6 : index
    %c0_133 = arith.constant 0 : index
    %c0_134 = arith.constant 0 : index
    %167 = vector.load %arg3[%c6_132, %c0_133, %c0_134] : memref<25x16x8xf32, #tpu.memory_space<vmem>>, vector<1x16x8xf32>
    %168 = vector.shape_cast %167 : vector<1x16x8xf32> to vector<16x8xf32>
    %cst_135 = arith.constant dense<0.000000e+00> : vector<16x1792xf32>
    %169 = tpu.matmul %168, %166, %cst_135 {dimension_numbers = #tpu.dot_dimension_numbers<[1], [0], [0], [1], [0, 0, 1, 1], [], []>} : vector<16x8xf32>, vector<8x1792xf32>, vector<16x1792xf32> -> vector<16x1792xf32>
    %170 = arith.addf %165, %169 : vector<16x1792xf32>
    %171 = vector.extract_strided_slice %134 {offsets = [0, 68], sizes = [8, 1792], strides = [1, 1]} : vector<8x2176xf32> to vector<8x1792xf32>
    %c7_136 = arith.constant 7 : index
    %c0_137 = arith.constant 0 : index
    %c0_138 = arith.constant 0 : index
    %172 = vector.load %arg3[%c7_136, %c0_137, %c0_138] : memref<25x16x8xf32, #tpu.memory_space<vmem>>, vector<1x16x8xf32>
    %173 = vector.shape_cast %172 : vector<1x16x8xf32> to vector<16x8xf32>
    %cst_139 = arith.constant dense<0.000000e+00> : vector<16x1792xf32>
    %174 = tpu.matmul %173, %171, %cst_139 {dimension_numbers = #tpu.dot_dimension_numbers<[1], [0], [0], [1], [0, 0, 1, 1], [], []>} : vector<16x8xf32>, vector<8x1792xf32>, vector<16x1792xf32> -> vector<16x1792xf32>
    %175 = arith.addf %170, %174 : vector<16x1792xf32>
    %176 = vector.extract_strided_slice %134 {offsets = [0, 70], sizes = [8, 1792], strides = [1, 1]} : vector<8x2176xf32> to vector<8x1792xf32>
    %c8_140 = arith.constant 8 : index
    %c0_141 = arith.constant 0 : index
    %c0_142 = arith.constant 0 : index
    %177 = vector.load %arg3[%c8_140, %c0_141, %c0_142] : memref<25x16x8xf32, #tpu.memory_space<vmem>>, vector<1x16x8xf32>
    %178 = vector.shape_cast %177 : vector<1x16x8xf32> to vector<16x8xf32>
    %cst_143 = arith.constant dense<0.000000e+00> : vector<16x1792xf32>
    %179 = tpu.matmul %178, %176, %cst_143 {dimension_numbers = #tpu.dot_dimension_numbers<[1], [0], [0], [1], [0, 0, 1, 1], [], []>} : vector<16x8xf32>, vector<8x1792xf32>, vector<16x1792xf32> -> vector<16x1792xf32>
    %180 = arith.addf %175, %179 : vector<16x1792xf32>
    %181 = vector.extract_strided_slice %134 {offsets = [0, 72], sizes = [8, 1792], strides = [1, 1]} : vector<8x2176xf32> to vector<8x1792xf32>
    %c9_144 = arith.constant 9 : index
    %c0_145 = arith.constant 0 : index
    %c0_146 = arith.constant 0 : index
    %182 = vector.load %arg3[%c9_144, %c0_145, %c0_146] : memref<25x16x8xf32, #tpu.memory_space<vmem>>, vector<1x16x8xf32>
    %183 = vector.shape_cast %182 : vector<1x16x8xf32> to vector<16x8xf32>
    %cst_147 = arith.constant dense<0.000000e+00> : vector<16x1792xf32>
    %184 = tpu.matmul %183, %181, %cst_147 {dimension_numbers = #tpu.dot_dimension_numbers<[1], [0], [0], [1], [0, 0, 1, 1], [], []>} : vector<16x8xf32>, vector<8x1792xf32>, vector<16x1792xf32> -> vector<16x1792xf32>
    %185 = arith.addf %180, %184 : vector<16x1792xf32>
    %186 = vector.extract_strided_slice %134 {offsets = [0, 128], sizes = [8, 1792], strides = [1, 1]} : vector<8x2176xf32> to vector<8x1792xf32>
    %c10_148 = arith.constant 10 : index
    %c0_149 = arith.constant 0 : index
    %c0_150 = arith.constant 0 : index
    %187 = vector.load %arg3[%c10_148, %c0_149, %c0_150] : memref<25x16x8xf32, #tpu.memory_space<vmem>>, vector<1x16x8xf32>
    %188 = vector.shape_cast %187 : vector<1x16x8xf32> to vector<16x8xf32>
    %cst_151 = arith.constant dense<0.000000e+00> : vector<16x1792xf32>
    %189 = tpu.matmul %188, %186, %cst_151 {dimension_numbers = #tpu.dot_dimension_numbers<[1], [0], [0], [1], [0, 0, 1, 1], [], []>} : vector<16x8xf32>, vector<8x1792xf32>, vector<16x1792xf32> -> vector<16x1792xf32>
    %190 = arith.addf %185, %189 : vector<16x1792xf32>
    %191 = vector.extract_strided_slice %134 {offsets = [0, 130], sizes = [8, 1792], strides = [1, 1]} : vector<8x2176xf32> to vector<8x1792xf32>
    %c11_152 = arith.constant 11 : index
    %c0_153 = arith.constant 0 : index
    %c0_154 = arith.constant 0 : index
    %192 = vector.load %arg3[%c11_152, %c0_153, %c0_154] : memref<25x16x8xf32, #tpu.memory_space<vmem>>, vector<1x16x8xf32>
    %193 = vector.shape_cast %192 : vector<1x16x8xf32> to vector<16x8xf32>
    %cst_155 = arith.constant dense<0.000000e+00> : vector<16x1792xf32>
    %194 = tpu.matmul %193, %191, %cst_155 {dimension_numbers = #tpu.dot_dimension_numbers<[1], [0], [0], [1], [0, 0, 1, 1], [], []>} : vector<16x8xf32>, vector<8x1792xf32>, vector<16x1792xf32> -> vector<16x1792xf32>
    %195 = arith.addf %190, %194 : vector<16x1792xf32>
    %196 = vector.extract_strided_slice %134 {offsets = [0, 132], sizes = [8, 1792], strides = [1, 1]} : vector<8x2176xf32> to vector<8x1792xf32>
    %c12_156 = arith.constant 12 : index
    %c0_157 = arith.constant 0 : index
    %c0_158 = arith.constant 0 : index
    %197 = vector.load %arg3[%c12_156, %c0_157, %c0_158] : memref<25x16x8xf32, #tpu.memory_space<vmem>>, vector<1x16x8xf32>
    %198 = vector.shape_cast %197 : vector<1x16x8xf32> to vector<16x8xf32>
    %cst_159 = arith.constant dense<0.000000e+00> : vector<16x1792xf32>
    %199 = tpu.matmul %198, %196, %cst_159 {dimension_numbers = #tpu.dot_dimension_numbers<[1], [0], [0], [1], [0, 0, 1, 1], [], []>} : vector<16x8xf32>, vector<8x1792xf32>, vector<16x1792xf32> -> vector<16x1792xf32>
    %200 = arith.addf %195, %199 : vector<16x1792xf32>
    %201 = vector.extract_strided_slice %134 {offsets = [0, 134], sizes = [8, 1792], strides = [1, 1]} : vector<8x2176xf32> to vector<8x1792xf32>
    %c13_160 = arith.constant 13 : index
    %c0_161 = arith.constant 0 : index
    %c0_162 = arith.constant 0 : index
    %202 = vector.load %arg3[%c13_160, %c0_161, %c0_162] : memref<25x16x8xf32, #tpu.memory_space<vmem>>, vector<1x16x8xf32>
    %203 = vector.shape_cast %202 : vector<1x16x8xf32> to vector<16x8xf32>
    %cst_163 = arith.constant dense<0.000000e+00> : vector<16x1792xf32>
    %204 = tpu.matmul %203, %201, %cst_163 {dimension_numbers = #tpu.dot_dimension_numbers<[1], [0], [0], [1], [0, 0, 1, 1], [], []>} : vector<16x8xf32>, vector<8x1792xf32>, vector<16x1792xf32> -> vector<16x1792xf32>
    %205 = arith.addf %200, %204 : vector<16x1792xf32>
    %206 = vector.extract_strided_slice %134 {offsets = [0, 136], sizes = [8, 1792], strides = [1, 1]} : vector<8x2176xf32> to vector<8x1792xf32>
    %c14_164 = arith.constant 14 : index
    %c0_165 = arith.constant 0 : index
    %c0_166 = arith.constant 0 : index
    %207 = vector.load %arg3[%c14_164, %c0_165, %c0_166] : memref<25x16x8xf32, #tpu.memory_space<vmem>>, vector<1x16x8xf32>
    %208 = vector.shape_cast %207 : vector<1x16x8xf32> to vector<16x8xf32>
    %cst_167 = arith.constant dense<0.000000e+00> : vector<16x1792xf32>
    %209 = tpu.matmul %208, %206, %cst_167 {dimension_numbers = #tpu.dot_dimension_numbers<[1], [0], [0], [1], [0, 0, 1, 1], [], []>} : vector<16x8xf32>, vector<8x1792xf32>, vector<16x1792xf32> -> vector<16x1792xf32>
    %210 = arith.addf %205, %209 : vector<16x1792xf32>
    %211 = vector.extract_strided_slice %134 {offsets = [0, 192], sizes = [8, 1792], strides = [1, 1]} : vector<8x2176xf32> to vector<8x1792xf32>
    %c15_168 = arith.constant 15 : index
    %c0_169 = arith.constant 0 : index
    %c0_170 = arith.constant 0 : index
    %212 = vector.load %arg3[%c15_168, %c0_169, %c0_170] : memref<25x16x8xf32, #tpu.memory_space<vmem>>, vector<1x16x8xf32>
    %213 = vector.shape_cast %212 : vector<1x16x8xf32> to vector<16x8xf32>
    %cst_171 = arith.constant dense<0.000000e+00> : vector<16x1792xf32>
    %214 = tpu.matmul %213, %211, %cst_171 {dimension_numbers = #tpu.dot_dimension_numbers<[1], [0], [0], [1], [0, 0, 1, 1], [], []>} : vector<16x8xf32>, vector<8x1792xf32>, vector<16x1792xf32> -> vector<16x1792xf32>
    %215 = arith.addf %210, %214 : vector<16x1792xf32>
    %216 = vector.extract_strided_slice %134 {offsets = [0, 194], sizes = [8, 1792], strides = [1, 1]} : vector<8x2176xf32> to vector<8x1792xf32>
    %c16_172 = arith.constant 16 : index
    %c0_173 = arith.constant 0 : index
    %c0_174 = arith.constant 0 : index
    %217 = vector.load %arg3[%c16_172, %c0_173, %c0_174] : memref<25x16x8xf32, #tpu.memory_space<vmem>>, vector<1x16x8xf32>
    %218 = vector.shape_cast %217 : vector<1x16x8xf32> to vector<16x8xf32>
    %cst_175 = arith.constant dense<0.000000e+00> : vector<16x1792xf32>
    %219 = tpu.matmul %218, %216, %cst_175 {dimension_numbers = #tpu.dot_dimension_numbers<[1], [0], [0], [1], [0, 0, 1, 1], [], []>} : vector<16x8xf32>, vector<8x1792xf32>, vector<16x1792xf32> -> vector<16x1792xf32>
    %220 = arith.addf %215, %219 : vector<16x1792xf32>
    %221 = vector.extract_strided_slice %134 {offsets = [0, 196], sizes = [8, 1792], strides = [1, 1]} : vector<8x2176xf32> to vector<8x1792xf32>
    %c17_176 = arith.constant 17 : index
    %c0_177 = arith.constant 0 : index
    %c0_178 = arith.constant 0 : index
    %222 = vector.load %arg3[%c17_176, %c0_177, %c0_178] : memref<25x16x8xf32, #tpu.memory_space<vmem>>, vector<1x16x8xf32>
    %223 = vector.shape_cast %222 : vector<1x16x8xf32> to vector<16x8xf32>
    %cst_179 = arith.constant dense<0.000000e+00> : vector<16x1792xf32>
    %224 = tpu.matmul %223, %221, %cst_179 {dimension_numbers = #tpu.dot_dimension_numbers<[1], [0], [0], [1], [0, 0, 1, 1], [], []>} : vector<16x8xf32>, vector<8x1792xf32>, vector<16x1792xf32> -> vector<16x1792xf32>
    %225 = arith.addf %220, %224 : vector<16x1792xf32>
    %226 = vector.extract_strided_slice %134 {offsets = [0, 198], sizes = [8, 1792], strides = [1, 1]} : vector<8x2176xf32> to vector<8x1792xf32>
    %c18_180 = arith.constant 18 : index
    %c0_181 = arith.constant 0 : index
    %c0_182 = arith.constant 0 : index
    %227 = vector.load %arg3[%c18_180, %c0_181, %c0_182] : memref<25x16x8xf32, #tpu.memory_space<vmem>>, vector<1x16x8xf32>
    %228 = vector.shape_cast %227 : vector<1x16x8xf32> to vector<16x8xf32>
    %cst_183 = arith.constant dense<0.000000e+00> : vector<16x1792xf32>
    %229 = tpu.matmul %228, %226, %cst_183 {dimension_numbers = #tpu.dot_dimension_numbers<[1], [0], [0], [1], [0, 0, 1, 1], [], []>} : vector<16x8xf32>, vector<8x1792xf32>, vector<16x1792xf32> -> vector<16x1792xf32>
    %230 = arith.addf %225, %229 : vector<16x1792xf32>
    %231 = vector.extract_strided_slice %134 {offsets = [0, 200], sizes = [8, 1792], strides = [1, 1]} : vector<8x2176xf32> to vector<8x1792xf32>
    %c19_184 = arith.constant 19 : index
    %c0_185 = arith.constant 0 : index
    %c0_186 = arith.constant 0 : index
    %232 = vector.load %arg3[%c19_184, %c0_185, %c0_186] : memref<25x16x8xf32, #tpu.memory_space<vmem>>, vector<1x16x8xf32>
    %233 = vector.shape_cast %232 : vector<1x16x8xf32> to vector<16x8xf32>
    %cst_187 = arith.constant dense<0.000000e+00> : vector<16x1792xf32>
    %234 = tpu.matmul %233, %231, %cst_187 {dimension_numbers = #tpu.dot_dimension_numbers<[1], [0], [0], [1], [0, 0, 1, 1], [], []>} : vector<16x8xf32>, vector<8x1792xf32>, vector<16x1792xf32> -> vector<16x1792xf32>
    %235 = arith.addf %230, %234 : vector<16x1792xf32>
    %236 = vector.extract_strided_slice %134 {offsets = [0, 256], sizes = [8, 1792], strides = [1, 1]} : vector<8x2176xf32> to vector<8x1792xf32>
    %c20_188 = arith.constant 20 : index
    %c0_189 = arith.constant 0 : index
    %c0_190 = arith.constant 0 : index
    %237 = vector.load %arg3[%c20_188, %c0_189, %c0_190] : memref<25x16x8xf32, #tpu.memory_space<vmem>>, vector<1x16x8xf32>
    %238 = vector.shape_cast %237 : vector<1x16x8xf32> to vector<16x8xf32>
    %cst_191 = arith.constant dense<0.000000e+00> : vector<16x1792xf32>
    %239 = tpu.matmul %238, %236, %cst_191 {dimension_numbers = #tpu.dot_dimension_numbers<[1], [0], [0], [1], [0, 0, 1, 1], [], []>} : vector<16x8xf32>, vector<8x1792xf32>, vector<16x1792xf32> -> vector<16x1792xf32>
    %240 = arith.addf %235, %239 : vector<16x1792xf32>
    %241 = vector.extract_strided_slice %134 {offsets = [0, 258], sizes = [8, 1792], strides = [1, 1]} : vector<8x2176xf32> to vector<8x1792xf32>
    %c21_192 = arith.constant 21 : index
    %c0_193 = arith.constant 0 : index
    %c0_194 = arith.constant 0 : index
    %242 = vector.load %arg3[%c21_192, %c0_193, %c0_194] : memref<25x16x8xf32, #tpu.memory_space<vmem>>, vector<1x16x8xf32>
    %243 = vector.shape_cast %242 : vector<1x16x8xf32> to vector<16x8xf32>
    %cst_195 = arith.constant dense<0.000000e+00> : vector<16x1792xf32>
    %244 = tpu.matmul %243, %241, %cst_195 {dimension_numbers = #tpu.dot_dimension_numbers<[1], [0], [0], [1], [0, 0, 1, 1], [], []>} : vector<16x8xf32>, vector<8x1792xf32>, vector<16x1792xf32> -> vector<16x1792xf32>
    %245 = arith.addf %240, %244 : vector<16x1792xf32>
    %246 = vector.extract_strided_slice %134 {offsets = [0, 260], sizes = [8, 1792], strides = [1, 1]} : vector<8x2176xf32> to vector<8x1792xf32>
    %c22_196 = arith.constant 22 : index
    %c0_197 = arith.constant 0 : index
    %c0_198 = arith.constant 0 : index
    %247 = vector.load %arg3[%c22_196, %c0_197, %c0_198] : memref<25x16x8xf32, #tpu.memory_space<vmem>>, vector<1x16x8xf32>
    %248 = vector.shape_cast %247 : vector<1x16x8xf32> to vector<16x8xf32>
    %cst_199 = arith.constant dense<0.000000e+00> : vector<16x1792xf32>
    %249 = tpu.matmul %248, %246, %cst_199 {dimension_numbers = #tpu.dot_dimension_numbers<[1], [0], [0], [1], [0, 0, 1, 1], [], []>} : vector<16x8xf32>, vector<8x1792xf32>, vector<16x1792xf32> -> vector<16x1792xf32>
    %250 = arith.addf %245, %249 : vector<16x1792xf32>
    %251 = vector.extract_strided_slice %134 {offsets = [0, 262], sizes = [8, 1792], strides = [1, 1]} : vector<8x2176xf32> to vector<8x1792xf32>
    %c23_200 = arith.constant 23 : index
    %c0_201 = arith.constant 0 : index
    %c0_202 = arith.constant 0 : index
    %252 = vector.load %arg3[%c23_200, %c0_201, %c0_202] : memref<25x16x8xf32, #tpu.memory_space<vmem>>, vector<1x16x8xf32>
    %253 = vector.shape_cast %252 : vector<1x16x8xf32> to vector<16x8xf32>
    %cst_203 = arith.constant dense<0.000000e+00> : vector<16x1792xf32>
    %254 = tpu.matmul %253, %251, %cst_203 {dimension_numbers = #tpu.dot_dimension_numbers<[1], [0], [0], [1], [0, 0, 1, 1], [], []>} : vector<16x8xf32>, vector<8x1792xf32>, vector<16x1792xf32> -> vector<16x1792xf32>
    %255 = arith.addf %250, %254 : vector<16x1792xf32>
    %256 = vector.extract_strided_slice %134 {offsets = [0, 264], sizes = [8, 1792], strides = [1, 1]} : vector<8x2176xf32> to vector<8x1792xf32>
    %c24_204 = arith.constant 24 : index
    %c0_205 = arith.constant 0 : index
    %c0_206 = arith.constant 0 : index
    %257 = vector.load %arg3[%c24_204, %c0_205, %c0_206] : memref<25x16x8xf32, #tpu.memory_space<vmem>>, vector<1x16x8xf32>
    %258 = vector.shape_cast %257 : vector<1x16x8xf32> to vector<16x8xf32>
    %cst_207 = arith.constant dense<0.000000e+00> : vector<16x1792xf32>
    %259 = tpu.matmul %258, %256, %cst_207 {dimension_numbers = #tpu.dot_dimension_numbers<[1], [0], [0], [1], [0, 0, 1, 1], [], []>} : vector<16x8xf32>, vector<8x1792xf32>, vector<16x1792xf32> -> vector<16x1792xf32>
    %260 = arith.addf %255, %259 : vector<16x1792xf32>
    %c0_208 = arith.constant 0 : index
    %c0_209 = arith.constant 0 : index
    %261 = vector.load %arg4[%c0_208, %c0_209] : memref<16x1xf32, #tpu.memory_space<vmem>>, vector<16x1xf32>
    %262 = vector.broadcast %261 : vector<16x1xf32> to vector<16x1792xf32>
    %263 = arith.addf %260, %262 : vector<16x1792xf32>
    %264 = vector.extract_strided_slice %263 {offsets = [0, 0], sizes = [16, 1790], strides = [1, 1]} : vector<16x1792xf32> to vector<16x1790xf32>
    %265 = vector.extract_strided_slice %263 {offsets = [0, 2], sizes = [16, 1790], strides = [1, 1]} : vector<16x1792xf32> to vector<16x1790xf32>
    %266 = arith.maximumf %264, %265 : vector<16x1790xf32>
    %267 = vector.extract_strided_slice %266 {offsets = [0, 0], sizes = [16, 1662], strides = [1, 1]} : vector<16x1790xf32> to vector<16x1662xf32>
    %268 = vector.extract_strided_slice %266 {offsets = [0, 128], sizes = [16, 1662], strides = [1, 1]} : vector<16x1790xf32> to vector<16x1662xf32>
    %269 = arith.maximumf %267, %268 : vector<16x1662xf32>
    %270 = tpu.iota {dimensions = array<i32: 1>} : vector<16x1152xi32>
    %c1023_i32 = arith.constant 1023 : i32
    %271 = vector.broadcast %c1023_i32 : i32 to vector<16x1152xi32>
    %272 = arith.andi %270, %271 : vector<16x1152xi32>
    %273 = vector.extract_strided_slice %269 {offsets = [0, 0], sizes = [16, 1152], strides = [1, 1]} : vector<16x1662xf32> to vector<16x1152xf32>
    %274 = vector.extract_strided_slice %269 {offsets = [0, 108], sizes = [16, 1152], strides = [1, 1]} : vector<16x1662xf32> to vector<16x1152xf32>
    %c20_i32 = arith.constant 20 : i32
    %275 = vector.broadcast %c20_i32 : i32 to vector<16x1152xi32>
    %276 = arith.cmpi sge, %272, %275 : vector<16x1152xi32>
    %c40_i32 = arith.constant 40 : i32
    %277 = vector.broadcast %c40_i32 : i32 to vector<16x1152xi32>
    %278 = arith.cmpi slt, %272, %277 : vector<16x1152xi32>
    %279 = arith.andi %276, %278 : vector<16x1152xi1>
    %280 = arith.select %279, %274, %273 : vector<16x1152xi1>, vector<16x1152xf32>
    %281 = vector.extract_strided_slice %269 {offsets = [0, 216], sizes = [16, 1152], strides = [1, 1]} : vector<16x1662xf32> to vector<16x1152xf32>
    %c40_i32_210 = arith.constant 40 : i32
    %282 = vector.broadcast %c40_i32_210 : i32 to vector<16x1152xi32>
    %283 = arith.cmpi sge, %272, %282 : vector<16x1152xi32>
    %c60_i32 = arith.constant 60 : i32
    %284 = vector.broadcast %c60_i32 : i32 to vector<16x1152xi32>
    %285 = arith.cmpi slt, %272, %284 : vector<16x1152xi32>
    %286 = arith.andi %283, %285 : vector<16x1152xi1>
    %287 = arith.select %286, %281, %280 : vector<16x1152xi1>, vector<16x1152xf32>
    %288 = vector.extract_strided_slice %269 {offsets = [0, 324], sizes = [16, 1152], strides = [1, 1]} : vector<16x1662xf32> to vector<16x1152xf32>
    %c60_i32_211 = arith.constant 60 : i32
    %289 = vector.broadcast %c60_i32_211 : i32 to vector<16x1152xi32>
    %290 = arith.cmpi sge, %272, %289 : vector<16x1152xi32>
    %c80_i32 = arith.constant 80 : i32
    %291 = vector.broadcast %c80_i32 : i32 to vector<16x1152xi32>
    %292 = arith.cmpi slt, %272, %291 : vector<16x1152xi32>
    %293 = arith.andi %290, %292 : vector<16x1152xi1>
    %294 = arith.select %293, %288, %287 : vector<16x1152xi1>, vector<16x1152xf32>
    %295 = vector.extract_strided_slice %269 {offsets = [0, 432], sizes = [16, 1152], strides = [1, 1]} : vector<16x1662xf32> to vector<16x1152xf32>
    %c80_i32_212 = arith.constant 80 : i32
    %296 = vector.broadcast %c80_i32_212 : i32 to vector<16x1152xi32>
    %297 = arith.cmpi sge, %272, %296 : vector<16x1152xi32>
    %c100_i32 = arith.constant 100 : i32
    %298 = vector.broadcast %c100_i32 : i32 to vector<16x1152xi32>
    %299 = arith.cmpi slt, %272, %298 : vector<16x1152xi32>
    %300 = arith.andi %297, %299 : vector<16x1152xi1>
    %301 = arith.select %300, %295, %294 : vector<16x1152xi1>, vector<16x1152xf32>
    %cst_213 = arith.constant 0.000000e+00 : f32
    %302 = vector.broadcast %cst_213 : f32 to vector<2x128xf32>
    %303 = vector.extract_strided_slice %301 {offsets = [0, 0], sizes = [1, 128], strides = [1, 1]} : vector<16x1152xf32> to vector<1x128xf32>
    %304 = vector.extract_strided_slice %301 {offsets = [0, 1024], sizes = [1, 128], strides = [1, 1]} : vector<16x1152xf32> to vector<1x128xf32>
    %305 = tpu.concatenate %303, %304 in 0 : vector<1x128xf32>, vector<1x128xf32> -> vector<2x128xf32>
    %c0_214 = arith.constant 0 : index
    %c0_215 = arith.constant 0 : index
    %c0_216 = arith.constant 0 : index
    %306 = vector.load %arg5[%c0_214, %c0_215, %c0_216] : memref<16x128x128xf32, #tpu.memory_space<vmem>>, vector<1x128x128xf32>
    %307 = vector.shape_cast %306 : vector<1x128x128xf32> to vector<128x128xf32>
    %cst_217 = arith.constant dense<0.000000e+00> : vector<2x128xf32>
    %308 = tpu.matmul %305, %307, %cst_217 {dimension_numbers = #tpu.dot_dimension_numbers<[1], [0], [0], [1], [0, 0, 1, 1], [], []>} : vector<2x128xf32>, vector<128x128xf32>, vector<2x128xf32> -> vector<2x128xf32>
    %309 = arith.addf %302, %308 : vector<2x128xf32>
    %310 = vector.extract_strided_slice %301 {offsets = [1, 0], sizes = [1, 128], strides = [1, 1]} : vector<16x1152xf32> to vector<1x128xf32>
    %311 = vector.extract_strided_slice %301 {offsets = [1, 1024], sizes = [1, 128], strides = [1, 1]} : vector<16x1152xf32> to vector<1x128xf32>
    %312 = tpu.concatenate %310, %311 in 0 : vector<1x128xf32>, vector<1x128xf32> -> vector<2x128xf32>
    %c1_218 = arith.constant 1 : index
    %c0_219 = arith.constant 0 : index
    %c0_220 = arith.constant 0 : index
    %313 = vector.load %arg5[%c1_218, %c0_219, %c0_220] : memref<16x128x128xf32, #tpu.memory_space<vmem>>, vector<1x128x128xf32>
    %314 = vector.shape_cast %313 : vector<1x128x128xf32> to vector<128x128xf32>
    %cst_221 = arith.constant dense<0.000000e+00> : vector<2x128xf32>
    %315 = tpu.matmul %312, %314, %cst_221 {dimension_numbers = #tpu.dot_dimension_numbers<[1], [0], [0], [1], [0, 0, 1, 1], [], []>} : vector<2x128xf32>, vector<128x128xf32>, vector<2x128xf32> -> vector<2x128xf32>
    %316 = arith.addf %309, %315 : vector<2x128xf32>
    %317 = vector.extract_strided_slice %301 {offsets = [2, 0], sizes = [1, 128], strides = [1, 1]} : vector<16x1152xf32> to vector<1x128xf32>
    %318 = vector.extract_strided_slice %301 {offsets = [2, 1024], sizes = [1, 128], strides = [1, 1]} : vector<16x1152xf32> to vector<1x128xf32>
    %319 = tpu.concatenate %317, %318 in 0 : vector<1x128xf32>, vector<1x128xf32> -> vector<2x128xf32>
    %c2_222 = arith.constant 2 : index
    %c0_223 = arith.constant 0 : index
    %c0_224 = arith.constant 0 : index
    %320 = vector.load %arg5[%c2_222, %c0_223, %c0_224] : memref<16x128x128xf32, #tpu.memory_space<vmem>>, vector<1x128x128xf32>
    %321 = vector.shape_cast %320 : vector<1x128x128xf32> to vector<128x128xf32>
    %cst_225 = arith.constant dense<0.000000e+00> : vector<2x128xf32>
    %322 = tpu.matmul %319, %321, %cst_225 {dimension_numbers = #tpu.dot_dimension_numbers<[1], [0], [0], [1], [0, 0, 1, 1], [], []>} : vector<2x128xf32>, vector<128x128xf32>, vector<2x128xf32> -> vector<2x128xf32>
    %323 = arith.addf %316, %322 : vector<2x128xf32>
    %324 = vector.extract_strided_slice %301 {offsets = [3, 0], sizes = [1, 128], strides = [1, 1]} : vector<16x1152xf32> to vector<1x128xf32>
    %325 = vector.extract_strided_slice %301 {offsets = [3, 1024], sizes = [1, 128], strides = [1, 1]} : vector<16x1152xf32> to vector<1x128xf32>
    %326 = tpu.concatenate %324, %325 in 0 : vector<1x128xf32>, vector<1x128xf32> -> vector<2x128xf32>
    %c3_226 = arith.constant 3 : index
    %c0_227 = arith.constant 0 : index
    %c0_228 = arith.constant 0 : index
    %327 = vector.load %arg5[%c3_226, %c0_227, %c0_228] : memref<16x128x128xf32, #tpu.memory_space<vmem>>, vector<1x128x128xf32>
    %328 = vector.shape_cast %327 : vector<1x128x128xf32> to vector<128x128xf32>
    %cst_229 = arith.constant dense<0.000000e+00> : vector<2x128xf32>
    %329 = tpu.matmul %326, %328, %cst_229 {dimension_numbers = #tpu.dot_dimension_numbers<[1], [0], [0], [1], [0, 0, 1, 1], [], []>} : vector<2x128xf32>, vector<128x128xf32>, vector<2x128xf32> -> vector<2x128xf32>
    %330 = arith.addf %323, %329 : vector<2x128xf32>
    %331 = vector.extract_strided_slice %301 {offsets = [4, 0], sizes = [1, 128], strides = [1, 1]} : vector<16x1152xf32> to vector<1x128xf32>
    %332 = vector.extract_strided_slice %301 {offsets = [4, 1024], sizes = [1, 128], strides = [1, 1]} : vector<16x1152xf32> to vector<1x128xf32>
    %333 = tpu.concatenate %331, %332 in 0 : vector<1x128xf32>, vector<1x128xf32> -> vector<2x128xf32>
    %c4_230 = arith.constant 4 : index
    %c0_231 = arith.constant 0 : index
    %c0_232 = arith.constant 0 : index
    %334 = vector.load %arg5[%c4_230, %c0_231, %c0_232] : memref<16x128x128xf32, #tpu.memory_space<vmem>>, vector<1x128x128xf32>
    %335 = vector.shape_cast %334 : vector<1x128x128xf32> to vector<128x128xf32>
    %cst_233 = arith.constant dense<0.000000e+00> : vector<2x128xf32>
    %336 = tpu.matmul %333, %335, %cst_233 {dimension_numbers = #tpu.dot_dimension_numbers<[1], [0], [0], [1], [0, 0, 1, 1], [], []>} : vector<2x128xf32>, vector<128x128xf32>, vector<2x128xf32> -> vector<2x128xf32>
    %337 = arith.addf %330, %336 : vector<2x128xf32>
    %338 = vector.extract_strided_slice %301 {offsets = [5, 0], sizes = [1, 128], strides = [1, 1]} : vector<16x1152xf32> to vector<1x128xf32>
    %339 = vector.extract_strided_slice %301 {offsets = [5, 1024], sizes = [1, 128], strides = [1, 1]} : vector<16x1152xf32> to vector<1x128xf32>
    %340 = tpu.concatenate %338, %339 in 0 : vector<1x128xf32>, vector<1x128xf32> -> vector<2x128xf32>
    %c5_234 = arith.constant 5 : index
    %c0_235 = arith.constant 0 : index
    %c0_236 = arith.constant 0 : index
    %341 = vector.load %arg5[%c5_234, %c0_235, %c0_236] : memref<16x128x128xf32, #tpu.memory_space<vmem>>, vector<1x128x128xf32>
    %342 = vector.shape_cast %341 : vector<1x128x128xf32> to vector<128x128xf32>
    %cst_237 = arith.constant dense<0.000000e+00> : vector<2x128xf32>
    %343 = tpu.matmul %340, %342, %cst_237 {dimension_numbers = #tpu.dot_dimension_numbers<[1], [0], [0], [1], [0, 0, 1, 1], [], []>} : vector<2x128xf32>, vector<128x128xf32>, vector<2x128xf32> -> vector<2x128xf32>
    %344 = arith.addf %337, %343 : vector<2x128xf32>
    %345 = vector.extract_strided_slice %301 {offsets = [6, 0], sizes = [1, 128], strides = [1, 1]} : vector<16x1152xf32> to vector<1x128xf32>
    %346 = vector.extract_strided_slice %301 {offsets = [6, 1024], sizes = [1, 128], strides = [1, 1]} : vector<16x1152xf32> to vector<1x128xf32>
    %347 = tpu.concatenate %345, %346 in 0 : vector<1x128xf32>, vector<1x128xf32> -> vector<2x128xf32>
    %c6_238 = arith.constant 6 : index
    %c0_239 = arith.constant 0 : index
    %c0_240 = arith.constant 0 : index
    %348 = vector.load %arg5[%c6_238, %c0_239, %c0_240] : memref<16x128x128xf32, #tpu.memory_space<vmem>>, vector<1x128x128xf32>
    %349 = vector.shape_cast %348 : vector<1x128x128xf32> to vector<128x128xf32>
    %cst_241 = arith.constant dense<0.000000e+00> : vector<2x128xf32>
    %350 = tpu.matmul %347, %349, %cst_241 {dimension_numbers = #tpu.dot_dimension_numbers<[1], [0], [0], [1], [0, 0, 1, 1], [], []>} : vector<2x128xf32>, vector<128x128xf32>, vector<2x128xf32> -> vector<2x128xf32>
    %351 = arith.addf %344, %350 : vector<2x128xf32>
    %352 = vector.extract_strided_slice %301 {offsets = [7, 0], sizes = [1, 128], strides = [1, 1]} : vector<16x1152xf32> to vector<1x128xf32>
    %353 = vector.extract_strided_slice %301 {offsets = [7, 1024], sizes = [1, 128], strides = [1, 1]} : vector<16x1152xf32> to vector<1x128xf32>
    %354 = tpu.concatenate %352, %353 in 0 : vector<1x128xf32>, vector<1x128xf32> -> vector<2x128xf32>
    %c7_242 = arith.constant 7 : index
    %c0_243 = arith.constant 0 : index
    %c0_244 = arith.constant 0 : index
    %355 = vector.load %arg5[%c7_242, %c0_243, %c0_244] : memref<16x128x128xf32, #tpu.memory_space<vmem>>, vector<1x128x128xf32>
    %356 = vector.shape_cast %355 : vector<1x128x128xf32> to vector<128x128xf32>
    %cst_245 = arith.constant dense<0.000000e+00> : vector<2x128xf32>
    %357 = tpu.matmul %354, %356, %cst_245 {dimension_numbers = #tpu.dot_dimension_numbers<[1], [0], [0], [1], [0, 0, 1, 1], [], []>} : vector<2x128xf32>, vector<128x128xf32>, vector<2x128xf32> -> vector<2x128xf32>
    %358 = arith.addf %351, %357 : vector<2x128xf32>
    %359 = vector.extract_strided_slice %301 {offsets = [8, 0], sizes = [1, 128], strides = [1, 1]} : vector<16x1152xf32> to vector<1x128xf32>
    %360 = vector.extract_strided_slice %301 {offsets = [8, 1024], sizes = [1, 128], strides = [1, 1]} : vector<16x1152xf32> to vector<1x128xf32>
    %361 = tpu.concatenate %359, %360 in 0 : vector<1x128xf32>, vector<1x128xf32> -> vector<2x128xf32>
    %c8_246 = arith.constant 8 : index
    %c0_247 = arith.constant 0 : index
    %c0_248 = arith.constant 0 : index
    %362 = vector.load %arg5[%c8_246, %c0_247, %c0_248] : memref<16x128x128xf32, #tpu.memory_space<vmem>>, vector<1x128x128xf32>
    %363 = vector.shape_cast %362 : vector<1x128x128xf32> to vector<128x128xf32>
    %cst_249 = arith.constant dense<0.000000e+00> : vector<2x128xf32>
    %364 = tpu.matmul %361, %363, %cst_249 {dimension_numbers = #tpu.dot_dimension_numbers<[1], [0], [0], [1], [0, 0, 1, 1], [], []>} : vector<2x128xf32>, vector<128x128xf32>, vector<2x128xf32> -> vector<2x128xf32>
    %365 = arith.addf %358, %364 : vector<2x128xf32>
    %366 = vector.extract_strided_slice %301 {offsets = [9, 0], sizes = [1, 128], strides = [1, 1]} : vector<16x1152xf32> to vector<1x128xf32>
    %367 = vector.extract_strided_slice %301 {offsets = [9, 1024], sizes = [1, 128], strides = [1, 1]} : vector<16x1152xf32> to vector<1x128xf32>
    %368 = tpu.concatenate %366, %367 in 0 : vector<1x128xf32>, vector<1x128xf32> -> vector<2x128xf32>
    %c9_250 = arith.constant 9 : index
    %c0_251 = arith.constant 0 : index
    %c0_252 = arith.constant 0 : index
    %369 = vector.load %arg5[%c9_250, %c0_251, %c0_252] : memref<16x128x128xf32, #tpu.memory_space<vmem>>, vector<1x128x128xf32>
    %370 = vector.shape_cast %369 : vector<1x128x128xf32> to vector<128x128xf32>
    %cst_253 = arith.constant dense<0.000000e+00> : vector<2x128xf32>
    %371 = tpu.matmul %368, %370, %cst_253 {dimension_numbers = #tpu.dot_dimension_numbers<[1], [0], [0], [1], [0, 0, 1, 1], [], []>} : vector<2x128xf32>, vector<128x128xf32>, vector<2x128xf32> -> vector<2x128xf32>
    %372 = arith.addf %365, %371 : vector<2x128xf32>
    %373 = vector.extract_strided_slice %301 {offsets = [10, 0], sizes = [1, 128], strides = [1, 1]} : vector<16x1152xf32> to vector<1x128xf32>
    %374 = vector.extract_strided_slice %301 {offsets = [10, 1024], sizes = [1, 128], strides = [1, 1]} : vector<16x1152xf32> to vector<1x128xf32>
    %375 = tpu.concatenate %373, %374 in 0 : vector<1x128xf32>, vector<1x128xf32> -> vector<2x128xf32>
    %c10_254 = arith.constant 10 : index
    %c0_255 = arith.constant 0 : index
    %c0_256 = arith.constant 0 : index
    %376 = vector.load %arg5[%c10_254, %c0_255, %c0_256] : memref<16x128x128xf32, #tpu.memory_space<vmem>>, vector<1x128x128xf32>
    %377 = vector.shape_cast %376 : vector<1x128x128xf32> to vector<128x128xf32>
    %cst_257 = arith.constant dense<0.000000e+00> : vector<2x128xf32>
    %378 = tpu.matmul %375, %377, %cst_257 {dimension_numbers = #tpu.dot_dimension_numbers<[1], [0], [0], [1], [0, 0, 1, 1], [], []>} : vector<2x128xf32>, vector<128x128xf32>, vector<2x128xf32> -> vector<2x128xf32>
    %379 = arith.addf %372, %378 : vector<2x128xf32>
    %380 = vector.extract_strided_slice %301 {offsets = [11, 0], sizes = [1, 128], strides = [1, 1]} : vector<16x1152xf32> to vector<1x128xf32>
    %381 = vector.extract_strided_slice %301 {offsets = [11, 1024], sizes = [1, 128], strides = [1, 1]} : vector<16x1152xf32> to vector<1x128xf32>
    %382 = tpu.concatenate %380, %381 in 0 : vector<1x128xf32>, vector<1x128xf32> -> vector<2x128xf32>
    %c11_258 = arith.constant 11 : index
    %c0_259 = arith.constant 0 : index
    %c0_260 = arith.constant 0 : index
    %383 = vector.load %arg5[%c11_258, %c0_259, %c0_260] : memref<16x128x128xf32, #tpu.memory_space<vmem>>, vector<1x128x128xf32>
    %384 = vector.shape_cast %383 : vector<1x128x128xf32> to vector<128x128xf32>
    %cst_261 = arith.constant dense<0.000000e+00> : vector<2x128xf32>
    %385 = tpu.matmul %382, %384, %cst_261 {dimension_numbers = #tpu.dot_dimension_numbers<[1], [0], [0], [1], [0, 0, 1, 1], [], []>} : vector<2x128xf32>, vector<128x128xf32>, vector<2x128xf32> -> vector<2x128xf32>
    %386 = arith.addf %379, %385 : vector<2x128xf32>
    %387 = vector.extract_strided_slice %301 {offsets = [12, 0], sizes = [1, 128], strides = [1, 1]} : vector<16x1152xf32> to vector<1x128xf32>
    %388 = vector.extract_strided_slice %301 {offsets = [12, 1024], sizes = [1, 128], strides = [1, 1]} : vector<16x1152xf32> to vector<1x128xf32>
    %389 = tpu.concatenate %387, %388 in 0 : vector<1x128xf32>, vector<1x128xf32> -> vector<2x128xf32>
    %c12_262 = arith.constant 12 : index
    %c0_263 = arith.constant 0 : index
    %c0_264 = arith.constant 0 : index
    %390 = vector.load %arg5[%c12_262, %c0_263, %c0_264] : memref<16x128x128xf32, #tpu.memory_space<vmem>>, vector<1x128x128xf32>
    %391 = vector.shape_cast %390 : vector<1x128x128xf32> to vector<128x128xf32>
    %cst_265 = arith.constant dense<0.000000e+00> : vector<2x128xf32>
    %392 = tpu.matmul %389, %391, %cst_265 {dimension_numbers = #tpu.dot_dimension_numbers<[1], [0], [0], [1], [0, 0, 1, 1], [], []>} : vector<2x128xf32>, vector<128x128xf32>, vector<2x128xf32> -> vector<2x128xf32>
    %393 = arith.addf %386, %392 : vector<2x128xf32>
    %394 = vector.extract_strided_slice %301 {offsets = [13, 0], sizes = [1, 128], strides = [1, 1]} : vector<16x1152xf32> to vector<1x128xf32>
    %395 = vector.extract_strided_slice %301 {offsets = [13, 1024], sizes = [1, 128], strides = [1, 1]} : vector<16x1152xf32> to vector<1x128xf32>
    %396 = tpu.concatenate %394, %395 in 0 : vector<1x128xf32>, vector<1x128xf32> -> vector<2x128xf32>
    %c13_266 = arith.constant 13 : index
    %c0_267 = arith.constant 0 : index
    %c0_268 = arith.constant 0 : index
    %397 = vector.load %arg5[%c13_266, %c0_267, %c0_268] : memref<16x128x128xf32, #tpu.memory_space<vmem>>, vector<1x128x128xf32>
    %398 = vector.shape_cast %397 : vector<1x128x128xf32> to vector<128x128xf32>
    %cst_269 = arith.constant dense<0.000000e+00> : vector<2x128xf32>
    %399 = tpu.matmul %396, %398, %cst_269 {dimension_numbers = #tpu.dot_dimension_numbers<[1], [0], [0], [1], [0, 0, 1, 1], [], []>} : vector<2x128xf32>, vector<128x128xf32>, vector<2x128xf32> -> vector<2x128xf32>
    %400 = arith.addf %393, %399 : vector<2x128xf32>
    %401 = vector.extract_strided_slice %301 {offsets = [14, 0], sizes = [1, 128], strides = [1, 1]} : vector<16x1152xf32> to vector<1x128xf32>
    %402 = vector.extract_strided_slice %301 {offsets = [14, 1024], sizes = [1, 128], strides = [1, 1]} : vector<16x1152xf32> to vector<1x128xf32>
    %403 = tpu.concatenate %401, %402 in 0 : vector<1x128xf32>, vector<1x128xf32> -> vector<2x128xf32>
    %c14_270 = arith.constant 14 : index
    %c0_271 = arith.constant 0 : index
    %c0_272 = arith.constant 0 : index
    %404 = vector.load %arg5[%c14_270, %c0_271, %c0_272] : memref<16x128x128xf32, #tpu.memory_space<vmem>>, vector<1x128x128xf32>
    %405 = vector.shape_cast %404 : vector<1x128x128xf32> to vector<128x128xf32>
    %cst_273 = arith.constant dense<0.000000e+00> : vector<2x128xf32>
    %406 = tpu.matmul %403, %405, %cst_273 {dimension_numbers = #tpu.dot_dimension_numbers<[1], [0], [0], [1], [0, 0, 1, 1], [], []>} : vector<2x128xf32>, vector<128x128xf32>, vector<2x128xf32> -> vector<2x128xf32>
    %407 = arith.addf %400, %406 : vector<2x128xf32>
    %408 = vector.extract_strided_slice %301 {offsets = [15, 0], sizes = [1, 128], strides = [1, 1]} : vector<16x1152xf32> to vector<1x128xf32>
    %409 = vector.extract_strided_slice %301 {offsets = [15, 1024], sizes = [1, 128], strides = [1, 1]} : vector<16x1152xf32> to vector<1x128xf32>
    %410 = tpu.concatenate %408, %409 in 0 : vector<1x128xf32>, vector<1x128xf32> -> vector<2x128xf32>
    %c15_274 = arith.constant 15 : index
    %c0_275 = arith.constant 0 : index
    %c0_276 = arith.constant 0 : index
    %411 = vector.load %arg5[%c15_274, %c0_275, %c0_276] : memref<16x128x128xf32, #tpu.memory_space<vmem>>, vector<1x128x128xf32>
    %412 = vector.shape_cast %411 : vector<1x128x128xf32> to vector<128x128xf32>
    %cst_277 = arith.constant dense<0.000000e+00> : vector<2x128xf32>
    %413 = tpu.matmul %410, %412, %cst_277 {dimension_numbers = #tpu.dot_dimension_numbers<[1], [0], [0], [1], [0, 0, 1, 1], [], []>} : vector<2x128xf32>, vector<128x128xf32>, vector<2x128xf32> -> vector<2x128xf32>
    %414 = arith.addf %407, %413 : vector<2x128xf32>
    %c0_278 = arith.constant 0 : index
    %c0_279 = arith.constant 0 : index
    %415 = vector.load %arg6[%c0_278, %c0_279] : memref<1x128xf32, #tpu.memory_space<vmem>>, vector<1x128xf32>
    %416 = vector.broadcast %415 : vector<1x128xf32> to vector<2x128xf32>
    %417 = arith.addf %414, %416 : vector<2x128xf32>
    %c0_280 = arith.constant 0 : index
    %c0_281 = arith.constant 0 : index
    %418 = vector.load %arg7[%c0_280, %c0_281] : memref<128x128xf32, #tpu.memory_space<vmem>>, vector<128x128xf32>
    %cst_282 = arith.constant dense<0.000000e+00> : vector<2x128xf32>
    %419 = tpu.matmul %417, %418, %cst_282 {dimension_numbers = #tpu.dot_dimension_numbers<[1], [0], [0], [1], [0, 0, 1, 1], [], []>} : vector<2x128xf32>, vector<128x128xf32>, vector<2x128xf32> -> vector<2x128xf32>
    %c0_283 = arith.constant 0 : index
    %c0_284 = arith.constant 0 : index
    %420 = vector.load %arg8[%c0_283, %c0_284] : memref<1x128xf32, #tpu.memory_space<vmem>>, vector<1x128xf32>
    %421 = vector.broadcast %420 : vector<1x128xf32> to vector<2x128xf32>
    %422 = arith.addf %419, %421 : vector<2x128xf32>
    %c0_285 = arith.constant 0 : index
    %c0_286 = arith.constant 0 : index
    %423 = vector.load %arg9[%c0_285, %c0_286] : memref<128x128xf32, #tpu.memory_space<vmem>>, vector<128x128xf32>
    %cst_287 = arith.constant dense<0.000000e+00> : vector<2x128xf32>
    %424 = tpu.matmul %422, %423, %cst_287 {dimension_numbers = #tpu.dot_dimension_numbers<[1], [0], [0], [1], [0, 0, 1, 1], [], []>} : vector<2x128xf32>, vector<128x128xf32>, vector<2x128xf32> -> vector<2x128xf32>
    %c0_288 = arith.constant 0 : index
    %c0_289 = arith.constant 0 : index
    %425 = vector.load %arg10[%c0_288, %c0_289] : memref<1x128xf32, #tpu.memory_space<vmem>>, vector<1x128xf32>
    %426 = vector.broadcast %425 : vector<1x128xf32> to vector<2x128xf32>
    %427 = arith.addf %424, %426 : vector<2x128xf32>
    %c0_290 = arith.constant 0 : index
    %c0_291 = arith.constant 0 : index
    %428 = vector.load %arg11[%c0_290, %c0_291] : memref<2x128xf32, #tpu.memory_space<vmem>>, vector<2x128xf32>
    tpu.vector_store %arg11[%c0_290, %c0_291], %427 {strides = array<i32>} : memref<2x128xf32, #tpu.memory_space<vmem>>, vector<2x128xf32>,
    return
  }
}

</mosaic_0001>

<bundles_post_ra>
// kernel: lenet5_forward.1
= control target key start
LH: loop header
LB: loop body
LE: loop exit
PB: predicated region body
PF: predicated region fallthrough
CT: control target
= control target key end

     0   :  { %s39026_s21 = smov 127   ;;  %v46747_v4 = vmov 0.0   ;;  %s46735_s0 = inlined_call_operand.vmem [shape: f32[8,2560], index: 0, kind: input, shape index: {}]   ;;  %s46736_s1 = inlined_call_operand.vmem [shape: f32[25,8,8], index: 1, kind: input, shape index: {}]   ;;  %s46737_s2 = inlined_call_operand.vmem [shape: f32[8,1], index: 2, kind: input, shape index: {}]   ;;  %s46738_s3 = inlined_call_operand.vmem [shape: f32[25,16,8], index: 3, kind: input, shape index: {}]   ;;  %s46739_s4 = inlined_call_operand.vmem [shape: f32[16,1], index: 4, kind: input, shape index: {}]   ;;  %s46740_s5 = inlined_call_operand.vmem [shape: f32[16,128,128], index: 5, kind: input, shape index: {}]   ;;  %s46741_s6 = inlined_call_operand.vmem [shape: f32[1,128], index: 6, kind: input, shape index: {}]   ;;  %s46742_s7 = inlined_call_operand.vmem [shape: f32[128,128], index: 7, kind: input, shape index: {}]   ;;  %s46743_s8 = inlined_call_operand.vmem [shape: f32[1,128], index: 8, kind: input, shape index: {}]   ;;  %s46744_s9 = inlined_call_operand.vmem [shape: f32[128,128], index: 9, kind: input, shape index: {}]   ;;  %s46745_s10 = inlined_call_operand.vmem [shape: f32[1,128], index: 10, kind: input, shape index: {}]   ;;  %s46746_s11 = inlined_call_operand.hbm [shape: f32[2,128], index: 11, kind: output, shape index: {}]  }
   0x1   :  { %v39120_v0 = vld [vmem:[%s46735_s0 + $0x8] sm:$0xff]  ;;  %v39125_v1 = vld [vmem:[%s46735_s0] sm:$0xff]  ;;  %v39134_v2 = vld [vmem:[%s46735_s0 + $0x10] sm:$0xff]  ;;  %223 = vmatprep.mubr.f32.mxu0 %v46747_v4  ;;  %436 = vmatprep.mubr.f32.mxu1 %v46747_v4 }
   0x2   :  { %82 = vrot.lane.b32.xlu0 %v39120_v0, %s39026_s21  ;;  %80 = vrot.lane.b32.xlu1 %v39125_v1, %s39026_s21  ;;  %v39139_v3 = vld [vmem:[%s46735_s0 + $0x18] sm:$0xff]  ;;  %v39150_v5 = vld [vmem:[%s46735_s0 + $0x20] sm:$0xff] }
   0x3   :  { %v39155_v6 = vld [vmem:[%s46735_s0 + $0x28] sm:$0xff] }
   0x6   :  { %84 = vrot.lane.b32.xlu0 %v39134_v2, %s39026_s21  ;;  %86 = vrot.lane.b32.xlu1 %v39139_v3, %s39026_s21 }
   0x7   :  { %16 = vsyncpa [#allocation3], 0  ;;  %v39164_v7 = vld [vmem:[%s46735_s0 + $0x30] sm:$0xff]  ;;  %v39169_v8 = vld [vmem:[%s46735_s0 + $0x48] sm:$0xff]  ;;  %s39028_s13 = smov 126   ;;  %s39029_s14 = smov 125  }
   0x8   :  { %v39178_v9 = vld [vmem:[%s46735_s0 + $0x50] sm:$0xff]  ;;  %v39183_v10 = vld [vmem:[%s46735_s0 + $0x40] sm:$0xff]  ;;  %v39192_v11 = vld [vmem:[%s46735_s0 + $0x68] sm:$0xff]  ;;  %s39030_s15 = smov 124   ;;  %vm118_vm0 = vcmask 1039360   ;;  %vm155_vm1 = vcmask 64512  }
   0x9   :  { %v39197_v12 = vld [vmem:[%s46735_s0 + $0x70] sm:$0xff]  ;;  %v39206_v13 = vld [vmem:[%s46735_s0 + $0x60] sm:$0xff]  ;;  %v39211_v14 = vld [vmem:[%s46735_s0 + $0x88] sm:$0xff]  ;;  %s39031_s18 = smov 96   ;;  %s39032_s28 = smov 95   ;;  %vm46880_vm2 = vcmask 1031168  }
   0xa   :  { %88 = vrot.lane.b32.xlu0 %v39150_v5, %s39026_s21  ;;  %90 = vrot.lane.b32.xlu1 %v39155_v6, %s39026_s21  ;;  %v39220_v15 = vld [vmem:[%s46735_s0 + $0x90] sm:$0xff]  ;;  %v39225_v16 = vld [vmem:[%s46735_s0 + $0x80] sm:$0xff]  ;;  %vm2217_vm3 = vcmask 1022976   ;;  %s39033_s17 = smov 94   ;;  %vm2954_vm4 = vcmask 1014784   ;;  %s39034_s22 = smov 93  }
   0xb   :  { %v39323_v22 = vld [vmem:[%s46736_s1 + $0x8] sm:$0xff]  ;;  %v39342_v28 = vld [vmem:[%s46735_s0 + $0x38] sm:$0xff]  ;;  %v39422_v51 = vld [vmem:[%s46736_s1] sm:$0xff]  ;;  %vm3691_vm5 = vcmask 785408   ;;  %vm4428_vm6 = vcmask 777216   ;;  %s39035_s25 = smov 92  }
   0xc   :  { %v39374_v37 = vld [vmem:[%s46735_s0 + $0x58] sm:$0xff]  ;;  %vm5165_vm7 = vcmask 769024   ;;  %s39036_s12 = smov 64   ;;  %vm5902_vm8 = vcmask 760832   ;;  %s39037_s30 = smov 63   ;;  %vm6639_vm9 = vcmask 752640  }
   0xd   :  { %v39400_v44 = vld [vmem:[%s46735_s0 + $0x78] sm:$0xff]  ;;  %vm7376_vm10 = vcmask 523264   ;;  %s39039_s23 = smov 61   ;;  %vm8113_vm11 = vcmask 515072   ;;  %s39040_s27 = smov 60   ;;  %vm8850_vm12 = vcmask 506880  }
   0xe   :  { %92 = vrot.lane.b32.xlu0 %v39164_v7, %s39026_s21  ;;  %98 = vrot.lane.b32.xlu1 %v39169_v8, %s39026_s21  ;;  %s39041_s29 = smov 32   ;;  %vm9587_vm13 = vcmask 498688   ;;  %s39042_s26 = smov 31   ;;  %vm46883_vm14 = vcmask 490496   ;;  %vm11061_vm15 = vcmask 261120  }
   0xf   :  { %s39043_s24 = smov 30   ;;  %s39045_s19 = smov 28  }
  0x10   :  { %s39052_s20 = smov 20  }
  0x12   :  { %100 = vrot.lane.b32.xlu0 %v39178_v9, %s39026_s21  ;;  %96 = vrot.lane.b32.xlu1 %v39183_v10, %s39026_s21 }
  0x16   :  { %106 = vrot.lane.b32.xlu0 %v39192_v11, %s39026_s21  ;;  %108 = vrot.lane.b32.xlu1 %v39197_v12, %s39026_s21 }
  0x1a   :  { %104 = vrot.lane.b32.xlu0 %v39206_v13, %s39026_s21  ;;  %114 = vrot.lane.b32.xlu1 %v39211_v14, %s39026_s21 }
  0x1e   :  { %116 = vrot.lane.b32.xlu0 %v39220_v15, %s39026_s21  ;;  %112 = vrot.lane.b32.xlu1 %v39225_v16, %s39026_s21 }
  0x22   :  { %1444 = vrot.lane.b32.xlu0 %v39120_v0, %s39028_s13  ;;  %1446 = vrot.lane.b32.xlu1 %v39134_v2, %s39028_s13 }
  0x26   :  { %1442 = vrot.lane.b32.xlu0 %v39125_v1, %s39028_s13  ;;  %1452 = vrot.lane.b32.xlu1 %v39155_v6, %s39028_s13 }
  0x2a   :  { %1454 = vrot.lane.b32.xlu0 %v39164_v7, %s39028_s13  ;;  %1450 = vrot.lane.b32.xlu1 %v39150_v5, %s39028_s13 }
  0x2e   :  { %1460 = vrot.lane.b32.xlu0 %v39169_v8, %s39028_s13  ;;  %1462 = vrot.lane.b32.xlu1 %v39178_v9, %s39028_s13 }
  0x32   :  { %1458 = vrot.lane.b32.xlu0 %v39183_v10, %s39028_s13  ;;  %1468 = vrot.lane.b32.xlu1 %v39192_v11, %s39028_s13 }
  0x36   :  { %1470 = vrot.lane.b32.xlu0 %v39197_v12, %s39028_s13  ;;  %1466 = vrot.lane.b32.xlu1 %v39206_v13, %s39028_s13 }
  0x3a   :  { %1476 = vrot.lane.b32.xlu0 %v39211_v14, %s39028_s13  ;;  %1478 = vrot.lane.b32.xlu1 %v39220_v15, %s39028_s13 }
  0x3e   :  { %1474 = vrot.lane.b32.xlu0 %v39225_v16, %s39028_s13  ;;  %2181 = vrot.lane.b32.xlu1 %v39120_v0, %s39029_s14 }
  0x42   :  { %2183 = vrot.lane.b32.xlu0 %v39134_v2, %s39029_s14  ;;  %2179 = vrot.lane.b32.xlu1 %v39125_v1, %s39029_s14 }
  0x46   :  { %2189 = vrot.lane.b32.xlu0 %v39155_v6, %s39029_s14  ;;  %2191 = vrot.lane.b32.xlu1 %v39164_v7, %s39029_s14 }
  0x4a   :  { %2187 = vrot.lane.b32.xlu0 %v39150_v5, %s39029_s14  ;;  %2197 = vrot.lane.b32.xlu1 %v39169_v8, %s39029_s14 }
  0x4e   :  { %2199 = vrot.lane.b32.xlu0 %v39178_v9, %s39029_s14  ;;  %2195 = vrot.lane.b32.xlu1 %v39183_v10, %s39029_s14 }
  0x52   :  { %2205 = vrot.lane.b32.xlu0 %v39192_v11, %s39029_s14  ;;  %2207 = vrot.lane.b32.xlu1 %v39197_v12, %s39029_s14 }
  0x56   :  { %2203 = vrot.lane.b32.xlu0 %v39206_v13, %s39029_s14  ;;  %2213 = vrot.lane.b32.xlu1 %v39211_v14, %s39029_s14 }
  0x5a   :  { %2215 = vrot.lane.b32.xlu0 %v39220_v15, %s39029_s14  ;;  %2211 = vrot.lane.b32.xlu1 %v39225_v16, %s39029_s14 }
  0x5e   :  { %2918 = vrot.lane.b32.xlu0 %v39120_v0, %s39030_s15  ;;  %2920 = vrot.lane.b32.xlu1 %v39134_v2, %s39030_s15 }
  0x62   :  { %2916 = vrot.lane.b32.xlu0 %v39125_v1, %s39030_s15  ;;  %2926 = vrot.lane.b32.xlu1 %v39155_v6, %s39030_s15 }
  0x66   :  { %2928 = vrot.lane.b32.xlu0 %v39164_v7, %s39030_s15  ;;  %2924 = vrot.lane.b32.xlu1 %v39150_v5, %s39030_s15 }
  0x6a   :  { %2934 = vrot.lane.b32.xlu0 %v39169_v8, %s39030_s15  ;;  %2936 = vrot.lane.b32.xlu1 %v39178_v9, %s39030_s15 }
  0x6e   :  { %2932 = vrot.lane.b32.xlu0 %v39183_v10, %s39030_s15  ;;  %2942 = vrot.lane.b32.xlu1 %v39192_v11, %s39030_s15 }
  0x72   :  { %2944 = vrot.lane.b32.xlu0 %v39197_v12, %s39030_s15  ;;  %2940 = vrot.lane.b32.xlu1 %v39206_v13, %s39030_s15 }
  0x74   :  { %v83_v17 = vpop.permute.xlu0 %82  ;;  %v81_v18 = vpop.permute.xlu1 %80 }
  0x75   :  { %v119_v23 = vsel %vm118_vm0, %v81_v18, %v83_v17  ;;  %v39487_v18 = vld [vmem:[%s46736_s1 + $0x10] sm:$0xff] }
  0x76   :  { %2950 = vrot.lane.b32.xlu0 %v39211_v14, %s39030_s15  ;;  %2952 = vrot.lane.b32.xlu1 %v39220_v15, %s39030_s15 }
  0x78   :  { %v85_v19 = vpop.permute.xlu0 %84  ;;  %v87_v20 = vpop.permute.xlu1 %86 }
  0x79   :  { %v120_v21 = vsel %vm118_vm0, %v83_v17, %v85_v19  ;;  %v121_v27 = vsel %vm118_vm0, %v85_v19, %v87_v20 }
  0x7a   :  { %159 = vmatprep.subr.mxu0 %v120_v21  ;;  %2948 = vrot.lane.b32.xlu0 %v39225_v16, %s39030_s15 }
  0x7b   :  { %3655 = vrot.lane.b32.xlu1 %v39120_v0, %s39031_s18  ;;  %160 = vmatpush1.msra.mxu0 %v119_v23 }
  0x7c   :  { %v89_v24 = vpop.permute.xlu0 %88  ;;  %v91_v25 = vpop.permute.xlu1 %90  ;;  %35490 = vmatmul.mubr.msk.f32.vlgmr.msra.gmra.mrb[0].mxu0 %vm155_vm1, %v39323_v22 }
  0x7d   :  { %v122_v26 = vsel %vm118_vm0, %v87_v20, %v89_v24  ;;  %294 = vmatprep.mubr.f32.mxu0 %v46747_v4  ;;  %v123_v32 = vsel %vm118_vm0, %v89_v24, %v91_v25 }
  0x7e   :  { %3657 = vrot.lane.b32.xlu0 %v39134_v2, %s39031_s18  ;;  %230 = vmatprep.subr.mxu0 %v122_v26 }
  0x7f   :  { %3653 = vrot.lane.b32.xlu1 %v39125_v1, %s39031_s18  ;;  %231 = vmatpush1.msra.mxu0 %v121_v27 }
  0x80   :  { %v39344_v29 = vpop.permute.xlu0 %92  ;;  %v99_v30 = vpop.permute.xlu1 %98  ;;  %35491 = vmatmul.mubr.msk.f32.vlgmr.msra.gmra.mrb[2].mxu0 %vm155_vm1, %v39323_v22 }
  0x81   :  { %v124_v31 = vsel %vm118_vm0, %v91_v25, %v39344_v29  ;;  %365 = vmatprep.mubr.f32.mxu0 %v46747_v4 }
  0x82   :  { %94 = vrot.lane.b32.xlu0 %v39342_v28, %s39026_s21  ;;  %301 = vmatprep.subr.mxu0 %v124_v31 }
  0x83   :  { %3663 = vrot.lane.b32.xlu1 %v39155_v6, %s39031_s18  ;;  %302 = vmatpush1.msra.mxu0 %v123_v32 }
  0x84   :  { %v39356_v33 = vpop.permute.xlu0 %100  ;;  %v39358_v34 = vpop.permute.xlu1 %96  ;;  %35492 = vmatmul.mubr.msk.f32.vlgmr.msra.gmra.mrb[4].mxu0 %vm155_vm1, %v39323_v22 }
  0x85   :  { %v128_v35 = vsel %vm118_vm0, %v99_v30, %v39356_v33  ;;  %v127_v36 = vsel %vm118_vm0, %v39358_v34, %v99_v30  ;;  %507 = vmatprep.mubr.f32.mxu0 %v46747_v4 }
  0x86   :  { %3665 = vrot.lane.b32.xlu0 %v39164_v7, %s39031_s18  ;;  %443 = vmatprep.subr.mxu0 %v128_v35 }
  0x87   :  { %3661 = vrot.lane.b32.xlu1 %v39150_v5, %s39031_s18  ;;  %444 = vmatpush1.msra.mxu0 %v127_v36 }
  0x88   :  { %v107_v38 = vpop.permute.xlu0 %106  ;;  %v39376_v39 = vpop.permute.xlu1 %108  ;;  %35494 = vmatmul.mubr.msk.f32.vlgmr.msra.gmra.mrb[6].mxu0 %vm155_vm1, %v39323_v22 }
  0x89   :  { %v132_v40 = vsel %vm118_vm0, %v107_v38, %v39376_v39  ;;  %649 = vmatprep.mubr.f32.mxu0 %v46747_v4 }
  0x8a   :  { %102 = vrot.lane.b32.xlu0 %v39374_v37, %s39026_s21  ;;  %585 = vmatprep.subr.mxu0 %v132_v40 }
  0x8b   :  { %3671 = vrot.lane.b32.xlu1 %v39169_v8, %s39031_s18 }
  0x8c   :  { %v39387_v41 = vpop.permute.xlu0 %104  ;;  %v115_v42 = vpop.permute.xlu1 %114 }
  0x8d   :  { %v131_v43 = vsel %vm118_vm0, %v39387_v41, %v107_v38 }
  0x8e   :  { %3673 = vrot.lane.b32.xlu0 %v39178_v9, %s39031_s18  ;;  %586 = vmatpush1.msra.mxu0 %v131_v43 }
  0x8f   :  { %3669 = vrot.lane.b32.xlu1 %v39183_v10, %s39031_s18  ;;  %35496 = vmatmul.mubr.msk.f32.vlgmr.msra.gmra.mrb[8].mxu0 %vm155_vm1, %v39323_v22 }
  0x90   :  { %v117_v45 = vpop.permute.xlu0 %116  ;;  %v39402_v46 = vpop.permute.xlu1 %112  ;;  %791 = vmatprep.mubr.f32.mxu0 %v46747_v4 }
  0x91   :  { %v136_v47 = vsel %vm118_vm0, %v115_v42, %v117_v45  ;;  %v135_v48 = vsel %vm118_vm0, %v39402_v46, %v115_v42 }
  0x92   :  { %110 = vrot.lane.b32.xlu0 %v39400_v44, %s39026_s21  ;;  %727 = vmatprep.subr.mxu0 %v136_v47 }
  0x93   :  { %3679 = vrot.lane.b32.xlu1 %v39192_v11, %s39031_s18  ;;  %728 = vmatpush1.msra.mxu0 %v135_v48 }
  0x94   :  { %v1445_v49 = vpop.permute.xlu0 %1444  ;;  %35498 = vmatmul.mubr.msk.f32.vlgmr.msra.gmra.mrb[10].mxu0 %vm155_vm1, %v39323_v22  ;;  %v39414_v50 = vpop.permute.xlu1 %1446  ;;  %801 = vmatprep.subr.mxu0 %v39120_v0 }
  0x95   :  { %802 = vmatpush1.msra.mxu0 %v39125_v1  ;;  %865 = vmatprep.mubr.f32.mxu0 %v46747_v4  ;;  %v1482_v60 = vsel %vm46880_vm2, %v1445_v49, %v39414_v50 }
  0x96   :  { %3681 = vrot.lane.b32.xlu0 %v39197_v12, %s39031_s18  ;;  %943 = vmatprep.subr.mxu0 %v39155_v6 }
  0x97   :  { %3677 = vrot.lane.b32.xlu1 %v39206_v13, %s39031_s18 }
  0x98   :  { %v1443_v52 = vpop.permute.xlu0 %1442  ;;  %35499 = vmatmul.mubr.msk.f32.vlgmr.msra.gmra.mrb[0].mxu0 %vm155_vm1, %v39422_v51  ;;  %v1453_v53 = vpop.permute.xlu1 %1452 }
  0x99   :  { %944 = vmatpush1.msra.mxu0 %v39150_v5  ;;  %1007 = vmatprep.mubr.f32.mxu0 %v46747_v4  ;;  %v1481_v61 = vsel %vm46880_vm2, %v1443_v52, %v1445_v49  ;;  %v39553_v49 = vld [vmem:[%s46736_s1 + $0x18] sm:$0xff] }
  0x9a   :  { %3687 = vrot.lane.b32.xlu0 %v39211_v14, %s39031_s18  ;;  %1085 = vmatprep.subr.mxu0 %v39169_v8 }
  0x9b   :  { %3689 = vrot.lane.b32.xlu1 %v39220_v15, %s39031_s18 }
  0x9c   :  { %v39438_v54 = vpop.permute.xlu0 %1454  ;;  %35501 = vmatmul.mubr.msk.f32.vlgmr.msra.gmra.mrb[4].mxu0 %vm155_vm1, %v39422_v51  ;;  %v39442_v55 = vpop.permute.xlu1 %1450 }
  0x9d   :  { %1086 = vmatpush1.msra.mxu0 %v39183_v10  ;;  %1149 = vmatprep.mubr.f32.mxu0 %v46747_v4  ;;  %v1486_v17 = vsel %vm46880_vm2, %v1453_v53, %v39438_v54  ;;  %v1485_v20 = vsel %vm46880_vm2, %v39442_v55, %v1453_v53 }
  0x9e   :  { %3685 = vrot.lane.b32.xlu0 %v39225_v16, %s39031_s18  ;;  %1227 = vmatprep.subr.mxu0 %v39192_v11 }
  0x9f   :  { %4392 = vrot.lane.b32.xlu1 %v39120_v0, %s39032_s28 }
  0xa0   :  { %v1461_v56 = vpop.permute.xlu0 %1460  ;;  %35503 = vmatmul.mubr.msk.f32.vlgmr.msra.gmra.mrb[6].mxu0 %vm155_vm1, %v39422_v51  ;;  %v39453_v57 = vpop.permute.xlu1 %1462 }
  0xa1   :  { %1228 = vmatpush1.msra.mxu0 %v39206_v13  ;;  %1291 = vmatprep.mubr.f32.mxu0 %v46747_v4  ;;  %v1490_v23 = vsel %vm46880_vm2, %v1461_v56, %v39453_v57 }
  0xa2   :  { %4394 = vrot.lane.b32.xlu0 %v39134_v2, %s39032_s28  ;;  %1369 = vmatprep.subr.mxu0 %v39211_v14 }
  0xa3   :  { %4390 = vrot.lane.b32.xlu1 %v39125_v1, %s39032_s28 }
  0xa4   :  { %v39462_v58 = vpop.permute.xlu0 %1458  ;;  %35505 = vmatmul.mubr.msk.f32.vlgmr.msra.gmra.mrb[8].mxu0 %vm155_vm1, %v39422_v51  ;;  %v1469_v59 = vpop.permute.xlu1 %1468 }
  0xa5   :  { %1370 = vmatpush1.msra.mxu0 %v39225_v16  ;;  %1433 = vmatprep.mubr.f32.mxu0 %v46747_v4  ;;  %v1489_v25 = vsel %vm46880_vm2, %v39462_v58, %v1461_v56 }
  0xa6   :  { %1520 = vmatprep.subr.mxu0 %v1482_v60  ;;  %4400 = vrot.lane.b32.xlu0 %v39155_v6, %s39032_s28 }
  0xa7   :  { %4402 = vrot.lane.b32.xlu1 %v39164_v7, %s39032_s28 }
  0xa8   :  { %v39475_v62 = vpop.permute.xlu0 %1470  ;;  %35507 = vmatmul.mubr.msk.f32.vlgmr.msra.gmra.mrb[10].mxu0 %vm155_vm1, %v39422_v51  ;;  %v39479_v63 = vpop.permute.xlu1 %1466 }
  0xa9   :  { %1521 = vmatpush1.msra.mxu0 %v1481_v61  ;;  %1584 = vmatprep.mubr.f32.mxu0 %v46747_v4  ;;  %v1494_v27 = vsel %vm46880_vm2, %v1469_v59, %v39475_v62  ;;  %v1493_v31 = vsel %vm46880_vm2, %v39479_v63, %v1469_v59 }
  0xaa   :  { %1662 = vmatprep.subr.mxu0 %v1486_v17  ;;  %4398 = vrot.lane.b32.xlu0 %v39150_v5, %s39032_s28 }
  0xab   :  { %4408 = vrot.lane.b32.xlu1 %v39169_v8, %s39032_s28 }
  0xac   :  { %v1477_v19 = vpop.permute.xlu0 %1476  ;;  %35509 = vmatmul.mubr.msk.f32.vlgmr.msra.gmra.mrb[0].mxu0 %vm155_vm1, %v39487_v18  ;;  %v1479_v21 = vpop.permute.xlu1 %1478 }
  0xad   :  { %1663 = vmatpush1.msra.mxu0 %v1485_v20  ;;  %1726 = vmatprep.mubr.f32.mxu0 %v46747_v4  ;;  %v1498_v35 = vsel %vm46880_vm2, %v1477_v19, %v1479_v21 }
  0xae   :  { %1804 = vmatprep.subr.mxu0 %v1490_v23  ;;  %4410 = vrot.lane.b32.xlu0 %v39178_v9, %s39032_s28 }
  0xaf   :  { %4406 = vrot.lane.b32.xlu1 %v39183_v10, %s39032_s28 }
  0xb0   :  { %v39504_v24 = vpop.permute.xlu0 %1474  ;;  %35511 = vmatmul.mubr.msk.f32.vlgmr.msra.gmra.mrb[4].mxu0 %vm155_vm1, %v39487_v18  ;;  %v2182_v26 = vpop.permute.xlu1 %2181 }
  0xb1   :  { %1805 = vmatpush1.msra.mxu0 %v1489_v25  ;;  %1868 = vmatprep.mubr.f32.mxu0 %v46747_v4  ;;  %v1497_v38 = vsel %vm46880_vm2, %v39504_v24, %v1477_v19 }
  0xb2   :  { %1946 = vmatprep.subr.mxu0 %v1494_v27  ;;  %1448 = vrot.lane.b32.xlu0 %v39139_v3, %s39028_s13 }
  0xb3   :  { %4416 = vrot.lane.b32.xlu1 %v39192_v11, %s39032_s28 }
  0xb4   :  { %v39517_v30 = vpop.permute.xlu0 %2183  ;;  %35513 = vmatmul.mubr.msk.f32.vlgmr.msra.gmra.mrb[6].mxu0 %vm155_vm1, %v39487_v18  ;;  %v2180_v32 = vpop.permute.xlu1 %2179 }
  0xb5   :  { %1947 = vmatpush1.msra.mxu0 %v1493_v31  ;;  %2010 = vmatprep.mubr.f32.mxu0 %v46747_v4  ;;  %v2219_v42 = vsel %vm2217_vm3, %v2182_v26, %v39517_v30  ;;  %v2218_v43 = vsel %vm2217_vm3, %v2180_v32, %v2182_v26 }
  0xb6   :  { %2088 = vmatprep.subr.mxu0 %v1498_v35  ;;  %4418 = vrot.lane.b32.xlu0 %v39197_v12, %s39032_s28 }
  0xb7   :  { %4414 = vrot.lane.b32.xlu1 %v39206_v13, %s39032_s28 }
  0xb8   :  { %v2190_v36 = vpop.permute.xlu0 %2189  ;;  %35515 = vmatmul.mubr.msk.f32.vlgmr.msra.gmra.mrb[8].mxu0 %vm155_vm1, %v39487_v18  ;;  %v39533_v40 = vpop.permute.xlu1 %2191 }
  0xb9   :  { %2089 = vmatpush1.msra.mxu0 %v1497_v38  ;;  %2152 = vmatprep.mubr.f32.mxu0 %v46747_v4  ;;  %v2223_v48 = vsel %vm2217_vm3, %v2190_v36, %v39533_v40 }
  0xba   :  { %2257 = vmatprep.subr.mxu0 %v2219_v42  ;;  %1456 = vrot.lane.b32.xlu0 %v39342_v28, %s39028_s13 }
  0xbb   :  { %4424 = vrot.lane.b32.xlu1 %v39211_v14, %s39032_s28 }
  0xbc   :  { %v39543_v45 = vpop.permute.xlu0 %2187  ;;  %35517 = vmatmul.mubr.msk.f32.vlgmr.msra.gmra.mrb[10].mxu0 %vm155_vm1, %v39487_v18  ;;  %v2198_v47 = vpop.permute.xlu1 %2197 }
  0xbd   :  { %2258 = vmatpush1.msra.mxu0 %v2218_v43  ;;  %2321 = vmatprep.mubr.f32.mxu0 %v46747_v4  ;;  %v2222_v53 = vsel %vm2217_vm3, %v39543_v45, %v2190_v36  ;;  %v39624_v43 = vld [vmem:[%s46736_s1 + $0x20] sm:$0xff] }
  0xbe   :  { %2399 = vmatprep.subr.mxu0 %v2223_v48  ;;  %4426 = vrot.lane.b32.xlu0 %v39220_v15, %s39032_s28 }
  0xbf   :  { %4422 = vrot.lane.b32.xlu1 %v39225_v16, %s39032_s28 }
  0xc0   :  { %v39559_v52 = vpop.permute.xlu0 %2199  ;;  %35519 = vmatmul.mubr.msk.f32.vlgmr.msra.gmra.mrb[0].mxu0 %vm155_vm1, %v39553_v49  ;;  %v39565_v56 = vpop.permute.xlu1 %2195 }
  0xc1   :  { %2400 = vmatpush1.msra.mxu0 %v2222_v53  ;;  %v2227_v59 = vsel %vm2217_vm3, %v2198_v47, %v39559_v52  ;;  %2463 = vmatprep.mubr.f32.mxu0 %v46747_v4  ;;  %v2226_v61 = vsel %vm2217_vm3, %v39565_v56, %v2198_v47 }
  0xc2   :  { %1464 = vrot.lane.b32.xlu0 %v39374_v37, %s39028_s13  ;;  %2541 = vmatprep.subr.mxu0 %v2227_v59 }
  0xc3   :  { %5129 = vrot.lane.b32.xlu1 %v39120_v0, %s39033_s17 }
  0xc4   :  { %v2206_v60 = vpop.permute.xlu0 %2205  ;;  %35521 = vmatmul.mubr.msk.f32.vlgmr.msra.gmra.mrb[4].mxu0 %vm155_vm1, %v39553_v49  ;;  %v39578_v17 = vpop.permute.xlu1 %2207 }
  0xc5   :  { %2542 = vmatpush1.msra.mxu0 %v2226_v61  ;;  %v2231_v19 = vsel %vm2217_vm3, %v2206_v60, %v39578_v17  ;;  %2605 = vmatprep.mubr.f32.mxu0 %v46747_v4 }
  0xc6   :  { %5131 = vrot.lane.b32.xlu0 %v39134_v2, %s39033_s17  ;;  %2683 = vmatprep.subr.mxu0 %v2231_v19 }
  0xc7   :  { %5127 = vrot.lane.b32.xlu1 %v39125_v1, %s39033_s17 }
  0xc8   :  { %v39587_v20 = vpop.permute.xlu0 %2203  ;;  %v2214_v21 = vpop.permute.xlu1 %2213  ;;  %35523 = vmatmul.mubr.msk.f32.vlgmr.msra.gmra.mrb[6].mxu0 %vm155_vm1, %v39553_v49 }
  0xc9   :  { %v2230_v23 = vsel %vm2217_vm3, %v39587_v20, %v2206_v60  ;;  %2747 = vmatprep.mubr.f32.mxu0 %v46747_v4 }
  0xca   :  { %1472 = vrot.lane.b32.xlu0 %v39400_v44, %s39028_s13  ;;  %2684 = vmatpush1.msra.mxu0 %v2230_v23 }
  0xcb   :  { %5137 = vrot.lane.b32.xlu1 %v39155_v6, %s39033_s17 }
  0xcc   :  { %v2216_v25 = vpop.permute.xlu0 %2215  ;;  %v39598_v26 = vpop.permute.xlu1 %2211  ;;  %35525 = vmatmul.mubr.msk.f32.vlgmr.msra.gmra.mrb[8].mxu0 %vm155_vm1, %v39553_v49 }
  0xcd   :  { %v2235_v27 = vsel %vm2217_vm3, %v2214_v21, %v2216_v25  ;;  %v2234_v31 = vsel %vm2217_vm3, %v39598_v26, %v2214_v21  ;;  %2889 = vmatprep.mubr.f32.mxu0 %v46747_v4 }
  0xce   :  { %5139 = vrot.lane.b32.xlu0 %v39164_v7, %s39033_s17  ;;  %2825 = vmatprep.subr.mxu0 %v2235_v27 }
  0xcf   :  { %5135 = vrot.lane.b32.xlu1 %v39150_v5, %s39033_s17  ;;  %2826 = vmatpush1.msra.mxu0 %v2234_v31 }
  0xd0   :  { %v2919_v32 = vpop.permute.xlu0 %2918  ;;  %v39610_v35 = vpop.permute.xlu1 %2920  ;;  %35527 = vmatmul.mubr.msk.f32.vlgmr.msra.gmra.mrb[10].mxu0 %vm155_vm1, %v39553_v49 }
  0xd1   :  { %v2956_v36 = vsel %vm2954_vm4, %v2919_v32, %v39610_v35  ;;  %3058 = vmatprep.mubr.f32.mxu0 %v46747_v4 }
  0xd2   :  { %2185 = vrot.lane.b32.xlu0 %v39139_v3, %s39029_s14  ;;  %2994 = vmatprep.subr.mxu0 %v2956_v36 }
  0xd3   :  { %5145 = vrot.lane.b32.xlu1 %v39169_v8, %s39033_s17 }
  0xd4   :  { %v2917_v38 = vpop.permute.xlu0 %2916  ;;  %v2927_v42 = vpop.permute.xlu1 %2926 }
  0xd5   :  { %v2955_v47 = vsel %vm2954_vm4, %v2917_v38, %v2919_v32 }
  0xd6   :  { %5147 = vrot.lane.b32.xlu0 %v39178_v9, %s39033_s17  ;;  %2995 = vmatpush1.msra.mxu0 %v2955_v47 }
  0xd7   :  { %5143 = vrot.lane.b32.xlu1 %v39183_v10, %s39033_s17  ;;  %35529 = vmatmul.mubr.msk.f32.vlgmr.msra.gmra.mrb[0].mxu0 %vm155_vm1, %v39624_v43 }
  0xd8   :  { %v39633_v48 = vpop.permute.xlu0 %2928  ;;  %v39635_v53 = vpop.permute.xlu1 %2924  ;;  %3200 = vmatprep.mubr.f32.mxu0 %v46747_v4 }
  0xd9   :  { %v2960_v59 = vsel %vm2954_vm4, %v2927_v42, %v39633_v48  ;;  %v2959_v60 = vsel %vm2954_vm4, %v39635_v53, %v2927_v42 }
  0xda   :  { %2193 = vrot.lane.b32.xlu0 %v39342_v28, %s39029_s14  ;;  %3136 = vmatprep.subr.mxu0 %v2960_v59 }
  0xdb   :  { %5153 = vrot.lane.b32.xlu1 %v39192_v11, %s39033_s17  ;;  %3137 = vmatpush1.msra.mxu0 %v2959_v60 }
  0xdc   :  { %v2935_v61 = vpop.permute.xlu0 %2934  ;;  %v39646_v19 = vpop.permute.xlu1 %2936  ;;  %35531 = vmatmul.mubr.msk.f32.vlgmr.msra.gmra.mrb[4].mxu0 %vm155_vm1, %v39624_v43 }
  0xdd   :  { %v2964_v21 = vsel %vm2954_vm4, %v2935_v61, %v39646_v19  ;;  %3342 = vmatprep.mubr.f32.mxu0 %v46747_v4 }
  0xde   :  { %5155 = vrot.lane.b32.xlu0 %v39197_v12, %s39033_s17  ;;  %3278 = vmatprep.subr.mxu0 %v2964_v21 }
  0xdf   :  { %5151 = vrot.lane.b32.xlu1 %v39206_v13, %s39033_s17 }
  0xe0   :  { %v39657_v23 = vpop.permute.xlu0 %2932  ;;  %v2943_v25 = vpop.permute.xlu1 %2942 }
  0xe1   :  { %v2963_v27 = vsel %vm2954_vm4, %v39657_v23, %v2935_v61 }
  0xe2   :  { %2201 = vrot.lane.b32.xlu0 %v39374_v37, %s39029_s14  ;;  %3279 = vmatpush1.msra.mxu0 %v2963_v27 }
  0xe3   :  { %5161 = vrot.lane.b32.xlu1 %v39211_v14, %s39033_s17  ;;  %35533 = vmatmul.mubr.msk.f32.vlgmr.msra.gmra.mrb[6].mxu0 %vm155_vm1, %v39624_v43 }
  0xe4   :  { %v39667_v31 = vpop.permute.xlu0 %2944  ;;  %v39669_v32 = vpop.permute.xlu1 %2940  ;;  %3484 = vmatprep.mubr.f32.mxu0 %v46747_v4 }
  0xe5   :  { %v2968_v36 = vsel %vm2954_vm4, %v2943_v25, %v39667_v31  ;;  %v2967_v38 = vsel %vm2954_vm4, %v39669_v32, %v2943_v25 }
  0xe6   :  { %5163 = vrot.lane.b32.xlu0 %v39220_v15, %s39033_s17  ;;  %3420 = vmatprep.subr.mxu0 %v2968_v36 }
  0xe7   :  { %5159 = vrot.lane.b32.xlu1 %v39225_v16, %s39033_s17  ;;  %3421 = vmatpush1.msra.mxu0 %v2967_v38  ;;  %v39706_v38 = vld [vmem:[%s46736_s1 + $0x28] sm:$0xff] }
  0xe8   :  { %v2951_v42 = vpop.permute.xlu0 %2950  ;;  %v2953_v47 = vpop.permute.xlu1 %2952  ;;  %35535 = vmatmul.mubr.msk.f32.vlgmr.msra.gmra.mrb[8].mxu0 %vm155_vm1, %v39624_v43 }
  0xe9   :  { %v2972_v59 = vsel %vm2954_vm4, %v2951_v42, %v2953_v47  ;;  %3626 = vmatprep.mubr.f32.mxu0 %v46747_v4 }
  0xea   :  { %2209 = vrot.lane.b32.xlu0 %v39400_v44, %s39029_s14  ;;  %3562 = vmatprep.subr.mxu0 %v2972_v59 }
  0xeb   :  { %5866 = vrot.lane.b32.xlu1 %v39120_v0, %s39034_s22 }
  0xec   :  { %v39688_v60 = vpop.permute.xlu0 %2948 }
  0xed   :  { %v3656_v61 = vpop.permute.xlu1 %3655  ;;  %v2971_v21 = vsel %vm2954_vm4, %v39688_v60, %v2951_v42 }
  0xee   :  { %5868 = vrot.lane.b32.xlu0 %v39134_v2, %s39034_s22  ;;  %3563 = vmatpush1.msra.mxu0 %v2971_v21 }
  0xef   :  { %5864 = vrot.lane.b32.xlu1 %v39125_v1, %s39034_s22  ;;  %35537 = vmatmul.mubr.msk.f32.vlgmr.msra.gmra.mrb[10].mxu0 %vm155_vm1, %v39624_v43 }
  0xf0   :  { %v39698_v25 = vpop.permute.xlu0 %3657  ;;  %3795 = vmatprep.mubr.f32.mxu0 %v46747_v4 }
  0xf1   :  { %v3654_v27 = vpop.permute.xlu1 %3653  ;;  %v3693_v36 = vsel %vm3691_vm5, %v3656_v61, %v39698_v25 }
  0xf2   :  { %v3692_v42 = vsel %vm3691_vm5, %v3654_v27, %v3656_v61  ;;  %2922 = vrot.lane.b32.xlu0 %v39139_v3, %s39030_s15  ;;  %3731 = vmatprep.subr.mxu0 %v3693_v36  ;;  %v46885_v61 = vmov 0.0  }
  0xf3   :  { %5874 = vrot.lane.b32.xlu1 %v39155_v6, %s39034_s22  ;;  %3732 = vmatpush1.msra.mxu0 %v3692_v42 }
  0xf4   :  { %v95_v47 = vpop.permute.xlu0 %94  ;;  %35539 = vmatmul.mubr.msk.f32.vlgmr.msra.gmra.mrb[0].mxu0 %vm155_vm1, %v39706_v38 }
  0xf5   :  { %v3664_v59 = vpop.permute.xlu1 %3663  ;;  %v126_v21 = vsel %vm118_vm0, %v95_v47, %v39358_v34  ;;  %v125_v4 = vsel %vm118_vm0, %v39344_v29, %v95_v47  ;;  %3937 = vmatprep.mubr.f32.mxu0 %v46885_v61 }
  0xf6   :  { %5876 = vrot.lane.b32.xlu0 %v39164_v7, %s39034_s22  ;;  %372 = vmatprep.subr.mxu1 %v126_v21 }
  0xf7   :  { %5872 = vrot.lane.b32.xlu1 %v39150_v5, %s39034_s22  ;;  %373 = vmatpush1.msra.mxu1 %v125_v4 }
  0xf8   :  { %v39724_v27 = vpop.permute.xlu0 %3665  ;;  %35493 = vmatmul.mubr.msk.f32.vlgmr.msra.gmra.mrb[0].mxu1 %vm155_vm1, %v39323_v22 }
  0xf9   :  { %v39728_v36 = vpop.permute.xlu1 %3661  ;;  %v3697_v29 = vsel %vm3691_vm5, %v3664_v59, %v39724_v27  ;;  %578 = vmatprep.mubr.f32.mxu1 %v46885_v61 }
  0xfa   :  { %2930 = vrot.lane.b32.xlu0 %v39342_v28, %s39030_s15  ;;  %3873 = vmatprep.subr.mxu0 %v3697_v29  ;;  %v3696_v34 = vsel %vm3691_vm5, %v39728_v36, %v3664_v59 }
  0xfb   :  { %5882 = vrot.lane.b32.xlu1 %v39169_v8, %s39034_s22  ;;  %3874 = vmatpush1.msra.mxu0 %v3696_v34 }
  0xfc   :  { %v103_v4 = vpop.permute.xlu0 %102  ;;  %35541 = vmatmul.mubr.msk.f32.vlgmr.msra.gmra.mrb[4].mxu0 %vm155_vm1, %v39706_v38 }
  0xfd   :  { %v3672_v42 = vpop.permute.xlu1 %3671  ;;  %v130_v47 = vsel %vm118_vm0, %v103_v4, %v39387_v41  ;;  %v129_v21 = vsel %vm118_vm0, %v39356_v33, %v103_v4  ;;  %4079 = vmatprep.mubr.f32.mxu0 %v46885_v61 }
  0xfe   :  { %5884 = vrot.lane.b32.xlu0 %v39178_v9, %s39034_s22  ;;  %514 = vmatprep.subr.mxu1 %v130_v47 }
  0xff   :  { %5880 = vrot.lane.b32.xlu1 %v39183_v10, %s39034_s22  ;;  %515 = vmatpush1.msra.mxu1 %v129_v21 }
 0x100   :  { %v39750_v59 = vpop.permute.xlu0 %3673  ;;  %35495 = vmatmul.mubr.msk.f32.vlgmr.msra.gmra.mrb[2].mxu1 %vm155_vm1, %v39323_v22 }
 0x101   :  { %v39754_v29 = vpop.permute.xlu1 %3669  ;;  %v3701_v33 = vsel %vm3691_vm5, %v3672_v42, %v39750_v59  ;;  %720 = vmatprep.mubr.f32.mxu1 %v46885_v61 }
 0x102   :  { %2938 = vrot.lane.b32.xlu0 %v39374_v37, %s39030_s15  ;;  %4015 = vmatprep.subr.mxu0 %v3701_v33  ;;  %v3700_v41 = vsel %vm3691_vm5, %v39754_v29, %v3672_v42 }
 0x103   :  { %5890 = vrot.lane.b32.xlu1 %v39192_v11, %s39034_s22  ;;  %4016 = vmatpush1.msra.mxu0 %v3700_v41 }
 0x104   :  { %v111_v34 = vpop.permute.xlu0 %110  ;;  %35543 = vmatmul.mubr.msk.f32.vlgmr.msra.gmra.mrb[6].mxu0 %vm155_vm1, %v39706_v38 }
 0x105   :  { %v3680_v4 = vpop.permute.xlu1 %3679  ;;  %v134_v47 = vsel %vm118_vm0, %v111_v34, %v39402_v46  ;;  %v133_v21 = vsel %vm118_vm0, %v39376_v39, %v111_v34  ;;  %4221 = vmatprep.mubr.f32.mxu0 %v46885_v61 }
 0x106   :  { %5892 = vrot.lane.b32.xlu0 %v39197_v12, %s39034_s22  ;;  %656 = vmatprep.subr.mxu1 %v134_v47 }
 0x107   :  { %5888 = vrot.lane.b32.xlu1 %v39206_v13, %s39034_s22  ;;  %657 = vmatpush1.msra.mxu1 %v133_v21 }
 0x108   :  { %v39776_v42 = vpop.permute.xlu0 %3681  ;;  %35497 = vmatmul.mubr.msk.f32.vlgmr.msra.gmra.mrb[4].mxu1 %vm155_vm1, %v39323_v22  ;;  %872 = vmatprep.subr.mxu1 %v39139_v3 }
 0x109   :  { %v39781_v46 = vpop.permute.xlu1 %3677  ;;  %v3705_v39 = vsel %vm3691_vm5, %v3680_v4, %v39776_v42  ;;  %873 = vmatpush1.msra.mxu1 %v39134_v2  ;;  %936 = vmatprep.mubr.f32.mxu1 %v46885_v61 }
 0x10a   :  { %2946 = vrot.lane.b32.xlu0 %v39400_v44, %s39030_s15  ;;  %4157 = vmatprep.subr.mxu0 %v3705_v39  ;;  %v3704_v33 = vsel %vm3691_vm5, %v39781_v46, %v3680_v4 }
 0x10b   :  { %5898 = vrot.lane.b32.xlu1 %v39211_v14, %s39034_s22  ;;  %4158 = vmatpush1.msra.mxu0 %v3704_v33 }
 0x10c   :  { %v3688_v22 = vpop.permute.xlu0 %3687  ;;  %35545 = vmatmul.mubr.msk.f32.vlgmr.msra.gmra.mrb[8].mxu0 %vm155_vm1, %v39706_v38  ;;  %35500 = vmatmul.mubr.msk.f32.vlgmr.msra.gmra.mrb[6].mxu1 %vm155_vm1, %v39422_v51 }
 0x10d   :  { %v3690_v41 = vpop.permute.xlu1 %3689  ;;  %4363 = vmatprep.mubr.f32.mxu0 %v46885_v61  ;;  %1014 = vmatprep.subr.mxu1 %v39342_v28 }
 0x10e   :  { %5900 = vrot.lane.b32.xlu0 %v39220_v15, %s39034_s22  ;;  %v3709_v34 = vsel %vm3691_vm5, %v3688_v22, %v3690_v41  ;;  %1015 = vmatpush1.msra.mxu1 %v39164_v7 }
 0x10f   :  { %5896 = vrot.lane.b32.xlu1 %v39225_v16, %s39034_s22  ;;  %4299 = vmatprep.subr.mxu0 %v3709_v34 }
 0x110   :  { %v39805_v14 = vpop.permute.xlu0 %3685  ;;  %1078 = vmatprep.mubr.f32.mxu1 %v46885_v61  ;;  %1156 = vmatprep.subr.mxu1 %v39374_v37 }
 0x111   :  { %v4393_v4 = vpop.permute.xlu1 %4392  ;;  %v3708_v47 = vsel %vm3691_vm5, %v39805_v14, %v3688_v22  ;;  %35502 = vmatmul.mubr.msk.f32.vlgmr.msra.gmra.mrb[0].mxu1 %vm155_vm1, %v39422_v51 }
 0x112   :  { %3659 = vrot.lane.b32.xlu0 %v39139_v3, %s39031_s18  ;;  %4300 = vmatpush1.msra.mxu0 %v3708_v47  ;;  %v39828_v3 = vld [vmem:[%s46736_s1 + $0x30] sm:$0xff] }
 0x113   :  { %6603 = vrot.lane.b32.xlu1 %v39120_v0, %s39035_s25  ;;  %35547 = vmatmul.mubr.msk.f32.vlgmr.msra.gmra.mrb[10].mxu0 %vm155_vm1, %v39706_v38 }
 0x114   :  { %v39819_v15 = vpop.permute.xlu0 %4394  ;;  %4532 = vmatprep.mubr.f32.mxu0 %v46885_v61  ;;  %1157 = vmatpush1.msra.mxu1 %v39178_v9 }
 0x115   :  { %v4391_v16 = vpop.permute.xlu1 %4390  ;;  %v4430_v21 = vsel %vm4428_vm6, %v4393_v4, %v39819_v15  ;;  %1220 = vmatprep.mubr.f32.mxu1 %v46885_v61  ;;  %1298 = vmatprep.subr.mxu1 %v39400_v44 }
 0x116   :  { %v4429_v0 = vsel %vm4428_vm6, %v4391_v16, %v4393_v4  ;;  %6605 = vrot.lane.b32.xlu0 %v39134_v2, %s39035_s25  ;;  %4468 = vmatprep.subr.mxu0 %v4430_v21 }
 0x117   :  { %6601 = vrot.lane.b32.xlu1 %v39125_v1, %s39035_s25  ;;  %4469 = vmatpush1.msra.mxu0 %v4429_v0 }
 0x118   :  { %v4401_v39 = vpop.permute.xlu0 %4400  ;;  %35549 = vmatmul.mubr.msk.f32.vlgmr.msra.gmra.mrb[0].mxu0 %vm155_vm1, %v39828_v3  ;;  %35504 = vmatmul.mubr.msk.f32.vlgmr.msra.gmra.mrb[2].mxu1 %vm155_vm1, %v39422_v51 }
 0x119   :  { %v39841_v33 = vpop.permute.xlu1 %4402  ;;  %4674 = vmatprep.mubr.f32.mxu0 %v46885_v61  ;;  %1299 = vmatpush1.msra.mxu1 %v39197_v12 }
 0x11a   :  { %3667 = vrot.lane.b32.xlu0 %v39342_v28, %s39031_s18  ;;  %v4434_v1 = vsel %vm4428_vm6, %v4401_v39, %v39841_v33  ;;  %1362 = vmatprep.mubr.f32.mxu1 %v46885_v61 }
 0x11b   :  { %6611 = vrot.lane.b32.xlu1 %v39155_v6, %s39035_s25  ;;  %4610 = vmatprep.subr.mxu0 %v4434_v1 }
 0x11c   :  { %v39852_v2 = vpop.permute.xlu0 %4398  ;;  %35506 = vmatmul.mubr.msk.f32.vlgmr.msra.gmra.mrb[4].mxu1 %vm155_vm1, %v39422_v51 }
 0x11d   :  { %v4409_v22 = vpop.permute.xlu1 %4408  ;;  %v4433_v41 = vsel %vm4428_vm6, %v39852_v2, %v4401_v39  ;;  %1655 = vmatprep.mubr.f32.mxu1 %v46885_v61 }
 0x11e   :  { %6613 = vrot.lane.b32.xlu0 %v39164_v7, %s39035_s25  ;;  %4611 = vmatpush1.msra.mxu0 %v4433_v41 }
 0x11f   :  { %6609 = vrot.lane.b32.xlu1 %v39150_v5, %s39035_s25  ;;  %35551 = vmatmul.mubr.msk.f32.vlgmr.msra.gmra.mrb[4].mxu0 %vm155_vm1, %v39828_v3 }
 0x120   :  { %v39865_v6 = vpop.permute.xlu0 %4410  ;;  %4816 = vmatprep.mubr.f32.mxu0 %v46885_v61 }
 0x121   :  { %v39868_v51 = vpop.permute.xlu1 %4406  ;;  %v4438_v34 = vsel %vm4428_vm6, %v4409_v22, %v39865_v6 }
 0x122   :  { %3675 = vrot.lane.b32.xlu0 %v39374_v37, %s39031_s18  ;;  %4752 = vmatprep.subr.mxu0 %v4438_v34  ;;  %v4437_v7 = vsel %vm4428_vm6, %v39868_v51, %v4409_v22 }
 0x123   :  { %6619 = vrot.lane.b32.xlu1 %v39169_v8, %s39035_s25  ;;  %4753 = vmatpush1.msra.mxu0 %v4437_v7 }
 0x124   :  { %v1449_v5 = vpop.permute.xlu0 %1448  ;;  %35553 = vmatmul.mubr.msk.f32.vlgmr.msra.gmra.mrb[6].mxu0 %vm155_vm1, %v39828_v3 }
 0x125   :  { %v4417_v4 = vpop.permute.xlu1 %4416  ;;  %v1484_v47 = vsel %vm46880_vm2, %v1449_v5, %v39442_v55  ;;  %v1483_v16 = vsel %vm46880_vm2, %v39414_v50, %v1449_v5  ;;  %4958 = vmatprep.mubr.f32.mxu0 %v46885_v61  ;;  %v39947_v5 = vld [vmem:[%s46735_s0 + $0x90] sm:$0xff] }
 0x126   :  { %6621 = vrot.lane.b32.xlu0 %v39178_v9, %s39035_s25  ;;  %1591 = vmatprep.subr.mxu1 %v1484_v47 }
 0x127   :  { %6617 = vrot.lane.b32.xlu1 %v39183_v10, %s39035_s25  ;;  %1592 = vmatpush1.msra.mxu1 %v1483_v16  ;;  %v39967_v16 = vld [vmem:[%s46736_s1 + $0x38] sm:$0xff] }
 0x128   :  { %v39889_v8 = vpop.permute.xlu0 %4418  ;;  %35510 = vmatmul.mubr.msk.f32.vlgmr.msra.gmra.mrb[6].mxu1 %vm155_vm1, %v39487_v18 }
 0x129   :  { %v39893_v21 = vpop.permute.xlu1 %4414  ;;  %v4442_v50 = vsel %vm4428_vm6, %v4417_v4, %v39889_v8  ;;  %1797 = vmatprep.mubr.f32.mxu1 %v46885_v61 }
 0x12a   :  { %3683 = vrot.lane.b32.xlu0 %v39400_v44, %s39031_s18  ;;  %4894 = vmatprep.subr.mxu0 %v4442_v50  ;;  %v4441_v9 = vsel %vm4428_vm6, %v39893_v21, %v4417_v4  ;;  %v39954_v4 = vld [vmem:[%s46735_s0 + $0x80] sm:$0xff] }
 0x12b   :  { %6627 = vrot.lane.b32.xlu1 %v39192_v11, %s39035_s25  ;;  %4895 = vmatpush1.msra.mxu0 %v4441_v9  ;;  %v39976_v9 = vld [vmem:[%s46735_s0 + $0x8] sm:$0xff] }
 0x12c   :  { %v1457_v10 = vpop.permute.xlu0 %1456  ;;  %35555 = vmatmul.mubr.msk.f32.vlgmr.msra.gmra.mrb[8].mxu0 %vm155_vm1, %v39828_v3 }
 0x12d   :  { %v4425_v55 = vpop.permute.xlu1 %4424  ;;  %v1488_v0 = vsel %vm46880_vm2, %v1457_v10, %v39462_v58  ;;  %v1487_v39 = vsel %vm46880_vm2, %v39438_v54, %v1457_v10  ;;  %5100 = vmatprep.mubr.f32.mxu0 %v46885_v61  ;;  %v39924_v54 = vld [vmem:[%s46735_s0 + $0x18] sm:$0xff] }
 0x12e   :  { %6629 = vrot.lane.b32.xlu0 %v39197_v12, %s39035_s25  ;;  %1733 = vmatprep.subr.mxu1 %v1488_v0 }
 0x12f   :  { %6625 = vrot.lane.b32.xlu1 %v39206_v13, %s39035_s25  ;;  %1734 = vmatpush1.msra.mxu1 %v1487_v39  ;;  %v39933_v13 = vld [vmem:[%s46735_s0 + $0x88] sm:$0xff]  ;;  %v39990_v39 = vld [vmem:[%s46735_s0 + $0x10] sm:$0xff] }
 0x130   :  { %v4427_v11 = vpop.permute.xlu0 %4426  ;;  %35512 = vmatmul.mubr.msk.f32.vlgmr.msra.gmra.mrb[0].mxu1 %vm155_vm1, %v39487_v18 }
 0x131   :  { %v39917_v1 = vpop.permute.xlu1 %4422  ;;  %v4446_v58 = vsel %vm4428_vm6, %v4425_v55, %v4427_v11  ;;  %1939 = vmatprep.mubr.f32.mxu1 %v46885_v61  ;;  %v39997_v11 = vld [vmem:[%s46735_s0] sm:$0xff] }
 0x132   :  { %4396 = vrot.lane.b32.xlu0 %v39924_v54, %s39032_s28  ;;  %5036 = vmatprep.subr.mxu0 %v4446_v58  ;;  %v4445_v12 = vsel %vm4428_vm6, %v39917_v1, %v4425_v55 }
 0x133   :  { %6635 = vrot.lane.b32.xlu1 %v39933_v13, %s39035_s25  ;;  %5037 = vmatpush1.msra.mxu0 %v4445_v12 }
 0x134   :  { %v1465_v22 = vpop.permute.xlu0 %1464  ;;  %35557 = vmatmul.mubr.msk.f32.vlgmr.msra.gmra.mrb[10].mxu0 %vm155_vm1, %v39828_v3 }
 0x135   :  { %v5130_v41 = vpop.permute.xlu1 %5129  ;;  %v1492_v34 = vsel %vm46880_vm2, %v1465_v22, %v39479_v63  ;;  %v1491_v7 = vsel %vm46880_vm2, %v39453_v57, %v1465_v22  ;;  %5269 = vmatprep.mubr.f32.mxu0 %v46885_v61  ;;  %v40017_v22 = vld [vmem:[%s46735_s0 + $0x28] sm:$0xff] }
 0x136   :  { %6637 = vrot.lane.b32.xlu0 %v39947_v5, %s39035_s25  ;;  %1875 = vmatprep.subr.mxu1 %v1492_v34 }
 0x137   :  { %6633 = vrot.lane.b32.xlu1 %v39954_v4, %s39035_s25  ;;  %1876 = vmatpush1.msra.mxu1 %v1491_v7  ;;  %v40031_v7 = vld [vmem:[%s46735_s0 + $0x30] sm:$0xff] }
 0x138   :  { %v39958_v57 = vpop.permute.xlu0 %5131  ;;  %35514 = vmatmul.mubr.msk.f32.vlgmr.msra.gmra.mrb[2].mxu1 %vm155_vm1, %v39487_v18 }
 0x139   :  { %v5128_v63 = vpop.permute.xlu1 %5127  ;;  %v5167_v47 = vsel %vm5165_vm7, %v5130_v41, %v39958_v57  ;;  %2081 = vmatprep.mubr.f32.mxu1 %v46885_v61 }
 0x13a   :  { %v5166_v50 = vsel %vm5165_vm7, %v5128_v63, %v5130_v41  ;;  %4404 = vrot.lane.b32.xlu0 %v39342_v28, %s39032_s28  ;;  %5205 = vmatprep.subr.mxu0 %v5167_v47  ;;  %v40038_v63 = vld [vmem:[%s46735_s0 + $0x20] sm:$0xff] }
 0x13b   :  { %7340 = vrot.lane.b32.xlu1 %v39976_v9, %s39036_s12  ;;  %5206 = vmatpush1.msra.mxu0 %v5166_v50 }
 0x13c   :  { %v1473_v10 = vpop.permute.xlu0 %1472  ;;  %35559 = vmatmul.mubr.msk.f32.vlgmr.msra.gmra.mrb[0].mxu0 %vm155_vm1, %v39967_v16 }
 0x13d   :  { %v5138_v55 = vpop.permute.xlu1 %5137  ;;  %v1496_v0 = vsel %vm46880_vm2, %v1473_v10, %v39504_v24  ;;  %v1495_v28 = vsel %vm46880_vm2, %v39475_v62, %v1473_v10  ;;  %5411 = vmatprep.mubr.f32.mxu0 %v46885_v61  ;;  %v40058_v10 = vld [vmem:[%s46735_s0 + $0x48] sm:$0xff] }
 0x13e   :  { %7342 = vrot.lane.b32.xlu0 %v39990_v39, %s39036_s12  ;;  %2017 = vmatprep.subr.mxu1 %v1496_v0 }
 0x13f   :  { %7338 = vrot.lane.b32.xlu1 %v39997_v11, %s39036_s12  ;;  %2018 = vmatpush1.msra.mxu1 %v1495_v28 }
 0x140   :  { %v40001_v62 = vpop.permute.xlu0 %5139  ;;  %35516 = vmatmul.mubr.msk.f32.vlgmr.msra.gmra.mrb[4].mxu1 %vm155_vm1, %v39487_v18 }
 0x141   :  { %v40005_v24 = vpop.permute.xlu1 %5135  ;;  %v5171_v58 = vsel %vm5165_vm7, %v5138_v55, %v40001_v62  ;;  %2392 = vmatprep.mubr.f32.mxu1 %v46885_v61 }
 0x142   :  { %4412 = vrot.lane.b32.xlu0 %v39374_v37, %s39032_s28  ;;  %5347 = vmatprep.subr.mxu0 %v5171_v58  ;;  %v5170_v12 = vsel %vm5165_vm7, %v40005_v24, %v5138_v55  ;;  %v40072_v58 = vld [vmem:[%s46735_s0 + $0x50] sm:$0xff] }
 0x143   :  { %7348 = vrot.lane.b32.xlu1 %v40017_v22, %s39036_s12  ;;  %5348 = vmatpush1.msra.mxu0 %v5170_v12  ;;  %v40079_v12 = vld [vmem:[%s46735_s0 + $0x40] sm:$0xff] }
 0x144   :  { %v2186_v18 = vpop.permute.xlu0 %2185  ;;  %35561 = vmatmul.mubr.msk.f32.vlgmr.msra.gmra.mrb[4].mxu0 %vm155_vm1, %v39967_v16 }
 0x145   :  { %v5146_v41 = vpop.permute.xlu1 %5145  ;;  %v2221_v37 = vsel %vm2217_vm3, %v2186_v18, %v39543_v45  ;;  %v2220_v34 = vsel %vm2217_vm3, %v39517_v30, %v2186_v18  ;;  %5553 = vmatprep.mubr.f32.mxu0 %v46885_v61 }
 0x146   :  { %7350 = vrot.lane.b32.xlu0 %v40031_v7, %s39036_s12  ;;  %2328 = vmatprep.subr.mxu1 %v2221_v37  ;;  %v40099_v37 = vld [vmem:[%s46735_s0 + $0x68] sm:$0xff] }
 0x147   :  { %7346 = vrot.lane.b32.xlu1 %v40038_v63, %s39036_s12  ;;  %2329 = vmatpush1.msra.mxu1 %v2220_v34 }
 0x148   :  { %v40042_v30 = vpop.permute.xlu0 %5147  ;;  %35520 = vmatmul.mubr.msk.f32.vlgmr.msra.gmra.mrb[6].mxu1 %vm155_vm1, %v39553_v49 }
 0x149   :  { %v40046_v45 = vpop.permute.xlu1 %5143  ;;  %v5175_v47 = vsel %vm5165_vm7, %v5146_v41, %v40042_v30  ;;  %2534 = vmatprep.mubr.f32.mxu1 %v46885_v61 }
 0x14a   :  { %4420 = vrot.lane.b32.xlu0 %v39400_v44, %s39032_s28  ;;  %5489 = vmatprep.subr.mxu0 %v5175_v47  ;;  %v5174_v50 = vsel %vm5165_vm7, %v40046_v45, %v5146_v41  ;;  %s39038_s28 = smov 62  }
 0x14b   :  { %7356 = vrot.lane.b32.xlu1 %v40058_v10, %s39036_s12  ;;  %5490 = vmatpush1.msra.mxu0 %v5174_v50 }
 0x14c   :  { %v2194_v55 = vpop.permute.xlu0 %2193  ;;  %35563 = vmatmul.mubr.msk.f32.vlgmr.msra.gmra.mrb[6].mxu0 %vm155_vm1, %v39967_v16 }
 0x14d   :  { %v5154_v0 = vpop.permute.xlu1 %5153  ;;  %v2225_v44 = vsel %vm2217_vm3, %v2194_v55, %v39565_v56  ;;  %v2224_v28 = vsel %vm2217_vm3, %v39533_v40, %v2194_v55  ;;  %5695 = vmatprep.mubr.f32.mxu0 %v46885_v61 }
 0x14e   :  { %7358 = vrot.lane.b32.xlu0 %v40072_v58, %s39036_s12  ;;  %2470 = vmatprep.subr.mxu1 %v2225_v44  ;;  %v40120_v44 = vld [vmem:[%s46735_s0 + $0x60] sm:$0xff] }
 0x14f   :  { %7354 = vrot.lane.b32.xlu1 %v40079_v12, %s39036_s12  ;;  %2471 = vmatpush1.msra.mxu1 %v2224_v28 }
 0x150   :  { %v40083_v40 = vpop.permute.xlu0 %5155  ;;  %35522 = vmatmul.mubr.msk.f32.vlgmr.msra.gmra.mrb[0].mxu1 %vm155_vm1, %v39553_v49 }
 0x151   :  { %v40087_v56 = vpop.permute.xlu1 %5151  ;;  %v5179_v18 = vsel %vm5165_vm7, %v5154_v0, %v40083_v40  ;;  %2676 = vmatprep.mubr.f32.mxu1 %v46885_v61 }
 0x152   :  { %5133 = vrot.lane.b32.xlu0 %v39924_v54, %s39033_s17  ;;  %5631 = vmatprep.subr.mxu0 %v5179_v18  ;;  %v5178_v41 = vsel %vm5165_vm7, %v40087_v56, %v5154_v0  ;;  %v40113_v0 = vld [vmem:[%s46735_s0 + $0x70] sm:$0xff]  ;;  %v40133_v18 = vld [vmem:[%s46735_s0 + $0x38] sm:$0xff] }
 0x153   :  { %7364 = vrot.lane.b32.xlu1 %v40099_v37, %s39036_s12  ;;  %5632 = vmatpush1.msra.mxu0 %v5178_v41 }
 0x154   :  { %v2202_v34 = vpop.permute.xlu0 %2201  ;;  %35565 = vmatmul.mubr.msk.f32.vlgmr.msra.gmra.mrb[8].mxu0 %vm155_vm1, %v39967_v16 }
 0x155   :  { %v5162_v47 = vpop.permute.xlu1 %5161  ;;  %v2229_v50 = vsel %vm2217_vm3, %v2202_v34, %v39587_v20  ;;  %v2228_v55 = vsel %vm2217_vm3, %v39559_v52, %v2202_v34  ;;  %5837 = vmatprep.mubr.f32.mxu0 %v46885_v61 }
 0x156   :  { %7366 = vrot.lane.b32.xlu0 %v40113_v0, %s39036_s12  ;;  %2612 = vmatprep.subr.mxu1 %v2229_v50 }
 0x157   :  { %7362 = vrot.lane.b32.xlu1 %v40120_v44, %s39036_s12  ;;  %2613 = vmatpush1.msra.mxu1 %v2228_v55 }
 0x158   :  { %v5164_v52 = vpop.permute.xlu0 %5163  ;;  %35524 = vmatmul.mubr.msk.f32.vlgmr.msra.gmra.mrb[2].mxu1 %vm155_vm1, %v39553_v49 }
 0x159   :  { %v40126_v20 = vpop.permute.xlu1 %5159  ;;  %v5183_v28 = vsel %vm5165_vm7, %v5162_v47, %v5164_v52  ;;  %2818 = vmatprep.mubr.f32.mxu1 %v46885_v61 }
 0x15a   :  { %5141 = vrot.lane.b32.xlu0 %v40133_v18, %s39033_s17  ;;  %5773 = vmatprep.subr.mxu0 %v5183_v28  ;;  %v5182_v41 = vsel %vm5165_vm7, %v40126_v20, %v5162_v47  ;;  %v40161_v28 = vld [vmem:[%s46736_s1 + $0x40] sm:$0xff] }
 0x15b   :  { %7372 = vrot.lane.b32.xlu1 %v39933_v13, %s39036_s12  ;;  %5774 = vmatpush1.msra.mxu0 %v5182_v41 }
 0x15c   :  { %v2210_v34 = vpop.permute.xlu0 %2209  ;;  %35567 = vmatmul.mubr.msk.f32.vlgmr.msra.gmra.mrb[10].mxu0 %vm155_vm1, %v39967_v16 }
 0x15d   :  { %v5867_v50 = vpop.permute.xlu1 %5866  ;;  %v2233_v55 = vsel %vm2217_vm3, %v2210_v34, %v39598_v26  ;;  %v2232_v52 = vsel %vm2217_vm3, %v39578_v17, %v2210_v34  ;;  %6006 = vmatprep.mubr.f32.mxu0 %v46885_v61  ;;  %v40168_v34 = vld [vmem:[%s46735_s0 + $0x58] sm:$0xff] }
 0x15e   :  { %7374 = vrot.lane.b32.xlu0 %v39947_v5, %s39036_s12  ;;  %2754 = vmatprep.subr.mxu1 %v2233_v55 }
 0x15f   :  { %7370 = vrot.lane.b32.xlu1 %v39954_v4, %s39036_s12  ;;  %2755 = vmatpush1.msra.mxu1 %v2232_v52 }
 0x160   :  { %v40152_v47 = vpop.permute.xlu0 %5868  ;;  %35526 = vmatmul.mubr.msk.f32.vlgmr.msra.gmra.mrb[4].mxu1 %vm155_vm1, %v39553_v49 }
 0x161   :  { %v5865_v26 = vpop.permute.xlu1 %5864  ;;  %v5904_v17 = vsel %vm5902_vm8, %v5867_v50, %v40152_v47  ;;  %3129 = vmatprep.mubr.f32.mxu1 %v46885_v61 }
 0x162   :  { %v5903_v41 = vsel %vm5902_vm8, %v5865_v26, %v5867_v50  ;;  %5149 = vrot.lane.b32.xlu0 %v40168_v34, %s39033_s17  ;;  %5942 = vmatprep.subr.mxu0 %v5904_v17 }
 0x163   :  { %8077 = vrot.lane.b32.xlu1 %v39976_v9, %s39037_s30  ;;  %5943 = vmatpush1.msra.mxu0 %v5903_v41 }
 0x164   :  { %v2923_v49 = vpop.permute.xlu0 %2922  ;;  %35569 = vmatmul.mubr.msk.f32.vlgmr.msra.gmra.mrb[0].mxu0 %vm155_vm1, %v40161_v28 }
 0x165   :  { %v5875_v55 = vpop.permute.xlu1 %5874  ;;  %v2958_v50 = vsel %vm2954_vm4, %v2923_v49, %v39635_v53  ;;  %v2957_v52 = vsel %vm2954_vm4, %v39610_v35, %v2923_v49  ;;  %6148 = vmatprep.mubr.f32.mxu0 %v46885_v61  ;;  %v40197_v53 = vld [vmem:[%s46735_s0 + $0x78] sm:$0xff] }
 0x166   :  { %8079 = vrot.lane.b32.xlu0 %v39990_v39, %s39037_s30  ;;  %3065 = vmatprep.subr.mxu1 %v2958_v50 }
 0x167   :  { %8075 = vrot.lane.b32.xlu1 %v39997_v11, %s39037_s30  ;;  %3066 = vmatpush1.msra.mxu1 %v2957_v52 }
 0x168   :  { %v40185_v26 = vpop.permute.xlu0 %5876  ;;  %35530 = vmatmul.mubr.msk.f32.vlgmr.msra.gmra.mrb[6].mxu1 %vm155_vm1, %v39624_v43 }
 0x169   :  { %46886 = vst [vmem:[#allocation5_spill] sm:$0xff] %v40185_v26  ;;  %v40189_v17 = vpop.permute.xlu1 %5872  ;;  %v5908_v35 = vsel %vm5902_vm8, %v5875_v55, %v40185_v26  ;;  %3271 = vmatprep.mubr.f32.mxu1 %v46885_v61 }
 0x16a   :  { %5157 = vrot.lane.b32.xlu0 %v40197_v53, %s39033_s17  ;;  %6084 = vmatprep.subr.mxu0 %v5908_v35  ;;  %v5907_v41 = vsel %vm5902_vm8, %v40189_v17, %v5875_v55  ;;  %s39048_s17 = smov 120  }
 0x16b   :  { %8085 = vrot.lane.b32.xlu1 %v40017_v22, %s39037_s30  ;;  %6085 = vmatpush1.msra.mxu0 %v5907_v41 }
 0x16c   :  { %v2931_v49 = vpop.permute.xlu0 %2930  ;;  %35571 = vmatmul.mubr.msk.f32.vlgmr.msra.gmra.mrb[4].mxu0 %vm155_vm1, %v40161_v28 }
 0x16d   :  { %v5883_v50 = vpop.permute.xlu1 %5882  ;;  %v2962_v52 = vsel %vm2954_vm4, %v2931_v49, %v39657_v23  ;;  %v2961_v26 = vsel %vm2954_vm4, %v39633_v48, %v2931_v49  ;;  %6290 = vmatprep.mubr.f32.mxu0 %v46885_v61 }
 0x16e   :  { %8087 = vrot.lane.b32.xlu0 %v40031_v7, %s39037_s30  ;;  %3207 = vmatprep.subr.mxu1 %v2962_v52 }
 0x16f   :  { %8083 = vrot.lane.b32.xlu1 %v40038_v63, %s39037_s30  ;;  %3208 = vmatpush1.msra.mxu1 %v2961_v26 }
 0x170   :  { %v40216_v55 = vpop.permute.xlu0 %5884  ;;  %35532 = vmatmul.mubr.msk.f32.vlgmr.msra.gmra.mrb[0].mxu1 %vm155_vm1, %v39624_v43 }
 0x171   :  { %v40220_v35 = vpop.permute.xlu1 %5880  ;;  %v5912_v48 = vsel %vm5902_vm8, %v5883_v50, %v40216_v55  ;;  %3413 = vmatprep.mubr.f32.mxu1 %v46885_v61 }
 0x172   :  { %5870 = vrot.lane.b32.xlu0 %v39924_v54, %s39034_s22  ;;  %6226 = vmatprep.subr.mxu0 %v5912_v48  ;;  %v5911_v23 = vsel %vm5902_vm8, %v40220_v35, %v5883_v50 }
 0x173   :  { %8093 = vrot.lane.b32.xlu1 %v40058_v10, %s39037_s30  ;;  %6227 = vmatpush1.msra.mxu0 %v5911_v23 }
 0x174   :  { %v2939_v26 = vpop.permute.xlu0 %2938  ;;  %35573 = vmatmul.mubr.msk.f32.vlgmr.msra.gmra.mrb[6].mxu0 %vm155_vm1, %v40161_v28 }
 0x175   :  { %v5891_v41 = vpop.permute.xlu1 %5890  ;;  %v2966_v49 = vsel %vm2954_vm4, %v2939_v26, %v39669_v32  ;;  %v2965_v52 = vsel %vm2954_vm4, %v39646_v19, %v2939_v26  ;;  %6432 = vmatprep.mubr.f32.mxu0 %v46885_v61 }
 0x176   :  { %8095 = vrot.lane.b32.xlu0 %v40072_v58, %s39037_s30  ;;  %3349 = vmatprep.subr.mxu1 %v2966_v49 }
 0x177   :  { %8091 = vrot.lane.b32.xlu1 %v40079_v12, %s39037_s30  ;;  %3350 = vmatpush1.msra.mxu1 %v2965_v52 }
 0x178   :  { %v40242_v50 = vpop.permute.xlu0 %5892  ;;  %35534 = vmatmul.mubr.msk.f32.vlgmr.msra.gmra.mrb[2].mxu1 %vm155_vm1, %v39624_v43 }
 0x179   :  { %v40246_v48 = vpop.permute.xlu1 %5888  ;;  %v5916_v19 = vsel %vm5902_vm8, %v5891_v41, %v40242_v50  ;;  %3555 = vmatprep.mubr.f32.mxu1 %v46885_v61 }
 0x17a   :  { %5878 = vrot.lane.b32.xlu0 %v40133_v18, %s39034_s22  ;;  %6368 = vmatprep.subr.mxu0 %v5916_v19  ;;  %v5915_v32 = vsel %vm5902_vm8, %v40246_v48, %v5891_v41 }
 0x17b   :  { %8101 = vrot.lane.b32.xlu1 %v40099_v37, %s39037_s30  ;;  %6369 = vmatpush1.msra.mxu0 %v5915_v32 }
 0x17c   :  { %v2947_v23 = vpop.permute.xlu0 %2946  ;;  %35575 = vmatmul.mubr.msk.f32.vlgmr.msra.gmra.mrb[8].mxu0 %vm155_vm1, %v40161_v28 }
 0x17d   :  { %v5899_v26 = vpop.permute.xlu1 %5898  ;;  %v2970_v49 = vsel %vm2954_vm4, %v2947_v23, %v39688_v60  ;;  %v2969_v52 = vsel %vm2954_vm4, %v39667_v31, %v2947_v23  ;;  %6574 = vmatprep.mubr.f32.mxu0 %v46885_v61 }
 0x17e   :  { %8103 = vrot.lane.b32.xlu0 %v40113_v0, %s39037_s30  ;;  %3491 = vmatprep.subr.mxu1 %v2970_v49 }
 0x17f   :  { %8099 = vrot.lane.b32.xlu1 %v40120_v44, %s39037_s30  ;;  %3492 = vmatpush1.msra.mxu1 %v2969_v52  ;;  %v40300_v52 = vld [vmem:[%s46736_s1 + $0x48] sm:$0xff] }
 0x180   :  { %v5901_v41 = vpop.permute.xlu0 %5900  ;;  %35536 = vmatmul.mubr.msk.f32.vlgmr.msra.gmra.mrb[4].mxu1 %vm155_vm1, %v39624_v43 }
 0x181   :  { %v40270_v19 = vpop.permute.xlu1 %5896  ;;  %v5920_v60 = vsel %vm5902_vm8, %v5899_v26, %v5901_v41  ;;  %3866 = vmatprep.mubr.f32.mxu1 %v46885_v61 }
 0x182   :  { %5886 = vrot.lane.b32.xlu0 %v40168_v34, %s39034_s22  ;;  %6510 = vmatprep.subr.mxu0 %v5920_v60  ;;  %v5919_v31 = vsel %vm5902_vm8, %v40270_v19, %v5899_v26 }
 0x183   :  { %8109 = vrot.lane.b32.xlu1 %v39933_v13, %s39037_s30  ;;  %6511 = vmatpush1.msra.mxu0 %v5919_v31 }
 0x184   :  { %v3660_v32 = vpop.permute.xlu0 %3659  ;;  %35577 = vmatmul.mubr.msk.f32.vlgmr.msra.gmra.mrb[10].mxu0 %vm155_vm1, %v40161_v28 }
 0x185   :  { %v6604_v43 = vpop.permute.xlu1 %6603  ;;  %v3695_v23 = vsel %vm3691_vm5, %v3660_v32, %v39728_v36  ;;  %v3694_v49 = vsel %vm3691_vm5, %v39698_v25, %v3660_v32  ;;  %6743 = vmatprep.mubr.f32.mxu0 %v46885_v61 }
 0x186   :  { %8111 = vrot.lane.b32.xlu0 %v39947_v5, %s39037_s30  ;;  %3802 = vmatprep.subr.mxu1 %v3695_v23 }
 0x187   :  { %8107 = vrot.lane.b32.xlu1 %v39954_v4, %s39037_s30  ;;  %3803 = vmatpush1.msra.mxu1 %v3694_v49 }
 0x188   :  { %v40291_v26 = vpop.permute.xlu0 %6605  ;;  %35540 = vmatmul.mubr.msk.f32.vlgmr.msra.gmra.mrb[6].mxu1 %vm155_vm1, %v39706_v38 }
 0x189   :  { %v6602_v36 = vpop.permute.xlu1 %6601  ;;  %v6641_v25 = vsel %vm6639_vm9, %v6604_v43, %v40291_v26  ;;  %4008 = vmatprep.mubr.f32.mxu1 %v46885_v61 }
 0x18a   :  { %v6640_v41 = vsel %vm6639_vm9, %v6602_v36, %v6604_v43  ;;  %5894 = vrot.lane.b32.xlu0 %v40197_v53, %s39034_s22  ;;  %6679 = vmatprep.subr.mxu0 %v6641_v25 }
 0x18b   :  { %8814 = vrot.lane.b32.xlu1 %v39976_v9, %s39038_s28  ;;  %6680 = vmatpush1.msra.mxu0 %v6640_v41 }
 0x18c   :  { %v3668_v60 = vpop.permute.xlu0 %3667  ;;  %35579 = vmatmul.mubr.msk.f32.vlgmr.msra.gmra.mrb[0].mxu0 %vm155_vm1, %v40300_v52 }
 0x18d   :  { %v6612_v31 = vpop.permute.xlu1 %6611  ;;  %v3699_v32 = vsel %vm3691_vm5, %v3668_v60, %v39754_v29  ;;  %v3698_v43 = vsel %vm3691_vm5, %v39724_v27, %v3668_v60  ;;  %6885 = vmatprep.mubr.f32.mxu0 %v46885_v61 }
 0x18e   :  { %8816 = vrot.lane.b32.xlu0 %v39990_v39, %s39038_s28  ;;  %3944 = vmatprep.subr.mxu1 %v3699_v32 }
 0x18f   :  { %8812 = vrot.lane.b32.xlu1 %v39997_v11, %s39038_s28  ;;  %3945 = vmatpush1.msra.mxu1 %v3698_v43 }
 0x190   :  { %v40319_v23 = vpop.permute.xlu0 %6613  ;;  %35542 = vmatmul.mubr.msk.f32.vlgmr.msra.gmra.mrb[0].mxu1 %vm155_vm1, %v39706_v38 }
 0x191   :  { %v40323_v49 = vpop.permute.xlu1 %6609  ;;  %v6645_v27 = vsel %vm6639_vm9, %v6612_v31, %v40319_v23  ;;  %4150 = vmatprep.mubr.f32.mxu1 %v46885_v61 }
 0x192   :  { %6607 = vrot.lane.b32.xlu0 %v39924_v54, %s39035_s25  ;;  %6821 = vmatprep.subr.mxu0 %v6645_v27  ;;  %v6644_v29 = vsel %vm6639_vm9, %v40323_v49, %v6612_v31 }
 0x193   :  { %8822 = vrot.lane.b32.xlu1 %v40017_v22, %s39038_s28  ;;  %6822 = vmatpush1.msra.mxu0 %v6644_v29 }
 0x194   :  { %v3676_v36 = vpop.permute.xlu0 %3675  ;;  %35581 = vmatmul.mubr.msk.f32.vlgmr.msra.gmra.mrb[4].mxu0 %vm155_vm1, %v40300_v52 }
 0x195   :  { %v6620_v25 = vpop.permute.xlu1 %6619  ;;  %v3703_v41 = vsel %vm3691_vm5, %v3676_v36, %v39781_v46  ;;  %v3702_v60 = vsel %vm3691_vm5, %v39750_v59, %v3676_v36  ;;  %7027 = vmatprep.mubr.f32.mxu0 %v46885_v61 }
 0x196   :  { %8824 = vrot.lane.b32.xlu0 %v40031_v7, %s39038_s28  ;;  %4086 = vmatprep.subr.mxu1 %v3703_v41 }
 0x197   :  { %8820 = vrot.lane.b32.xlu1 %v40038_v63, %s39038_s28  ;;  %4087 = vmatpush1.msra.mxu1 %v3702_v60 }
 0x198   :  { %v40345_v31 = vpop.permute.xlu0 %6621  ;;  %35544 = vmatmul.mubr.msk.f32.vlgmr.msra.gmra.mrb[2].mxu1 %vm155_vm1, %v39706_v38 }
 0x199   :  { %v40349_v32 = vpop.permute.xlu1 %6617  ;;  %v6649_v59 = vsel %vm6639_vm9, %v6620_v25, %v40345_v31  ;;  %4292 = vmatprep.mubr.f32.mxu1 %v46885_v61 }
 0x19a   :  { %6615 = vrot.lane.b32.xlu0 %v40133_v18, %s39035_s25  ;;  %6963 = vmatprep.subr.mxu0 %v6649_v59  ;;  %v6648_v46 = vsel %vm6639_vm9, %v40349_v32, %v6620_v25 }
 0x19b   :  { %8830 = vrot.lane.b32.xlu1 %v40058_v10, %s39038_s28  ;;  %6964 = vmatpush1.msra.mxu0 %v6648_v46 }
 0x19c   :  { %v3684_v43 = vpop.permute.xlu0 %3683  ;;  %35583 = vmatmul.mubr.msk.f32.vlgmr.msra.gmra.mrb[6].mxu0 %vm155_vm1, %v40300_v52 }
 0x19d   :  { %v6628_v27 = vpop.permute.xlu1 %6627  ;;  %v3707_v29 = vsel %vm3691_vm5, %v3684_v43, %v39805_v14  ;;  %v3706_v36 = vsel %vm3691_vm5, %v39776_v42, %v3684_v43  ;;  %7169 = vmatprep.mubr.f32.mxu0 %v46885_v61 }
 0x19e   :  { %8832 = vrot.lane.b32.xlu0 %v40072_v58, %s39038_s28  ;;  %4228 = vmatprep.subr.mxu1 %v3707_v29 }
 0x19f   :  { %8828 = vrot.lane.b32.xlu1 %v40079_v12, %s39038_s28  ;;  %4229 = vmatpush1.msra.mxu1 %v3706_v36 }
 0x1a0   :  { %v40371_v25 = vpop.permute.xlu0 %6629  ;;  %35546 = vmatmul.mubr.msk.f32.vlgmr.msra.gmra.mrb[4].mxu1 %vm155_vm1, %v39706_v38 }
 0x1a1   :  { %v40375_v41 = vpop.permute.xlu1 %6625  ;;  %v6653_v42 = vsel %vm6639_vm9, %v6628_v27, %v40371_v25  ;;  %4603 = vmatprep.mubr.f32.mxu1 %v46885_v61 }
 0x1a2   :  { %6623 = vrot.lane.b32.xlu0 %v40168_v34, %s39035_s25  ;;  %7105 = vmatprep.subr.mxu0 %v6653_v42  ;;  %v6652_v14 = vsel %vm6639_vm9, %v40375_v41, %v6628_v27 }
 0x1a3   :  { %8838 = vrot.lane.b32.xlu1 %v40099_v37, %s39038_s28  ;;  %7106 = vmatpush1.msra.mxu0 %v6652_v14 }
 0x1a4   :  { %v4397_v60 = vpop.permute.xlu0 %4396  ;;  %35585 = vmatmul.mubr.msk.f32.vlgmr.msra.gmra.mrb[8].mxu0 %vm155_vm1, %v40300_v52 }
 0x1a5   :  { %v6636_v38 = vpop.permute.xlu1 %6635  ;;  %v4432_v59 = vsel %vm4428_vm6, %v4397_v60, %v39852_v2  ;;  %v4431_v46 = vsel %vm4428_vm6, %v39819_v15, %v4397_v60  ;;  %7311 = vmatprep.mubr.f32.mxu0 %v46885_v61 }
 0x1a6   :  { %8840 = vrot.lane.b32.xlu0 %v40113_v0, %s39038_s28  ;;  %4539 = vmatprep.subr.mxu1 %v4432_v59 }
 0x1a7   :  { %8836 = vrot.lane.b32.xlu1 %v40120_v44, %s39038_s28  ;;  %4540 = vmatpush1.msra.mxu1 %v4431_v46 }
 0x1a8   :  { %v6638_v43 = vpop.permute.xlu0 %6637  ;;  %35550 = vmatmul.mubr.msk.f32.vlgmr.msra.gmra.mrb[6].mxu1 %vm155_vm1, %v39828_v3 }
 0x1a9   :  { %v40399_v27 = vpop.permute.xlu1 %6633  ;;  %v6657_v2 = vsel %vm6639_vm9, %v6636_v38, %v6638_v43  ;;  %4745 = vmatprep.mubr.f32.mxu1 %v46885_v61 }
 0x1aa   :  { %6631 = vrot.lane.b32.xlu0 %v40197_v53, %s39035_s25  ;;  %7247 = vmatprep.subr.mxu0 %v6657_v2  ;;  %v6656_v15 = vsel %vm6639_vm9, %v40399_v27, %v6636_v38  ;;  %v40429_v38 = vld [vmem:[%s46736_s1 + $0x50] sm:$0xff] }
 0x1ab   :  { %8846 = vrot.lane.b32.xlu1 %v39933_v13, %s39038_s28  ;;  %7248 = vmatpush1.msra.mxu0 %v6656_v15 }
 0x1ac   :  { %v4405_v29 = vpop.permute.xlu0 %4404  ;;  %35587 = vmatmul.mubr.msk.f32.vlgmr.msra.gmra.mrb[10].mxu0 %vm155_vm1, %v40300_v52 }
 0x1ad   :  { %v7341_v36 = vpop.permute.xlu1 %7340  ;;  %v4436_v42 = vsel %vm4428_vm6, %v4405_v29, %v39868_v51  ;;  %v4435_v14 = vsel %vm4428_vm6, %v39841_v33, %v4405_v29  ;;  %7480 = vmatprep.mubr.f32.mxu0 %v46885_v61 }
 0x1ae   :  { %8848 = vrot.lane.b32.xlu0 %v39947_v5, %s39038_s28  ;;  %4681 = vmatprep.subr.mxu1 %v4436_v42 }
 0x1af   :  { %8844 = vrot.lane.b32.xlu1 %v39954_v4, %s39038_s28  ;;  %4682 = vmatpush1.msra.mxu1 %v4435_v14 }
 0x1b0   :  { %v40420_v60 = vpop.permute.xlu0 %7342  ;;  %35552 = vmatmul.mubr.msk.f32.vlgmr.msra.gmra.mrb[0].mxu1 %vm155_vm1, %v39828_v3 }
 0x1b1   :  { %v7339_v51 = vpop.permute.xlu1 %7338  ;;  %v7378_v33 = vsel %vm7376_vm10, %v7341_v36, %v40420_v60  ;;  %4887 = vmatprep.mubr.f32.mxu1 %v46885_v61 }
 0x1b2   :  { %v7377_v59 = vsel %vm7376_vm10, %v7339_v51, %v7341_v36  ;;  %7344 = vrot.lane.b32.xlu0 %v39924_v54, %s39036_s12  ;;  %7416 = vmatprep.subr.mxu0 %v7378_v33 }
 0x1b3   :  { %9551 = vrot.lane.b32.xlu1 %v39976_v9, %s39039_s23  ;;  %7417 = vmatpush1.msra.mxu0 %v7377_v59 }
 0x1b4   :  { %v4413_v46 = vpop.permute.xlu0 %4412  ;;  %35589 = vmatmul.mubr.msk.f32.vlgmr.msra.gmra.mrb[0].mxu0 %vm155_vm1, %v40429_v38 }
 0x1b5   :  { %v7349_v43 = vpop.permute.xlu1 %7348  ;;  %v4440_v2 = vsel %vm4428_vm6, %v4413_v46, %v39893_v21  ;;  %v4439_v15 = vsel %vm4428_vm6, %v39865_v6, %v4413_v46  ;;  %7622 = vmatprep.mubr.f32.mxu0 %v46885_v61 }
 0x1b6   :  { %9553 = vrot.lane.b32.xlu0 %v39990_v39, %s39039_s23  ;;  %4823 = vmatprep.subr.mxu1 %v4440_v2 }
 0x1b7   :  { %9549 = vrot.lane.b32.xlu1 %v39997_v11, %s39039_s23  ;;  %4824 = vmatpush1.msra.mxu1 %v4439_v15 }
 0x1b8   :  { %v40448_v29 = vpop.permute.xlu0 %7350  ;;  %35554 = vmatmul.mubr.msk.f32.vlgmr.msra.gmra.mrb[2].mxu1 %vm155_vm1, %v39828_v3 }
 0x1b9   :  { %v40452_v36 = vpop.permute.xlu1 %7346  ;;  %v7382_v6 = vsel %vm7376_vm10, %v7349_v43, %v40448_v29  ;;  %5029 = vmatprep.mubr.f32.mxu1 %v46885_v61 }
 0x1ba   :  { %7352 = vrot.lane.b32.xlu0 %v40133_v18, %s39036_s12  ;;  %7558 = vmatprep.subr.mxu0 %v7382_v6  ;;  %v7381_v21 = vsel %vm7376_vm10, %v40452_v36, %v7349_v43 }
 0x1bb   :  { %9559 = vrot.lane.b32.xlu1 %v40017_v22, %s39039_s23  ;;  %7559 = vmatpush1.msra.mxu0 %v7381_v21 }
 0x1bc   :  { %v4421_v42 = vpop.permute.xlu0 %4420  ;;  %35591 = vmatmul.mubr.msk.f32.vlgmr.msra.gmra.mrb[4].mxu0 %vm155_vm1, %v40429_v38 }
 0x1bd   :  { %v7357_v14 = vpop.permute.xlu1 %7356  ;;  %v4444_v51 = vsel %vm4428_vm6, %v4421_v42, %v39917_v1  ;;  %v4443_v33 = vsel %vm4428_vm6, %v39889_v8, %v4421_v42  ;;  %7764 = vmatprep.mubr.f32.mxu0 %v46885_v61  ;;  %vm11798_vm6 = vcmask 252928  }
 0x1be   :  { %9561 = vrot.lane.b32.xlu0 %v40031_v7, %s39039_s23  ;;  %4965 = vmatprep.subr.mxu1 %v4444_v51 }
 0x1bf   :  { %9557 = vrot.lane.b32.xlu1 %v40038_v63, %s39039_s23  ;;  %4966 = vmatpush1.msra.mxu1 %v4443_v33 }
 0x1c0   :  { %v40474_v59 = vpop.permute.xlu0 %7358  ;;  %35556 = vmatmul.mubr.msk.f32.vlgmr.msra.gmra.mrb[4].mxu1 %vm155_vm1, %v39828_v3 }
 0x1c1   :  { %v40478_v46 = vpop.permute.xlu1 %7354  ;;  %v7386_v8 = vsel %vm7376_vm10, %v7357_v14, %v40474_v59  ;;  %5340 = vmatprep.mubr.f32.mxu1 %v46885_v61 }
 0x1c2   :  { %7360 = vrot.lane.b32.xlu0 %v40168_v34, %s39036_s12  ;;  %7700 = vmatprep.subr.mxu0 %v7386_v8  ;;  %v7385_v1 = vsel %vm7376_vm10, %v40478_v46, %v7357_v14 }
 0x1c3   :  { %9567 = vrot.lane.b32.xlu1 %v40058_v10, %s39039_s23  ;;  %7701 = vmatpush1.msra.mxu0 %v7385_v1 }
 0x1c4   :  { %v5134_v43 = vpop.permute.xlu0 %5133  ;;  %35593 = vmatmul.mubr.msk.f32.vlgmr.msra.gmra.mrb[6].mxu0 %vm155_vm1, %v40429_v38 }
 0x1c5   :  { %v7365_v3 = vpop.permute.xlu1 %7364  ;;  %v5169_v2 = vsel %vm5165_vm7, %v5134_v43, %v40005_v24  ;;  %v5168_v15 = vsel %vm5165_vm7, %v39958_v57, %v5134_v43  ;;  %7906 = vmatprep.mubr.f32.mxu0 %v46885_v61 }
 0x1c6   :  { %9569 = vrot.lane.b32.xlu0 %v40072_v58, %s39039_s23  ;;  %5276 = vmatprep.subr.mxu1 %v5169_v2 }
 0x1c7   :  { %9565 = vrot.lane.b32.xlu1 %v40079_v12, %s39039_s23  ;;  %5277 = vmatpush1.msra.mxu1 %v5168_v15 }
 0x1c8   :  { %v40500_v6 = vpop.permute.xlu0 %7366  ;;  %35560 = vmatmul.mubr.msk.f32.vlgmr.msra.gmra.mrb[6].mxu1 %vm155_vm1, %v39967_v16 }
 0x1c9   :  { %v40504_v21 = vpop.permute.xlu1 %7362  ;;  %v7390_v57 = vsel %vm7376_vm10, %v7365_v3, %v40500_v6  ;;  %5482 = vmatprep.mubr.f32.mxu1 %v46885_v61 }
 0x1ca   :  { %7368 = vrot.lane.b32.xlu0 %v40197_v53, %s39036_s12  ;;  %7842 = vmatprep.subr.mxu0 %v7390_v57  ;;  %v7389_v24 = vsel %vm7376_vm10, %v40504_v21, %v7365_v3  ;;  %v40558_v57 = vld [vmem:[%s46736_s1 + $0x58] sm:$0xff] }
 0x1cb   :  { %9575 = vrot.lane.b32.xlu1 %v40099_v37, %s39039_s23  ;;  %7843 = vmatpush1.msra.mxu0 %v7389_v24 }
 0x1cc   :  { %v5142_v42 = vpop.permute.xlu0 %5141  ;;  %35595 = vmatmul.mubr.msk.f32.vlgmr.msra.gmra.mrb[8].mxu0 %vm155_vm1, %v40429_v38 }
 0x1cd   :  { %v7373_v14 = vpop.permute.xlu1 %7372  ;;  %v5173_v51 = vsel %vm5165_vm7, %v5142_v42, %v40046_v45  ;;  %v5172_v33 = vsel %vm5165_vm7, %v40001_v62, %v5142_v42  ;;  %8048 = vmatprep.mubr.f32.mxu0 %v46885_v61 }
 0x1ce   :  { %9577 = vrot.lane.b32.xlu0 %v40113_v0, %s39039_s23  ;;  %5418 = vmatprep.subr.mxu1 %v5173_v51 }
 0x1cf   :  { %9573 = vrot.lane.b32.xlu1 %v40120_v44, %s39039_s23  ;;  %5419 = vmatpush1.msra.mxu1 %v5172_v33 }
 0x1d0   :  { %v7375_v8 = vpop.permute.xlu0 %7374  ;;  %35562 = vmatmul.mubr.msk.f32.vlgmr.msra.gmra.mrb[0].mxu1 %vm155_vm1, %v39967_v16 }
 0x1d1   :  { %v40528_v1 = vpop.permute.xlu1 %7370  ;;  %v7394_v45 = vsel %vm7376_vm10, %v7373_v14, %v7375_v8  ;;  %5624 = vmatprep.mubr.f32.mxu1 %v46885_v61 }
 0x1d2   :  { %8081 = vrot.lane.b32.xlu0 %v39924_v54, %s39037_s30  ;;  %7984 = vmatprep.subr.mxu0 %v7394_v45  ;;  %v7393_v62 = vsel %vm7376_vm10, %v40528_v1, %v7373_v14 }
 0x1d3   :  { %9583 = vrot.lane.b32.xlu1 %v39933_v13, %s39039_s23  ;;  %7985 = vmatpush1.msra.mxu0 %v7393_v62  ;;  %v46887_v62 = vld [vmem:[#allocation5_spill] sm:$0xff] }
 0x1d4   :  { %v5150_v43 = vpop.permute.xlu0 %5149  ;;  %35597 = vmatmul.mubr.msk.f32.vlgmr.msra.gmra.mrb[10].mxu0 %vm155_vm1, %v40429_v38 }
 0x1d5   :  { %v8078_v3 = vpop.permute.xlu1 %8077  ;;  %v5177_v2 = vsel %vm5165_vm7, %v5150_v43, %v40087_v56  ;;  %v5176_v15 = vsel %vm5165_vm7, %v40042_v30, %v5150_v43  ;;  %8217 = vmatprep.mubr.f32.mxu0 %v46885_v61 }
 0x1d6   :  { %9585 = vrot.lane.b32.xlu0 %v39947_v5, %s39039_s23  ;;  %5560 = vmatprep.subr.mxu1 %v5177_v2 }
 0x1d7   :  { %9581 = vrot.lane.b32.xlu1 %v39954_v4, %s39039_s23  ;;  %5561 = vmatpush1.msra.mxu1 %v5176_v15 }
 0x1d8   :  { %v40549_v13 = vpop.permute.xlu0 %8079  ;;  %35564 = vmatmul.mubr.msk.f32.vlgmr.msra.gmra.mrb[2].mxu1 %vm155_vm1, %v39967_v16 }
 0x1d9   :  { %v8076_v56 = vpop.permute.xlu1 %8075  ;;  %v8115_v30 = vsel %vm8113_vm11, %v8078_v3, %v40549_v13  ;;  %5766 = vmatprep.mubr.f32.mxu1 %v46885_v61 }
 0x1da   :  { %v8114_v5 = vsel %vm8113_vm11, %v8076_v56, %v8078_v3  ;;  %8089 = vrot.lane.b32.xlu0 %v40133_v18, %s39037_s30  ;;  %8153 = vmatprep.subr.mxu0 %v8115_v30 }
 0x1db   :  { %10288 = vrot.lane.b32.xlu1 %v39976_v9, %s39040_s27  ;;  %8154 = vmatpush1.msra.mxu0 %v8114_v5 }
 0x1dc   :  { %v5158_v4 = vpop.permute.xlu0 %5157  ;;  %35599 = vmatmul.mubr.msk.f32.vlgmr.msra.gmra.mrb[0].mxu0 %vm155_vm1, %v40558_v57 }
 0x1dd   :  { %v8086_v24 = vpop.permute.xlu1 %8085  ;;  %v5181_v42 = vsel %vm5165_vm7, %v5158_v4, %v40126_v20  ;;  %v5180_v14 = vsel %vm5165_vm7, %v40083_v40, %v5158_v4  ;;  %8359 = vmatprep.mubr.f32.mxu0 %v46885_v61  ;;  %vm12535_vm7 = vcmask 244736  }
 0x1de   :  { %10290 = vrot.lane.b32.xlu0 %v39990_v39, %s39040_s27  ;;  %5702 = vmatprep.subr.mxu1 %v5181_v42  ;;  %v40689_v42 = vld [vmem:[%s46735_s0 + $0x80] sm:$0xff] }
 0x1df   :  { %10286 = vrot.lane.b32.xlu1 %v39997_v11, %s39040_s27  ;;  %5703 = vmatpush1.msra.mxu1 %v5180_v14 }
 0x1e0   :  { %v40577_v9 = vpop.permute.xlu0 %8087  ;;  %35566 = vmatmul.mubr.msk.f32.vlgmr.msra.gmra.mrb[4].mxu1 %vm155_vm1, %v39967_v16 }
 0x1e1   :  { %v40581_v51 = vpop.permute.xlu1 %8083  ;;  %v8119_v40 = vsel %vm8113_vm11, %v8086_v24, %v40577_v9  ;;  %6077 = vmatprep.mubr.f32.mxu1 %v46885_v61 }
 0x1e2   :  { %8097 = vrot.lane.b32.xlu0 %v40168_v34, %s39037_s30  ;;  %8295 = vmatprep.subr.mxu0 %v8119_v40  ;;  %v8118_v39 = vsel %vm8113_vm11, %v40581_v51, %v8086_v24  ;;  %v40682_v24 = vld [vmem:[%s46735_s0 + $0x90] sm:$0xff]  ;;  %v40702_v40 = vld [vmem:[%s46736_s1 + $0x60] sm:$0xff] }
 0x1e3   :  { %10296 = vrot.lane.b32.xlu1 %v40017_v22, %s39040_s27  ;;  %8296 = vmatpush1.msra.mxu0 %v8118_v39 }
 0x1e4   :  { %v5871_v11 = vpop.permute.xlu0 %5870  ;;  %35601 = vmatmul.mubr.msk.f32.vlgmr.msra.gmra.mrb[4].mxu0 %vm155_vm1, %v40558_v57 }
 0x1e5   :  { %v8094_v16 = vpop.permute.xlu1 %8093  ;;  %v5906_v20 = vsel %vm5902_vm8, %v5871_v11, %v40189_v17  ;;  %v5905_v33 = vsel %vm5902_vm8, %v40152_v47, %v5871_v11  ;;  %8501 = vmatprep.mubr.f32.mxu0 %v46885_v61 }
 0x1e6   :  { %10298 = vrot.lane.b32.xlu0 %v40031_v7, %s39040_s27  ;;  %6013 = vmatprep.subr.mxu1 %v5906_v20 }
 0x1e7   :  { %10294 = vrot.lane.b32.xlu1 %v40038_v63, %s39040_s27  ;;  %6014 = vmatpush1.msra.mxu1 %v5905_v33 }
 0x1e8   :  { %v40603_v22 = vpop.permute.xlu0 %8095  ;;  %35570 = vmatmul.mubr.msk.f32.vlgmr.msra.gmra.mrb[6].mxu1 %vm155_vm1, %v40161_v28 }
 0x1e9   :  { %v40607_v8 = vpop.permute.xlu1 %8091  ;;  %v8123_v47 = vsel %vm8113_vm11, %v8094_v16, %v40603_v22  ;;  %6219 = vmatprep.mubr.f32.mxu1 %v46885_v61 }
 0x1ea   :  { %8105 = vrot.lane.b32.xlu0 %v40197_v53, %s39037_s30  ;;  %8437 = vmatprep.subr.mxu0 %v8123_v47  ;;  %v8122_v7 = vsel %vm8113_vm11, %v40607_v8, %v8094_v16  ;;  %v40725_v47 = vld [vmem:[%s46735_s0 + $0x10] sm:$0xff]  ;;  %s39044_s30 = smov 29  }
 0x1eb   :  { %10304 = vrot.lane.b32.xlu1 %v40058_v10, %s39040_s27  ;;  %8438 = vmatpush1.msra.mxu0 %v8122_v7  ;;  %v40732_v7 = vld [vmem:[%s46735_s0] sm:$0xff] }
 0x1ec   :  { %v5879_v63 = vpop.permute.xlu0 %5878  ;;  %35603 = vmatmul.mubr.msk.f32.vlgmr.msra.gmra.mrb[6].mxu0 %vm155_vm1, %v40558_v57 }
 0x1ed   :  { %v8102_v17 = vpop.permute.xlu1 %8101  ;;  %v5910_v45 = vsel %vm5902_vm8, %v5879_v63, %v40220_v35  ;;  %v5909_v43 = vsel %vm5902_vm8, %v46887_v62, %v5879_v63  ;;  %8643 = vmatprep.mubr.f32.mxu0 %v46885_v61 }
 0x1ee   :  { %10306 = vrot.lane.b32.xlu0 %v40072_v58, %s39040_s27  ;;  %6155 = vmatprep.subr.mxu1 %v5910_v45  ;;  %v40752_v45 = vld [vmem:[%s46735_s0 + $0x28] sm:$0xff] }
 0x1ef   :  { %10302 = vrot.lane.b32.xlu1 %v40079_v12, %s39040_s27  ;;  %6156 = vmatpush1.msra.mxu1 %v5909_v43 }
 0x1f0   :  { %v40629_v10 = vpop.permute.xlu0 %8103  ;;  %35572 = vmatmul.mubr.msk.f32.vlgmr.msra.gmra.mrb[0].mxu1 %vm155_vm1, %v40161_v28 }
 0x1f1   :  { %v40633_v3 = vpop.permute.xlu1 %8099  ;;  %v8127_v35 = vsel %vm8113_vm11, %v8102_v17, %v40629_v10  ;;  %6361 = vmatprep.mubr.f32.mxu1 %v46885_v61 }
 0x1f2   :  { %8818 = vrot.lane.b32.xlu0 %v39924_v54, %s39038_s28  ;;  %8579 = vmatprep.subr.mxu0 %v8127_v35  ;;  %v8126_v58 = vsel %vm8113_vm11, %v40633_v3, %v8102_v17 }
 0x1f3   :  { %10312 = vrot.lane.b32.xlu1 %v40099_v37, %s39040_s27  ;;  %8580 = vmatpush1.msra.mxu0 %v8126_v58 }
 0x1f4   :  { %v5887_v12 = vpop.permute.xlu0 %5886  ;;  %35605 = vmatmul.mubr.msk.f32.vlgmr.msra.gmra.mrb[8].mxu0 %vm155_vm1, %v40558_v57 }
 0x1f5   :  { %v8110_v2 = vpop.permute.xlu1 %8109  ;;  %v5914_v15 = vsel %vm5902_vm8, %v5887_v12, %v40246_v48  ;;  %v5913_v56 = vsel %vm5902_vm8, %v40216_v55, %v5887_v12  ;;  %8785 = vmatprep.mubr.f32.mxu0 %v46885_v61  ;;  %v40766_v12 = vld [vmem:[%s46735_s0 + $0x30] sm:$0xff] }
 0x1f6   :  { %10314 = vrot.lane.b32.xlu0 %v40113_v0, %s39040_s27  ;;  %6297 = vmatprep.subr.mxu1 %v5914_v15 }
 0x1f7   :  { %10310 = vrot.lane.b32.xlu1 %v40120_v44, %s39040_s27  ;;  %6298 = vmatpush1.msra.mxu1 %v5913_v56  ;;  %v40668_v44 = vld [vmem:[%s46735_s0 + $0x88] sm:$0xff]  ;;  %v40789_v56 = vld [vmem:[%s46735_s0 + $0x18] sm:$0xff] }
 0x1f8   :  { %v8112_v54 = vpop.permute.xlu0 %8111  ;;  %35574 = vmatmul.mubr.msk.f32.vlgmr.msra.gmra.mrb[2].mxu1 %vm155_vm1, %v40161_v28 }
 0x1f9   :  { %v40657_v37 = vpop.permute.xlu1 %8107  ;;  %v8131_v48 = vsel %vm8113_vm11, %v8110_v2, %v8112_v54  ;;  %6503 = vmatprep.mubr.f32.mxu1 %v46885_v61 }
 0x1fa   :  { %8826 = vrot.lane.b32.xlu0 %v40133_v18, %s39038_s28  ;;  %8721 = vmatprep.subr.mxu0 %v8131_v48  ;;  %v8130_v0 = vsel %vm8113_vm11, %v40657_v37, %v8110_v2  ;;  %v40773_v2 = vld [vmem:[%s46735_s0 + $0x20] sm:$0xff]  ;;  %v40798_v48 = vld [vmem:[%s46735_s0 + $0x48] sm:$0xff] }
 0x1fb   :  { %10320 = vrot.lane.b32.xlu1 %v40668_v44, %s39040_s27  ;;  %8722 = vmatpush1.msra.mxu0 %v8130_v0 }
 0x1fc   :  { %v5895_v55 = vpop.permute.xlu0 %5894  ;;  %35607 = vmatmul.mubr.msk.f32.vlgmr.msra.gmra.mrb[10].mxu0 %vm155_vm1, %v40558_v57 }
 0x1fd   :  { %v8815_v30 = vpop.permute.xlu1 %8814  ;;  %v5918_v5 = vsel %vm5902_vm8, %v5895_v55, %v40270_v19  ;;  %v5917_v4 = vsel %vm5902_vm8, %v40242_v50, %v5895_v55  ;;  %8954 = vmatprep.mubr.f32.mxu0 %v46885_v61  ;;  %vm13272_vm8 = vcmask 236544  }
 0x1fe   :  { %10322 = vrot.lane.b32.xlu0 %v40682_v24, %s39040_s27  ;;  %6439 = vmatprep.subr.mxu1 %v5918_v5 }
 0x1ff   :  { %10318 = vrot.lane.b32.xlu1 %v40689_v42, %s39040_s27  ;;  %6440 = vmatpush1.msra.mxu1 %v5917_v4  ;;  %v40812_v4 = vld [vmem:[%s46735_s0 + $0x50] sm:$0xff] }
 0x200   :  { %v40693_v50 = vpop.permute.xlu0 %8816  ;;  %35576 = vmatmul.mubr.msk.f32.vlgmr.msra.gmra.mrb[4].mxu1 %vm155_vm1, %v40161_v28  ;;  %v40711_v28 = vld [vmem:[%s46735_s0 + $0x8] sm:$0xff] }
 0x201   :  { %v8813_v19 = vpop.permute.xlu1 %8812  ;;  %v8852_v14 = vsel %vm8850_vm12, %v8815_v30, %v40693_v50  ;;  %6814 = vmatprep.mubr.f32.mxu1 %v46885_v61 }
 0x202   :  { %v8851_v39 = vsel %vm8850_vm12, %v8813_v19, %v8815_v30  ;;  %8834 = vrot.lane.b32.xlu0 %v40168_v34, %s39038_s28  ;;  %8890 = vmatprep.subr.mxu0 %v8852_v14  ;;  %v40819_v19 = vld [vmem:[%s46735_s0 + $0x40] sm:$0xff] }
 0x203   :  { %11025 = vrot.lane.b32.xlu1 %v40711_v28, %s39041_s29  ;;  %8891 = vmatpush1.msra.mxu0 %v8851_v39 }
 0x204   :  { %v6608_v11 = vpop.permute.xlu0 %6607  ;;  %35609 = vmatmul.mubr.msk.f32.vlgmr.msra.gmra.mrb[0].mxu0 %vm155_vm1, %v40702_v40 }
 0x205   :  { %v8823_v16 = vpop.permute.xlu1 %8822  ;;  %v6643_v20 = vsel %vm6639_vm9, %v6608_v11, %v40323_v49  ;;  %v6642_v33 = vsel %vm6639_vm9, %v40291_v26, %v6608_v11  ;;  %9096 = vmatprep.mubr.f32.mxu0 %v46885_v61  ;;  %v40839_v11 = vld [vmem:[%s46735_s0 + $0x68] sm:$0xff] }
 0x206   :  { %11027 = vrot.lane.b32.xlu0 %v40725_v47, %s39041_s29  ;;  %6750 = vmatprep.subr.mxu1 %v6643_v20 }
 0x207   :  { %11023 = vrot.lane.b32.xlu1 %v40732_v7, %s39041_s29  ;;  %6751 = vmatpush1.msra.mxu1 %v6642_v33 }
 0x208   :  { %v40736_v26 = vpop.permute.xlu0 %8824  ;;  %35580 = vmatmul.mubr.msk.f32.vlgmr.msra.gmra.mrb[6].mxu1 %vm155_vm1, %v40300_v52 }
 0x209   :  { %v40740_v49 = vpop.permute.xlu1 %8820  ;;  %v8856_v63 = vsel %vm8850_vm12, %v8823_v16, %v40736_v26  ;;  %6956 = vmatprep.mubr.f32.mxu1 %v46885_v61 }
 0x20a   :  { %8842 = vrot.lane.b32.xlu0 %v40197_v53, %s39038_s28  ;;  %9032 = vmatprep.subr.mxu0 %v8856_v63  ;;  %v8855_v17 = vsel %vm8850_vm12, %v40740_v49, %v8823_v16  ;;  %v40853_v63 = vld [vmem:[%s46735_s0 + $0x70] sm:$0xff] }
 0x20b   :  { %11033 = vrot.lane.b32.xlu1 %v40752_v45, %s39041_s29  ;;  %9033 = vmatpush1.msra.mxu0 %v8855_v17  ;;  %v40860_v17 = vld [vmem:[%s46735_s0 + $0x60] sm:$0xff] }
 0x20c   :  { %v6616_v62 = vpop.permute.xlu0 %6615  ;;  %35611 = vmatmul.mubr.msk.f32.vlgmr.msra.gmra.mrb[4].mxu0 %vm155_vm1, %v40702_v40 }
 0x20d   :  { %v8831_v43 = vpop.permute.xlu1 %8830  ;;  %v6647_v35 = vsel %vm6639_vm9, %v6616_v62, %v40349_v32  ;;  %v6646_v58 = vsel %vm6639_vm9, %v40319_v23, %v6616_v62  ;;  %9238 = vmatprep.mubr.f32.mxu0 %v46885_v61 }
 0x20e   :  { %11035 = vrot.lane.b32.xlu0 %v40766_v12, %s39041_s29  ;;  %6892 = vmatprep.subr.mxu1 %v6647_v35 }
 0x20f   :  { %11031 = vrot.lane.b32.xlu1 %v40773_v2, %s39041_s29  ;;  %6893 = vmatpush1.msra.mxu1 %v6646_v58 }
 0x210   :  { %v40777_v23 = vpop.permute.xlu0 %8832  ;;  %35582 = vmatmul.mubr.msk.f32.vlgmr.msra.gmra.mrb[0].mxu1 %vm155_vm1, %v40300_v52 }
 0x211   :  { %v40781_v32 = vpop.permute.xlu1 %8828  ;;  %v8860_v15 = vsel %vm8850_vm12, %v8831_v43, %v40777_v23  ;;  %7098 = vmatprep.mubr.f32.mxu1 %v46885_v61 }
 0x212   :  { %9555 = vrot.lane.b32.xlu0 %v40789_v56, %s39039_s23  ;;  %9174 = vmatprep.subr.mxu0 %v8860_v15  ;;  %v8859_v54 = vsel %vm8850_vm12, %v40781_v32, %v8831_v43 }
 0x213   :  { %11041 = vrot.lane.b32.xlu1 %v40798_v48, %s39041_s29  ;;  %9175 = vmatpush1.msra.mxu0 %v8859_v54  ;;  %v40896_v54 = vld [vmem:[%s46736_s1 + $0x68] sm:$0xff] }
 0x214   :  { %v6624_v0 = vpop.permute.xlu0 %6623  ;;  %35613 = vmatmul.mubr.msk.f32.vlgmr.msra.gmra.mrb[6].mxu0 %vm155_vm1, %v40702_v40 }
 0x215   :  { %v8839_v55 = vpop.permute.xlu1 %8838  ;;  %v6651_v30 = vsel %vm6639_vm9, %v6624_v0, %v40375_v41  ;;  %v6650_v5 = vsel %vm6639_vm9, %v40345_v31, %v6624_v0  ;;  %9380 = vmatprep.mubr.f32.mxu0 %v46885_v61 }
 0x216   :  { %11043 = vrot.lane.b32.xlu0 %v40812_v4, %s39041_s29  ;;  %7034 = vmatprep.subr.mxu1 %v6651_v30 }
 0x217   :  { %11039 = vrot.lane.b32.xlu1 %v40819_v19, %s39041_s29  ;;  %7035 = vmatpush1.msra.mxu1 %v6650_v5 }
 0x218   :  { %v40823_v31 = vpop.permute.xlu0 %8840  ;;  %35584 = vmatmul.mubr.msk.f32.vlgmr.msra.gmra.mrb[2].mxu1 %vm155_vm1, %v40300_v52 }
 0x219   :  { %v40827_v41 = vpop.permute.xlu1 %8836  ;;  %v8864_v14 = vsel %vm8850_vm12, %v8839_v55, %v40823_v31  ;;  %7240 = vmatprep.mubr.f32.mxu1 %v46885_v61 }
 0x21a   :  { %9563 = vrot.lane.b32.xlu0 %v40133_v18, %s39039_s23  ;;  %9316 = vmatprep.subr.mxu0 %v8864_v14  ;;  %v8863_v39 = vsel %vm8850_vm12, %v40827_v41, %v8839_v55 }
 0x21b   :  { %11049 = vrot.lane.b32.xlu1 %v40839_v11, %s39041_s29  ;;  %9317 = vmatpush1.msra.mxu0 %v8863_v39 }
 0x21c   :  { %v6632_v16 = vpop.permute.xlu0 %6631  ;;  %35615 = vmatmul.mubr.msk.f32.vlgmr.msra.gmra.mrb[8].mxu0 %vm155_vm1, %v40702_v40 }
 0x21d   :  { %v8847_v20 = vpop.permute.xlu1 %8846  ;;  %v6655_v18 = vsel %vm6639_vm9, %v6632_v16, %v40399_v27  ;;  %v6654_v33 = vsel %vm6639_vm9, %v40371_v25, %v6632_v16  ;;  %9522 = vmatprep.mubr.f32.mxu0 %v46885_v61  ;;  %vm14009_vm9 = vcmask 228352  }
 0x21e   :  { %11051 = vrot.lane.b32.xlu0 %v40853_v63, %s39041_s29  ;;  %7176 = vmatprep.subr.mxu1 %v6655_v18 }
 0x21f   :  { %11047 = vrot.lane.b32.xlu1 %v40860_v17, %s39041_s29  ;;  %7177 = vmatpush1.msra.mxu1 %v6654_v33 }
 0x220   :  { %v8849_v25 = vpop.permute.xlu0 %8848  ;;  %35586 = vmatmul.mubr.msk.f32.vlgmr.msra.gmra.mrb[4].mxu1 %vm155_vm1, %v40300_v52 }
 0x221   :  { %v40866_v27 = vpop.permute.xlu1 %8844  ;;  %v8868_v62 = vsel %vm8850_vm12, %v8847_v20, %v8849_v25  ;;  %7551 = vmatprep.mubr.f32.mxu1 %v46885_v61 }
 0x222   :  { %9571 = vrot.lane.b32.xlu0 %v40168_v34, %s39039_s23  ;;  %9458 = vmatprep.subr.mxu0 %v8868_v62  ;;  %v8867_v43 = vsel %vm8850_vm12, %v40866_v27, %v8847_v20  ;;  %v40945_v62 = vpop.f32.mrb[2].mxu0 }
 0x223   :  { %11057 = vrot.lane.b32.xlu1 %v40668_v44, %s39041_s29  ;;  %9459 = vmatpush1.msra.mxu0 %v8867_v43  ;;  %v40952_v43 = vpop.f32.mrb[3].mxu0 }
 0x224   :  { %v7345_v35 = vpop.permute.xlu0 %7344  ;;  %35617 = vmatmul.mubr.msk.f32.vlgmr.msra.gmra.mrb[10].mxu0 %vm155_vm1, %v40702_v40 }
 0x225   :  { %v9552_v52 = vpop.permute.xlu1 %9551  ;;  %v7380_v58 = vsel %vm7376_vm10, %v7345_v35, %v40452_v36  ;;  %v7379_v15 = vsel %vm7376_vm10, %v40420_v60, %v7345_v35  ;;  %9691 = vmatprep.mubr.f32.mxu0 %v46885_v61  ;;  %v40957_v35 = vld [vmem:[%s46735_s0 + $0x38] sm:$0xff] }
 0x226   :  { %11059 = vrot.lane.b32.xlu0 %v40682_v24, %s39041_s29  ;;  %7487 = vmatprep.subr.mxu1 %v7380_v58 }
 0x227   :  { %11055 = vrot.lane.b32.xlu1 %v40689_v42, %s39041_s29  ;;  %7488 = vmatpush1.msra.mxu1 %v7379_v15 }
 0x228   :  { %v40887_v34 = vpop.permute.xlu0 %9553  ;;  %35590 = vmatmul.mubr.msk.f32.vlgmr.msra.gmra.mrb[6].mxu1 %vm155_vm1, %v40429_v38 }
 0x229   :  { %v9550_v36 = vpop.permute.xlu1 %9549  ;;  %v9589_v60 = vsel %vm9587_vm13, %v9552_v52, %v40887_v34  ;;  %7693 = vmatprep.mubr.f32.mxu1 %v46885_v61 }
 0x22a   :  { %v9588_v0 = vsel %vm9587_vm13, %v9550_v36, %v9552_v52  ;;  %9579 = vrot.lane.b32.xlu0 %v40197_v53, %s39039_s23  ;;  %9627 = vmatprep.subr.mxu0 %v9589_v60 }
 0x22b   :  { %11762 = vrot.lane.b32.xlu1 %v40711_v28, %s39042_s26  ;;  %9628 = vmatpush1.msra.mxu0 %v9588_v0 }
 0x22c   :  { %v7353_v55 = vpop.permute.xlu0 %7352  ;;  %35619 = vmatmul.mubr.msk.f32.vlgmr.msra.gmra.mrb[0].mxu0 %vm155_vm1, %v40896_v54 }
 0x22d   :  { %v9560_v30 = vpop.permute.xlu1 %9559  ;;  %v7384_v5 = vsel %vm7376_vm10, %v7353_v55, %v40478_v46  ;;  %v7383_v14 = vsel %vm7376_vm10, %v40448_v29, %v7353_v55  ;;  %9833 = vmatprep.mubr.f32.mxu0 %v46885_v61 }
 0x22e   :  { %11764 = vrot.lane.b32.xlu0 %v40725_v47, %s39042_s26  ;;  %7629 = vmatprep.subr.mxu1 %v7384_v5 }
 0x22f   :  { %11760 = vrot.lane.b32.xlu1 %v40732_v7, %s39042_s26  ;;  %7630 = vmatpush1.msra.mxu1 %v7383_v14 }
 0x230   :  { %v40915_v53 = vpop.permute.xlu0 %9561  ;;  %35592 = vmatmul.mubr.msk.f32.vlgmr.msra.gmra.mrb[0].mxu1 %vm155_vm1, %v40429_v38 }
 0x231   :  { %v40919_v39 = vpop.permute.xlu1 %9557  ;;  %v9593_v29 = vsel %vm9587_vm13, %v9560_v30, %v40915_v53  ;;  %7835 = vmatprep.mubr.f32.mxu1 %v46885_v61 }
 0x232   :  { %10292 = vrot.lane.b32.xlu0 %v40789_v56, %s39040_s27  ;;  %9769 = vmatprep.subr.mxu0 %v9593_v29  ;;  %v9592_v46 = vsel %vm9587_vm13, %v40919_v39, %v9560_v30 }
 0x233   :  { %11770 = vrot.lane.b32.xlu1 %v40752_v45, %s39042_s26  ;;  %9770 = vmatpush1.msra.mxu0 %v9592_v46 }
 0x234   :  { %v7361_v16 = vpop.permute.xlu0 %7360  ;;  %35621 = vmatmul.mubr.msk.f32.vlgmr.msra.gmra.mrb[4].mxu0 %vm155_vm1, %v40896_v54 }
 0x235   :  { %v9568_v20 = vpop.permute.xlu1 %9567  ;;  %v7388_v18 = vsel %vm7376_vm10, %v7361_v16, %v40504_v21  ;;  %v7387_v33 = vsel %vm7376_vm10, %v40474_v59, %v7361_v16  ;;  %9975 = vmatprep.mubr.f32.mxu0 %v46885_v61 }
 0x236   :  { %11772 = vrot.lane.b32.xlu0 %v40766_v12, %s39042_s26  ;;  %7771 = vmatprep.subr.mxu1 %v7388_v18 }
 0x237   :  { %11768 = vrot.lane.b32.xlu1 %v40773_v2, %s39042_s26  ;;  %7772 = vmatpush1.msra.mxu1 %v7387_v33 }
 0x238   :  { %v40941_v25 = vpop.permute.xlu0 %9569  ;;  %35594 = vmatmul.mubr.msk.f32.vlgmr.msra.gmra.mrb[2].mxu1 %vm155_vm1, %v40429_v38 }
 0x239   :  { %v40947_v21 = vpop.permute.xlu1 %9565  ;;  %v9597_v59 = vsel %vm9587_vm13, %v9568_v20, %v40941_v25  ;;  %7977 = vmatprep.mubr.f32.mxu1 %v46885_v61 }
 0x23a   :  { %10300 = vrot.lane.b32.xlu0 %v40957_v35, %s39040_s27  ;;  %9911 = vmatprep.subr.mxu0 %v9597_v59  ;;  %v9596_v52 = vsel %vm9587_vm13, %v40947_v21, %v9568_v20 }
 0x23b   :  { %11778 = vrot.lane.b32.xlu1 %v40798_v48, %s39042_s26  ;;  %9912 = vmatpush1.msra.mxu0 %v9596_v52 }
 0x23c   :  { %v7369_v58 = vpop.permute.xlu0 %7368  ;;  %35623 = vmatmul.mubr.msk.f32.vlgmr.msra.gmra.mrb[6].mxu0 %vm155_vm1, %v40896_v54 }
 0x23d   :  { %v9576_v15 = vpop.permute.xlu1 %9575  ;;  %v7392_v36 = vsel %vm7376_vm10, %v7369_v58, %v40528_v1  ;;  %v7391_v60 = vsel %vm7376_vm10, %v40500_v6, %v7369_v58  ;;  %10117 = vmatprep.mubr.f32.mxu0 %v46885_v61  ;;  %v40988_v1 = vld [vmem:[%s46735_s0 + $0x58] sm:$0xff] }
 0x23e   :  { %11780 = vrot.lane.b32.xlu0 %v40812_v4, %s39042_s26  ;;  %7913 = vmatprep.subr.mxu1 %v7392_v36 }
 0x23f   :  { %11776 = vrot.lane.b32.xlu1 %v40819_v19, %s39042_s26  ;;  %7914 = vmatpush1.msra.mxu1 %v7391_v60 }
 0x240   :  { %v40976_v0 = vpop.permute.xlu0 %9577  ;;  %35596 = vmatmul.mubr.msk.f32.vlgmr.msra.gmra.mrb[4].mxu1 %vm155_vm1, %v40429_v38 }
 0x241   :  { %v40980_v55 = vpop.permute.xlu1 %9573  ;;  %v9601_v6 = vsel %vm9587_vm13, %v9576_v15, %v40976_v0  ;;  %8288 = vmatprep.mubr.f32.mxu1 %v46885_v61 }
 0x242   :  { %10308 = vrot.lane.b32.xlu0 %v40988_v1, %s39040_s27  ;;  %10053 = vmatprep.subr.mxu0 %v9601_v6  ;;  %v9600_v30 = vsel %vm9587_vm13, %v40980_v55, %v9576_v15  ;;  %v41044_v15 = vld [vmem:[%s46736_s1 + $0x70] sm:$0xff] }
 0x243   :  { %11786 = vrot.lane.b32.xlu1 %v40839_v11, %s39042_s26  ;;  %10054 = vmatpush1.msra.mxu0 %v9600_v30 }
 0x244   :  { %v8082_v38 = vpop.permute.xlu0 %8081  ;;  %35625 = vmatmul.mubr.msk.f32.vlgmr.msra.gmra.mrb[8].mxu0 %vm155_vm1, %v40896_v54 }
 0x245   :  { %v9584_v5 = vpop.permute.xlu1 %9583  ;;  %v8117_v14 = vsel %vm8113_vm11, %v8082_v38, %v40581_v51  ;;  %v8116_v29 = vsel %vm8113_vm11, %v40549_v13, %v8082_v38  ;;  %10259 = vmatprep.mubr.f32.mxu0 %v46885_v61  ;;  %v41016_v13 = vld [vmem:[%s46735_s0 + $0x78] sm:$0xff] }
 0x246   :  { %11788 = vrot.lane.b32.xlu0 %v40853_v63, %s39042_s26  ;;  %8224 = vmatprep.subr.mxu1 %v8117_v14 }
 0x247   :  { %11784 = vrot.lane.b32.xlu1 %v40860_v17, %s39042_s26  ;;  %8225 = vmatpush1.msra.mxu1 %v8116_v29 }
 0x248   :  { %v9586_v46 = vpop.permute.xlu0 %9585  ;;  %35600 = vmatmul.mubr.msk.f32.vlgmr.msra.gmra.mrb[6].mxu1 %vm155_vm1, %v40558_v57 }
 0x249   :  { %v41009_v16 = vpop.permute.xlu1 %9581  ;;  %v9605_v51 = vsel %vm9587_vm13, %v9584_v5, %v9586_v46  ;;  %8430 = vmatprep.mubr.f32.mxu1 %v46885_v61 }
 0x24a   :  { %10316 = vrot.lane.b32.xlu0 %v41016_v13, %s39040_s27  ;;  %10195 = vmatprep.subr.mxu0 %v9605_v51  ;;  %v9604_v20 = vsel %vm9587_vm13, %v41009_v16, %v9584_v5 }
 0x24b   :  { %11794 = vrot.lane.b32.xlu1 %v40668_v44, %s39042_s26  ;;  %10196 = vmatpush1.msra.mxu0 %v9604_v20 }
 0x24c   :  { %v8090_v18 = vpop.permute.xlu0 %8089  ;;  %35627 = vmatmul.mubr.msk.f32.vlgmr.msra.gmra.mrb[10].mxu0 %vm155_vm1, %v40896_v54 }
 0x24d   :  { %v10289_v33 = vpop.permute.xlu1 %10288  ;;  %v8121_v59 = vsel %vm8113_vm11, %v8090_v18, %v40607_v8  ;;  %v8120_v52 = vsel %vm8113_vm11, %v40577_v9, %v8090_v18  ;;  %10428 = vmatprep.mubr.f32.mxu0 %v46885_v61 }
 0x24e   :  { %11796 = vrot.lane.b32.xlu0 %v40682_v24, %s39042_s26  ;;  %8366 = vmatprep.subr.mxu1 %v8121_v59 }
 0x24f   :  { %11792 = vrot.lane.b32.xlu1 %v40689_v42, %s39042_s26  ;;  %8367 = vmatpush1.msra.mxu1 %v8120_v52 }
 0x250   :  { %v41035_v58 = vpop.permute.xlu0 %10290  ;;  %35602 = vmatmul.mubr.msk.f32.vlgmr.msra.gmra.mrb[0].mxu1 %vm155_vm1, %v40558_v57 }
 0x251   :  { %v10287_v8 = vpop.permute.xlu1 %10286  ;;  %v10326_v9 = vsel %vm46883_vm14, %v10289_v33, %v41035_v58  ;;  %8572 = vmatprep.mubr.f32.mxu1 %v46885_v61 }
 0x252   :  { %v10325_v36 = vsel %vm46883_vm14, %v10287_v8, %v10289_v33  ;;  %11029 = vrot.lane.b32.xlu0 %v40789_v56, %s39041_s29  ;;  %10364 = vmatprep.subr.mxu0 %v10326_v9 }
 0x253   :  { %12499 = vrot.lane.b32.xlu1 %v40711_v28, %s39043_s24  ;;  %10365 = vmatpush1.msra.mxu0 %v10325_v36 }
 0x254   :  { %v8098_v60 = vpop.permute.xlu0 %8097  ;;  %35629 = vmatmul.mubr.msk.f32.vlgmr.msra.gmra.mrb[0].mxu0 %vm155_vm1, %v41044_v15 }
 0x255   :  { %v10297_v6 = vpop.permute.xlu1 %10296  ;;  %v8125_v30 = vsel %vm8113_vm11, %v8098_v60, %v40633_v3  ;;  %v8124_v38 = vsel %vm8113_vm11, %v40603_v22, %v8098_v60  ;;  %10570 = vmatprep.mubr.f32.mxu0 %v46885_v61 }
 0x256   :  { %12501 = vrot.lane.b32.xlu0 %v40725_v47, %s39043_s24  ;;  %8508 = vmatprep.subr.mxu1 %v8125_v30 }
 0x257   :  { %12497 = vrot.lane.b32.xlu1 %v40732_v7, %s39043_s24  ;;  %8509 = vmatpush1.msra.mxu1 %v8124_v38 }
 0x258   :  { %v41063_v5 = vpop.permute.xlu0 %10298  ;;  %35604 = vmatmul.mubr.msk.f32.vlgmr.msra.gmra.mrb[2].mxu1 %vm155_vm1, %v40558_v57 }
 0x259   :  { %v41067_v14 = vpop.permute.xlu1 %10294  ;;  %v10330_v22 = vsel %vm46883_vm14, %v10297_v6, %v41063_v5  ;;  %8714 = vmatprep.mubr.f32.mxu1 %v46885_v61 }
 0x25a   :  { %11037 = vrot.lane.b32.xlu0 %v40957_v35, %s39041_s29  ;;  %10506 = vmatprep.subr.mxu0 %v10330_v22  ;;  %v10329_v3 = vsel %vm46883_vm14, %v41067_v14, %v10297_v6 }
 0x25b   :  { %12507 = vrot.lane.b32.xlu1 %v40752_v45, %s39043_s24  ;;  %10507 = vmatpush1.msra.mxu0 %v10329_v3 }
 0x25c   :  { %v8106_v29 = vpop.permute.xlu0 %8105  ;;  %35631 = vmatmul.mubr.msk.f32.vlgmr.msra.gmra.mrb[4].mxu0 %vm155_vm1, %v41044_v15 }
 0x25d   :  { %v10305_v46 = vpop.permute.xlu1 %10304  ;;  %v8129_v51 = vsel %vm8113_vm11, %v8106_v29, %v40657_v37  ;;  %v8128_v20 = vsel %vm8113_vm11, %v40629_v10, %v8106_v29  ;;  %10712 = vmatprep.mubr.f32.mxu0 %v46885_v61  ;;  %vm21044_vm11 = vcmask 982016  }
 0x25e   :  { %12509 = vrot.lane.b32.xlu0 %v40766_v12, %s39043_s24  ;;  %8650 = vmatprep.subr.mxu1 %v8129_v51 }
 0x25f   :  { %12505 = vrot.lane.b32.xlu1 %v40773_v2, %s39043_s24  ;;  %8651 = vmatpush1.msra.mxu1 %v8128_v20 }
 0x260   :  { %v41089_v18 = vpop.permute.xlu0 %10306  ;;  %35606 = vmatmul.mubr.msk.f32.vlgmr.msra.gmra.mrb[4].mxu1 %vm155_vm1, %v40558_v57 }
 0x261   :  { %v41093_v33 = vpop.permute.xlu1 %10302  ;;  %v10334_v10 = vsel %vm46883_vm14, %v10305_v46, %v41089_v18  ;;  %9025 = vmatprep.mubr.f32.mxu1 %v46885_v61 }
 0x262   :  { %11045 = vrot.lane.b32.xlu0 %v40988_v1, %s39041_s29  ;;  %10648 = vmatprep.subr.mxu0 %v10334_v10  ;;  %v10333_v37 = vsel %vm46883_vm14, %v41093_v33, %v10305_v46 }
 0x263   :  { %12515 = vrot.lane.b32.xlu1 %v40798_v48, %s39043_s24  ;;  %10649 = vmatpush1.msra.mxu0 %v10333_v37  ;;  %v41173_v37 = vld [vmem:[%s46736_s1 + $0x78] sm:$0xff] }
 0x264   :  { %v8819_v59 = vpop.permute.xlu0 %8818  ;;  %35633 = vmatmul.mubr.msk.f32.vlgmr.msra.gmra.mrb[6].mxu0 %vm155_vm1, %v41044_v15 }
 0x265   :  { %v10313_v57 = vpop.permute.xlu1 %10312  ;;  %v8854_v52 = vsel %vm8850_vm12, %v8819_v59, %v40740_v49  ;;  %v8853_v8 = vsel %vm8850_vm12, %v40693_v50, %v8819_v59  ;;  %10854 = vmatprep.mubr.f32.mxu0 %v46885_v61 }
 0x266   :  { %12517 = vrot.lane.b32.xlu0 %v40812_v4, %s39043_s24  ;;  %8961 = vmatprep.subr.mxu1 %v8854_v52 }
 0x267   :  { %12513 = vrot.lane.b32.xlu1 %v40819_v19, %s39043_s24  ;;  %8962 = vmatpush1.msra.mxu1 %v8853_v8 }
 0x268   :  { %v41115_v9 = vpop.permute.xlu0 %10314  ;;  %35610 = vmatmul.mubr.msk.f32.vlgmr.msra.gmra.mrb[6].mxu1 %vm155_vm1, %v40702_v40 }
 0x269   :  { %v41119_v36 = vpop.permute.xlu1 %10310  ;;  %v10338_v50 = vsel %vm46883_vm14, %v10313_v57, %v41115_v9  ;;  %9167 = vmatprep.mubr.f32.mxu1 %v46885_v61 }
 0x26a   :  { %11053 = vrot.lane.b32.xlu0 %v41016_v13, %s39041_s29  ;;  %10790 = vmatprep.subr.mxu0 %v10338_v50  ;;  %v10337_v49 = vsel %vm46883_vm14, %v41119_v36, %v10313_v57 }
 0x26b   :  { %12523 = vrot.lane.b32.xlu1 %v40839_v11, %s39043_s24  ;;  %10791 = vmatpush1.msra.mxu0 %v10337_v49 }
 0x26c   :  { %v8827_v60 = vpop.permute.xlu0 %8826  ;;  %35635 = vmatmul.mubr.msk.f32.vlgmr.msra.gmra.mrb[8].mxu0 %vm155_vm1, %v41044_v15 }
 0x26d   :  { %v10321_v6 = vpop.permute.xlu1 %10320  ;;  %v8858_v30 = vsel %vm8850_vm12, %v8827_v60, %v40781_v32  ;;  %v8857_v38 = vsel %vm8850_vm12, %v40736_v26, %v8827_v60  ;;  %10996 = vmatprep.mubr.f32.mxu0 %v46885_v61 }
 0x26e   :  { %12525 = vrot.lane.b32.xlu0 %v40853_v63, %s39043_s24  ;;  %9103 = vmatprep.subr.mxu1 %v8858_v30 }
 0x26f   :  { %12521 = vrot.lane.b32.xlu1 %v40860_v17, %s39043_s24  ;;  %9104 = vmatpush1.msra.mxu1 %v8857_v38 }
 0x270   :  { %v10323_v22 = vpop.permute.xlu0 %10322  ;;  %35612 = vmatmul.mubr.msk.f32.vlgmr.msra.gmra.mrb[0].mxu1 %vm155_vm1, %v40702_v40 }
 0x271   :  { %v41143_v3 = vpop.permute.xlu1 %10318  ;;  %v10342_v32 = vsel %vm46883_vm14, %v10321_v6, %v10323_v22  ;;  %9309 = vmatprep.mubr.f32.mxu1 %v46885_v61 }
 0x272   :  { %11766 = vrot.lane.b32.xlu0 %v40789_v56, %s39042_s26  ;;  %10932 = vmatprep.subr.mxu0 %v10342_v32  ;;  %v10341_v26 = vsel %vm46883_vm14, %v41143_v3, %v10321_v6 }
 0x273   :  { %12531 = vrot.lane.b32.xlu1 %v40668_v44, %s39043_s24  ;;  %10933 = vmatpush1.msra.mxu0 %v10341_v26 }
 0x274   :  { %v8835_v29 = vpop.permute.xlu0 %8834  ;;  %35637 = vmatmul.mubr.msk.f32.vlgmr.msra.gmra.mrb[10].mxu0 %vm155_vm1, %v41044_v15 }
 0x275   :  { %v11026_v46 = vpop.permute.xlu1 %11025  ;;  %v8862_v51 = vsel %vm8850_vm12, %v8835_v29, %v40827_v41  ;;  %v8861_v20 = vsel %vm8850_vm12, %v40777_v23, %v8835_v29  ;;  %11165 = vmatprep.mubr.f32.mxu0 %v46885_v61 }
 0x276   :  { %12533 = vrot.lane.b32.xlu0 %v40682_v24, %s39043_s24  ;;  %9245 = vmatprep.subr.mxu1 %v8862_v51 }
 0x277   :  { %12529 = vrot.lane.b32.xlu1 %v40689_v42, %s39043_s24  ;;  %9246 = vmatpush1.msra.mxu1 %v8861_v20 }
 0x278   :  { %v41164_v10 = vpop.permute.xlu0 %11027  ;;  %35614 = vmatmul.mubr.msk.f32.vlgmr.msra.gmra.mrb[2].mxu1 %vm155_vm1, %v40702_v40 }
 0x279   :  { %v11024_v41 = vpop.permute.xlu1 %11023  ;;  %v11063_v23 = vsel %vm11061_vm15, %v11026_v46, %v41164_v10  ;;  %9451 = vmatprep.mubr.f32.mxu1 %v46885_v61 }
 0x27a   :  { %v11062_v59 = vsel %vm11061_vm15, %v11024_v41, %v11026_v46  ;;  %11774 = vrot.lane.b32.xlu0 %v40957_v35, %s39042_s26  ;;  %11101 = vmatprep.subr.mxu0 %v11063_v23 }
 0x27b   :  { %13236 = vrot.lane.b32.xlu1 %v40711_v28, %s39044_s30  ;;  %11102 = vmatpush1.msra.mxu0 %v11062_v59 }
 0x27c   :  { %v8843_v57 = vpop.permute.xlu0 %8842  ;;  %35639 = vmatmul.mubr.msk.f32.vlgmr.msra.gmra.mrb[0].mxu0 %vm155_vm1, %v41173_v37 }
 0x27d   :  { %v11034_v52 = vpop.permute.xlu1 %11033  ;;  %v8866_v8 = vsel %vm8850_vm12, %v8843_v57, %v40866_v27  ;;  %v8865_v50 = vsel %vm8850_vm12, %v40823_v31, %v8843_v57  ;;  %11307 = vmatprep.mubr.f32.mxu0 %v46885_v61 }
 0x27e   :  { %13238 = vrot.lane.b32.xlu0 %v40725_v47, %s39044_s30  ;;  %9387 = vmatprep.subr.mxu1 %v8866_v8 }
 0x27f   :  { %13234 = vrot.lane.b32.xlu1 %v40732_v7, %s39044_s30  ;;  %9388 = vmatpush1.msra.mxu1 %v8865_v50 }
 0x280   :  { %v41192_v49 = vpop.permute.xlu0 %11035  ;;  %35616 = vmatmul.mubr.msk.f32.vlgmr.msra.gmra.mrb[4].mxu1 %vm155_vm1, %v40702_v40 }
 0x281   :  { %v41196_v60 = vpop.permute.xlu1 %11031  ;;  %v11067_v31 = vsel %vm11061_vm15, %v11034_v52, %v41192_v49  ;;  %9762 = vmatprep.mubr.f32.mxu1 %v46885_v61 }
 0x282   :  { %11782 = vrot.lane.b32.xlu0 %v40988_v1, %s39042_s26  ;;  %11243 = vmatprep.subr.mxu0 %v11067_v31  ;;  %v11066_v27 = vsel %vm11061_vm15, %v41196_v60, %v11034_v52 }
 0x283   :  { %13244 = vrot.lane.b32.xlu1 %v40752_v45, %s39044_s30  ;;  %11244 = vmatpush1.msra.mxu0 %v11066_v27 }
 0x284   :  { %v9556_v6 = vpop.permute.xlu0 %9555  ;;  %35641 = vmatmul.mubr.msk.f32.vlgmr.msra.gmra.mrb[4].mxu0 %vm155_vm1, %v41173_v37 }
 0x285   :  { %v11042_v40 = vpop.permute.xlu1 %11041  ;;  %v9591_v30 = vsel %vm9587_vm13, %v9556_v6, %v40919_v39  ;;  %v9590_v38 = vsel %vm9587_vm13, %v40887_v34, %v9556_v6  ;;  %11449 = vmatprep.mubr.f32.mxu0 %v46885_v61 }
 0x286   :  { %13246 = vrot.lane.b32.xlu0 %v40766_v12, %s39044_s30  ;;  %9698 = vmatprep.subr.mxu1 %v9591_v30  ;;  %v41302_v30 = vld [vmem:[%s46736_s1 + $0x80] sm:$0xff] }
 0x287   :  { %13242 = vrot.lane.b32.xlu1 %v40773_v2, %s39044_s30  ;;  %9699 = vmatpush1.msra.mxu1 %v9590_v38 }
 0x288   :  { %v41218_v22 = vpop.permute.xlu0 %11043  ;;  %35620 = vmatmul.mubr.msk.f32.vlgmr.msra.gmra.mrb[6].mxu1 %vm155_vm1, %v40896_v54 }
 0x289   :  { %v41222_v32 = vpop.permute.xlu1 %11039  ;;  %v11071_v34 = vsel %vm11061_vm15, %v11042_v40, %v41218_v22  ;;  %9904 = vmatprep.mubr.f32.mxu1 %v46885_v61 }
 0x28a   :  { %11790 = vrot.lane.b32.xlu0 %v41016_v13, %s39042_s26  ;;  %11385 = vmatprep.subr.mxu0 %v11071_v34  ;;  %v11070_v39 = vsel %vm11061_vm15, %v41222_v32, %v11042_v40 }
 0x28b   :  { %13252 = vrot.lane.b32.xlu1 %v40798_v48, %s39044_s30  ;;  %11386 = vmatpush1.msra.mxu0 %v11070_v39 }
 0x28c   :  { %v9564_v26 = vpop.permute.xlu0 %9563  ;;  %35643 = vmatmul.mubr.msk.f32.vlgmr.msra.gmra.mrb[6].mxu0 %vm155_vm1, %v41173_v37 }
 0x28d   :  { %v11050_v29 = vpop.permute.xlu1 %11049  ;;  %v9595_v46 = vsel %vm9587_vm13, %v9564_v26, %v40947_v21  ;;  %v9594_v51 = vsel %vm9587_vm13, %v40915_v53, %v9564_v26  ;;  %11591 = vmatprep.mubr.f32.mxu0 %v46885_v61 }
 0x28e   :  { %13254 = vrot.lane.b32.xlu0 %v40812_v4, %s39044_s30  ;;  %9840 = vmatprep.subr.mxu1 %v9595_v46 }
 0x28f   :  { %13250 = vrot.lane.b32.xlu1 %v40819_v19, %s39044_s30  ;;  %9841 = vmatpush1.msra.mxu1 %v9594_v51 }
 0x290   :  { %v41244_v20 = vpop.permute.xlu0 %11051  ;;  %35622 = vmatmul.mubr.msk.f32.vlgmr.msra.gmra.mrb[0].mxu1 %vm155_vm1, %v40896_v54 }
 0x291   :  { %v41248_v41 = vpop.permute.xlu1 %11047  ;;  %v11075_v53 = vsel %vm11061_vm15, %v11050_v29, %v41244_v20  ;;  %10046 = vmatprep.mubr.f32.mxu1 %v46885_v61 }
 0x292   :  { %12503 = vrot.lane.b32.xlu0 %v40789_v56, %s39043_s24  ;;  %11527 = vmatprep.subr.mxu0 %v11075_v53  ;;  %v11074_v21 = vsel %vm11061_vm15, %v41248_v41, %v11050_v29 }
 0x293   :  { %13260 = vrot.lane.b32.xlu1 %v40839_v11, %s39044_s30  ;;  %11528 = vmatpush1.msra.mxu0 %v11074_v21 }
 0x294   :  { %v9572_v23 = vpop.permute.xlu0 %9571  ;;  %35645 = vmatmul.mubr.msk.f32.vlgmr.msra.gmra.mrb[8].mxu0 %vm155_vm1, %v41173_v37 }
 0x295   :  { %v11058_v59 = vpop.permute.xlu1 %11057  ;;  %v9599_v57 = vsel %vm9587_vm13, %v9572_v23, %v40980_v55  ;;  %v9598_v52 = vsel %vm9587_vm13, %v40941_v25, %v9572_v23  ;;  %11733 = vmatprep.mubr.f32.mxu0 %v46885_v61 }
 0x296   :  { %13262 = vrot.lane.b32.xlu0 %v40853_v63, %s39044_s30  ;;  %9982 = vmatprep.subr.mxu1 %v9599_v57 }
 0x297   :  { %13258 = vrot.lane.b32.xlu1 %v40860_v17, %s39044_s30  ;;  %9983 = vmatpush1.msra.mxu1 %v9598_v52 }
 0x298   :  { %v11060_v8 = vpop.permute.xlu0 %11059  ;;  %35624 = vmatmul.mubr.msk.f32.vlgmr.msra.gmra.mrb[2].mxu1 %vm155_vm1, %v40896_v54 }
 0x299   :  { %v41272_v50 = vpop.permute.xlu1 %11055  ;;  %v11079_v55 = vsel %vm11061_vm15, %v11058_v59, %v11060_v8  ;;  %10188 = vmatprep.mubr.f32.mxu1 %v46885_v61 }
 0x29a   :  { %12511 = vrot.lane.b32.xlu0 %v40957_v35, %s39043_s24  ;;  %11669 = vmatprep.subr.mxu0 %v11079_v55  ;;  %v11078_v25 = vsel %vm11061_vm15, %v41272_v50, %v11058_v59  ;;  %v41426_v55 = vld [vmem:[%s46735_s0 + $0x90] sm:$0xff] }
 0x29b   :  { %13268 = vrot.lane.b32.xlu1 %v40668_v44, %s39044_s30  ;;  %11670 = vmatpush1.msra.mxu0 %v11078_v25  ;;  %v41433_v25 = vld [vmem:[%s46735_s0 + $0x80] sm:$0xff] }
 0x29c   :  { %v9580_v31 = vpop.permute.xlu0 %9579  ;;  %35647 = vmatmul.mubr.msk.f32.vlgmr.msra.gmra.mrb[10].mxu0 %vm155_vm1, %v41173_v37 }
 0x29d   :  { %v11763_v27 = vpop.permute.xlu1 %11762  ;;  %v9603_v6 = vsel %vm9587_vm13, %v9580_v31, %v41009_v16  ;;  %v9602_v40 = vsel %vm9587_vm13, %v40976_v0, %v9580_v31  ;;  %11902 = vmatprep.mubr.f32.mxu0 %v46885_v61  ;;  %vm24196_vm13 = vcmask 457728  }
 0x29e   :  { %13270 = vrot.lane.b32.xlu0 %v40682_v24, %s39044_s30  ;;  %10124 = vmatprep.subr.mxu1 %v9603_v6 }
 0x29f   :  { %13266 = vrot.lane.b32.xlu1 %v40689_v42, %s39044_s30  ;;  %10125 = vmatpush1.msra.mxu1 %v9602_v40 }
 0x2a0   :  { %v41293_v44 = vpop.permute.xlu0 %11764  ;;  %35626 = vmatmul.mubr.msk.f32.vlgmr.msra.gmra.mrb[4].mxu1 %vm155_vm1, %v40896_v54 }
 0x2a1   :  { %v11761_v16 = vpop.permute.xlu1 %11760  ;;  %v11800_v0 = vsel %vm11798_vm6, %v11763_v27, %v41293_v44  ;;  %10499 = vmatprep.mubr.f32.mxu1 %v46885_v61 }
 0x2a2   :  { %v11799_v24 = vsel %vm11798_vm6, %v11761_v16, %v11763_v27  ;;  %12519 = vrot.lane.b32.xlu0 %v40988_v1, %s39043_s24  ;;  %11838 = vmatprep.subr.mxu0 %v11800_v0  ;;  %v41446_v27 = vld [vmem:[%s46736_s1 + $0x88] sm:$0xff] }
 0x2a3   :  { %13973 = vrot.lane.b32.xlu1 %v40711_v28, %s39045_s19  ;;  %11839 = vmatpush1.msra.mxu0 %v11799_v24 }
 0x2a4   :  { %v10293_v42 = vpop.permute.xlu0 %10292  ;;  %35649 = vmatmul.mubr.msk.f32.vlgmr.msra.gmra.mrb[0].mxu0 %vm155_vm1, %v41302_v30 }
 0x2a5   :  { %v11771_v54 = vpop.permute.xlu1 %11770  ;;  %v10328_v38 = vsel %vm46883_vm14, %v10293_v42, %v41067_v14  ;;  %v10327_v34 = vsel %vm46883_vm14, %v41035_v58, %v10293_v42  ;;  %12044 = vmatprep.mubr.f32.mxu0 %v46885_v61  ;;  %v41470_v42 = vld [vmem:[%s46735_s0 + $0x10] sm:$0xff] }
 0x2a6   :  { %13975 = vrot.lane.b32.xlu0 %v40725_v47, %s39045_s19  ;;  %10435 = vmatprep.subr.mxu1 %v10328_v38  ;;  %v41493_v38 = vld [vmem:[%s46735_s0 + $0x8] sm:$0xff] }
 0x2a7   :  { %13971 = vrot.lane.b32.xlu1 %v40732_v7, %s39045_s19  ;;  %10436 = vmatpush1.msra.mxu1 %v10327_v34 }
 0x2a8   :  { %v41321_v28 = vpop.permute.xlu0 %11772  ;;  %35630 = vmatmul.mubr.msk.f32.vlgmr.msra.gmra.mrb[6].mxu1 %vm155_vm1, %v41044_v15 }
 0x2a9   :  { %v41325_v39 = vpop.permute.xlu1 %11768  ;;  %v11804_v58 = vsel %vm11798_vm6, %v11771_v54, %v41321_v28  ;;  %10641 = vmatprep.mubr.f32.mxu1 %v46885_v61 }
 0x2aa   :  { %12527 = vrot.lane.b32.xlu0 %v41016_v13, %s39043_s24  ;;  %11980 = vmatprep.subr.mxu0 %v11804_v58  ;;  %v11803_v47 = vsel %vm11798_vm6, %v41325_v39, %v11771_v54  ;;  %s39049_s24 = smov 58  }
 0x2ab   :  { %13981 = vrot.lane.b32.xlu1 %v40752_v45, %s39045_s19  ;;  %11981 = vmatpush1.msra.mxu0 %v11803_v47  ;;  %v41509_v47 = vld [vmem:[%s46735_s0 + $0x30] sm:$0xff] }
 0x2ac   :  { %v10301_v7 = vpop.permute.xlu0 %10300  ;;  %35651 = vmatmul.mubr.msk.f32.vlgmr.msra.gmra.mrb[4].mxu0 %vm155_vm1, %v41302_v30 }
 0x2ad   :  { %v11779_v14 = vpop.permute.xlu1 %11778  ;;  %v10332_v26 = vsel %vm46883_vm14, %v10301_v7, %v41093_v33  ;;  %v10331_v29 = vsel %vm46883_vm14, %v41063_v5, %v10301_v7  ;;  %12186 = vmatprep.mubr.f32.mxu0 %v46885_v61 }
 0x2ae   :  { %13983 = vrot.lane.b32.xlu0 %v40766_v12, %s39045_s19  ;;  %10577 = vmatprep.subr.mxu1 %v10332_v26 }
 0x2af   :  { %13979 = vrot.lane.b32.xlu1 %v40773_v2, %s39045_s19  ;;  %10578 = vmatpush1.msra.mxu1 %v10331_v29  ;;  %v41534_v29 = vld [vmem:[%s46735_s0 + $0x28] sm:$0xff] }
 0x2b0   :  { %v41347_v45 = vpop.permute.xlu0 %11780  ;;  %35632 = vmatmul.mubr.msk.f32.vlgmr.msra.gmra.mrb[0].mxu1 %vm155_vm1, %v41044_v15 }
 0x2b1   :  { %v41351_v46 = vpop.permute.xlu1 %11776  ;;  %v11808_v5 = vsel %vm11798_vm6, %v11779_v14, %v41347_v45  ;;  %10783 = vmatprep.mubr.f32.mxu1 %v46885_v61 }
 0x2b2   :  { %13240 = vrot.lane.b32.xlu0 %v40789_v56, %s39044_s30  ;;  %12122 = vmatprep.subr.mxu0 %v11808_v5  ;;  %v11807_v12 = vsel %vm11798_vm6, %v41351_v46, %v11779_v14 }
 0x2b3   :  { %13989 = vrot.lane.b32.xlu1 %v40798_v48, %s39045_s19  ;;  %12123 = vmatpush1.msra.mxu0 %v11807_v12  ;;  %v41539_v12 = vld [vmem:[%s46735_s0 + $0x50] sm:$0xff] }
 0x2b4   :  { %v10309_v2 = vpop.permute.xlu0 %10308  ;;  %35653 = vmatmul.mubr.msk.f32.vlgmr.msra.gmra.mrb[6].mxu0 %vm155_vm1, %v41302_v30 }
 0x2b5   :  { %v11787_v33 = vpop.permute.xlu1 %11786  ;;  %v10336_v51 = vsel %vm46883_vm14, %v10309_v2, %v41119_v36  ;;  %v10335_v53 = vsel %vm46883_vm14, %v41089_v18, %v10309_v2  ;;  %12328 = vmatprep.mubr.f32.mxu0 %v46885_v61 }
 0x2b6   :  { %13991 = vrot.lane.b32.xlu0 %v40812_v4, %s39045_s19  ;;  %10719 = vmatprep.subr.mxu1 %v10336_v51 }
 0x2b7   :  { %13987 = vrot.lane.b32.xlu1 %v40819_v19, %s39045_s19  ;;  %10720 = vmatpush1.msra.mxu1 %v10335_v53  ;;  %v41555_v53 = vld [vmem:[%s46735_s0 + $0x58] sm:$0xff] }
 0x2b8   :  { %v41373_v48 = vpop.permute.xlu0 %11788  ;;  %35634 = vmatmul.mubr.msk.f32.vlgmr.msra.gmra.mrb[2].mxu1 %vm155_vm1, %v41044_v15 }
 0x2b9   :  { %v41377_v21 = vpop.permute.xlu1 %11784  ;;  %v11812_v18 = vsel %vm11798_vm6, %v11787_v33, %v41373_v48  ;;  %10925 = vmatprep.mubr.f32.mxu1 %v46885_v61 }
 0x2ba   :  { %13248 = vrot.lane.b32.xlu0 %v40957_v35, %s39044_s30  ;;  %12264 = vmatprep.subr.mxu0 %v11812_v18  ;;  %v11811_v4 = vsel %vm11798_vm6, %v41377_v21, %v11787_v33 }
 0x2bb   :  { %13997 = vrot.lane.b32.xlu1 %v40839_v11, %s39045_s19  ;;  %12265 = vmatpush1.msra.mxu0 %v11811_v4 }
 0x2bc   :  { %v10317_v19 = vpop.permute.xlu0 %10316  ;;  %35655 = vmatmul.mubr.msk.f32.vlgmr.msra.gmra.mrb[8].mxu0 %vm155_vm1, %v41302_v30 }
 0x2bd   :  { %v11795_v36 = vpop.permute.xlu1 %11794  ;;  %v10340_v23 = vsel %vm46883_vm14, %v10317_v19, %v41143_v3  ;;  %v10339_v59 = vsel %vm46883_vm14, %v41115_v9, %v10317_v19  ;;  %12470 = vmatprep.mubr.f32.mxu0 %v46885_v61 }
 0x2be   :  { %13999 = vrot.lane.b32.xlu0 %v40853_v63, %s39045_s19  ;;  %10861 = vmatprep.subr.mxu1 %v10340_v23  ;;  %v41585_v23 = vld [vmem:[%s46735_s0 + $0x78] sm:$0xff] }
 0x2bf   :  { %13995 = vrot.lane.b32.xlu1 %v40860_v17, %s39045_s19  ;;  %10862 = vmatpush1.msra.mxu1 %v10339_v59  ;;  %v41412_v17 = vld [vmem:[%s46735_s0 + $0x88] sm:$0xff] }
 0x2c0   :  { %v11797_v11 = vpop.permute.xlu0 %11796  ;;  %35636 = vmatmul.mubr.msk.f32.vlgmr.msra.gmra.mrb[4].mxu1 %vm155_vm1, %v41044_v15 }
 0x2c1   :  { %v41401_v57 = vpop.permute.xlu1 %11792  ;;  %v11816_v3 = vsel %vm11798_vm6, %v11795_v36, %v11797_v11  ;;  %11236 = vmatprep.mubr.f32.mxu1 %v46885_v61 }
 0x2c2   :  { %13256 = vrot.lane.b32.xlu0 %v40988_v1, %s39044_s30  ;;  %12406 = vmatprep.subr.mxu0 %v11816_v3  ;;  %v11815_v63 = vsel %vm11798_vm6, %v41401_v57, %v11795_v36 }
 0x2c3   :  { %14005 = vrot.lane.b32.xlu1 %v41412_v17, %s39045_s19  ;;  %12407 = vmatpush1.msra.mxu0 %v11815_v63  ;;  %v41601_v63 = vld [vmem:[%s46735_s0 + $0x68] sm:$0xff] }
 0x2c4   :  { %v11030_v15 = vpop.permute.xlu0 %11029  ;;  %35657 = vmatmul.mubr.msk.f32.vlgmr.msra.gmra.mrb[10].mxu0 %vm155_vm1, %v41302_v30 }
 0x2c5   :  { %v12500_v9 = vpop.permute.xlu1 %12499  ;;  %v11065_v52 = vsel %vm11061_vm15, %v11030_v15, %v41196_v60  ;;  %v11064_v8 = vsel %vm11061_vm15, %v41164_v10, %v11030_v15  ;;  %12639 = vmatprep.mubr.f32.mxu0 %v46885_v61 }
 0x2c6   :  { %14007 = vrot.lane.b32.xlu0 %v41426_v55, %s39045_s19  ;;  %11172 = vmatprep.subr.mxu1 %v11065_v52 }
 0x2c7   :  { %14003 = vrot.lane.b32.xlu1 %v41433_v25, %s39045_s19  ;;  %11173 = vmatpush1.msra.mxu1 %v11064_v8  ;;  %v41623_v8 = vld [vmem:[%s46735_s0 + $0x90] sm:$0xff] }
 0x2c8   :  { %v41437_v10 = vpop.permute.xlu0 %12501  ;;  %35640 = vmatmul.mubr.msk.f32.vlgmr.msra.gmra.mrb[6].mxu1 %vm155_vm1, %v41173_v37 }
 0x2c9   :  { %v12498_v60 = vpop.permute.xlu1 %12497  ;;  %v12537_v31 = vsel %vm12535_vm7, %v12500_v9, %v41437_v10  ;;  %11378 = vmatprep.mubr.f32.mxu1 %v46885_v61 }
 0x2ca   :  { %v12536_v6 = vsel %vm12535_vm7, %v12498_v60, %v12500_v9  ;;  %13264 = vrot.lane.b32.xlu0 %v41016_v13, %s39044_s30  ;;  %12575 = vmatprep.subr.mxu0 %v12537_v31  ;;  %v41628_v31 = vld [vmem:[%s46735_s0 + $0x98] sm:$0xff] }
 0x2cb   :  { %13977 = vrot.lane.b32.xlu1 %v40789_v56, %s39045_s19  ;;  %12576 = vmatpush1.msra.mxu0 %v12536_v6 }
 0x2cc   :  { %v11038_v40 = vpop.permute.xlu0 %11037  ;;  %35659 = vmatmul.mubr.msk.f32.vlgmr.msra.gmra.mrb[0].mxu0 %vm155_vm1, %v41446_v27 }
 0x2cd   :  { %v12508_v16 = vpop.permute.xlu1 %12507  ;;  %v11069_v0 = vsel %vm11061_vm15, %v11038_v40, %v41222_v32  ;;  %v11068_v24 = vsel %vm11061_vm15, %v41192_v49, %v11038_v40  ;;  %12781 = vmatprep.mubr.f32.mxu0 %v46885_v61  ;;  %v41488_v32 = vld [vmem:[%s46735_s0 + $0x18] sm:$0xff] }
 0x2ce   :  { %13985 = vrot.lane.b32.xlu0 %v40957_v35, %s39045_s19  ;;  %11314 = vmatprep.subr.mxu1 %v11069_v0  ;;  %v41644_v0 = vld [vmem:[%s46735_s0 + $0x88] sm:$0xff] }
 0x2cf   :  { %13993 = vrot.lane.b32.xlu1 %v40988_v1, %s39045_s19  ;;  %11315 = vmatpush1.msra.mxu1 %v11068_v24 }
 0x2d0   :  { %v41465_v56 = vpop.permute.xlu0 %12509  ;;  %35642 = vmatmul.mubr.msk.f32.vlgmr.msra.gmra.mrb[0].mxu1 %vm155_vm1, %v41173_v37 }
 0x2d1   :  { %v41474_v49 = vpop.permute.xlu1 %12505  ;;  %v12541_v35 = vsel %vm12535_vm7, %v12508_v16, %v41465_v56  ;;  %11520 = vmatprep.mubr.f32.mxu1 %v46885_v61 }
 0x2d2   :  { %14001 = vrot.lane.b32.xlu0 %v41016_v13, %s39045_s19  ;;  %12717 = vmatprep.subr.mxu0 %v12541_v35  ;;  %v12540_v1 = vsel %vm12535_vm7, %v41474_v49, %v12508_v16 }
 0x2d3   :  { %15410 = vrot.lane.b32.xlu1 %v41470_v42, %s39026_s21  ;;  %12718 = vmatpush1.msra.mxu0 %v12540_v1  ;;  %v41660_v1 = vld [vmem:[%s46736_s1 + $0x90] sm:$0xff] }
 0x2d4   :  { %v11046_v54 = vpop.permute.xlu0 %11045  ;;  %35661 = vmatmul.mubr.msk.f32.vlgmr.msra.gmra.mrb[4].mxu0 %vm155_vm1, %v41446_v27 }
 0x2d5   :  { %v12516_v13 = vpop.permute.xlu1 %12515  ;;  %v11073_v34 = vsel %vm11061_vm15, %v11046_v54, %v41248_v41  ;;  %v11072_v58 = vsel %vm11061_vm15, %v41218_v22, %v11046_v54  ;;  %12923 = vmatprep.mubr.f32.mxu0 %v46885_v61  ;;  %v41516_v22 = vld [vmem:[%s46735_s0 + $0x38] sm:$0xff] }
 0x2d6   :  { %15412 = vrot.lane.b32.xlu0 %v41488_v32, %s39026_s21  ;;  %11456 = vmatprep.subr.mxu1 %v11073_v34 }
 0x2d7   :  { %15408 = vrot.lane.b32.xlu1 %v41493_v38, %s39026_s21  ;;  %11457 = vmatpush1.msra.mxu1 %v11072_v58 }
 0x2d8   :  { %v41511_v7 = vpop.permute.xlu0 %12517  ;;  %35644 = vmatmul.mubr.msk.f32.vlgmr.msra.gmra.mrb[2].mxu1 %vm155_vm1, %v41173_v37 }
 0x2d9   :  { %v41520_v41 = vpop.permute.xlu1 %12513  ;;  %v12545_v14 = vsel %vm12535_vm7, %v12516_v13, %v41511_v7  ;;  %11662 = vmatprep.mubr.f32.mxu1 %v46885_v61 }
 0x2da   :  { %15418 = vrot.lane.b32.xlu0 %v41509_v47, %s39026_s21  ;;  %12859 = vmatprep.subr.mxu0 %v12545_v14  ;;  %v12544_v26 = vsel %vm12535_vm7, %v41520_v41, %v12516_v13 }
 0x2db   :  { %15420 = vrot.lane.b32.xlu1 %v41516_v22, %s39026_s21  ;;  %12860 = vmatpush1.msra.mxu0 %v12544_v26 }
 0x2dc   :  { %v11054_v5 = vpop.permute.xlu0 %11053  ;;  %35663 = vmatmul.mubr.msk.f32.vlgmr.msra.gmra.mrb[6].mxu0 %vm155_vm1, %v41446_v27 }
 0x2dd   :  { %v12524_v2 = vpop.permute.xlu1 %12523  ;;  %v11077_v33 = vsel %vm11061_vm15, %v11054_v5, %v41272_v50  ;;  %v11076_v51 = vsel %vm11061_vm15, %v41244_v20, %v11054_v5  ;;  %13065 = vmatprep.mubr.f32.mxu0 %v46885_v61  ;;  %v41562_v20 = vld [vmem:[%s46735_s0 + $0x48] sm:$0xff]  ;;  %v41684_v5 = vld [vmem:[%s46735_s0 + $0x60] sm:$0xff] }
 0x2de   :  { %15416 = vrot.lane.b32.xlu0 %v41534_v29, %s39026_s21  ;;  %11598 = vmatprep.subr.mxu1 %v11077_v33 }
 0x2df   :  { %15426 = vrot.lane.b32.xlu1 %v41539_v12, %s39026_s21  ;;  %11599 = vmatpush1.msra.mxu1 %v11076_v51 }
 0x2e0   :  { %v41557_v18 = vpop.permute.xlu0 %12525  ;;  %35646 = vmatmul.mubr.msk.f32.vlgmr.msra.gmra.mrb[4].mxu1 %vm155_vm1, %v41173_v37  ;;  %v41580_v37 = vld [vmem:[%s46735_s0 + $0x70] sm:$0xff] }
 0x2e1   :  { %v41566_v50 = vpop.permute.xlu1 %12521  ;;  %v12549_v4 = vsel %vm12535_vm7, %v12524_v2, %v41557_v18  ;;  %11973 = vmatprep.mubr.f32.mxu1 %v46885_v61 }
 0x2e2   :  { %15428 = vrot.lane.b32.xlu0 %v41555_v53, %s39026_s21  ;;  %13001 = vmatprep.subr.mxu0 %v12549_v4  ;;  %v12548_v19 = vsel %vm12535_vm7, %v41566_v50, %v12524_v2 }
 0x2e3   :  { %15424 = vrot.lane.b32.xlu1 %v41562_v20, %s39026_s21  ;;  %13002 = vmatpush1.msra.mxu0 %v12548_v19 }
 0x2e4   :  { %v11767_v36 = vpop.permute.xlu0 %11766  ;;  %35665 = vmatmul.mubr.msk.f32.vlgmr.msra.gmra.mrb[8].mxu0 %vm155_vm1, %v41446_v27 }
 0x2e5   :  { %v12532_v59 = vpop.permute.xlu1 %12531  ;;  %v11802_v11 = vsel %vm11798_vm6, %v11767_v36, %v41325_v39  ;;  %v11801_v3 = vsel %vm11798_vm6, %v41293_v44, %v11767_v36  ;;  %13207 = vmatprep.mubr.f32.mxu0 %v46885_v61  ;;  %v41606_v44 = vld [vmem:[%s46735_s0 + $0x20] sm:$0xff] }
 0x2e6   :  { %15434 = vrot.lane.b32.xlu0 %v41580_v37, %s39026_s21  ;;  %11909 = vmatprep.subr.mxu1 %v11802_v11 }
 0x2e7   :  { %15436 = vrot.lane.b32.xlu1 %v41585_v23, %s39026_s21  ;;  %11910 = vmatpush1.msra.mxu1 %v11801_v3 }
 0x2e8   :  { %v12534_v15 = vpop.permute.xlu0 %12533  ;;  %35650 = vmatmul.mubr.msk.f32.vlgmr.msra.gmra.mrb[6].mxu1 %vm155_vm1, %v41302_v30 }
 0x2e9   :  { %v41610_v39 = vpop.permute.xlu1 %12529  ;;  %v12553_v9 = vsel %vm12535_vm7, %v12532_v59, %v12534_v15  ;;  %12115 = vmatprep.mubr.f32.mxu1 %v46885_v61 }
 0x2ea   :  { %15432 = vrot.lane.b32.xlu0 %v41601_v63, %s39026_s21  ;;  %13143 = vmatprep.subr.mxu0 %v12553_v9  ;;  %v12552_v52 = vsel %vm12535_vm7, %v41610_v39, %v12532_v59  ;;  %v41715_v59 = vld [vmem:[%s46735_s0 + $0x80] sm:$0xff] }
 0x2eb   :  { %15414 = vrot.lane.b32.xlu1 %v41606_v44, %s39026_s21  ;;  %13144 = vmatpush1.msra.mxu0 %v12552_v52 }
 0x2ec   :  { %v11775_v60 = vpop.permute.xlu0 %11774  ;;  %35667 = vmatmul.mubr.msk.f32.vlgmr.msra.gmra.mrb[10].mxu0 %vm155_vm1, %v41446_v27 }
 0x2ed   :  { %v13237_v6 = vpop.permute.xlu1 %13236  ;;  %v11806_v40 = vsel %vm11798_vm6, %v11775_v60, %v41351_v46  ;;  %v11805_v16 = vsel %vm11798_vm6, %v41321_v28, %v11775_v60  ;;  %13376 = vmatprep.mubr.f32.mxu0 %v46885_v61  ;;  %v41651_v28 = vld [vmem:[%s46735_s0 + $0x40] sm:$0xff] }
 0x2ee   :  { %15442 = vrot.lane.b32.xlu0 %v41623_v8, %s39026_s21  ;;  %12051 = vmatprep.subr.mxu1 %v11806_v40 }
 0x2ef   :  { %15444 = vrot.lane.b32.xlu1 %v41628_v31, %s39026_s21  ;;  %12052 = vmatpush1.msra.mxu1 %v11805_v16 }
 0x2f0   :  { %v41646_v46 = vpop.permute.xlu0 %13238  ;;  %35652 = vmatmul.mubr.msk.f32.vlgmr.msra.gmra.mrb[0].mxu1 %vm155_vm1, %v41302_v30 }
 0x2f1   :  { %v13235_v24 = vpop.permute.xlu1 %13234  ;;  %v13274_v35 = vsel %vm13272_vm8, %v13237_v6, %v41646_v46  ;;  %12257 = vmatprep.mubr.f32.mxu1 %v46885_v61 }
 0x2f2   :  { %v13273_v54 = vsel %vm13272_vm8, %v13235_v24, %v13237_v6  ;;  %15440 = vrot.lane.b32.xlu0 %v41644_v0, %s39026_s21  ;;  %13312 = vmatprep.subr.mxu0 %v13274_v35 }
 0x2f3   :  { %15422 = vrot.lane.b32.xlu1 %v41651_v28, %s39026_s21  ;;  %13313 = vmatpush1.msra.mxu0 %v13273_v54 }
 0x2f4   :  { %v11783_v13 = vpop.permute.xlu0 %11782  ;;  %35669 = vmatmul.mubr.msk.f32.vlgmr.msra.gmra.mrb[0].mxu0 %vm155_vm1, %v41660_v1 }
 0x2f5   :  { %v13245_v34 = vpop.permute.xlu1 %13244  ;;  %v11810_v58 = vsel %vm11798_vm6, %v11783_v13, %v41377_v21  ;;  %v11809_v14 = vsel %vm11798_vm6, %v41347_v45, %v11783_v13  ;;  %13518 = vmatprep.mubr.f32.mxu0 %v46885_v61 }
 0x2f6   :  { %16146 = vrot.lane.b32.xlu0 %v41470_v42, %s39028_s13  ;;  %12193 = vmatprep.subr.mxu1 %v11810_v58 }
 0x2f7   :  { %16148 = vrot.lane.b32.xlu1 %v41488_v32, %s39028_s13  ;;  %12194 = vmatpush1.msra.mxu1 %v11809_v14 }
 0x2f8   :  { %v41679_v26 = vpop.permute.xlu0 %13246  ;;  %35654 = vmatmul.mubr.msk.f32.vlgmr.msra.gmra.mrb[2].mxu1 %vm155_vm1, %v41302_v30 }
 0x2f9   :  { %v41688_v45 = vpop.permute.xlu1 %13242  ;;  %v13278_v21 = vsel %vm13272_vm8, %v13245_v34, %v41679_v26  ;;  %12399 = vmatprep.mubr.f32.mxu1 %v46885_v61 }
 0x2fa   :  { %16144 = vrot.lane.b32.xlu0 %v41493_v38, %s39028_s13  ;;  %13454 = vmatprep.subr.mxu0 %v13278_v21  ;;  %v13277_v2 = vsel %vm13272_vm8, %v41688_v45, %v13245_v34 }
 0x2fb   :  { %15430 = vrot.lane.b32.xlu1 %v41684_v5, %s39026_s21  ;;  %13455 = vmatpush1.msra.mxu0 %v13277_v2  ;;  %v41799_v2 = vld [vmem:[%s46736_s1 + $0x98] sm:$0xff] }
 0x2fc   :  { %v11791_v33 = vpop.permute.xlu0 %11790  ;;  %35671 = vmatmul.mubr.msk.f32.vlgmr.msra.gmra.mrb[4].mxu0 %vm155_vm1, %v41660_v1 }
 0x2fd   :  { %v13253_v51 = vpop.permute.xlu1 %13252  ;;  %v11814_v4 = vsel %vm11798_vm6, %v11791_v33, %v41401_v57  ;;  %v11813_v19 = vsel %vm11798_vm6, %v41373_v48, %v11791_v33  ;;  %13660 = vmatprep.mubr.f32.mxu0 %v46885_v61  ;;  %vm46884_vm6 = vcmask 326656  }
 0x2fe   :  { %16154 = vrot.lane.b32.xlu0 %v41509_v47, %s39028_s13  ;;  %12335 = vmatprep.subr.mxu1 %v11814_v4 }
 0x2ff   :  { %16156 = vrot.lane.b32.xlu1 %v41516_v22, %s39028_s13  ;;  %12336 = vmatpush1.msra.mxu1 %v11813_v19 }
 0x300   :  { %v41710_v36 = vpop.permute.xlu0 %13254  ;;  %35656 = vmatmul.mubr.msk.f32.vlgmr.msra.gmra.mrb[4].mxu1 %vm155_vm1, %v41302_v30 }
 0x301   :  { %v41719_v48 = vpop.permute.xlu1 %13250  ;;  %v13282_v57 = vsel %vm13272_vm8, %v13253_v51, %v41710_v36  ;;  %12710 = vmatprep.mubr.f32.mxu1 %v46885_v61 }
 0x302   :  { %16152 = vrot.lane.b32.xlu0 %v41534_v29, %s39028_s13  ;;  %13596 = vmatprep.subr.mxu0 %v13282_v57  ;;  %v13281_v11 = vsel %vm13272_vm8, %v41719_v48, %v13253_v51 }
 0x303   :  { %15438 = vrot.lane.b32.xlu1 %v41715_v59, %s39026_s21  ;;  %13597 = vmatpush1.msra.mxu0 %v13281_v11 }
 0x304   :  { %v12504_v3 = vpop.permute.xlu0 %12503  ;;  %35673 = vmatmul.mubr.msk.f32.vlgmr.msra.gmra.mrb[6].mxu0 %vm155_vm1, %v41660_v1 }
 0x305   :  { %v13261_v30 = vpop.permute.xlu1 %13260  ;;  %v12539_v15 = vsel %vm12535_vm7, %v12504_v3, %v41474_v49  ;;  %v12538_v9 = vsel %vm12535_vm7, %v41437_v10, %v12504_v3  ;;  %13802 = vmatprep.mubr.f32.mxu0 %v46885_v61 }
 0x306   :  { %16162 = vrot.lane.b32.xlu0 %v41539_v12, %s39028_s13  ;;  %12646 = vmatprep.subr.mxu1 %v12539_v15 }
 0x307   :  { %16164 = vrot.lane.b32.xlu1 %v41555_v53, %s39028_s13  ;;  %12647 = vmatpush1.msra.mxu1 %v12538_v9 }
 0x308   :  { %v41741_v52 = vpop.permute.xlu0 %13262  ;;  %35660 = vmatmul.mubr.msk.f32.vlgmr.msra.gmra.mrb[6].mxu1 %vm155_vm1, %v41446_v27 }
 0x309   :  { %v41745_v60 = vpop.permute.xlu1 %13258  ;;  %v13286_v10 = vsel %vm13272_vm8, %v13261_v30, %v41741_v52  ;;  %12852 = vmatprep.mubr.f32.mxu1 %v46885_v61 }
 0x30a   :  { %16160 = vrot.lane.b32.xlu0 %v41562_v20, %s39028_s13  ;;  %13738 = vmatprep.subr.mxu0 %v13286_v10  ;;  %v13285_v49 = vsel %vm13272_vm8, %v41745_v60, %v13261_v30 }
 0x30b   :  { %16150 = vrot.lane.b32.xlu1 %v41606_v44, %s39028_s13  ;;  %13739 = vmatpush1.msra.mxu0 %v13285_v49 }
 0x30c   :  { %v12512_v6 = vpop.permute.xlu0 %12511  ;;  %35675 = vmatmul.mubr.msk.f32.vlgmr.msra.gmra.mrb[8].mxu0 %vm155_vm1, %v41660_v1 }
 0x30d   :  { %v13269_v40 = vpop.permute.xlu1 %13268  ;;  %v12543_v16 = vsel %vm12535_vm7, %v12512_v6, %v41520_v41  ;;  %v12542_v24 = vsel %vm12535_vm7, %v41465_v56, %v12512_v6  ;;  %13944 = vmatprep.mubr.f32.mxu0 %v46885_v61 }
 0x30e   :  { %16170 = vrot.lane.b32.xlu0 %v41580_v37, %s39028_s13  ;;  %12788 = vmatprep.subr.mxu1 %v12543_v16 }
 0x30f   :  { %16172 = vrot.lane.b32.xlu1 %v41585_v23, %s39028_s13  ;;  %12789 = vmatpush1.msra.mxu1 %v12542_v24 }
 0x310   :  { %v13271_v35 = vpop.permute.xlu0 %13270  ;;  %35662 = vmatmul.mubr.msk.f32.vlgmr.msra.gmra.mrb[0].mxu1 %vm155_vm1, %v41446_v27 }
 0x311   :  { %v41769_v54 = vpop.permute.xlu1 %13266  ;;  %v13290_v41 = vsel %vm13272_vm8, %v13269_v40, %v13271_v35  ;;  %12994 = vmatprep.mubr.f32.mxu1 %v46885_v61 }
 0x312   :  { %16168 = vrot.lane.b32.xlu0 %v41601_v63, %s39028_s13  ;;  %13880 = vmatprep.subr.mxu0 %v13290_v41  ;;  %v13289_v56 = vsel %vm13272_vm8, %v41769_v54, %v13269_v40 }
 0x313   :  { %16158 = vrot.lane.b32.xlu1 %v41651_v28, %s39028_s13  ;;  %13881 = vmatpush1.msra.mxu0 %v13289_v56 }
 0x314   :  { %v12520_v13 = vpop.permute.xlu0 %12519  ;;  %35677 = vmatmul.mubr.msk.f32.vlgmr.msra.gmra.mrb[10].mxu0 %vm155_vm1, %v41660_v1 }
 0x315   :  { %v13974_v34 = vpop.permute.xlu1 %13973  ;;  %v12547_v58 = vsel %vm12535_vm7, %v12520_v13, %v41566_v50  ;;  %v12546_v14 = vsel %vm12535_vm7, %v41511_v7, %v12520_v13  ;;  %14113 = vmatprep.mubr.f32.mxu0 %v46885_v61 }
 0x316   :  { %16178 = vrot.lane.b32.xlu0 %v41623_v8, %s39028_s13  ;;  %12930 = vmatprep.subr.mxu1 %v12547_v58 }
 0x317   :  { %16180 = vrot.lane.b32.xlu1 %v41628_v31, %s39028_s13  ;;  %12931 = vmatpush1.msra.mxu1 %v12546_v14 }
 0x318   :  { %v41790_v21 = vpop.permute.xlu0 %13975  ;;  %35664 = vmatmul.mubr.msk.f32.vlgmr.msra.gmra.mrb[2].mxu1 %vm155_vm1, %v41446_v27 }
 0x319   :  { %v13972_v50 = vpop.permute.xlu1 %13971  ;;  %v14011_v7 = vsel %vm14009_vm9, %v13974_v34, %v41790_v21  ;;  %13136 = vmatprep.mubr.f32.mxu1 %v46885_v61 }
 0x31a   :  { %v14010_v33 = vsel %vm14009_vm9, %v13972_v50, %v13974_v34  ;;  %16176 = vrot.lane.b32.xlu0 %v41644_v0, %s39028_s13  ;;  %14049 = vmatprep.subr.mxu0 %v14011_v7 }
 0x31b   :  { %16166 = vrot.lane.b32.xlu1 %v41684_v5, %s39028_s13  ;;  %14050 = vmatpush1.msra.mxu0 %v14010_v33  ;;  %v38969_v33 = vld [vmem:[%s46735_s0 + $0x10] sm:$0xff] }
 0x31c   :  { %v12528_v51 = vpop.permute.xlu0 %12527  ;;  %35679 = vmatmul.mubr.msk.f32.vlgmr.msra.gmra.mrb[0].mxu0 %vm155_vm1, %v41799_v2 }
 0x31d   :  { %v13982_v4 = vpop.permute.xlu1 %13981  ;;  %v12551_v19 = vsel %vm12535_vm7, %v12528_v51, %v41610_v39  ;;  %v12550_v57 = vsel %vm12535_vm7, %v41557_v18, %v12528_v51  ;;  %14255 = vmatprep.mubr.f32.mxu0 %v46885_v61 }
 0x31e   :  { %16882 = vrot.lane.b32.xlu0 %v41470_v42, %s39029_s14  ;;  %13072 = vmatprep.subr.mxu1 %v12551_v19 }
 0x31f   :  { %16884 = vrot.lane.b32.xlu1 %v41488_v32, %s39029_s14  ;;  %13073 = vmatpush1.msra.mxu1 %v12550_v57  ;;  %v38970_v57 = vld [vmem:[%s46735_s0 + $0x8] sm:$0xff] }
 0x320   :  { %v41818_v11 = vpop.permute.xlu0 %13983  ;;  %35666 = vmatmul.mubr.msk.f32.vlgmr.msra.gmra.mrb[4].mxu1 %vm155_vm1, %v41446_v27 }
 0x321   :  { %v41822_v3 = vpop.permute.xlu1 %13979  ;;  %v14015_v18 = vsel %vm14009_vm9, %v13982_v4, %v41818_v11  ;;  %13447 = vmatprep.mubr.f32.mxu1 %v46885_v61 }
 0x322   :  { %16880 = vrot.lane.b32.xlu0 %v41493_v38, %s39029_s14  ;;  %14191 = vmatprep.subr.mxu0 %v14015_v18  ;;  %v14014_v39 = vsel %vm14009_vm9, %v41822_v3, %v13982_v4  ;;  %v41926_v18 = vld [vmem:[%s46736_s1 + $0xa0] sm:$0xff] }
 0x323   :  { %16174 = vrot.lane.b32.xlu1 %v41715_v59, %s39028_s13  ;;  %14192 = vmatpush1.msra.mxu0 %v14014_v39 }
 0x324   :  { %v13241_v30 = vpop.permute.xlu0 %13240  ;;  %35681 = vmatmul.mubr.msk.f32.vlgmr.msra.gmra.mrb[4].mxu0 %vm155_vm1, %v41799_v2 }
 0x325   :  { %v13990_v27 = vpop.permute.xlu1 %13989  ;;  %v13276_v15 = vsel %vm13272_vm8, %v13241_v30, %v41688_v45  ;;  %v13275_v9 = vsel %vm13272_vm8, %v41646_v46, %v13241_v30  ;;  %14397 = vmatprep.mubr.f32.mxu0 %v46885_v61 }
 0x326   :  { %16890 = vrot.lane.b32.xlu0 %v41509_v47, %s39029_s14  ;;  %13383 = vmatprep.subr.mxu1 %v13276_v15 }
 0x327   :  { %16892 = vrot.lane.b32.xlu1 %v41516_v22, %s39029_s14  ;;  %13384 = vmatpush1.msra.mxu1 %v13275_v9 }
 0x328   :  { %v41844_v10 = vpop.permute.xlu0 %13991  ;;  %35670 = vmatmul.mubr.msk.f32.vlgmr.msra.gmra.mrb[6].mxu1 %vm155_vm1, %v41660_v1 }
 0x329   :  { %v41848_v49 = vpop.permute.xlu1 %13987  ;;  %v14019_v46 = vsel %vm14009_vm9, %v13990_v27, %v41844_v10  ;;  %13589 = vmatprep.mubr.f32.mxu1 %v46885_v61 }
 0x32a   :  { %16888 = vrot.lane.b32.xlu0 %v41534_v29, %s39029_s14  ;;  %14333 = vmatprep.subr.mxu0 %v14019_v46  ;;  %v14018_v45 = vsel %vm14009_vm9, %v41848_v49, %v13990_v27  ;;  %v38973_v46 = vld [vmem:[%s46735_s0 + $0x50] sm:$0xff] }
 0x32b   :  { %16886 = vrot.lane.b32.xlu1 %v41606_v44, %s39029_s14  ;;  %14334 = vmatpush1.msra.mxu0 %v14018_v45  ;;  %v38974_v45 = vld [vmem:[%s46735_s0 + $0x48] sm:$0xff] }
 0x32c   :  { %v13249_v6 = vpop.permute.xlu0 %13248  ;;  %35683 = vmatmul.mubr.msk.f32.vlgmr.msra.gmra.mrb[6].mxu0 %vm155_vm1, %v41799_v2 }
 0x32d   :  { %v13998_v40 = vpop.permute.xlu1 %13997  ;;  %v13280_v16 = vsel %vm13272_vm8, %v13249_v6, %v41719_v48  ;;  %v13279_v24 = vsel %vm13272_vm8, %v41679_v26, %v13249_v6  ;;  %14539 = vmatprep.mubr.f32.mxu0 %v46885_v61 }
 0x32e   :  { %16898 = vrot.lane.b32.xlu0 %v41539_v12, %s39029_s14  ;;  %13525 = vmatprep.subr.mxu1 %v13280_v16 }
 0x32f   :  { %16900 = vrot.lane.b32.xlu1 %v41555_v53, %s39029_s14  ;;  %13526 = vmatpush1.msra.mxu1 %v13279_v24  ;;  %v38976_v24 = vld [vmem:[%s46735_s0 + $0x68] sm:$0xff] }
 0x330   :  { %v41870_v35 = vpop.permute.xlu0 %13999  ;;  %35672 = vmatmul.mubr.msk.f32.vlgmr.msra.gmra.mrb[0].mxu1 %vm155_vm1, %v41660_v1 }
 0x331   :  { %v41874_v41 = vpop.permute.xlu1 %13995  ;;  %v14023_v26 = vsel %vm14009_vm9, %v13998_v40, %v41870_v35  ;;  %13731 = vmatprep.mubr.f32.mxu1 %v46885_v61 }
 0x332   :  { %16896 = vrot.lane.b32.xlu0 %v41562_v20, %s39029_s14  ;;  %14475 = vmatprep.subr.mxu0 %v14023_v26  ;;  %v14022_v48 = vsel %vm14009_vm9, %v41874_v41, %v13998_v40  ;;  %v38975_v40 = vld [vmem:[%s46735_s0 + $0x70] sm:$0xff] }
 0x333   :  { %16894 = vrot.lane.b32.xlu1 %v41651_v28, %s39029_s14  ;;  %14476 = vmatpush1.msra.mxu0 %v14022_v48  ;;  %v38978_v48 = vld [vmem:[%s46735_s0 + $0x18] sm:$0xff] }
 0x334   :  { %v13257_v56 = vpop.permute.xlu0 %13256  ;;  %35685 = vmatmul.mubr.msk.f32.vlgmr.msra.gmra.mrb[8].mxu0 %vm155_vm1, %v41799_v2 }
 0x335   :  { %v14006_v13 = vpop.permute.xlu1 %14005  ;;  %v13284_v34 = vsel %vm13272_vm8, %v13257_v56, %v41745_v60  ;;  %v13283_v58 = vsel %vm13272_vm8, %v41710_v36, %v13257_v56  ;;  %14681 = vmatprep.mubr.f32.mxu0 %v46885_v61 }
 0x336   :  { %16906 = vrot.lane.b32.xlu0 %v41580_v37, %s39029_s14  ;;  %13667 = vmatprep.subr.mxu1 %v13284_v34  ;;  %v38979_v34 = vld [vmem:[%s46735_s0 + $0x40] sm:$0xff] }
 0x337   :  { %16908 = vrot.lane.b32.xlu1 %v41585_v23, %s39029_s14  ;;  %13668 = vmatpush1.msra.mxu1 %v13283_v58 }
 0x338   :  { %v14008_v14 = vpop.permute.xlu0 %14007  ;;  %35674 = vmatmul.mubr.msk.f32.vlgmr.msra.gmra.mrb[2].mxu1 %vm155_vm1, %v41660_v1 }
 0x339   :  { %v41898_v50 = vpop.permute.xlu1 %14003  ;;  %v14027_v60 = vsel %vm14009_vm9, %v14006_v13, %v14008_v14  ;;  %13873 = vmatprep.mubr.f32.mxu1 %v46885_v61  ;;  %v38980_v14 = vld [vmem:[%s46735_s0 + $0x38] sm:$0xff] }
 0x33a   :  { %16904 = vrot.lane.b32.xlu0 %v41601_v63, %s39029_s14  ;;  %14617 = vmatprep.subr.mxu0 %v14027_v60  ;;  %v14026_v36 = vsel %vm14009_vm9, %v41898_v50, %v14006_v13 }
 0x33b   :  { %16902 = vrot.lane.b32.xlu1 %v41684_v5, %s39029_s14  ;;  %14618 = vmatpush1.msra.mxu0 %v14026_v36  ;;  %v38981_v36 = vld [vmem:[%s46735_s0 + $0x60] sm:$0xff] }
 0x33c   :  { %v13265_v7 = vpop.permute.xlu0 %13264  ;;  %35687 = vmatmul.mubr.msk.f32.vlgmr.msra.gmra.mrb[10].mxu0 %vm155_vm1, %v41799_v2  ;;  %14711 = vmatprep.subr.mxu0 %v38969_v33  ;;  %v38982_v33 = vld [vmem:[%s46735_s0 + $0x58] sm:$0xff] }
 0x33d   :  { %v13978_v51 = vpop.permute.xlu1 %13977  ;;  %v13288_v4 = vsel %vm13272_vm8, %v13265_v7, %v41769_v54  ;;  %v13287_v19 = vsel %vm13272_vm8, %v41741_v52, %v13265_v7  ;;  %14712 = vmatpush1.msra.mxu0 %v38970_v57  ;;  %14775 = vmatprep.mubr.f32.mxu0 %v46885_v61 }
 0x33e   :  { %16914 = vrot.lane.b32.xlu0 %v41623_v8, %s39029_s14  ;;  %13809 = vmatprep.subr.mxu1 %v13288_v4  ;;  %v14013_v52 = vsel %vm14009_vm9, %v13978_v51, %v41822_v3  ;;  %v14012_v39 = vsel %vm14009_vm9, %v41790_v21, %v13978_v51  ;;  %v38972_v21 = vld [vmem:[%s46735_s0 + $0x28] sm:$0xff] }
 0x33f   :  { %16916 = vrot.lane.b32.xlu1 %v41628_v31, %s39029_s14  ;;  %13810 = vmatpush1.msra.mxu1 %v13287_v19 }
 0x340   :  { %v13986_v54 = vpop.permute.xlu0 %13985  ;;  %35676 = vmatmul.mubr.msk.f32.vlgmr.msra.gmra.mrb[4].mxu1 %vm155_vm1, %v41660_v1  ;;  %14120 = vmatprep.subr.mxu1 %v14013_v52  ;;  %v38971_v1 = vld [vmem:[%s46735_s0 + $0x30] sm:$0xff] }
 0x341   :  { %35689 = vmatmul.mubr.msk.f32.vlgmr.msra.gmra.mrb[0].mxu0 %vm155_vm1, %v41926_v18  ;;  %v13994_v30 = vpop.permute.xlu1 %13993  ;;  %14121 = vmatpush1.msra.mxu1 %v14012_v39  ;;  %v14017_v27 = vsel %vm14009_vm9, %v13986_v54, %v41848_v49  ;;  %v14016_v15 = vsel %vm14009_vm9, %v41818_v11, %v13986_v54 }
 0x342   :  { %16912 = vrot.lane.b32.xlu0 %v41644_v0, %s39029_s14  ;;  %14262 = vmatprep.subr.mxu1 %v14017_v27  ;;  %v14021_v49 = vsel %vm14009_vm9, %v13994_v30, %v41874_v41 }
 0x343   :  { %16910 = vrot.lane.b32.xlu1 %v41715_v59, %s39029_s14  ;;  %14853 = vmatprep.subr.mxu0 %v38971_v1 }
 0x344   :  { %14184 = vmatprep.mubr.f32.mxu1 %v46885_v61  ;;  %14854 = vmatpush1.msra.mxu0 %v38972_v21  ;;  %v14002_v3 = vpop.permute.xlu0 %14001 }
 0x345   :  { %14917 = vmatprep.mubr.f32.mxu0 %v46885_v61  ;;  %35680 = vmatmul.mubr.msk.f32.vlgmr.msra.gmra.mrb[6].mxu1 %vm155_vm1, %v41799_v2  ;;  %v15411_v9 = vpop.permute.xlu1 %15410 }
 0x346   :  { %14263 = vmatpush1.msra.mxu1 %v14016_v15  ;;  %35691 = vmatmul.mubr.msk.f32.vlgmr.msra.gmra.mrb[4].mxu0 %vm155_vm1, %v41926_v18 }
 0x347   :  { %14404 = vmatprep.subr.mxu1 %v14021_v49  ;;  %17618 = vrot.lane.b32.xlu0 %v41470_v42, %s39030_s15  ;;  %v14020_v42 = vsel %vm14009_vm9, %v41844_v10, %v13994_v30  ;;  %v39046_v49 = vmov 0  }
 0x348   :  { %17620 = vrot.lane.b32.xlu1 %v41488_v32, %s39030_s15  ;;  %14995 = vmatprep.subr.mxu0 %v38973_v46  ;;  %v41967_v11 = vpop.permute.xlu0 %15412  ;;  %v14025_v32 = vsel %vm14009_vm9, %v14002_v3, %v41898_v50 }
 0x349   :  { %14326 = vmatprep.mubr.f32.mxu1 %v46885_v61  ;;  %14996 = vmatpush1.msra.mxu0 %v38974_v45  ;;  %v15409_v6 = vpop.permute.xlu1 %15408  ;;  %v15447_v41 = vsel %vm118_vm0, %v15411_v9, %v41967_v11  ;;  %v18350_v45 = vld [vmem:[%s46737_s2] sm:$0xff]  ;;  %s39050_s2 = smov 56  }
 0x34a   :  { %15059 = vmatprep.mubr.f32.mxu0 %v46885_v61  ;;  %35682 = vmatmul.mubr.msk.f32.vlgmr.msra.gmra.mrb[0].mxu1 %vm155_vm1, %v41799_v2 }
 0x34b   :  { %14405 = vmatpush1.msra.mxu1 %v14020_v42  ;;  %35693 = vmatmul.mubr.msk.f32.vlgmr.msra.gmra.mrb[6].mxu0 %vm155_vm1, %v41926_v18 }
 0x34c   :  { %14546 = vmatprep.subr.mxu1 %v14025_v32  ;;  %15137 = vmatprep.subr.mxu0 %v38975_v40  ;;  %v15419_v16 = vpop.permute.xlu0 %15418 }
 0x34d   :  { %17616 = vrot.lane.b32.xlu0 %v41493_v38, %s39030_s15  ;;  %17622 = vrot.lane.b32.xlu1 %v41606_v44, %s39030_s15  ;;  %v41989_v10 = vpop.permute.xlu1 %15420  ;;  %v14024_v38 = vsel %vm14009_vm9, %v41870_v35, %v14002_v3 }
 0x34e   :  { %15138 = vmatpush1.msra.mxu0 %v38976_v24  ;;  %14468 = vmatprep.mubr.f32.mxu1 %v46885_v61  ;;  %v15451_v35 = vsel %vm118_vm0, %v15419_v16, %v41989_v10 }
 0x34f   :  { %15201 = vmatprep.mubr.f32.mxu0 %v46885_v61  ;;  %15279 = vmatprep.subr.mxu0 %v41426_v55 }
 0x350   :  { %35684 = vmatmul.mubr.msk.f32.vlgmr.msra.gmra.mrb[2].mxu1 %vm155_vm1, %v41799_v2  ;;  %35695 = vmatmul.mubr.msk.f32.vlgmr.msra.gmra.mrb[8].mxu0 %vm155_vm1, %v41926_v18  ;;  %v15417_v44 = vpop.permute.xlu0 %15416 }
 0x351   :  { %14547 = vmatpush1.msra.mxu1 %v14024_v38  ;;  %15280 = vmatpush1.msra.mxu0 %v41412_v17  ;;  %v15427_v26 = vpop.permute.xlu1 %15426  ;;  %v15446_v17 = vsel %vm118_vm0, %v15409_v6, %v15411_v9  ;;  %v15450_v13 = vsel %vm118_vm0, %v15417_v44, %v15419_v16 }
 0x352   :  { %15485 = vmatprep.subr.mxu0 %v15447_v41  ;;  %17624 = vrot.lane.b32.xlu0 %v41534_v29, %s39030_s15  ;;  %v38977_v29 = vld [vmem:[%s46735_s0 + $0x20] sm:$0xff] }
 0x353   :  { %17626 = vrot.lane.b32.xlu1 %v41509_v47, %s39030_s15  ;;  %14610 = vmatprep.mubr.f32.mxu1 %v46885_v61 }
 0x354   :  { %15343 = vmatprep.mubr.f32.mxu0 %v46885_v61  ;;  %35686 = vmatmul.mubr.msk.f32.vlgmr.msra.gmra.mrb[4].mxu1 %vm155_vm1, %v41799_v2  ;;  %v42014_v55 = vpop.permute.xlu0 %15428  ;;  %v42033_v2 = vld [vmem:[%s46736_s1 + $0xa8] sm:$0xff] }
 0x355   :  { %35697 = vmatmul.mubr.msk.f32.vlgmr.msra.gmra.mrb[10].mxu0 %vm155_vm1, %v41926_v18  ;;  %14782 = vmatprep.subr.mxu1 %v38977_v29  ;;  %v42022_v47 = vpop.permute.xlu1 %15424 }
 0x356   :  { %15486 = vmatpush1.msra.mxu0 %v15446_v17  ;;  %17628 = vrot.lane.b32.xlu0 %v41516_v22, %s39030_s15  ;;  %v15455_v22 = vsel %vm118_vm0, %v15427_v26, %v42014_v55 }
 0x357   :  { %15627 = vmatprep.subr.mxu0 %v15451_v35  ;;  %17630 = vrot.lane.b32.xlu1 %v41651_v28, %s39030_s15 }
 0x358   :  { %14783 = vmatpush1.msra.mxu1 %v38978_v48  ;;  %14846 = vmatprep.mubr.f32.mxu1 %v46885_v61  ;;  %v15435_v56 = vpop.permute.xlu0 %15434 }
 0x359   :  { %15549 = vmatprep.mubr.f32.mxu0 %v46885_v61  ;;  %35690 = vmatmul.mubr.msk.f32.vlgmr.msra.gmra.mrb[6].mxu1 %vm155_vm1, %v41926_v18  ;;  %v42044_v28 = vpop.permute.xlu1 %15436 }
 0x35a   :  { %35699 = vmatmul.mubr.msk.f32.vlgmr.msra.gmra.mrb[0].mxu0 %vm155_vm1, %v42033_v2  ;;  %17632 = vrot.lane.b32.xlu0 %v41562_v20, %s39030_s15  ;;  %v15454_v20 = vsel %vm118_vm0, %v42022_v47, %v15427_v26 }
 0x35b   :  { %15628 = vmatpush1.msra.mxu0 %v15450_v13  ;;  %17634 = vrot.lane.b32.xlu1 %v41539_v12, %s39030_s15  ;;  %v15459_v12 = vsel %vm118_vm0, %v15435_v56, %v42044_v28 }
 0x35c   :  { %14924 = vmatprep.subr.mxu1 %v38979_v34  ;;  %15769 = vmatprep.subr.mxu0 %v15455_v22  ;;  %v15433_v58 = vpop.permute.xlu0 %15432 }
 0x35d   :  { %14925 = vmatpush1.msra.mxu1 %v38980_v14  ;;  %14988 = vmatprep.mubr.f32.mxu1 %v46885_v61  ;;  %v15415_v50 = vpop.permute.xlu1 %15414  ;;  %v15458_v51 = vsel %vm118_vm0, %v15433_v58, %v15435_v56 }
 0x35e   :  { %15691 = vmatprep.mubr.f32.mxu0 %v46885_v61  ;;  %35692 = vmatmul.mubr.msk.f32.vlgmr.msra.gmra.mrb[0].mxu1 %vm155_vm1, %v41926_v18  ;;  %v15448_v57 = vsel %vm118_vm0, %v41967_v11, %v15415_v50 }
 0x35f   :  { %35701 = vmatmul.mubr.msk.f32.vlgmr.msra.gmra.mrb[4].mxu0 %vm155_vm1, %v42033_v2  ;;  %17636 = vrot.lane.b32.xlu0 %v41555_v53, %s39030_s15  ;;  %v15449_v53 = vsel %vm118_vm0, %v15415_v50, %v15417_v44 }
 0x360   :  { %15770 = vmatpush1.msra.mxu0 %v15454_v20  ;;  %17638 = vrot.lane.b32.xlu1 %v41684_v5, %s39030_s15  ;;  %v15443_v60 = vpop.permute.xlu0 %15442  ;;  %v38983_v5 = vld [vmem:[%s46735_s0 + $0x78] sm:$0xff] }
 0x361   :  { %15066 = vmatprep.subr.mxu1 %v38981_v36  ;;  %15911 = vmatprep.subr.mxu0 %v15459_v12  ;;  %v15445_v7 = vpop.permute.xlu1 %15444 }
 0x362   :  { %15067 = vmatpush1.msra.mxu1 %v38982_v33  ;;  %15130 = vmatprep.mubr.f32.mxu1 %v46885_v61 }
 0x363   :  { %35694 = vmatmul.mubr.msk.f32.vlgmr.msra.gmra.mrb[2].mxu1 %vm155_vm1, %v41926_v18  ;;  %15208 = vmatprep.subr.mxu1 %v41433_v25  ;;  %v15463_v25 = vsel %vm118_vm0, %v15443_v60, %v15445_v7 }
 0x364   :  { %15209 = vmatpush1.msra.mxu1 %v38983_v5  ;;  %15833 = vmatprep.mubr.f32.mxu0 %v46885_v61  ;;  %v15441_v4 = vpop.permute.xlu0 %15440 }
 0x365   :  { %17640 = vrot.lane.b32.xlu0 %v41601_v63, %s39030_s15  ;;  %15556 = vmatprep.subr.mxu1 %v15449_v53  ;;  %v15423_v19 = vpop.permute.xlu1 %15422  ;;  %v15462_v54 = vsel %vm118_vm0, %v15441_v4, %v15443_v60  ;;  %v42198_v60 = vld [vmem:[%s46736_s1 + $0xb8] sm:$0xff] }
 0x366   :  { %35703 = vmatmul.mubr.msk.f32.vlgmr.msra.gmra.mrb[6].mxu0 %vm155_vm1, %v42033_v2  ;;  %15272 = vmatprep.mubr.f32.mxu1 %v46885_v61  ;;  %v15453_v63 = vsel %vm118_vm0, %v15423_v19, %v42022_v47 }
 0x367   :  { %15912 = vmatpush1.msra.mxu0 %v15458_v51  ;;  %35696 = vmatmul.mubr.msk.f32.vlgmr.msra.gmra.mrb[4].mxu1 %vm155_vm1, %v41926_v18 }
 0x368   :  { %15557 = vmatpush1.msra.mxu1 %v15448_v57  ;;  %17642 = vrot.lane.b32.xlu1 %v41580_v37, %s39030_s15  ;;  %v16147_v52 = vpop.permute.xlu0 %16146  ;;  %v15452_v37 = vsel %vm118_vm0, %v41989_v10, %v15423_v19 }
 0x369   :  { %17644 = vrot.lane.b32.xlu0 %v41585_v23, %s39030_s15  ;;  %16053 = vmatprep.subr.mxu0 %v15463_v25  ;;  %v42106_v39 = vpop.permute.xlu1 %16148 }
 0x36a   :  { %15975 = vmatprep.mubr.f32.mxu0 %v46885_v61  ;;  %15620 = vmatprep.mubr.f32.mxu1 %v46885_v61  ;;  %v16183_v18 = vsel %vm46880_vm2, %v16147_v52, %v42106_v39 }
 0x36b   :  { %15698 = vmatprep.subr.mxu1 %v15453_v63  ;;  %35705 = vmatmul.mubr.msk.f32.vlgmr.msra.gmra.mrb[8].mxu0 %vm155_vm1, %v42033_v2 }
 0x36c   :  { %17646 = vrot.lane.b32.xlu1 %v41715_v59, %s39030_s15  ;;  %16054 = vmatpush1.msra.mxu0 %v15462_v54  ;;  %v16145_v23 = vpop.permute.xlu0 %16144 }
 0x36d   :  { %17648 = vrot.lane.b32.xlu0 %v41644_v0, %s39030_s15  ;;  %35700 = vmatmul.mubr.msk.f32.vlgmr.msra.gmra.mrb[6].mxu1 %vm155_vm1, %v42033_v2  ;;  %v15431_v30 = vpop.permute.xlu1 %15430  ;;  %v16182_v1 = vsel %vm46880_vm2, %v16145_v23, %v16147_v52 }
 0x36e   :  { %15699 = vmatpush1.msra.mxu1 %v15452_v37  ;;  %16221 = vmatprep.subr.mxu0 %v16183_v18  ;;  %v15457_v27 = vsel %vm118_vm0, %v15431_v30, %v15433_v58  ;;  %v15456_v0 = vsel %vm118_vm0, %v42014_v55, %v15431_v30 }
 0x36f   :  { %16117 = vmatprep.mubr.f32.mxu0 %v46885_v61  ;;  %15762 = vmatprep.mubr.f32.mxu1 %v46885_v61 }
 0x370   :  { %17650 = vrot.lane.b32.xlu1 %v41623_v8, %s39030_s15  ;;  %15840 = vmatprep.subr.mxu1 %v15457_v27  ;;  %v16155_v59 = vpop.permute.xlu0 %16154  ;;  %v42140_v8 = vld [vmem:[%s46736_s1 + $0xb0] sm:$0xff] }
 0x371   :  { %17652 = vrot.lane.b32.xlu0 %v41628_v31, %s39030_s15  ;;  %35707 = vmatmul.mubr.msk.f32.vlgmr.msra.gmra.mrb[10].mxu0 %vm155_vm1, %v42033_v2  ;;  %v16157_v21 = vpop.permute.xlu1 %16156 }
 0x372   :  { %16222 = vmatpush1.msra.mxu0 %v16182_v1  ;;  %35702 = vmatmul.mubr.msk.f32.vlgmr.msra.gmra.mrb[0].mxu1 %vm155_vm1, %v42033_v2  ;;  %v16187_v3 = vsel %vm46880_vm2, %v16155_v59, %v16157_v21 }
 0x373   :  { %15841 = vmatpush1.msra.mxu1 %v15456_v0  ;;  %16363 = vmatprep.subr.mxu0 %v16187_v3 }
 0x374   :  { %v16153_v15 = vpop.permute.xlu0 %16152  ;;  %16285 = vmatprep.mubr.f32.mxu0 %v46885_v61  ;;  %15904 = vmatprep.mubr.f32.mxu1 %v46885_v61 }
 0x375   :  { %v15439_v31 = vpop.permute.xlu1 %15438  ;;  %35709 = vmatmul.mubr.msk.f32.vlgmr.msra.gmra.mrb[0].mxu0 %vm155_vm1, %v42140_v8  ;;  %v16186_v9 = vsel %vm46880_vm2, %v16153_v15, %v16155_v59  ;;  %38786 = vset.pattern.permute.xlu1 %v39046_v49 }
 0x376   :  { %v15461_v46 = vsel %vm118_vm0, %v15439_v31, %v15441_v4  ;;  %16364 = vmatpush1.msra.mxu0 %v16186_v9  ;;  %35704 = vmatmul.mubr.msk.f32.vlgmr.msra.gmra.mrb[2].mxu1 %vm155_vm1, %v42033_v2  ;;  %v15460_v11 = vsel %vm118_vm0, %v42044_v28, %v15439_v31 }
 0x377   :  { %15982 = vmatprep.subr.mxu1 %v15461_v46  ;;  %16427 = vmatprep.mubr.f32.mxu0 %v46885_v61 }
 0x378   :  { %15983 = vmatpush1.msra.mxu1 %v15460_v11  ;;  %v16163_v6 = vpop.permute.xlu0 %16162  ;;  %16046 = vmatprep.mubr.f32.mxu1 %v46885_v61 }
 0x379   :  { %v16165_v42 = vpop.permute.xlu1 %16164  ;;  %35711 = vmatmul.mubr.msk.f32.vlgmr.msra.gmra.mrb[4].mxu0 %vm155_vm1, %v42140_v8  ;;  %18353 = vperm.xlu1 %38786, %v18350_v45  }
 0x37a   :  { %v16191_v32 = vsel %vm46880_vm2, %v16163_v6, %v16165_v42  ;;  %35706 = vmatmul.mubr.msk.f32.vlgmr.msra.gmra.mrb[4].mxu1 %vm155_vm1, %v42033_v2  ;;  %16569 = vmatprep.mubr.f32.mxu0 %v46885_v61 }
 0x37b   :  { %16505 = vmatprep.subr.mxu0 %v16191_v32  ;;  %16356 = vmatprep.mubr.f32.mxu1 %v46885_v61 }
 0x37c   :  { %v16161_v40 = vpop.permute.xlu0 %16160  ;;  %38787 = vset.pattern.permute.xlu0 %v39046_v49 }
 0x37d   :  { %v16151_v16 = vpop.permute.xlu1 %16150  ;;  %v16190_v10 = vsel %vm46880_vm2, %v16161_v40, %v16163_v6 }
 0x37e   :  { %v16185_v24 = vsel %vm46880_vm2, %v16151_v16, %v16153_v15  ;;  %16506 = vmatpush1.msra.mxu0 %v16190_v10  ;;  %v16184_v38 = vsel %vm46880_vm2, %v42106_v39, %v16151_v16 }
 0x37f   :  { %16292 = vmatprep.subr.mxu1 %v16185_v24  ;;  %35713 = vmatmul.mubr.msk.f32.vlgmr.msra.gmra.mrb[6].mxu0 %vm155_vm1, %v42140_v8 }
 0x380   :  { %16293 = vmatpush1.msra.mxu1 %v16184_v38  ;;  %v16171_v44 = vpop.permute.xlu0 %16170  ;;  %16711 = vmatprep.mubr.f32.mxu0 %v46885_v61 }
 0x381   :  { %v16173_v41 = vpop.permute.xlu1 %16172  ;;  %35710 = vmatmul.mubr.msk.f32.vlgmr.msra.gmra.mrb[6].mxu1 %vm155_vm1, %v42140_v8 }
 0x382   :  { %v16195_v26 = vsel %vm46880_vm2, %v16171_v44, %v16173_v41  ;;  %16498 = vmatprep.mubr.f32.mxu1 %v46885_v61 }
 0x383   :  { %16647 = vmatprep.subr.mxu0 %v16195_v26 }
 0x384   :  { %v16169_v55 = vpop.permute.xlu0 %16168 }
 0x385   :  { %v16159_v17 = vpop.permute.xlu1 %16158  ;;  %v16194_v29 = vsel %vm46880_vm2, %v16169_v55, %v16171_v44 }
 0x386   :  { %v16189_v47 = vsel %vm46880_vm2, %v16159_v17, %v16161_v40  ;;  %16648 = vmatpush1.msra.mxu0 %v16194_v29  ;;  %v16188_v35 = vsel %vm46880_vm2, %v16157_v21, %v16159_v17 }
 0x387   :  { %16434 = vmatprep.subr.mxu1 %v16189_v47  ;;  %35715 = vmatmul.mubr.msk.f32.vlgmr.msra.gmra.mrb[8].mxu0 %vm155_vm1, %v42140_v8 }
 0x388   :  { %16435 = vmatpush1.msra.mxu1 %v16188_v35  ;;  %v16179_v2 = vpop.permute.xlu0 %16178  ;;  %16853 = vmatprep.mubr.f32.mxu0 %v46885_v61 }
 0x389   :  { %v16181_v48 = vpop.permute.xlu1 %16180  ;;  %35712 = vmatmul.mubr.msk.f32.vlgmr.msra.gmra.mrb[0].mxu1 %vm155_vm1, %v42140_v8 }
 0x38a   :  { %v16199_v56 = vsel %vm46880_vm2, %v16179_v2, %v16181_v48  ;;  %16640 = vmatprep.mubr.f32.mxu1 %v46885_v61 }
 0x38b   :  { %16789 = vmatprep.subr.mxu0 %v16199_v56 }
 0x38c   :  { %v16177_v22 = vpop.permute.xlu0 %16176 }
 0x38d   :  { %v16167_v28 = vpop.permute.xlu1 %16166  ;;  %v16198_v13 = vsel %vm46880_vm2, %v16177_v22, %v16179_v2 }
 0x38e   :  { %v16193_v34 = vsel %vm46880_vm2, %v16167_v28, %v16169_v55  ;;  %16790 = vmatpush1.msra.mxu0 %v16198_v13  ;;  %v16192_v58 = vsel %vm46880_vm2, %v16165_v42, %v16167_v28 }
 0x38f   :  { %16576 = vmatprep.subr.mxu1 %v16193_v34  ;;  %35717 = vmatmul.mubr.msk.f32.vlgmr.msra.gmra.mrb[10].mxu0 %vm155_vm1, %v42140_v8 }
 0x390   :  { %16577 = vmatpush1.msra.mxu1 %v16192_v58  ;;  %v16883_v14 = vpop.permute.xlu0 %16882  ;;  %17021 = vmatprep.mubr.f32.mxu0 %v46885_v61 }
 0x391   :  { %v16885_v50 = vpop.permute.xlu1 %16884  ;;  %35714 = vmatmul.mubr.msk.f32.vlgmr.msra.gmra.mrb[2].mxu1 %vm155_vm1, %v42140_v8 }
 0x392   :  { %v16919_v12 = vsel %vm2217_vm3, %v16883_v14, %v16885_v50  ;;  %16782 = vmatprep.mubr.f32.mxu1 %v46885_v61 }
 0x393   :  { %16957 = vmatprep.subr.mxu0 %v16919_v12 }
 0x394   :  { %v16881_v20 = vpop.permute.xlu0 %16880 }
 0x395   :  { %v16918_v36 = vsel %vm2217_vm3, %v16881_v20, %v16883_v14  ;;  %v16175_v7 = vpop.permute.xlu1 %16174 }
 0x396   :  { %v16197_v33 = vsel %vm46880_vm2, %v16175_v7, %v16177_v22  ;;  %16958 = vmatpush1.msra.mxu0 %v16918_v36  ;;  %v16196_v53 = vsel %vm46880_vm2, %v16173_v41, %v16175_v7  ;;  %v42253_v41 = vld [vmem:[%s46736_s1 + $0xc0] sm:$0xff]  ;;  %s39047_s1 = smov 122  }
 0x397   :  { %16718 = vmatprep.subr.mxu1 %v16197_v33  ;;  %35719 = vmatmul.mubr.msk.f32.vlgmr.msra.gmra.mrb[0].mxu0 %vm155_vm1, %v42198_v60 }
 0x398   :  { %16719 = vmatpush1.msra.mxu1 %v16196_v53  ;;  %v16891_v5 = vpop.permute.xlu0 %16890  ;;  %17163 = vmatprep.mubr.f32.mxu0 %v46885_v61 }
 0x399   :  { %v16893_v51 = vpop.permute.xlu1 %16892  ;;  %35716 = vmatmul.mubr.msk.f32.vlgmr.msra.gmra.mrb[4].mxu1 %vm155_vm1, %v42140_v8 }
 0x39a   :  { %v16923_v4 = vsel %vm2217_vm3, %v16891_v5, %v16893_v51  ;;  %17092 = vmatprep.mubr.f32.mxu1 %v46885_v61 }
 0x39b   :  { %17099 = vmatprep.subr.mxu0 %v16923_v4 }
 0x39c   :  { %v16889_v19 = vpop.permute.xlu0 %16888 }
 0x39d   :  { %v16887_v25 = vpop.permute.xlu1 %16886  ;;  %v16922_v57 = vsel %vm2217_vm3, %v16889_v19, %v16891_v5 }
 0x39e   :  { %v16921_v63 = vsel %vm2217_vm3, %v16887_v25, %v16889_v19  ;;  %17100 = vmatpush1.msra.mxu0 %v16922_v57  ;;  %v16920_v52 = vsel %vm2217_vm3, %v16885_v50, %v16887_v25 }
 0x39f   :  { %17028 = vmatprep.subr.mxu1 %v16921_v63  ;;  %35721 = vmatmul.mubr.msk.f32.vlgmr.msra.gmra.mrb[4].mxu0 %vm155_vm1, %v42198_v60 }
 0x3a0   :  { %17029 = vmatpush1.msra.mxu1 %v16920_v52  ;;  %v16899_v54 = vpop.permute.xlu0 %16898  ;;  %17305 = vmatprep.mubr.f32.mxu0 %v46885_v61 }
 0x3a1   :  { %v16901_v39 = vpop.permute.xlu1 %16900  ;;  %35720 = vmatmul.mubr.msk.f32.vlgmr.msra.gmra.mrb[6].mxu1 %vm155_vm1, %v42198_v60 }
 0x3a2   :  { %v16927_v37 = vsel %vm2217_vm3, %v16899_v54, %v16901_v39  ;;  %17234 = vmatprep.mubr.f32.mxu1 %v46885_v61 }
 0x3a3   :  { %17241 = vmatprep.subr.mxu0 %v16927_v37 }
 0x3a4   :  { %v16897_v18 = vpop.permute.xlu0 %16896 }
 0x3a5   :  { %v16895_v23 = vpop.permute.xlu1 %16894  ;;  %v16926_v30 = vsel %vm2217_vm3, %v16897_v18, %v16899_v54 }
 0x3a6   :  { %v16925_v27 = vsel %vm2217_vm3, %v16895_v23, %v16897_v18  ;;  %17242 = vmatpush1.msra.mxu0 %v16926_v30  ;;  %v16924_v1 = vsel %vm2217_vm3, %v16893_v51, %v16895_v23 }
 0x3a7   :  { %17170 = vmatprep.subr.mxu1 %v16925_v27  ;;  %35723 = vmatmul.mubr.msk.f32.vlgmr.msra.gmra.mrb[6].mxu0 %vm155_vm1, %v42198_v60 }
 0x3a8   :  { %17171 = vmatpush1.msra.mxu1 %v16924_v1  ;;  %v16907_v0 = vpop.permute.xlu0 %16906  ;;  %17447 = vmatprep.mubr.f32.mxu0 %v46885_v61 }
 0x3a9   :  { %v16909_v59 = vpop.permute.xlu1 %16908  ;;  %35722 = vmatmul.mubr.msk.f32.vlgmr.msra.gmra.mrb[0].mxu1 %vm155_vm1, %v42198_v60 }
 0x3aa   :  { %v16931_v21 = vsel %vm2217_vm3, %v16907_v0, %v16909_v59  ;;  %17376 = vmatprep.mubr.f32.mxu1 %v46885_v61 }
 0x3ab   :  { %17383 = vmatprep.subr.mxu0 %v16931_v21 }
 0x3ac   :  { %v16905_v3 = vpop.permute.xlu0 %16904 }
 0x3ad   :  { %v16903_v8 = vpop.permute.xlu1 %16902  ;;  %v16930_v15 = vsel %vm2217_vm3, %v16905_v3, %v16907_v0 }
 0x3ae   :  { %v16929_v31 = vsel %vm2217_vm3, %v16903_v8, %v16905_v3  ;;  %17384 = vmatpush1.msra.mxu0 %v16930_v15  ;;  %v16928_v9 = vsel %vm2217_vm3, %v16901_v39, %v16903_v8 }
 0x3af   :  { %17312 = vmatprep.subr.mxu1 %v16929_v31  ;;  %35725 = vmatmul.mubr.msk.f32.vlgmr.msra.gmra.mrb[8].mxu0 %vm155_vm1, %v42198_v60 }
 0x3b0   :  { %17313 = vmatpush1.msra.mxu1 %v16928_v9  ;;  %v16915_v49 = vpop.permute.xlu0 %16914  ;;  %17589 = vmatprep.mubr.f32.mxu0 %v46885_v61 }
 0x3b1   :  { %v16917_v46 = vpop.permute.xlu1 %16916  ;;  %35724 = vmatmul.mubr.msk.f32.vlgmr.msra.gmra.mrb[2].mxu1 %vm155_vm1, %v42198_v60 }
 0x3b2   :  { %v16935_v11 = vsel %vm2217_vm3, %v16915_v49, %v16917_v46  ;;  %17518 = vmatprep.mubr.f32.mxu1 %v46885_v61 }
 0x3b3   :  { %17525 = vmatprep.subr.mxu0 %v16935_v11 }
 0x3b4   :  { %v16913_v45 = vpop.permute.xlu0 %16912 }
 0x3b5   :  { %v16911_v6 = vpop.permute.xlu1 %16910  ;;  %v16934_v42 = vsel %vm2217_vm3, %v16913_v45, %v16915_v49 }
 0x3b6   :  { %v16933_v32 = vsel %vm2217_vm3, %v16911_v6, %v16913_v45  ;;  %17526 = vmatpush1.msra.mxu0 %v16934_v42  ;;  %v16932_v40 = vsel %vm2217_vm3, %v16909_v59, %v16911_v6  ;;  %vm20413_vm3 = vcmask 998400  }
 0x3b7   :  { %17454 = vmatprep.subr.mxu1 %v16933_v32  ;;  %35727 = vmatmul.mubr.msk.f32.vlgmr.msra.gmra.mrb[10].mxu0 %vm155_vm1, %v42198_v60 }
 0x3b8   :  { %17455 = vmatpush1.msra.mxu1 %v16932_v40  ;;  %17757 = vmatprep.mubr.f32.mxu0 %v46885_v61 }
 0x3b9   :  { %v17619_v16 = vpop.permute.xlu0 %17618  ;;  %35726 = vmatmul.mubr.msk.f32.vlgmr.msra.gmra.mrb[4].mxu1 %vm155_vm1, %v42198_v60 }
 0x3ba   :  { %v17621_v10 = vpop.permute.xlu1 %17620  ;;  %17828 = vmatprep.mubr.f32.mxu1 %v46885_v61 }
 0x3bb   :  { %v17655_v24 = vsel %vm2954_vm4, %v17619_v16, %v17621_v10 }
 0x3bc   :  { %17693 = vmatprep.subr.mxu0 %v17655_v24 }
 0x3bf   :  { %v17617_v38 = vpop.permute.xlu0 %17616  ;;  %v17623_v44 = vpop.permute.xlu1 %17622 }
 0x3c0   :  { %v17654_v26 = vsel %vm2954_vm4, %v17617_v38, %v17619_v16  ;;  %v17656_v47 = vsel %vm2954_vm4, %v17621_v10, %v17623_v44 }
 0x3c1   :  { %17694 = vmatpush1.msra.mxu0 %v17654_v26 }
 0x3c2   :  { %35729 = vmatmul.mubr.msk.f32.vlgmr.msra.gmra.mrb[0].mxu0 %vm155_vm1, %v42253_v41 }
 0x3c3   :  { %17899 = vmatprep.mubr.f32.mxu0 %v46885_v61 }
 0x3c4   :  { %v17625_v55 = vpop.permute.xlu0 %17624 }
 0x3c5   :  { %v17627_v17 = vpop.permute.xlu1 %17626  ;;  %v17657_v29 = vsel %vm2954_vm4, %v17623_v44, %v17625_v55 }
 0x3c6   :  { %17764 = vmatprep.subr.mxu1 %v17657_v29  ;;  %v17658_v56 = vsel %vm2954_vm4, %v17625_v55, %v17627_v17 }
 0x3c7   :  { %17765 = vmatpush1.msra.mxu1 %v17656_v47 }
 0x3c8   :  { %v17629_v35 = vpop.permute.xlu0 %17628  ;;  %35730 = vmatmul.mubr.msk.f32.vlgmr.msra.gmra.mrb[6].mxu1 %vm155_vm1, %v42253_v41 }
 0x3c9   :  { %v17659_v2 = vsel %vm2954_vm4, %v17627_v17, %v17629_v35  ;;  %17970 = vmatprep.mubr.f32.mxu1 %v46885_v61  ;;  %v17631_v48 = vpop.permute.xlu1 %17630 }
 0x3ca   :  { %17835 = vmatprep.subr.mxu0 %v17659_v2  ;;  %v17660_v13 = vsel %vm2954_vm4, %v17629_v35, %v17631_v48 }
 0x3cb   :  { %17836 = vmatpush1.msra.mxu0 %v17658_v56 }
 0x3cc   :  { %v17633_v22 = vpop.permute.xlu0 %17632  ;;  %35731 = vmatmul.mubr.msk.f32.vlgmr.msra.gmra.mrb[4].mxu0 %vm155_vm1, %v42253_v41 }
 0x3cd   :  { %v17661_v28 = vsel %vm2954_vm4, %v17631_v48, %v17633_v22  ;;  %18041 = vmatprep.mubr.f32.mxu0 %v46885_v61  ;;  %v17635_v34 = vpop.permute.xlu1 %17634 }
 0x3ce   :  { %17906 = vmatprep.subr.mxu1 %v17661_v28  ;;  %v17662_v50 = vsel %vm2954_vm4, %v17633_v22, %v17635_v34 }
 0x3cf   :  { %17907 = vmatpush1.msra.mxu1 %v17660_v13 }
 0x3d0   :  { %35732 = vmatmul.mubr.msk.f32.vlgmr.msra.gmra.mrb[0].mxu1 %vm155_vm1, %v42253_v41 }
 0x3d1   :  { %v17637_v58 = vpop.permute.xlu0 %17636  ;;  %18112 = vmatprep.mubr.f32.mxu1 %v46885_v61 }
 0x3d2   :  { %v17663_v14 = vsel %vm2954_vm4, %v17635_v34, %v17637_v58  ;;  %v17639_v12 = vpop.permute.xlu1 %17638 }
 0x3d3   :  { %17977 = vmatprep.subr.mxu0 %v17663_v14  ;;  %v17664_v36 = vsel %vm2954_vm4, %v17637_v58, %v17639_v12 }
 0x3d4   :  { %17978 = vmatpush1.msra.mxu0 %v17662_v50 }
 0x3d5   :  { %35733 = vmatmul.mubr.msk.f32.vlgmr.msra.gmra.mrb[6].mxu0 %vm155_vm1, %v42253_v41 }
 0x3d6   :  { %18183 = vmatprep.mubr.f32.mxu0 %v46885_v61 }
 0x3d7   :  { %v17641_v20 = vpop.permute.xlu0 %17640 }
 0x3d8   :  { %v17665_v60 = vsel %vm2954_vm4, %v17639_v12, %v17641_v20 }
 0x3d9   :  { %18048 = vmatprep.subr.mxu1 %v17665_v60 }
 0x3da   :  { %18049 = vmatpush1.msra.mxu1 %v17664_v36  ;;  %v17643_v7 = vpop.permute.xlu1 %17642 }
 0x3db   :  { %v17645_v33 = vpop.permute.xlu0 %17644  ;;  %35734 = vmatmul.mubr.msk.f32.vlgmr.msra.gmra.mrb[2].mxu1 %vm155_vm1, %v42253_v41  ;;  %v17666_v5 = vsel %vm2954_vm4, %v17641_v20, %v17643_v7 }
 0x3dc   :  { %v17667_v53 = vsel %vm2954_vm4, %v17643_v7, %v17645_v33  ;;  %18254 = vmatprep.mubr.f32.mxu1 %v46885_v61 }
 0x3dd   :  { %18119 = vmatprep.subr.mxu0 %v17667_v53 }
 0x3de   :  { %18120 = vmatpush1.msra.mxu0 %v17666_v5  ;;  %v17647_v51 = vpop.permute.xlu1 %17646 }
 0x3df   :  { %v17649_v4 = vpop.permute.xlu0 %17648  ;;  %35735 = vmatmul.mubr.msk.f32.vlgmr.msra.gmra.mrb[8].mxu0 %vm155_vm1, %v42253_v41  ;;  %v17668_v25 = vsel %vm2954_vm4, %v17645_v33, %v17647_v51 }
 0x3e0   :  { %v17669_v19 = vsel %vm2954_vm4, %v17647_v51, %v17649_v4  ;;  %18325 = vmatprep.mubr.f32.mxu0 %v46885_v61 }
 0x3e1   :  { %18190 = vmatprep.subr.mxu1 %v17669_v19 }
 0x3e2   :  { %18191 = vmatpush1.msra.mxu1 %v17668_v25  ;;  %v17651_v57 = vpop.permute.xlu1 %17650 }
 0x3e3   :  { %v17653_v63 = vpop.permute.xlu0 %17652  ;;  %35736 = vmatmul.mubr.msk.f32.vlgmr.msra.gmra.mrb[4].mxu1 %vm155_vm1, %v42253_v41  ;;  %v17670_v54 = vsel %vm2954_vm4, %v17649_v4, %v17651_v57 }
 0x3e4   :  { %v17671_v52 = vsel %vm2954_vm4, %v17651_v57, %v17653_v63  ;;  %20666 = vmatprep.mubr.f32.mxu1 %v46885_v61 }
 0x3e5   :  { %18261 = vmatprep.subr.mxu0 %v17671_v52 }
 0x3e6   :  { %18262 = vmatpush1.msra.mxu0 %v17670_v54 }
 0x3e7   :  { %35737 = vmatmul.mubr.msk.f32.vlgmr.msra.gmra.mrb[10].mxu0 %vm155_vm1, %v42253_v41 }
 0x3e8   :  { %18734 = vmatprep.mubr.f32.mxu0 %v46885_v61 }
 0x3f8   :  { %v42301_v0 = vpop.permute.xlu1 %18353 }
 0x495   :  { %v17759_v39 = vpop.f32.mrb[0].mxu0 }
 0x496   :  { %v17761_v37 = vpop.f32.mrb[1].mxu0  ;;  %v42347_v2 = vadd.f32 %v42301_v0, %v17759_v39 }
 0x497   :  { %v18357_v29 = vadd.f32 %v42301_v0, %v17761_v37 }
 0x49b   :  { %v17830_v18 = vpop.f32.mrb[6].mxu1 }
 0x49c   :  { %v37747_v23 = vadd.f32 %v17830_v18, %v40945_v62  ;;  %v17832_v30 = vpop.f32.mrb[7].mxu1 }
 0x49d   :  { %v37748_v27 = vadd.f32 %v17832_v30, %v40952_v43 }
 0x49e   :  { %v42339_v47 = vadd.f32 %v37747_v23, %v42301_v0 }
 0x49f   :  { %v17901_v1 = vpop.f32.mrb[4].mxu0  ;;  %v18359_v35 = vadd.f32 %v37748_v27, %v42301_v0 }
 0x4a0   :  { %v17903_v59 = vpop.f32.mrb[5].mxu0  ;;  %v18360_v43 = vadd.f32 %v42301_v0, %v17901_v1 }
 0x4a1   :  { %v18361_v21 = vadd.f32 %v42301_v0, %v17903_v59 }
 0x4a3   :  { %v17972_v3 = vpop.f32.mrb[0].mxu1  ;;  %18402 = vrot.lane.b32.xlu0 %v18361_v21, %s39026_s21 }
 0x4a4   :  { %v18362_v8 = vadd.f32 %v42301_v0, %v17972_v3  ;;  %v17974_v15 = vpop.f32.mrb[1].mxu1 }
 0x4a5   :  { %v18363_v31 = vadd.f32 %v42301_v0, %v17974_v15 }
 0x4a6   :  { %18404 = vrot.lane.b32.xlu1 %v18362_v8, %s39026_s21 }
 0x4a7   :  { %18406 = vrot.lane.b32.xlu0 %v18363_v31, %s39026_s21 }
 0x4a8   :  { %v18043_v62 = vpop.f32.mrb[6].mxu0 }
 0x4a9   :  { %v42311_v9 = vadd.f32 %v42301_v0, %v18043_v62  ;;  %v18045_v49 = vpop.f32.mrb[7].mxu0 }
 0x4aa   :  { %v18365_v46 = vadd.f32 %v42301_v0, %v18045_v49 }
 0x4ab   :  { %18408 = vrot.lane.b32.xlu1 %v42311_v9, %s39026_s21  ;;  %18400 = vrot.lane.b32.xlu0 %v18360_v43, %s39026_s21 }
 0x4ae   :  { %v18114_v11 = vpop.f32.mrb[2].mxu1 }
 0x4af   :  { %v18366_v45 = vadd.f32 %v42301_v0, %v18114_v11  ;;  %v18116_v6 = vpop.f32.mrb[3].mxu1  ;;  %18410 = vrot.lane.b32.xlu1 %v18365_v46, %s39026_s21 }
 0x4b0   :  { %v18367_v42 = vadd.f32 %v42301_v0, %v18116_v6 }
 0x4b1   :  { %18412 = vrot.lane.b32.xlu0 %v18366_v45, %s39026_s21 }
 0x4b2   :  { %v18185_v32 = vpop.f32.mrb[8].mxu0 }
 0x4b3   :  { %v18368_v40 = vadd.f32 %v42301_v0, %v18185_v32  ;;  %v18187_v16 = vpop.f32.mrb[9].mxu0  ;;  %18414 = vrot.lane.b32.xlu1 %v18367_v42, %s39026_s21 }
 0x4b4   :  { %v18369_v10 = vadd.f32 %v42301_v0, %v18187_v16 }
 0x4b5   :  { %18416 = vrot.lane.b32.xlu0 %v18368_v40, %s39026_s21 }
 0x4b6   :  { %v18256_v24 = vpop.f32.mrb[4].mxu1 }
 0x4b7   :  { %v18370_v38 = vadd.f32 %v42301_v0, %v18256_v24  ;;  %v18258_v44 = vpop.f32.mrb[5].mxu1  ;;  %18418 = vrot.lane.b32.xlu1 %v18369_v10, %s39026_s21 }
 0x4b8   :  { %v18371_v41 = vadd.f32 %v42301_v0, %v18258_v44 }
 0x4b9   :  { %18420 = vrot.lane.b32.xlu0 %v18370_v38, %s39026_s21 }
 0x4ba   :  { %v18327_v26 = vpop.f32.mrb[10].mxu0 }
 0x4bb   :  { %v42330_v55 = vadd.f32 %v42301_v0, %v18327_v26  ;;  %v42332_v17 = vpop.f32.mrb[11].mxu0  ;;  %18422 = vrot.lane.b32.xlu1 %v18371_v41, %s39026_s21 }
 0x4bd   :  { %18424 = vrot.lane.b32.xlu0 %v42330_v55, %s39026_s21 }
 0x4bf   :  { %18394 = vrot.lane.b32.xlu1 %v18357_v29, %s39026_s21 }
 0x4c1   :  { %18396 = vrot.lane.b32.xlu0 %v42339_v47, %s39026_s21 }
 0x4c3   :  { %18398 = vrot.lane.b32.xlu1 %v18359_v35, %s39026_s21 }
 0x4c5   :  { %18392 = vrot.lane.b32.xlu0 %v42347_v2, %s39026_s21 }
 0x515   :  { %v18403_v48 = vpop.permute.xlu0 %18402 }
 0x518   :  { %v18405_v56 = vpop.permute.xlu1 %18404 }
 0x519   :  { %v18433_v22 = vsel %vm118_vm0, %v18403_v48, %v18405_v56  ;;  %v18407_v28 = vpop.permute.xlu0 %18406 }
 0x51a   :  { %v42352_v13 = vmax.f32 %v18361_v21, %v18433_v22  ;;  %v18434_v34 = vsel %vm118_vm0, %v18405_v56, %v18407_v28 }
 0x51b   :  { %v42355_v58 = vmax.f32 %v18362_v8, %v18434_v34 }
 0x51c   :  { %18509 = vrot.lane.b32.xlu1 %v42352_v13, %s39031_s18 }
 0x51d   :  { %v18409_v14 = vpop.permute.xlu1 %18408  ;;  %v18401_v50 = vpop.permute.xlu0 %18400  ;;  %18511 = vrot.lane.b32.xlu0 %v42355_v58, %s39031_s18 }
 0x51e   :  { %v18435_v12 = vsel %vm118_vm0, %v18407_v28, %v18409_v14  ;;  %v18432_v20 = vsel %vm118_vm0, %v18401_v50, %v18403_v48 }
 0x51f   :  { %v42363_v60 = vmax.f32 %v18363_v31, %v18435_v12  ;;  %v18467_v36 = vmax.f32 %v18360_v43, %v18432_v20 }
 0x521   :  { %v18411_v7 = vpop.permute.xlu1 %18410  ;;  %18513 = vrot.lane.b32.xlu1 %v42363_v60, %s39031_s18  ;;  %18507 = vrot.lane.b32.xlu0 %v18467_v36, %s39031_s18 }
 0x522   :  { %v18436_v57 = vsel %vm118_vm0, %v18409_v14, %v18411_v7 }
 0x523   :  { %v18413_v33 = vpop.permute.xlu0 %18412  ;;  %v18471_v37 = vmax.f32 %v42311_v9, %v18436_v57 }
 0x524   :  { %v18437_v53 = vsel %vm118_vm0, %v18411_v7, %v18413_v33 }
 0x525   :  { %v42369_v5 = vmax.f32 %v18365_v46, %v18437_v53  ;;  %v18415_v51 = vpop.permute.xlu1 %18414 }
 0x526   :  { %v18438_v4 = vsel %vm118_vm0, %v18413_v33, %v18415_v51 }
 0x527   :  { %v42372_v19 = vmax.f32 %v18366_v45, %v18438_v4  ;;  %v18417_v25 = vpop.permute.xlu0 %18416  ;;  %18517 = vrot.lane.b32.xlu1 %v42369_v5, %s39031_s18 }
 0x528   :  { %v18439_v63 = vsel %vm118_vm0, %v18415_v51, %v18417_v25 }
 0x529   :  { %v42378_v52 = vmax.f32 %v18367_v42, %v18439_v63  ;;  %v18419_v54 = vpop.permute.xlu1 %18418  ;;  %18519 = vrot.lane.b32.xlu0 %v42372_v19, %s39031_s18 }
 0x52a   :  { %v18440_v39 = vsel %vm118_vm0, %v18417_v25, %v18419_v54 }
 0x52b   :  { %v42384_v18 = vmax.f32 %v18368_v40, %v18440_v39  ;;  %v18421_v23 = vpop.permute.xlu0 %18420  ;;  %18521 = vrot.lane.b32.xlu1 %v42378_v52, %s39031_s18 }
 0x52c   :  { %v18441_v30 = vsel %vm118_vm0, %v18419_v54, %v18421_v23 }
 0x52d   :  { %v18423_v27 = vpop.permute.xlu1 %18422  ;;  %18515 = vrot.lane.b32.xlu0 %v18471_v37, %s39031_s18  ;;  %v18476_v59 = vmax.f32 %v18369_v10, %v18441_v30 }
 0x52e   :  { %v18442_v1 = vsel %vm118_vm0, %v18421_v23, %v18423_v27 }
 0x52f   :  { %v42391_v21 = vmax.f32 %v18370_v38, %v18442_v1  ;;  %v42393_v3 = vpop.permute.xlu0 %18424  ;;  %18523 = vrot.lane.b32.xlu1 %v42384_v18, %s39031_s18 }
 0x530   :  { %v18443_v8 = vsel %vm118_vm0, %v18423_v27, %v42393_v3 }
 0x531   :  { %v18395_v15 = vpop.permute.xlu1 %18394  ;;  %18525 = vrot.lane.b32.xlu0 %v18476_v59, %s39031_s18  ;;  %v42400_v31 = vmax.f32 %v18371_v41, %v18443_v8 }
 0x533   :  { %v18397_v62 = vpop.permute.xlu0 %18396  ;;  %18527 = vrot.lane.b32.xlu1 %v42391_v21, %s39031_s18 }
 0x534   :  { %v18429_v43 = vsel %vm118_vm0, %v18395_v15, %v18397_v62 }
 0x535   :  { %v18464_v9 = vmax.f32 %v18357_v29, %v18429_v43  ;;  %v18399_v49 = vpop.permute.xlu1 %18398  ;;  %18529 = vrot.lane.b32.xlu0 %v42400_v31, %s39031_s18 }
 0x536   :  { %v18430_v46 = vsel %vm118_vm0, %v18397_v62, %v18399_v49  ;;  %v18431_v11 = vsel %vm118_vm0, %v18399_v49, %v18401_v50  ;;  %v35784_v49 = vld [vmem:[%s46738_s3 + $0x30] sm:$0xff] }
 0x537   :  { %v18465_v45 = vmax.f32 %v42339_v47, %v18430_v46  ;;  %v42410_v6 = vmax.f32 %v18359_v35, %v18431_v11  ;;  %18501 = vrot.lane.b32.xlu1 %v18464_v9, %s39031_s18  ;;  %v18393_v42 = vpop.permute.xlu0 %18392  ;;  %v35785_v46 = vld [vmem:[%s46738_s3 + $0x38] sm:$0xff] }
 0x538   :  { %v18428_v32 = vsel %vm118_vm0, %v18393_v42, %v18395_v15 }
 0x539   :  { %18503 = vrot.lane.b32.xlu0 %v18465_v45, %s39031_s18  ;;  %v18463_v40 = vmax.f32 %v42347_v2, %v18428_v32 }
 0x53b   :  { %18505 = vrot.lane.b32.xlu1 %v42410_v6, %s39031_s18 }
 0x53d   :  { %18499 = vrot.lane.b32.xlu0 %v18463_v40, %s39031_s18 }
 0x58e   :  { %v18510_v16 = vpop.permute.xlu1 %18509 }
 0x58f   :  { %v18512_v10 = vpop.permute.xlu0 %18511 }
 0x590   :  { %v18540_v24 = vsel %vm3691_vm5, %v18510_v16, %v18512_v10 }
 0x591   :  { %v42421_v38 = vmax.f32 %v42352_v13, %v18540_v24 }
 0x593   :  { %v42423_v44 = vpop.permute.xlu1 %18513  ;;  %20393 = vrot.lane.b32.xlu1 %v42421_v38, %s39047_s1  ;;  %v18508_v41 = vpop.permute.xlu0 %18507 }
 0x594   :  { %v18541_v26 = vsel %vm3691_vm5, %v18512_v10, %v42423_v44  ;;  %v18539_v29 = vsel %vm3691_vm5, %v18508_v41, %v18510_v16 }
 0x595   :  { %v42431_v47 = vmax.f32 %v42355_v58, %v18541_v26  ;;  %v42433_v35 = vmax.f32 %v18467_v36, %v18539_v29 }
 0x597   :  { %20395 = vrot.lane.b32.xlu0 %v42431_v47, %s39047_s1  ;;  %20391 = vrot.lane.b32.xlu1 %v42433_v35, %s39047_s1 }
 0x599   :  { %v18518_v2 = vpop.permute.xlu1 %18517 }
 0x59b   :  { %v18520_v48 = vpop.permute.xlu0 %18519 }
 0x59c   :  { %v18544_v56 = vsel %vm3691_vm5, %v18518_v2, %v18520_v48 }
 0x59d   :  { %v42441_v22 = vmax.f32 %v42369_v5, %v18544_v56  ;;  %v18522_v28 = vpop.permute.xlu1 %18521 }
 0x59e   :  { %v18545_v13 = vsel %vm3691_vm5, %v18520_v48, %v18522_v28 }
 0x59f   :  { %v42445_v34 = vmax.f32 %v42372_v19, %v18545_v13  ;;  %20401 = vrot.lane.b32.xlu0 %v42441_v22, %s39047_s1  ;;  %v42449_v58 = vpop.permute.xlu0 %18515 }
 0x5a0   :  { %v18543_v14 = vsel %vm3691_vm5, %v42449_v58, %v18518_v2 }
 0x5a1   :  { %v42453_v50 = vmax.f32 %v18471_v37, %v18543_v14  ;;  %v18524_v12 = vpop.permute.xlu1 %18523  ;;  %20403 = vrot.lane.b32.xlu1 %v42445_v34, %s39047_s1 }
 0x5a2   :  { %v18546_v20 = vsel %vm3691_vm5, %v18522_v28, %v18524_v12 }
 0x5a3   :  { %v42459_v36 = vmax.f32 %v42378_v52, %v18546_v20  ;;  %20399 = vrot.lane.b32.xlu0 %v42453_v50, %s39047_s1  ;;  %v18526_v7 = vpop.permute.xlu0 %18525 }
 0x5a4   :  { %v18547_v33 = vsel %vm3691_vm5, %v18524_v12, %v18526_v7 }
 0x5a5   :  { %v42465_v53 = vmax.f32 %v42384_v18, %v18547_v33  ;;  %v18528_v5 = vpop.permute.xlu1 %18527  ;;  %20405 = vrot.lane.b32.xlu1 %v42459_v36, %s39047_s1 }
 0x5a6   :  { %v18548_v51 = vsel %vm3691_vm5, %v18526_v7, %v18528_v5 }
 0x5a7   :  { %v42470_v4 = vmax.f32 %v18476_v59, %v18548_v51  ;;  %20407 = vrot.lane.b32.xlu0 %v42465_v53, %s39047_s1  ;;  %v42474_v19 = vpop.permute.xlu0 %18529  ;;  %v42706_v51 = vld [vmem:[%s46738_s3 + $0x40] sm:$0xff] }
 0x5a8   :  { %v18549_v25 = vsel %vm3691_vm5, %v18528_v5, %v42474_v19 }
 0x5a9   :  { %v42479_v57 = vmax.f32 %v42391_v21, %v18549_v25  ;;  %v18502_v63 = vpop.permute.xlu1 %18501  ;;  %20409 = vrot.lane.b32.xlu1 %v42470_v4, %s39047_s1 }
 0x5ab   :  { %46888 = vst [vmem:[#allocation5_spill] sm:$0xff] %v42479_v57  ;;  %20411 = vrot.lane.b32.xlu0 %v42479_v57, %s39047_s1  ;;  %v18504_v52 = vpop.permute.xlu0 %18503 }
 0x5ac   :  { %v18536_v54 = vsel %vm3691_vm5, %v18502_v63, %v18504_v52 }
 0x5ad   :  { %v42486_v39 = vmax.f32 %v18464_v9, %v18536_v54  ;;  %v18506_v37 = vpop.permute.xlu1 %18505 }
 0x5ae   :  { %v18537_v18 = vsel %vm3691_vm5, %v18504_v52, %v18506_v37  ;;  %v18538_v27 = vsel %vm3691_vm5, %v18506_v37, %v18508_v41  ;;  %v42725_v37 = vld [vmem:[%s46738_s3 + $0x48] sm:$0xff] }
 0x5af   :  { %v42489_v23 = vmax.f32 %v18465_v45, %v18537_v18  ;;  %21016 = vrot.lane.b32.xlu1 %v42486_v39, %s39048_s17  ;;  %v18500_v30 = vpop.permute.xlu0 %18499  ;;  %v42500_v21 = vmax.f32 %v42410_v6, %v18538_v27 }
 0x5b0   :  { %v18535_v1 = vsel %vm3691_vm5, %v18500_v30, %v18502_v63 }
 0x5b1   :  { %v42495_v59 = vmax.f32 %v18463_v40, %v18535_v1  ;;  %21018 = vrot.lane.b32.xlu0 %v42489_v23, %s39048_s17 }
 0x5b3   :  { %21014 = vrot.lane.b32.xlu1 %v42495_v59, %s39048_s17 }
 0x5b5   :  { %21020 = vrot.lane.b32.xlu0 %v42500_v21, %s39048_s17 }
 0x5b7   :  { %21022 = vrot.lane.b32.xlu1 %v42433_v35, %s39048_s17 }
 0x5b9   :  { %21024 = vrot.lane.b32.xlu0 %v42421_v38, %s39048_s17 }
 0x5bb   :  { %21026 = vrot.lane.b32.xlu1 %v42431_v47, %s39048_s17 }
 0x5bd   :  { %21032 = vrot.lane.b32.xlu0 %v42441_v22, %s39048_s17 }
 0x5bf   :  { %21034 = vrot.lane.b32.xlu1 %v42445_v34, %s39048_s17 }
 0x5c1   :  { %21030 = vrot.lane.b32.xlu0 %v42453_v50, %s39048_s17 }
 0x5c3   :  { %21036 = vrot.lane.b32.xlu1 %v42459_v36, %s39048_s17 }
 0x5c5   :  { %21038 = vrot.lane.b32.xlu0 %v42465_v53, %s39048_s17 }
 0x5c7   :  { %21040 = vrot.lane.b32.xlu1 %v42470_v4, %s39048_s17 }
 0x5c9   :  { %21042 = vrot.lane.b32.xlu0 %v42479_v57, %s39048_s17 }
 0x5cb   :  { %21647 = vrot.lane.b32.xlu1 %v42486_v39, %s39036_s12 }
 0x5cd   :  { %21649 = vrot.lane.b32.xlu0 %v42489_v23, %s39036_s12 }
 0x5cf   :  { %21645 = vrot.lane.b32.xlu1 %v42495_v59, %s39036_s12 }
 0x5d1   :  { %21651 = vrot.lane.b32.xlu0 %v42500_v21, %s39036_s12 }
 0x5d3   :  { %21653 = vrot.lane.b32.xlu1 %v42433_v35, %s39036_s12 }
 0x5d5   :  { %21655 = vrot.lane.b32.xlu0 %v42421_v38, %s39036_s12 }
 0x5d7   :  { %21657 = vrot.lane.b32.xlu1 %v42431_v47, %s39036_s12 }
 0x5d9   :  { %21663 = vrot.lane.b32.xlu0 %v42441_v22, %s39036_s12 }
 0x5db   :  { %21665 = vrot.lane.b32.xlu1 %v42445_v34, %s39036_s12 }
 0x5dd   :  { %21661 = vrot.lane.b32.xlu0 %v42453_v50, %s39036_s12 }
 0x5df   :  { %21667 = vrot.lane.b32.xlu1 %v42459_v36, %s39036_s12 }
 0x5e1   :  { %21669 = vrot.lane.b32.xlu0 %v42465_v53, %s39036_s12 }
 0x5e3   :  { %21671 = vrot.lane.b32.xlu1 %v42470_v4, %s39036_s12 }
 0x5e5   :  { %21673 = vrot.lane.b32.xlu0 %v42479_v57, %s39036_s12 }
 0x5e7   :  { %22277 = vrot.lane.b32.xlu1 %v42486_v39, %s39038_s28 }
 0x5e9   :  { %22279 = vrot.lane.b32.xlu0 %v42489_v23, %s39038_s28 }
 0x5eb   :  { %22275 = vrot.lane.b32.xlu1 %v42495_v59, %s39038_s28 }
 0x5ed   :  { %22281 = vrot.lane.b32.xlu0 %v42500_v21, %s39038_s28 }
 0x5ef   :  { %22283 = vrot.lane.b32.xlu1 %v42433_v35, %s39038_s28 }
 0x5f1   :  { %22285 = vrot.lane.b32.xlu0 %v42421_v38, %s39038_s28 }
 0x5f3   :  { %22287 = vrot.lane.b32.xlu1 %v42431_v47, %s39038_s28 }
 0x5f5   :  { %22293 = vrot.lane.b32.xlu0 %v42441_v22, %s39038_s28 }
 0x5f7   :  { %22295 = vrot.lane.b32.xlu1 %v42445_v34, %s39038_s28 }
 0x5f9   :  { %22291 = vrot.lane.b32.xlu0 %v42453_v50, %s39038_s28 }
 0x5fb   :  { %22297 = vrot.lane.b32.xlu1 %v42459_v36, %s39038_s28 }
 0x5fd   :  { %22299 = vrot.lane.b32.xlu0 %v42465_v53, %s39038_s28 }
 0x5ff   :  { %22301 = vrot.lane.b32.xlu1 %v42470_v4, %s39038_s28 }
 0x601   :  { %22303 = vrot.lane.b32.xlu0 %v42479_v57, %s39038_s28 }
 0x603   :  { %22907 = vrot.lane.b32.xlu1 %v42486_v39, %s39040_s27 }
 0x605   :  { %22909 = vrot.lane.b32.xlu0 %v42489_v23, %s39040_s27  ;;  %v20394_v8 = vpop.permute.xlu1 %20393 }
 0x607   :  { %22905 = vrot.lane.b32.xlu1 %v42495_v59, %s39040_s27 }
 0x609   :  { %22911 = vrot.lane.b32.xlu0 %v42500_v21, %s39040_s27  ;;  %v42590_v15 = vpop.permute.xlu0 %20395  ;;  %v42592_v62 = vpop.permute.xlu1 %20391 }
 0x60a   :  { %46889 = vst [vmem:[#allocation6_spill] sm:$0xff] %v42590_v15  ;;  %v42596_v43 = vsel %vm20413_vm3, %v20394_v8, %v42590_v15  ;;  %v42600_v9 = vsel %vm20413_vm3, %v42592_v62, %v20394_v8 }
 0x60b   :  { %46890 = vst [vmem:[#allocation7_spill] sm:$0xff] %v42596_v43  ;;  %46891 = vst [vmem:[#allocation8_spill] sm:$0xff] %v42600_v9  ;;  %22913 = vrot.lane.b32.xlu1 %v42433_v35, %s39040_s27  ;;  %20602 = vmatprep.subr.mxu1 %v42596_v43 }
 0x60c   :  { %20603 = vmatpush1.msra.mxu1 %v42600_v9 }
 0x60d   :  { %22915 = vrot.lane.b32.xlu0 %v42421_v38, %s39040_s27  ;;  %35790 = vmatmul.mubr.msk.f32.vlgmr.msra.gmra.mrb[8].mxu1 %vm155_vm1, %v35784_v49 }
 0x60e   :  { %20672 = vmatprep.mubr.f32.mxu1 %v46885_v61 }
 0x60f   :  { %22917 = vrot.lane.b32.xlu1 %v42431_v47, %s39040_s27 }
 0x611   :  { %22923 = vrot.lane.b32.xlu0 %v42441_v22, %s39040_s27  ;;  %v20402_v11 = vpop.permute.xlu0 %20401  ;;  %35791 = vmatmul.mubr.msk.f32.gmra.mrb[10].mxu1 %vm155_vm1, %v35785_v46 }
 0x612   :  { %20818 = vmatprep.mubr.f32.mxu1 %v46885_v61 }
 0x613   :  { %v20404_v45 = vpop.permute.xlu1 %20403  ;;  %22925 = vrot.lane.b32.xlu1 %v42445_v34, %s39040_s27 }
 0x614   :  { %v42625_v6 = vsel %vm20413_vm3, %v20402_v11, %v20404_v45 }
 0x615   :  { %46892 = vst [vmem:[#allocation9_spill] sm:$0xff] %v42625_v6  ;;  %22921 = vrot.lane.b32.xlu0 %v42453_v50, %s39040_s27  ;;  %20754 = vmatprep.subr.mxu1 %v42625_v6  ;;  %v42630_v42 = vpop.permute.xlu0 %20399 }
 0x616   :  { %46893 = vst [vmem:[#allocation10_spill] sm:$0xff] %v42630_v42  ;;  %v42634_v32 = vsel %vm20413_vm3, %v42630_v42, %v20402_v11 }
 0x617   :  { %46894 = vst [vmem:[#allocation11_spill] sm:$0xff] %v42634_v32  ;;  %v20406_v40 = vpop.permute.xlu1 %20405  ;;  %22927 = vrot.lane.b32.xlu1 %v42459_v36, %s39040_s27  ;;  %20755 = vmatpush1.msra.mxu1 %v42634_v32 }
 0x618   :  { %35794 = vmatmul.mubr.msk.f32.vlgmr.msra.gmra.mrb[12].mxu1 %vm155_vm1, %v35784_v49  ;;  %v42651_v24 = vsel %vm20413_vm3, %v20404_v45, %v20406_v40 }
 0x619   :  { %22929 = vrot.lane.b32.xlu0 %v42465_v53, %s39040_s27  ;;  %v20408_v16 = vpop.permute.xlu0 %20407  ;;  %20824 = vmatprep.mubr.f32.mxu1 %v46885_v61  ;;  %46896 = vst [vmem:[#allocation13_spill] sm:$0xff] %v42651_v24 }
 0x61a   :  { %v42644_v10 = vsel %vm20413_vm3, %v20406_v40, %v20408_v16 }
 0x61b   :  { %46895 = vst [vmem:[#allocation12_spill] sm:$0xff] %v42644_v10  ;;  %22931 = vrot.lane.b32.xlu1 %v42470_v4, %s39040_s27  ;;  %20831 = vmatprep.subr.mxu1 %v42644_v10  ;;  %v20410_v41 = vpop.permute.xlu1 %20409 }
 0x61c   :  { %35795 = vmatmul.mubr.msk.f32.gmra.mrb[14].mxu1 %vm155_vm1, %v35785_v46  ;;  %v42668_v2 = vsel %vm20413_vm3, %v20408_v16, %v20410_v41 }
 0x61d   :  { %22933 = vrot.lane.b32.xlu0 %v42479_v57, %s39040_s27  ;;  %20832 = vmatpush1.msra.mxu1 %v42651_v24  ;;  %v42656_v26 = vpop.permute.xlu0 %20411  ;;  %46899 = vst [vmem:[#allocation16_spill] sm:$0xff] %v42668_v2 }
 0x61e   :  { %46897 = vst [vmem:[#allocation14_spill] sm:$0xff] %v42656_v26  ;;  %20895 = vmatprep.mubr.f32.mxu1 %v46885_v61  ;;  %v42661_v29 = vsel %vm20413_vm3, %v20410_v41, %v42656_v26 }
 0x61f   :  { %46898 = vst [vmem:[#allocation15_spill] sm:$0xff] %v42661_v29  ;;  %23537 = vrot.lane.b32.xlu1 %v42486_v39, %s39049_s24  ;;  %20908 = vmatprep.subr.mxu1 %v42661_v29 }
 0x620   :  { %35796 = vmatmul.mubr.msk.f32.vlgmr.msra.gmra.mrb[16].mxu1 %vm155_vm1, %v35784_v49 }
 0x621   :  { %23539 = vrot.lane.b32.xlu0 %v42489_v23, %s39049_s24  ;;  %20909 = vmatpush1.msra.mxu1 %v42668_v2  ;;  %v21017_v48 = vpop.permute.xlu1 %21016 }
 0x622   :  { %20901 = vmatprep.mubr.f32.mxu1 %v46885_v61 }
 0x623   :  { %v21019_v56 = vpop.permute.xlu0 %21018  ;;  %23535 = vrot.lane.b32.xlu1 %v42495_v59, %s39049_s24 }
 0x624   :  { %35797 = vmatmul.mubr.msk.f32.gmra.mrb[18].mxu1 %vm155_vm1, %v35785_v46  ;;  %v42678_v28 = vsel %vm21044_vm11, %v21017_v48, %v21019_v56 }
 0x625   :  { %46900 = vst [vmem:[#allocation17_spill] sm:$0xff] %v42678_v28  ;;  %23541 = vrot.lane.b32.xlu0 %v42500_v21, %s39049_s24  ;;  %21079 = vmatprep.subr.mxu1 %v42678_v28  ;;  %v21015_v13 = vpop.permute.xlu1 %21014 }
 0x626   :  { %v21045_v14 = vsel %vm21044_vm11, %v21015_v13, %v21017_v48  ;;  %20972 = vmatprep.mubr.f32.mxu1 %v46885_v61  ;;  %v42782_v48 = vadd.f32 %v42301_v0, %v42332_v17 }
 0x627   :  { %v21021_v12 = vpop.permute.xlu0 %21020  ;;  %23543 = vrot.lane.b32.xlu1 %v42433_v35, %s39049_s24 }
 0x628   :  { %35798 = vmatmul.mubr.msk.f32.vlgmr.msra.gmra.mrb[20].mxu1 %vm155_vm1, %v35784_v49  ;;  %v42713_v63 = vsel %vm21044_vm11, %v21019_v56, %v21021_v12 }
 0x629   :  { %23545 = vrot.lane.b32.xlu0 %v42421_v38, %s39049_s24  ;;  %21080 = vmatpush1.msra.mxu1 %v21045_v14  ;;  %v21023_v20 = vpop.permute.xlu1 %21022  ;;  %46903 = vst [vmem:[#allocation20_spill] sm:$0xff] %v42713_v63 }
 0x62a   :  { %20978 = vmatprep.mubr.f32.mxu1 %v46885_v61  ;;  %v42692_v7 = vsel %vm21044_vm11, %v21021_v12, %v21023_v20 }
 0x62b   :  { %46901 = vst [vmem:[#allocation18_spill] sm:$0xff] %v42692_v7  ;;  %v21025_v33 = vpop.permute.xlu0 %21024  ;;  %23547 = vrot.lane.b32.xlu1 %v42431_v47, %s39049_s24  ;;  %21156 = vmatprep.subr.mxu1 %v42692_v7 }
 0x62c   :  { %35799 = vmatmul.mubr.msk.f32.gmra.mrb[22].mxu1 %vm155_vm1, %v35785_v46  ;;  %v42743_v1 = vsel %vm21044_vm11, %v21023_v20, %v21025_v33 }
 0x62d   :  { %23553 = vrot.lane.b32.xlu0 %v42441_v22, %s39049_s24  ;;  %v42700_v5 = vpop.permute.xlu1 %21026  ;;  %21143 = vmatprep.mubr.f32.mxu1 %v46885_v61  ;;  %46906 = vst [vmem:[#allocation23_spill] sm:$0xff] %v42743_v1 }
 0x62e   :  { %46902 = vst [vmem:[#allocation19_spill] sm:$0xff] %v42700_v5  ;;  %v42720_v54 = vsel %vm21044_vm11, %v21025_v33, %v42700_v5 }
 0x62f   :  { %v21033_v25 = vpop.permute.xlu0 %21032  ;;  %23555 = vrot.lane.b32.xlu1 %v42445_v34, %s39049_s24  ;;  %46904 = vst [vmem:[#allocation21_spill] sm:$0xff] %v42720_v54 }
 0x630   :  { %35802 = vmatmul.mubr.msk.f32.vlgmr.msra.gmra.mrb[24].mxu1 %vm155_vm1, %v42706_v51 }
 0x631   :  { %23551 = vrot.lane.b32.xlu0 %v42453_v50, %s39049_s24  ;;  %21157 = vmatpush1.msra.mxu1 %v42713_v63  ;;  %v21035_v52 = vpop.permute.xlu1 %21034 }
 0x632   :  { %21233 = vmatprep.subr.mxu1 %v42720_v54  ;;  %21149 = vmatprep.mubr.f32.mxu1 %v46885_v61  ;;  %v42749_v49 = vsel %vm21044_vm11, %v21033_v25, %v21035_v52 }
 0x633   :  { %v42729_v18 = vpop.permute.xlu0 %21030  ;;  %23557 = vrot.lane.b32.xlu1 %v42459_v36, %s39049_s24  ;;  %46907 = vst [vmem:[#allocation24_spill] sm:$0xff] %v42749_v49 }
 0x634   :  { %46905 = vst [vmem:[#allocation22_spill] sm:$0xff] %v42729_v18  ;;  %35803 = vmatmul.mubr.msk.f32.gmra.mrb[26].mxu1 %vm155_vm1, %v42725_v37  ;;  %v42770_v40 = vsel %vm21044_vm11, %v42729_v18, %v21033_v25 }
 0x635   :  { %23559 = vrot.lane.b32.xlu0 %v42465_v53, %s39049_s24  ;;  %v21037_v30 = vpop.permute.xlu1 %21036  ;;  %21220 = vmatprep.mubr.f32.mxu1 %v46885_v61  ;;  %46909 = vst [vmem:[#allocation26_spill] sm:$0xff] %v42770_v40 }
 0x636   :  { %v42800_v0 = vsel %vm21044_vm11, %v21035_v52, %v21037_v30 }
 0x637   :  { %v21039_v27 = vpop.permute.xlu0 %21038  ;;  %23561 = vrot.lane.b32.xlu1 %v42470_v4, %s39049_s24  ;;  %46911 = vst [vmem:[#allocation28_spill] sm:$0xff] %v42800_v0 }
 0x638   :  { %35804 = vmatmul.mubr.msk.f32.vlgmr.msra.gmra.mrb[28].mxu1 %vm155_vm1, %v42706_v51  ;;  %v42776_v41 = vsel %vm21044_vm11, %v21037_v30, %v21039_v27 }
 0x639   :  { %23563 = vrot.lane.b32.xlu0 %v42479_v57, %s39049_s24  ;;  %21234 = vmatpush1.msra.mxu1 %v42743_v1  ;;  %v21041_v8 = vpop.permute.xlu1 %21040  ;;  %46910 = vst [vmem:[#allocation27_spill] sm:$0xff] %v42776_v41  ;;  %v43099_v1 = vld [vmem:[%s46738_s3 + $0x68] sm:$0xff] }
 0x63a   :  { %21385 = vmatprep.subr.mxu1 %v42749_v49  ;;  %21226 = vmatprep.mubr.f32.mxu1 %v46885_v61  ;;  %v42831_v52 = vsel %vm21044_vm11, %v21039_v27, %v21041_v8 }
 0x63b   :  { %v42753_v46 = vpop.permute.xlu0 %21042  ;;  %24168 = vrot.lane.b32.xlu1 %v42486_v39, %s39050_s2  ;;  %46915 = vst [vmem:[#allocation32_spill] sm:$0xff] %v42831_v52 }
 0x63c   :  { %46908 = vst [vmem:[#allocation25_spill] sm:$0xff] %v42753_v46  ;;  %35805 = vmatmul.mubr.msk.f32.gmra.mrb[30].mxu1 %vm155_vm1, %v42725_v37  ;;  %v42809_v12 = vsel %vm21044_vm11, %v21041_v8, %v42753_v46  ;;  %v42906_v46 = vld [vmem:[%s46738_s3 + $0x58] sm:$0xff] }
 0x63d   :  { %24170 = vrot.lane.b32.xlu0 %v42489_v23, %s39050_s2  ;;  %v21648_v11 = vpop.permute.xlu1 %21647  ;;  %21297 = vmatprep.mubr.f32.mxu1 %v46885_v61  ;;  %46913 = vst [vmem:[#allocation30_spill] sm:$0xff] %v42809_v12 }
 0x63f   :  { %v42762_v45 = vpop.permute.xlu0 %21649  ;;  %24166 = vrot.lane.b32.xlu1 %v42495_v59, %s39050_s2 }
 0x640   :  { %35806 = vmatmul.mubr.msk.f32.vlgmr.msra.gmra.mrb[8].mxu1 %vm155_vm1, %v42706_v51 }
 0x641   :  { %24172 = vrot.lane.b32.xlu0 %v42500_v21, %s39050_s2  ;;  %21386 = vmatpush1.msra.mxu1 %v42770_v40  ;;  %v21646_v16 = vpop.permute.xlu1 %21645  ;;  %v42840_v40 = vsel %vm7376_vm10, %v21648_v11, %v42762_v45 }
 0x642   :  { %21462 = vmatprep.subr.mxu1 %v42776_v41  ;;  %21303 = vmatprep.mubr.f32.mxu1 %v46885_v61  ;;  %46916 = vst [vmem:[#allocation33_spill] sm:$0xff] %v42840_v40  ;;  %v21675_v18 = vsel %vm7376_vm10, %v21646_v16, %v21648_v11 }
 0x643   :  { %v21652_v56 = vpop.permute.xlu0 %21651  ;;  %24174 = vrot.lane.b32.xlu1 %v42433_v35, %s39050_s2 }
 0x644   :  { %35807 = vmatmul.mubr.msk.f32.gmra.mrb[10].mxu1 %vm155_vm1, %v42725_v37 }
 0x645   :  { %18426 = vrot.lane.b32.xlu0 %v42782_v48, %s39026_s21  ;;  %v42790_v13 = vpop.permute.xlu1 %21653  ;;  %21449 = vmatprep.mubr.f32.mxu1 %v46885_v61 }
 0x647   :  { %v42793_v14 = vpop.permute.xlu0 %21655  ;;  %24176 = vrot.lane.b32.xlu1 %v42421_v38, %s39050_s2 }
 0x648   :  { %35810 = vmatmul.mubr.msk.f32.vlgmr.msra.gmra.mrb[12].mxu1 %vm155_vm1, %v42706_v51 }
 0x649   :  { %24178 = vrot.lane.b32.xlu0 %v42431_v47, %s39050_s2  ;;  %21463 = vmatpush1.msra.mxu1 %v42800_v0  ;;  %v42805_v17 = vpop.permute.xlu1 %21657 }
 0x64a   :  { %46912 = vst [vmem:[#allocation29_spill] sm:$0xff] %v42805_v17  ;;  %21539 = vmatprep.subr.mxu1 %v42809_v12  ;;  %21455 = vmatprep.mubr.f32.mxu1 %v46885_v61 }
 0x64b   :  { %v42813_v20 = vpop.permute.xlu0 %21663  ;;  %24184 = vrot.lane.b32.xlu1 %v42441_v22, %s39050_s2 }
 0x64c   :  { %35811 = vmatmul.mubr.msk.f32.gmra.mrb[14].mxu1 %vm155_vm1, %v42725_v37 }
 0x64d   :  { %24186 = vrot.lane.b32.xlu0 %v42445_v34, %s39050_s2  ;;  %v42821_v33 = vpop.permute.xlu1 %21665  ;;  %21526 = vmatprep.mubr.f32.mxu1 %v46885_v61 }
 0x64f   :  { %v42824_v25 = vpop.permute.xlu0 %21661  ;;  %24182 = vrot.lane.b32.xlu1 %v42453_v50, %s39050_s2 }
 0x650   :  { %46914 = vst [vmem:[#allocation31_spill] sm:$0xff] %v42824_v25  ;;  %35812 = vmatmul.mubr.msk.f32.vlgmr.msra.gmra.mrb[16].mxu1 %vm155_vm1, %v42706_v51 }
 0x651   :  { %24188 = vrot.lane.b32.xlu0 %v42459_v36, %s39050_s2  ;;  %21540 = vmatpush1.msra.mxu1 %v42831_v52  ;;  %v42836_v30 = vpop.permute.xlu1 %21667 }
 0x652   :  { %21709 = vmatprep.subr.mxu1 %v42840_v40  ;;  %21532 = vmatprep.mubr.f32.mxu1 %v46885_v61  ;;  %v42866_v40 = vsel %vm7376_vm10, %v21652_v56, %v42790_v13 }
 0x653   :  { %v42844_v32 = vpop.permute.xlu0 %21669  ;;  %24190 = vrot.lane.b32.xlu1 %v42465_v53, %s39050_s2  ;;  %46918 = vst [vmem:[#allocation35_spill] sm:$0xff] %v42866_v40 }
 0x654   :  { %35813 = vmatmul.mubr.msk.f32.gmra.mrb[18].mxu1 %vm155_vm1, %v42725_v37 }
 0x655   :  { %24192 = vrot.lane.b32.xlu0 %v42470_v4, %s39050_s2  ;;  %v42852_v27 = vpop.permute.xlu1 %21671  ;;  %21603 = vmatprep.mubr.f32.mxu1 %v46885_v61 }
 0x657   :  { %v42855_v8 = vpop.permute.xlu0 %21673  ;;  %24194 = vrot.lane.b32.xlu1 %v42479_v57, %s39050_s2 }
 0x658   :  { %46917 = vst [vmem:[#allocation34_spill] sm:$0xff] %v42855_v8  ;;  %35814 = vmatmul.mubr.msk.f32.vlgmr.msra.gmra.mrb[20].mxu1 %vm155_vm1, %v42706_v51  ;;  %v43001_v49 = vsel %vm7376_vm10, %v42852_v27, %v42855_v8 }
 0x659   :  { %21710 = vmatpush1.msra.mxu1 %v21675_v18  ;;  %v42862_v42 = vpop.permute.xlu1 %22277  ;;  %21609 = vmatprep.mubr.f32.mxu1 %v46885_v61  ;;  %v42882_v18 = vld [vmem:[%s46738_s3 + $0x50] sm:$0xff]  ;;  %46929 = vst [vmem:[#allocation46_spill] sm:$0xff] %v43001_v49 }
 0x65a   :  { %21786 = vmatprep.subr.mxu1 %v42866_v40  ;;  %v42900_v40 = vsel %vm7376_vm10, %v42793_v14, %v42805_v17 }
 0x65b   :  { %v42870_v12 = vpop.permute.xlu0 %22279  ;;  %18610 = vrot.lane.b32.xlu1 %v42489_v23, %s39028_s13  ;;  %46920 = vst [vmem:[#allocation37_spill] sm:$0xff] %v42900_v40 }
 0x65c   :  { %35815 = vmatmul.mubr.msk.f32.gmra.mrb[22].mxu1 %vm155_vm1, %v42725_v37  ;;  %v42892_v37 = vsel %vm7376_vm10, %v42762_v45, %v21652_v56  ;;  %v18542_v45 = vsel %vm3691_vm5, %v42423_v44, %v42449_v58  ;;  %v42933_v44 = vsel %vm7376_vm10, %v42790_v13, %v42793_v14  ;;  %v42941_v58 = vsel %vm7376_vm10, %v42813_v20, %v42821_v33 }
 0x65d   :  { %v42876_v51 = vpop.permute.xlu1 %22275  ;;  %21773 = vmatprep.mubr.f32.mxu1 %v46885_v61  ;;  %46919 = vst [vmem:[#allocation36_spill] sm:$0xff] %v42892_v37  ;;  %v42919_v17 = vmax.f32 %v42363_v60, %v18542_v45  ;;  %46922 = vst [vmem:[#allocation39_spill] sm:$0xff] %v42933_v44 }
 0x65e   :  { %46923 = vst [vmem:[#allocation40_spill] sm:$0xff] %v42941_v58 }
 0x65f   :  { %v42884_v11 = vpop.permute.xlu0 %22281  ;;  %18608 = vrot.lane.b32.xlu1 %v42486_v39, %s39028_s13 }
 0x660   :  { %35818 = vmatmul.mubr.msk.f32.vlgmr.msra.gmra.mrb[24].mxu1 %vm155_vm1, %v42882_v18 }
 0x661   :  { %21787 = vmatpush1.msra.mxu1 %v42892_v37  ;;  %v42895_v16 = vpop.permute.xlu1 %22283  ;;  %21779 = vmatprep.mubr.f32.mxu1 %v46885_v61 }
 0x662   :  { %21863 = vmatprep.subr.mxu1 %v42900_v40  ;;  %v43058_v5 = vsel %vm8850_vm12, %v42884_v11, %v42895_v16 }
 0x663   :  { %v42912_v56 = vpop.permute.xlu0 %22285  ;;  %18616 = vrot.lane.b32.xlu1 %v42421_v38, %s39028_s13  ;;  %46932 = vst [vmem:[#allocation49_spill] sm:$0xff] %v43058_v5 }
 0x664   :  { %35819 = vmatmul.mubr.msk.f32.gmra.mrb[26].mxu1 %vm155_vm1, %v42906_v46 }
 0x665   :  { %v42921_v37 = vpop.permute.xlu1 %22287  ;;  %21850 = vmatprep.mubr.f32.mxu1 %v46885_v61 }
 0x666   :  { %46921 = vst [vmem:[#allocation38_spill] sm:$0xff] %v42921_v37 }
 0x667   :  { %v42924_v41 = vpop.permute.xlu0 %22293  ;;  %18620 = vrot.lane.b32.xlu1 %v42919_v17, %s39028_s13 }
 0x668   :  { %35820 = vmatmul.mubr.msk.f32.vlgmr.msra.gmra.mrb[28].mxu1 %vm155_vm1, %v42882_v18 }
 0x669   :  { %21864 = vmatpush1.msra.mxu1 %v42933_v44  ;;  %v42936_v60 = vpop.permute.xlu1 %22295  ;;  %21856 = vmatprep.mubr.f32.mxu1 %v46885_v61  ;;  %v42971_v44 = vsel %vm7376_vm10, %v42836_v30, %v42844_v32 }
 0x66a   :  { %22015 = vmatprep.subr.mxu1 %v42941_v58  ;;  %v42963_v58 = vsel %vm7376_vm10, %v42824_v25, %v42813_v20  ;;  %46926 = vst [vmem:[#allocation43_spill] sm:$0xff] %v42971_v44  ;;  %v42993_v25 = vsel %vm7376_vm10, %v42821_v33, %v42836_v30  ;;  %v43128_v28 = vsel %vm8850_vm12, %v42924_v41, %v42936_v60 }
 0x66b   :  { %v42945_v45 = vpop.permute.xlu0 %22291  ;;  %18628 = vrot.lane.b32.xlu1 %v42459_v36, %s39028_s13  ;;  %46925 = vst [vmem:[#allocation42_spill] sm:$0xff] %v42963_v58  ;;  %46928 = vst [vmem:[#allocation45_spill] sm:$0xff] %v42993_v25 }
 0x66c   :  { %46924 = vst [vmem:[#allocation41_spill] sm:$0xff] %v42945_v45  ;;  %35821 = vmatmul.mubr.msk.f32.gmra.mrb[30].mxu1 %vm155_vm1, %v42906_v46  ;;  %46937 = vst [vmem:[#allocation54_spill] sm:$0xff] %v43128_v28 }
 0x66d   :  { %v42951_v13 = vpop.permute.xlu1 %22297  ;;  %21927 = vmatprep.mubr.f32.mxu1 %v46885_v61 }
 0x66f   :  { %v42954_v14 = vpop.permute.xlu0 %22299  ;;  %18630 = vrot.lane.b32.xlu1 %v42465_v53, %s39028_s13 }
 0x670   :  { %35822 = vmatmul.mubr.msk.f32.vlgmr.msra.gmra.mrb[8].mxu1 %vm155_vm1, %v42882_v18  ;;  %v43154_v29 = vsel %vm8850_vm12, %v42951_v13, %v42954_v14 }
 0x671   :  { %22016 = vmatpush1.msra.mxu1 %v42963_v58  ;;  %v42966_v40 = vpop.permute.xlu1 %22301  ;;  %21933 = vmatprep.mubr.f32.mxu1 %v46885_v61  ;;  %46939 = vst [vmem:[#allocation56_spill] sm:$0xff] %v43154_v29 }
 0x672   :  { %22092 = vmatprep.subr.mxu1 %v42971_v44 }
 0x673   :  { %v42975_v52 = vpop.permute.xlu0 %22303  ;;  %18634 = vrot.lane.b32.xlu1 %v42479_v57, %s39028_s13 }
 0x674   :  { %46927 = vst [vmem:[#allocation44_spill] sm:$0xff] %v42975_v52  ;;  %35823 = vmatmul.mubr.msk.f32.gmra.mrb[10].mxu1 %vm155_vm1, %v42906_v46  ;;  %v43180_v10 = vsel %vm8850_vm12, %v42966_v40, %v42975_v52  ;;  %v43198_v52 = vsel %vm8850_vm12, %v42954_v14, %v42966_v40 }
 0x675   :  { %v42981_v20 = vpop.permute.xlu1 %22907  ;;  %22079 = vmatprep.mubr.f32.mxu1 %v46885_v61  ;;  %46941 = vst [vmem:[#allocation58_spill] sm:$0xff] %v43180_v10  ;;  %46943 = vst [vmem:[#allocation60_spill] sm:$0xff] %v43198_v52 }
 0x677   :  { %v42984_v58 = vpop.permute.xlu0 %22909  ;;  %19757 = vrot.lane.b32.xlu1 %v42489_v23, %s39030_s15 }
 0x678   :  { %35826 = vmatmul.mubr.msk.f32.vlgmr.msra.gmra.mrb[12].mxu1 %vm155_vm1, %v42882_v18 }
 0x679   :  { %22093 = vmatpush1.msra.mxu1 %v42993_v25  ;;  %v42996_v44 = vpop.permute.xlu1 %22905  ;;  %22085 = vmatprep.mubr.f32.mxu1 %v46885_v61  ;;  %v43031_v25 = vsel %vm8850_vm12, %v42862_v42, %v42870_v12 }
 0x67a   :  { %22169 = vmatprep.subr.mxu1 %v43001_v49  ;;  %v43023_v49 = vsel %vm7376_vm10, %v42844_v32, %v42852_v27  ;;  %46931 = vst [vmem:[#allocation48_spill] sm:$0xff] %v43031_v25 }
 0x67b   :  { %v43005_v0 = vpop.permute.xlu0 %22911  ;;  %19755 = vrot.lane.b32.xlu1 %v42486_v39, %s39030_s15  ;;  %46930 = vst [vmem:[#allocation47_spill] sm:$0xff] %v43023_v49 }
 0x67c   :  { %35827 = vmatmul.mubr.msk.f32.gmra.mrb[14].mxu1 %vm155_vm1, %v42906_v46 }
 0x67d   :  { %v43011_v33 = vpop.permute.xlu1 %22913  ;;  %22156 = vmatprep.mubr.f32.mxu1 %v46885_v61 }
 0x67e   :  { %v43235_v15 = vsel %vm46883_vm14, %v43005_v0, %v43011_v33 }
 0x67f   :  { %v43014_v30 = vpop.permute.xlu0 %22915  ;;  %19763 = vrot.lane.b32.xlu1 %v42421_v38, %s39030_s15  ;;  %46945 = vst [vmem:[#allocation62_spill] sm:$0xff] %v43235_v15 }
 0x680   :  { %35828 = vmatmul.mubr.msk.f32.vlgmr.msra.gmra.mrb[16].mxu1 %vm155_vm1, %v42882_v18 }
 0x681   :  { %22170 = vmatpush1.msra.mxu1 %v43023_v49  ;;  %v43026_v8 = vpop.permute.xlu1 %22917  ;;  %22162 = vmatprep.mubr.f32.mxu1 %v46885_v61 }
 0x682   :  { %22339 = vmatprep.subr.mxu1 %v43031_v25  ;;  %v22305_v25 = vsel %vm8850_vm12, %v42876_v51, %v42862_v42 }
 0x683   :  { %v43035_v54 = vpop.permute.xlu0 %22923  ;;  %19767 = vrot.lane.b32.xlu1 %v42919_v17, %s39030_s15 }
 0x684   :  { %35829 = vmatmul.mubr.msk.f32.gmra.mrb[18].mxu1 %vm155_vm1, %v42906_v46 }
 0x685   :  { %v43041_v32 = vpop.permute.xlu1 %22925  ;;  %22233 = vmatprep.mubr.f32.mxu1 %v46885_v61 }
 0x687   :  { %v43044_v27 = vpop.permute.xlu0 %22921  ;;  %19775 = vrot.lane.b32.xlu1 %v42459_v36, %s39030_s15 }
 0x688   :  { %35830 = vmatmul.mubr.msk.f32.vlgmr.msra.gmra.mrb[20].mxu1 %vm155_vm1, %v42882_v18 }
 0x689   :  { %22340 = vmatpush1.msra.mxu1 %v22305_v25  ;;  %v43053_v49 = vpop.permute.xlu1 %22927  ;;  %22239 = vmatprep.mubr.f32.mxu1 %v46885_v61  ;;  %v43074_v25 = vld [vmem:[%s46738_s3 + $0x60] sm:$0xff] }
 0x68a   :  { %22416 = vmatprep.subr.mxu1 %v43058_v5  ;;  %v43093_v5 = vsel %vm8850_vm12, %v42912_v56, %v42921_v37 }
 0x68b   :  { %v43062_v7 = vpop.permute.xlu0 %22929  ;;  %19777 = vrot.lane.b32.xlu1 %v42465_v53, %s39030_s15  ;;  %46935 = vst [vmem:[#allocation52_spill] sm:$0xff] %v43093_v5 }
 0x68c   :  { %35831 = vmatmul.mubr.msk.f32.gmra.mrb[22].mxu1 %vm155_vm1, %v42906_v46  ;;  %v43085_v46 = vsel %vm8850_vm12, %v42870_v12, %v42884_v11 }
 0x68d   :  { %v43068_v42 = vpop.permute.xlu1 %22931  ;;  %22403 = vmatprep.mubr.f32.mxu1 %v46885_v61  ;;  %46934 = vst [vmem:[#allocation51_spill] sm:$0xff] %v43085_v46 }
 0x68f   :  { %v43076_v51 = vpop.permute.xlu0 %22933  ;;  %19781 = vrot.lane.b32.xlu1 %v42479_v57, %s39030_s15 }
 0x690   :  { %46933 = vst [vmem:[#allocation50_spill] sm:$0xff] %v43076_v51  ;;  %35834 = vmatmul.mubr.msk.f32.vlgmr.msra.gmra.mrb[24].mxu1 %vm155_vm1, %v43074_v25 }
 0x691   :  { %22417 = vmatpush1.msra.mxu1 %v43085_v46  ;;  %v43088_v18 = vpop.permute.xlu1 %23537  ;;  %22409 = vmatprep.mubr.f32.mxu1 %v46885_v61 }
 0x692   :  { %22493 = vmatprep.subr.mxu1 %v43093_v5  ;;  %v43120_v5 = vsel %vm8850_vm12, %v42895_v16, %v42912_v56 }
 0x693   :  { %v43102_v12 = vpop.permute.xlu0 %23539  ;;  %20387 = vrot.lane.b32.xlu1 %v42489_v23, %s39047_s1  ;;  %46936 = vst [vmem:[#allocation53_spill] sm:$0xff] %v43120_v5 }
 0x694   :  { %35835 = vmatmul.mubr.msk.f32.gmra.mrb[26].mxu1 %vm155_vm1, %v43099_v1 }
 0x695   :  { %v43108_v11 = vpop.permute.xlu1 %23535  ;;  %22480 = vmatprep.mubr.f32.mxu1 %v46885_v61 }
 0x697   :  { %v43111_v37 = vpop.permute.xlu0 %23541  ;;  %20385 = vrot.lane.b32.xlu1 %v42486_v39, %s39047_s1 }
 0x698   :  { %35836 = vmatmul.mubr.msk.f32.vlgmr.msra.gmra.mrb[28].mxu1 %vm155_vm1, %v43074_v25 }
 0x699   :  { %22494 = vmatpush1.msra.mxu1 %v43120_v5  ;;  %v43123_v46 = vpop.permute.xlu1 %23543  ;;  %22486 = vmatprep.mubr.f32.mxu1 %v46885_v61  ;;  %v43146_v5 = vsel %vm8850_vm12, %v42945_v45, %v42924_v41  ;;  %v43172_v45 = vsel %vm8850_vm12, %v42936_v60, %v42951_v13 }
 0x69a   :  { %22645 = vmatprep.subr.mxu1 %v43128_v28  ;;  %46938 = vst [vmem:[#allocation55_spill] sm:$0xff] %v43146_v5  ;;  %46940 = vst [vmem:[#allocation57_spill] sm:$0xff] %v43172_v45 }
 0x69b   :  { %v43132_v63 = vpop.permute.xlu0 %23545 }
 0x69c   :  { %35837 = vmatmul.mubr.msk.f32.gmra.mrb[30].mxu1 %vm155_vm1, %v43099_v1 }
 0x69d   :  { %v43136_v16 = vpop.permute.xlu1 %23547  ;;  %22557 = vmatprep.mubr.f32.mxu1 %v46885_v61 }
 0x69f   :  { %v43139_v56 = vpop.permute.xlu0 %23553 }
 0x6a0   :  { %35838 = vmatmul.mubr.msk.f32.vlgmr.msra.gmra.mrb[8].mxu1 %vm155_vm1, %v43074_v25 }
 0x6a1   :  { %22646 = vmatpush1.msra.mxu1 %v43146_v5  ;;  %v43149_v28 = vpop.permute.xlu1 %23555  ;;  %22563 = vmatprep.mubr.f32.mxu1 %v46885_v61 }
 0x6a2   :  { %22722 = vmatprep.subr.mxu1 %v43154_v29 }
 0x6a3   :  { %v43158_v26 = vpop.permute.xlu0 %23551 }
 0x6a4   :  { %35839 = vmatmul.mubr.msk.f32.gmra.mrb[10].mxu1 %vm155_vm1, %v43099_v1 }
 0x6a5   :  { %v43162_v41 = vpop.permute.xlu1 %23557  ;;  %22709 = vmatprep.mubr.f32.mxu1 %v46885_v61 }
 0x6a7   :  { %v43165_v5 = vpop.permute.xlu0 %23559 }
 0x6a8   :  { %35842 = vmatmul.mubr.msk.f32.vlgmr.msra.gmra.mrb[12].mxu1 %vm155_vm1, %v43074_v25 }
 0x6a9   :  { %22723 = vmatpush1.msra.mxu1 %v43172_v45  ;;  %v43175_v29 = vpop.permute.xlu1 %23561  ;;  %22715 = vmatprep.mubr.f32.mxu1 %v46885_v61  ;;  %v43206_v45 = vsel %vm46883_vm14, %v42981_v20, %v42984_v58 }
 0x6aa   :  { %22799 = vmatprep.subr.mxu1 %v43180_v10  ;;  %46944 = vst [vmem:[#allocation61_spill] sm:$0xff] %v43206_v45 }
 0x6ab   :  { %v43184_v2 = vpop.permute.xlu0 %23563 }
 0x6ac   :  { %46942 = vst [vmem:[#allocation59_spill] sm:$0xff] %v43184_v2  ;;  %35843 = vmatmul.mubr.msk.f32.gmra.mrb[14].mxu1 %vm155_vm1, %v43099_v1 }
 0x6ad   :  { %v43188_v60 = vpop.permute.xlu1 %24168  ;;  %22786 = vmatprep.mubr.f32.mxu1 %v46885_v61 }
 0x6af   :  { %v43191_v13 = vpop.permute.xlu0 %24170 }
 0x6b0   :  { %35844 = vmatmul.mubr.msk.f32.vlgmr.msra.gmra.mrb[16].mxu1 %vm155_vm1, %v43074_v25 }
 0x6b1   :  { %22800 = vmatpush1.msra.mxu1 %v43198_v52  ;;  %v43201_v10 = vpop.permute.xlu1 %24166  ;;  %22792 = vmatprep.mubr.f32.mxu1 %v46885_v61  ;;  %v22935_v52 = vsel %vm46883_vm14, %v42996_v44, %v42981_v20  ;;  %v35849_v44 = vld [vmem:[%s46738_s3 + $0x78] sm:$0xff] }
 0x6b2   :  { %22969 = vmatprep.subr.mxu1 %v43206_v45 }
 0x6b3   :  { %v43210_v6 = vpop.permute.xlu0 %24172 }
 0x6b4   :  { %35845 = vmatmul.mubr.msk.f32.gmra.mrb[18].mxu1 %vm155_vm1, %v43099_v1 }
 0x6b5   :  { %v43214_v40 = vpop.permute.xlu1 %24174  ;;  %22863 = vmatprep.mubr.f32.mxu1 %v46885_v61 }
 0x6b7   :  { %v43217_v14 = vpop.permute.xlu0 %18426 }
 0x6b8   :  { %v18444_v24 = vsel %vm118_vm0, %v42393_v3, %v43217_v14  ;;  %35846 = vmatmul.mubr.msk.f32.vlgmr.msra.gmra.mrb[20].mxu1 %vm155_vm1, %v43074_v25  ;;  %v35848_v3 = vld [vmem:[%s46738_s3 + $0x70] sm:$0xff]  ;;  %v43290_v25 = vsel %vm46883_vm14, %v43035_v54, %v43041_v32  ;;  %vm23565_vm0 = vcmask 474112  }
 0x6b9   :  { %v43228_v45 = vmax.f32 %v42330_v55, %v18444_v24  ;;  %22970 = vmatpush1.msra.mxu1 %v22935_v52  ;;  %v43230_v43 = vpop.permute.xlu1 %24176  ;;  %22869 = vmatprep.mubr.f32.mxu1 %v46885_v61  ;;  %v43255_v24 = vsel %vm46883_vm14, %v42984_v58, %v43005_v0  ;;  %v43263_v52 = vsel %vm46883_vm14, %v43014_v30, %v43026_v8 }
 0x6ba   :  { %23046 = vmatprep.subr.mxu1 %v43235_v15  ;;  %46946 = vst [vmem:[#allocation63_spill] sm:$0xff] %v43263_v52  ;;  %v43282_v58 = vsel %vm46883_vm14, %v43011_v33, %v43014_v30  ;;  %46949 = vst [vmem:[#allocation66_spill] sm:$0xff] %v43290_v25  ;;  %v43306_v30 = vsel %vm46883_vm14, %v43044_v27, %v43035_v54  ;;  %v43332_v54 = vsel %vm46883_vm14, %v43041_v32, %v43053_v49 }
 0x6bb   :  { %18531 = vrot.lane.b32.xlu0 %v43228_v45, %s39031_s18  ;;  %46947 = vst [vmem:[#allocation64_spill] sm:$0xff] %v43282_v58  ;;  %46950 = vst [vmem:[#allocation67_spill] sm:$0xff] %v43306_v30  ;;  %v43354_v32 = vsel %vm23565_vm0, %v43088_v18, %v43102_v12 }
 0x6bc   :  { %35847 = vmatmul.mubr.msk.f32.gmra.mrb[22].mxu1 %vm155_vm1, %v43099_v1  ;;  %46952 = vst [vmem:[#allocation69_spill] sm:$0xff] %v43332_v54  ;;  %46955 = vst [vmem:[#allocation72_spill] sm:$0xff] %v43354_v32 }
 0x6bd   :  { %v43243_v55 = vpop.permute.xlu1 %24184  ;;  %23033 = vmatprep.mubr.f32.mxu1 %v46885_v61 }
 0x6bf   :  { %18612 = vrot.lane.b32.xlu0 %v42500_v21, %s39028_s13 }
 0x6c0   :  { %35850 = vmatmul.mubr.msk.f32.vlgmr.msra.gmra.mrb[24].mxu1 %vm155_vm1, %v35848_v3 }
 0x6c1   :  { %23047 = vmatpush1.msra.mxu1 %v43255_v24  ;;  %v43258_v1 = vpop.permute.xlu1 %24182  ;;  %23039 = vmatprep.mubr.f32.mxu1 %v46885_v61 }
 0x6c2   :  { %23123 = vmatprep.subr.mxu1 %v43263_v52  ;;  %v43314_v52 = vsel %vm46883_vm14, %v43053_v49, %v43062_v7  ;;  %v43348_v49 = vsel %vm46883_vm14, %v43062_v7, %v43068_v42  ;;  %v23566_v7 = vsel %vm23565_vm0, %v43108_v11, %v43088_v18  ;;  %v35864_v18 = vld [vmem:[%s46738_s3 + $0x80] sm:$0xff]  ;;  %v43380_v11 = vsel %vm23565_vm0, %v43102_v12, %v43111_v37 }
 0x6c3   :  { %18614 = vrot.lane.b32.xlu0 %v42433_v35, %s39028_s13  ;;  %46951 = vst [vmem:[#allocation68_spill] sm:$0xff] %v43314_v52  ;;  %46954 = vst [vmem:[#allocation71_spill] sm:$0xff] %v43348_v49  ;;  %v43405_v12 = vsel %vm23565_vm0, %v43139_v56, %v43149_v28 }
 0x6c4   :  { %35851 = vmatmul.mubr.msk.f32.gmra.mrb[26].mxu1 %vm155_vm1, %v35849_v44  ;;  %46957 = vst [vmem:[#allocation74_spill] sm:$0xff] %v43380_v11  ;;  %46960 = vst [vmem:[#allocation77_spill] sm:$0xff] %v43405_v12 }
 0x6c5   :  { %v43273_v0 = vpop.permute.xlu1 %24190  ;;  %23110 = vmatprep.mubr.f32.mxu1 %v46885_v61 }
 0x6c7   :  { %18618 = vrot.lane.b32.xlu0 %v42431_v47, %s39028_s13 }
 0x6c8   :  { %35852 = vmatmul.mubr.msk.f32.vlgmr.msra.gmra.mrb[28].mxu1 %vm155_vm1, %v35848_v3 }
 0x6c9   :  { %23124 = vmatpush1.msra.mxu1 %v43282_v58  ;;  %v43285_v20 = vpop.permute.xlu1 %24194  ;;  %23116 = vmatprep.mubr.f32.mxu1 %v46885_v61 }
 0x6ca   :  { %46948 = vst [vmem:[#allocation65_spill] sm:$0xff] %v43285_v20  ;;  %23275 = vmatprep.subr.mxu1 %v43290_v25 }
 0x6cb   :  { %18626 = vrot.lane.b32.xlu0 %v42445_v34, %s39028_s13 }
 0x6cc   :  { %35853 = vmatmul.mubr.msk.f32.gmra.mrb[30].mxu1 %vm155_vm1, %v35849_v44 }
 0x6cd   :  { %v43297_v33 = vpop.permute.xlu1 %18610  ;;  %23187 = vmatprep.mubr.f32.mxu1 %v46885_v61 }
 0x6cf   :  { %18624 = vrot.lane.b32.xlu0 %v42441_v22, %s39028_s13 }
 0x6d0   :  { %35854 = vmatmul.mubr.msk.f32.vlgmr.msra.gmra.mrb[8].mxu1 %vm155_vm1, %v35848_v3 }
 0x6d1   :  { %23276 = vmatpush1.msra.mxu1 %v43306_v30  ;;  %v43309_v25 = vpop.permute.xlu1 %18608  ;;  %23193 = vmatprep.mubr.f32.mxu1 %v46885_v61  ;;  %v43338_v30 = vsel %vm46883_vm14, %v43068_v42, %v43076_v51  ;;  %v43367_v42 = vsel %vm23565_vm0, %v43111_v37, %v43123_v46  ;;  %v43399_v37 = vsel %vm23565_vm0, %v43123_v46, %v43132_v63 }
 0x6d2   :  { %23352 = vmatprep.subr.mxu1 %v43314_v52  ;;  %v43321_v15 = vsel %vm46880_vm2, %v43309_v25, %v43297_v33  ;;  %46953 = vst [vmem:[#allocation70_spill] sm:$0xff] %v43338_v30  ;;  %46956 = vst [vmem:[#allocation73_spill] sm:$0xff] %v43367_v42  ;;  %v43421_v46 = vsel %vm23565_vm0, %v43162_v41, %v43165_v5  ;;  %v43823_v52 = vld [vmem:[%s46738_s3 + $0xc8] sm:$0xff] }
 0x6d3   :  { %18632 = vrot.lane.b32.xlu0 %v42470_v4, %s39028_s13  ;;  %18670 = vmatprep.subr.mxu0 %v43321_v15  ;;  %46959 = vst [vmem:[#allocation76_spill] sm:$0xff] %v43399_v37  ;;  %46962 = vst [vmem:[#allocation79_spill] sm:$0xff] %v43421_v46 }
 0x6d4   :  { %35855 = vmatmul.mubr.msk.f32.gmra.mrb[10].mxu1 %vm155_vm1, %v35849_v44 }
 0x6d5   :  { %23339 = vmatprep.mubr.f32.mxu1 %v46885_v61 }
 0x6d8   :  { %35858 = vmatmul.mubr.msk.f32.vlgmr.msra.gmra.mrb[12].mxu1 %vm155_vm1, %v35848_v3 }
 0x6d9   :  { %23353 = vmatpush1.msra.mxu1 %v43332_v54  ;;  %23345 = vmatprep.mubr.f32.mxu1 %v46885_v61 }
 0x6da   :  { %23429 = vmatprep.subr.mxu1 %v43338_v30 }
 0x6dc   :  { %35859 = vmatmul.mubr.msk.f32.gmra.mrb[14].mxu1 %vm155_vm1, %v35849_v44 }
 0x6dd   :  { %23416 = vmatprep.mubr.f32.mxu1 %v46885_v61 }
 0x6e0   :  { %35860 = vmatmul.mubr.msk.f32.vlgmr.msra.gmra.mrb[16].mxu1 %vm155_vm1, %v35848_v3 }
 0x6e1   :  { %23430 = vmatpush1.msra.mxu1 %v43348_v49  ;;  %23422 = vmatprep.mubr.f32.mxu1 %v46885_v61 }
 0x6e2   :  { %23600 = vmatprep.subr.mxu1 %v43354_v32 }
 0x6e4   :  { %35861 = vmatmul.mubr.msk.f32.gmra.mrb[18].mxu1 %vm155_vm1, %v35849_v44 }
 0x6e5   :  { %23493 = vmatprep.mubr.f32.mxu1 %v46885_v61 }
 0x6e8   :  { %35862 = vmatmul.mubr.msk.f32.vlgmr.msra.gmra.mrb[20].mxu1 %vm155_vm1, %v35848_v3  ;;  %v43386_v3 = vsel %vm23565_vm0, %v43132_v63, %v43136_v16  ;;  %v43415_v63 = vsel %vm23565_vm0, %v43158_v26, %v43139_v56  ;;  %v43431_v56 = vsel %vm23565_vm0, %v43149_v28, %v43162_v41  ;;  %v43447_v28 = vsel %vm23565_vm0, %v43165_v5, %v43175_v29 }
 0x6e9   :  { %23601 = vmatpush1.msra.mxu1 %v23566_v7  ;;  %23499 = vmatprep.mubr.f32.mxu1 %v46885_v61  ;;  %46958 = vst [vmem:[#allocation75_spill] sm:$0xff] %v43386_v3  ;;  %46961 = vst [vmem:[#allocation78_spill] sm:$0xff] %v43415_v63  ;;  %v43437_v7 = vsel %vm23565_vm0, %v43175_v29, %v43184_v2  ;;  %v43453_v41 = vsel %vm24196_vm13, %v43188_v60, %v43191_v13 }
 0x6ea   :  { %23677 = vmatprep.subr.mxu1 %v43367_v42  ;;  %46963 = vst [vmem:[#allocation80_spill] sm:$0xff] %v43431_v56  ;;  %46964 = vst [vmem:[#allocation81_spill] sm:$0xff] %v43437_v7  ;;  %v24197_v29 = vsel %vm24196_vm13, %v43201_v10, %v43188_v60  ;;  %v43468_v5 = vsel %vm24196_vm13, %v43210_v6, %v43214_v40  ;;  %v35880_v10 = vld [vmem:[%s46738_s3 + $0x90] sm:$0xff]  ;;  %v43481_v60 = vsel %vm24196_vm13, %v43191_v13, %v43210_v6 }
 0x6eb   :  { %46965 = vst [vmem:[#allocation82_spill] sm:$0xff] %v43447_v28  ;;  %46966 = vst [vmem:[#allocation83_spill] sm:$0xff] %v43453_v41  ;;  %v43499_v6 = vsel %vm24196_vm13, %v43214_v40, %v43230_v43 }
 0x6ec   :  { %35863 = vmatmul.mubr.msk.f32.gmra.mrb[22].mxu1 %vm155_vm1, %v35849_v44  ;;  %v35865_v44 = vld [vmem:[%s46738_s3 + $0x88] sm:$0xff]  ;;  %46967 = vst [vmem:[#allocation84_spill] sm:$0xff] %v43468_v5  ;;  %46968 = vst [vmem:[#allocation85_spill] sm:$0xff] %v43481_v60 }
 0x6ed   :  { %23664 = vmatprep.mubr.f32.mxu1 %v46885_v61  ;;  %46970 = vst [vmem:[#allocation87_spill] sm:$0xff] %v43499_v6 }
 0x6f0   :  { %35866 = vmatmul.mubr.msk.f32.vlgmr.msra.gmra.mrb[24].mxu1 %vm155_vm1, %v35864_v18 }
 0x6f1   :  { %23678 = vmatpush1.msra.mxu1 %v43380_v11  ;;  %23670 = vmatprep.mubr.f32.mxu1 %v46885_v61 }
 0x6f2   :  { %23754 = vmatprep.subr.mxu1 %v43386_v3 }
 0x6f4   :  { %35867 = vmatmul.mubr.msk.f32.gmra.mrb[26].mxu1 %vm155_vm1, %v35865_v44 }
 0x6f5   :  { %23741 = vmatprep.mubr.f32.mxu1 %v46885_v61 }
 0x6f8   :  { %35868 = vmatmul.mubr.msk.f32.vlgmr.msra.gmra.mrb[28].mxu1 %vm155_vm1, %v35864_v18 }
 0x6f9   :  { %23755 = vmatpush1.msra.mxu1 %v43399_v37  ;;  %23747 = vmatprep.mubr.f32.mxu1 %v46885_v61 }
 0x6fa   :  { %23906 = vmatprep.subr.mxu1 %v43405_v12 }
 0x6fc   :  { %35869 = vmatmul.mubr.msk.f32.gmra.mrb[30].mxu1 %vm155_vm1, %v35865_v44 }
 0x6fd   :  { %23818 = vmatprep.mubr.f32.mxu1 %v46885_v61 }
 0x700   :  { %35870 = vmatmul.mubr.msk.f32.vlgmr.msra.gmra.mrb[8].mxu1 %vm155_vm1, %v35864_v18 }
 0x701   :  { %23907 = vmatpush1.msra.mxu1 %v43415_v63  ;;  %23824 = vmatprep.mubr.f32.mxu1 %v46885_v61 }
 0x702   :  { %23983 = vmatprep.subr.mxu1 %v43421_v46 }
 0x704   :  { %35871 = vmatmul.mubr.msk.f32.gmra.mrb[10].mxu1 %vm155_vm1, %v35865_v44 }
 0x705   :  { %23970 = vmatprep.mubr.f32.mxu1 %v46885_v61 }
 0x708   :  { %35874 = vmatmul.mubr.msk.f32.vlgmr.msra.gmra.mrb[12].mxu1 %vm155_vm1, %v35864_v18 }
 0x709   :  { %23984 = vmatpush1.msra.mxu1 %v43431_v56  ;;  %23976 = vmatprep.mubr.f32.mxu1 %v46885_v61 }
 0x70a   :  { %24060 = vmatprep.subr.mxu1 %v43437_v7  ;;  %v43459_v7 = vpop.permute.xlu0 %24178 }
 0x70c   :  { %35875 = vmatmul.mubr.msk.f32.gmra.mrb[14].mxu1 %vm155_vm1, %v35865_v44 }
 0x70d   :  { %24047 = vmatprep.mubr.f32.mxu1 %v46885_v61 }
 0x710   :  { %35876 = vmatmul.mubr.msk.f32.vlgmr.msra.gmra.mrb[16].mxu1 %vm155_vm1, %v35864_v18 }
 0x711   :  { %24061 = vmatpush1.msra.mxu1 %v43447_v28  ;;  %24053 = vmatprep.mubr.f32.mxu1 %v46885_v61 }
 0x712   :  { %24231 = vmatprep.subr.mxu1 %v43453_v41  ;;  %v24187_v41 = vpop.permute.xlu0 %24186 }
 0x714   :  { %35877 = vmatmul.mubr.msk.f32.gmra.mrb[18].mxu1 %vm155_vm1, %v35865_v44 }
 0x715   :  { %24124 = vmatprep.mubr.f32.mxu1 %v46885_v61 }
 0x718   :  { %35878 = vmatmul.mubr.msk.f32.vlgmr.msra.gmra.mrb[20].mxu1 %vm155_vm1, %v35864_v18  ;;  %v43487_v18 = vsel %vm24196_vm13, %v43230_v43, %v43459_v7 }
 0x719   :  { %24232 = vmatpush1.msra.mxu1 %v24197_v29  ;;  %24130 = vmatprep.mubr.f32.mxu1 %v46885_v61  ;;  %46969 = vst [vmem:[#allocation86_spill] sm:$0xff] %v43487_v18  ;;  %v24189_v29 = vpop.permute.xlu0 %24188 }
 0x71a   :  { %24308 = vmatprep.subr.mxu1 %v43468_v5  ;;  %v43505_v5 = vsel %vm24196_vm13, %v43243_v55, %v24187_v41 }
 0x71b   :  { %46971 = vst [vmem:[#allocation88_spill] sm:$0xff] %v43505_v5 }
 0x71c   :  { %35879 = vmatmul.mubr.msk.f32.gmra.mrb[22].mxu1 %vm155_vm1, %v35865_v44  ;;  %v35881_v44 = vld [vmem:[%s46738_s3 + $0x98] sm:$0xff] }
 0x71d   :  { %24295 = vmatprep.mubr.f32.mxu1 %v46885_v61  ;;  %v24193_v13 = vpop.permute.xlu0 %24192 }
 0x720   :  { %35882 = vmatmul.mubr.msk.f32.vlgmr.msra.gmra.mrb[24].mxu1 %vm155_vm1, %v35880_v10 }
 0x721   :  { %24309 = vmatpush1.msra.mxu1 %v43481_v60  ;;  %24301 = vmatprep.mubr.f32.mxu1 %v46885_v61 }
 0x722   :  { %24385 = vmatprep.subr.mxu1 %v43487_v18 }
 0x724   :  { %35883 = vmatmul.mubr.msk.f32.gmra.mrb[26].mxu1 %vm155_vm1, %v35881_v44 }
 0x725   :  { %24372 = vmatprep.mubr.f32.mxu1 %v46885_v61 }
 0x728   :  { %35884 = vmatmul.mubr.msk.f32.vlgmr.msra.gmra.mrb[28].mxu1 %vm155_vm1, %v35880_v10 }
 0x729   :  { %24386 = vmatpush1.msra.mxu1 %v43499_v6  ;;  %24378 = vmatprep.mubr.f32.mxu1 %v46885_v61  ;;  %v43522_v6 = vsel %vm24196_vm13, %v43258_v1, %v43243_v55  ;;  %v43565_v55 = vsel %vm24196_vm13, %v43273_v0, %v24193_v13 }
 0x72a   :  { %24537 = vmatprep.subr.mxu1 %v43505_v5  ;;  %46973 = vst [vmem:[#allocation90_spill] sm:$0xff] %v43522_v6  ;;  %v43530_v5 = vsel %vm24196_vm13, %v24189_v29, %v43273_v0  ;;  %46977 = vst [vmem:[#allocation94_spill] sm:$0xff] %v43565_v55  ;;  %v35896_v0 = vld [vmem:[%s46738_s3 + $0xa0] sm:$0xff] }
 0x72b   :  { %46974 = vst [vmem:[#allocation91_spill] sm:$0xff] %v43530_v5 }
 0x72c   :  { %35885 = vmatmul.mubr.msk.f32.gmra.mrb[30].mxu1 %vm155_vm1, %v35881_v44 }
 0x72d   :  { %v43510_v18 = vpop.permute.xlu0 %18531  ;;  %24449 = vmatprep.mubr.f32.mxu1 %v46885_v61 }
 0x72e   :  { %v18550_v43 = vsel %vm3691_vm5, %v42474_v19, %v43510_v18  ;;  %v43551_v19 = vsel %vm24196_vm13, %v24193_v13, %v43285_v20 }
 0x72f   :  { %v43517_v40 = vmax.f32 %v42400_v31, %v18550_v43  ;;  %v43543_v31 = vsel %vm24196_vm13, %v24187_v41, %v24189_v29  ;;  %46976 = vst [vmem:[#allocation93_spill] sm:$0xff] %v43551_v19  ;;  %v43599_v41 = vpop.permute.xlu1 %18616 }
 0x730   :  { %35886 = vmatmul.mubr.msk.f32.vlgmr.msra.gmra.mrb[8].mxu1 %vm155_vm1, %v35880_v10  ;;  %46975 = vst [vmem:[#allocation92_spill] sm:$0xff] %v43543_v31 }
 0x731   :  { %46972 = vst [vmem:[#allocation89_spill] sm:$0xff] %v43517_v40  ;;  %24538 = vmatpush1.msra.mxu1 %v43522_v6  ;;  %26522 = vrot.lane.b32.xlu1 %v43517_v40, %s39047_s1 }
 0x732   :  { %25370 = vrot.lane.b32.xlu0 %v43517_v40, %s39028_s13  ;;  %24614 = vmatprep.subr.mxu1 %v43530_v5 }
 0x733   :  { %24455 = vmatprep.mubr.f32.mxu1 %v46885_v61 }
 0x734   :  { %35887 = vmatmul.mubr.msk.f32.gmra.mrb[10].mxu1 %vm155_vm1, %v35881_v44 }
 0x735   :  { %27098 = vrot.lane.b32.xlu1 %v43517_v40, %s39048_s17  ;;  %24601 = vmatprep.mubr.f32.mxu1 %v46885_v61 }
 0x736   :  { %19759 = vrot.lane.b32.xlu0 %v42500_v21, %s39030_s15 }
 0x738   :  { %35890 = vmatmul.mubr.msk.f32.vlgmr.msra.gmra.mrb[12].mxu1 %vm155_vm1, %v35880_v10 }
 0x739   :  { %24615 = vmatpush1.msra.mxu1 %v43543_v31  ;;  %27674 = vrot.lane.b32.xlu1 %v43517_v40, %s39036_s12 }
 0x73a   :  { %19761 = vrot.lane.b32.xlu0 %v42433_v35, %s39030_s15  ;;  %24691 = vmatprep.subr.mxu1 %v43551_v19  ;;  %v18613_v19 = vpop.permute.xlu0 %18612 }
 0x73b   :  { %24607 = vmatprep.mubr.f32.mxu1 %v46885_v61  ;;  %v43661_v5 = vsel %vm46880_vm2, %v43297_v33, %v18613_v19  ;;  %v18480_v33 = vmax.f32 %v42782_v48, %v43217_v14 }
 0x73c   :  { %35891 = vmatmul.mubr.msk.f32.gmra.mrb[14].mxu1 %vm155_vm1, %v35881_v44  ;;  %46978 = vst [vmem:[#allocation95_spill] sm:$0xff] %v43661_v5 }
 0x73d   :  { %28250 = vrot.lane.b32.xlu1 %v43517_v40, %s39038_s28  ;;  %24678 = vmatprep.mubr.f32.mxu1 %v46885_v61 }
 0x73e   :  { %19765 = vrot.lane.b32.xlu0 %v42431_v47, %s39030_s15 }
 0x740   :  { %35892 = vmatmul.mubr.msk.f32.vlgmr.msra.gmra.mrb[16].mxu1 %vm155_vm1, %v35880_v10 }
 0x741   :  { %24692 = vmatpush1.msra.mxu1 %v43565_v55  ;;  %18606 = vrot.lane.b32.xlu1 %v42495_v59, %s39028_s13 }
 0x742   :  { %19773 = vrot.lane.b32.xlu0 %v42445_v34, %s39030_s15  ;;  %24803 = vmatprep.subr.mxu1 %v42489_v23 }
 0x743   :  { %24684 = vmatprep.mubr.f32.mxu1 %v46885_v61 }
 0x744   :  { %35893 = vmatmul.mubr.msk.f32.gmra.mrb[18].mxu1 %vm155_vm1, %v35881_v44 }
 0x745   :  { %18622 = vrot.lane.b32.xlu1 %v42453_v50, %s39028_s13  ;;  %24755 = vmatprep.mubr.f32.mxu1 %v46885_v61 }
 0x746   :  { %19771 = vrot.lane.b32.xlu0 %v42441_v22, %s39030_s15 }
 0x748   :  { %35894 = vmatmul.mubr.msk.f32.vlgmr.msra.gmra.mrb[20].mxu1 %vm155_vm1, %v35880_v10  ;;  %v35897_v10 = vld [vmem:[%s46738_s3 + $0xa8] sm:$0xff] }
 0x749   :  { %24804 = vmatpush1.msra.mxu1 %v42486_v39  ;;  %29402 = vrot.lane.b32.xlu1 %v43517_v40, %s39049_s24 }
 0x74a   :  { %19779 = vrot.lane.b32.xlu0 %v42470_v4, %s39030_s15  ;;  %24880 = vmatprep.subr.mxu1 %v42433_v35 }
 0x74b   :  { %24761 = vmatprep.mubr.f32.mxu1 %v46885_v61 }
 0x74c   :  { %35895 = vmatmul.mubr.msk.f32.gmra.mrb[22].mxu1 %vm155_vm1, %v35881_v44  ;;  %v43617_v44 = vpop.permute.xlu1 %18620 }
 0x74d   :  { %29978 = vrot.lane.b32.xlu1 %v43517_v40, %s39050_s2  ;;  %24867 = vmatprep.mubr.f32.mxu1 %v46885_v61 }
 0x74e   :  { %25946 = vrot.lane.b32.xlu0 %v43517_v40, %s39030_s15 }
 0x750   :  { %35898 = vmatmul.mubr.msk.f32.vlgmr.msra.gmra.mrb[24].mxu1 %vm155_vm1, %v35896_v0  ;;  %v43626_v29 = vpop.permute.xlu1 %18628 }
 0x751   :  { %24881 = vmatpush1.msra.mxu1 %v42500_v21  ;;  %19769 = vrot.lane.b32.xlu1 %v42453_v50, %s39030_s15 }
 0x752   :  { %20389 = vrot.lane.b32.xlu0 %v42500_v21, %s39047_s1  ;;  %24957 = vmatprep.subr.mxu1 %v42431_v47 }
 0x753   :  { %24873 = vmatprep.mubr.f32.mxu1 %v46885_v61 }
 0x754   :  { %35899 = vmatmul.mubr.msk.f32.gmra.mrb[26].mxu1 %vm155_vm1, %v35897_v10  ;;  %v43637_v13 = vpop.permute.xlu1 %18630 }
 0x755   :  { %20383 = vrot.lane.b32.xlu1 %v42495_v59, %s39047_s1  ;;  %24944 = vmatprep.mubr.f32.mxu1 %v46885_v61 }
 0x756   :  { %20397 = vrot.lane.b32.xlu0 %v42919_v17, %s39047_s1 }
 0x758   :  { %35900 = vmatmul.mubr.msk.f32.vlgmr.msra.gmra.mrb[28].mxu1 %vm155_vm1, %v35896_v0  ;;  %v43644_v43 = vpop.permute.xlu1 %18634 }
 0x759   :  { %24958 = vmatpush1.msra.mxu1 %v42421_v38  ;;  %24950 = vmatprep.mubr.f32.mxu1 %v46885_v61 }
 0x75a   :  { %21028 = vrot.lane.b32.xlu0 %v42919_v17, %s39048_s17  ;;  %25109 = vmatprep.subr.mxu1 %v42445_v34 }
 0x75c   :  { %35901 = vmatmul.mubr.msk.f32.gmra.mrb[30].mxu1 %vm155_vm1, %v35897_v10  ;;  %v43655_v20 = vpop.permute.xlu1 %19757 }
 0x75d   :  { %25021 = vmatprep.mubr.f32.mxu1 %v46885_v61 }
 0x75e   :  { %21659 = vrot.lane.b32.xlu0 %v42919_v17, %s39036_s12 }
 0x760   :  { %35902 = vmatmul.mubr.msk.f32.vlgmr.msra.gmra.mrb[8].mxu1 %vm155_vm1, %v35896_v0 }
 0x761   :  { %25110 = vmatpush1.msra.mxu1 %v42441_v22  ;;  %25027 = vmatprep.mubr.f32.mxu1 %v46885_v61 }
 0x762   :  { %22289 = vrot.lane.b32.xlu0 %v42919_v17, %s39038_s28  ;;  %25186 = vmatprep.subr.mxu1 %v42465_v53 }
 0x764   :  { %35903 = vmatmul.mubr.msk.f32.gmra.mrb[10].mxu1 %vm155_vm1, %v35897_v10 }
 0x765   :  { %25173 = vmatprep.mubr.f32.mxu1 %v46885_v61 }
 0x766   :  { %22919 = vrot.lane.b32.xlu0 %v42919_v17, %s39040_s27 }
 0x768   :  { %35906 = vmatmul.mubr.msk.f32.vlgmr.msra.gmra.mrb[12].mxu1 %vm155_vm1, %v35896_v0 }
 0x769   :  { %25187 = vmatpush1.msra.mxu1 %v42459_v36  ;;  %25179 = vmatprep.mubr.f32.mxu1 %v46885_v61 }
 0x76a   :  { %28826 = vrot.lane.b32.xlu0 %v43517_v40, %s39040_s27  ;;  %25263 = vmatprep.subr.mxu1 %v42479_v57  ;;  %v43668_v57 = vpop.permute.xlu1 %19755  ;;  %v18615_v40 = vpop.permute.xlu0 %18614 }
 0x76b   :  { %v43679_v55 = vsel %vm46880_vm2, %v18615_v40, %v43599_v41  ;;  %v43692_v48 = vsel %vm46880_vm2, %v18613_v19, %v18615_v40 }
 0x76c   :  { %35907 = vmatmul.mubr.msk.f32.gmra.mrb[14].mxu1 %vm155_vm1, %v35897_v10  ;;  %46979 = vst [vmem:[#allocation96_spill] sm:$0xff] %v43679_v55  ;;  %46980 = vst [vmem:[#allocation97_spill] sm:$0xff] %v43692_v48 }
 0x76d   :  { %25250 = vmatprep.mubr.f32.mxu1 %v46885_v61 }
 0x76e   :  { %23549 = vrot.lane.b32.xlu0 %v42919_v17, %s39049_s24  ;;  %v43684_v31 = vpop.permute.xlu1 %19763  ;;  %v18619_v60 = vpop.permute.xlu0 %18618  ;;  %s39056_s24 = smov [#allocation2]  }
 0x76f   :  { %v43713_v19 = vsel %vm46880_vm2, %v43599_v41, %v18619_v60 }
 0x770   :  { %35908 = vmatmul.mubr.msk.f32.vlgmr.msra.gmra.mrb[16].mxu1 %vm155_vm1, %v35896_v0  ;;  %46982 = vst [vmem:[#allocation99_spill] sm:$0xff] %v43713_v19 }
 0x771   :  { %25264 = vmatpush1.msra.mxu1 %v42470_v4  ;;  %25256 = vmatprep.mubr.f32.mxu1 %v46885_v61 }
 0x772   :  { %24180 = vrot.lane.b32.xlu0 %v42919_v17, %s39050_s2  ;;  %25380 = vmatprep.subr.mxu1 %v43661_v5  ;;  %v43695_v14 = vpop.permute.xlu1 %19767 }
 0x774   :  { %35909 = vmatmul.mubr.msk.f32.gmra.mrb[18].mxu1 %vm155_vm1, %v35897_v10 }
 0x775   :  { %25327 = vmatprep.mubr.f32.mxu1 %v46885_v61 }
 0x776   :  { %19753 = vrot.lane.b32.xlu0 %v42495_v59, %s39030_s15  ;;  %v43709_v40 = vpop.permute.xlu1 %19775 }
 0x778   :  { %35910 = vmatmul.mubr.msk.f32.vlgmr.msra.gmra.mrb[20].mxu1 %vm155_vm1, %v35896_v0  ;;  %v43700_v0 = vsel %vm46880_vm2, %v18619_v60, %v43617_v44 }
 0x779   :  { %25381 = vmatpush1.msra.mxu1 %v43321_v15  ;;  %25333 = vmatprep.mubr.f32.mxu1 %v46885_v61  ;;  %v35912_v15 = vld [vmem:[%s46738_s3 + $0xb0] sm:$0xff]  ;;  %46981 = vst [vmem:[#allocation98_spill] sm:$0xff] %v43700_v0 }
 0x77a   :  { %18533 = vrot.lane.b32.xlu0 %v18480_v33, %s39031_s18  ;;  %25457 = vmatprep.subr.mxu1 %v43679_v55  ;;  %v18627_v33 = vpop.permute.xlu0 %18626  ;;  %v43726_v28 = vpop.permute.xlu1 %19777  ;;  %s39055_s18 = smov 80  }
 0x77b   :  { %v43721_v46 = vsel %vm46880_vm2, %v18627_v33, %v43626_v29 }
 0x77c   :  { %35911 = vmatmul.mubr.msk.f32.gmra.mrb[22].mxu1 %vm155_vm1, %v35897_v10  ;;  %v35913_v10 = vld [vmem:[%s46738_s3 + $0xb8] sm:$0xff]  ;;  %46983 = vst [vmem:[#allocation100_spill] sm:$0xff] %v43721_v46 }
 0x77d   :  { %25444 = vmatprep.mubr.f32.mxu1 %v46885_v61 }
 0x77e   :  { %v43715_v2 = vpop.permute.xlu0 %18624  ;;  %v43741_v6 = vpop.permute.xlu1 %19781 }
 0x77f   :  { %v43731_v41 = vsel %vm46880_vm2, %v43715_v2, %v18627_v33  ;;  %v43748_v33 = vsel %vm46880_vm2, %v43626_v29, %v43637_v13 }
 0x780   :  { %35914 = vmatmul.mubr.msk.f32.vlgmr.msra.gmra.mrb[24].mxu1 %vm155_vm1, %v35912_v15  ;;  %46984 = vst [vmem:[#allocation101_spill] sm:$0xff] %v43731_v41  ;;  %46986 = vst [vmem:[#allocation103_spill] sm:$0xff] %v43748_v33 }
 0x781   :  { %25458 = vmatpush1.msra.mxu1 %v43692_v48  ;;  %25450 = vmatprep.mubr.f32.mxu1 %v46885_v61 }
 0x782   :  { %25534 = vmatprep.subr.mxu1 %v43700_v0  ;;  %v18633_v60 = vpop.permute.xlu0 %18632  ;;  %v43751_v56 = vpop.permute.xlu1 %20387 }
 0x783   :  { %v43737_v12 = vsel %vm46880_vm2, %v43637_v13, %v18633_v60  ;;  %v43774_v42 = vsel %vm46880_vm2, %v18633_v60, %v43644_v43 }
 0x784   :  { %35915 = vmatmul.mubr.msk.f32.gmra.mrb[26].mxu1 %vm155_vm1, %v35913_v10  ;;  %46985 = vst [vmem:[#allocation102_spill] sm:$0xff] %v43737_v12  ;;  %46990 = vst [vmem:[#allocation107_spill] sm:$0xff] %v43774_v42 }
 0x785   :  { %25521 = vmatprep.mubr.f32.mxu1 %v46885_v61 }
 0x786   :  { %v43757_v3 = vpop.permute.xlu1 %20385 }
 0x788   :  { %35916 = vmatmul.mubr.msk.f32.vlgmr.msra.gmra.mrb[28].mxu1 %vm155_vm1, %v35912_v15 }
 0x789   :  { %25535 = vmatpush1.msra.mxu1 %v43713_v19  ;;  %25527 = vmatprep.mubr.f32.mxu1 %v46885_v61 }
 0x78a   :  { %25686 = vmatprep.subr.mxu1 %v43721_v46 }
 0x78c   :  { %35917 = vmatmul.mubr.msk.f32.gmra.mrb[30].mxu1 %vm155_vm1, %v35913_v10 }
 0x78d   :  { %25598 = vmatprep.mubr.f32.mxu1 %v46885_v61 }
 0x790   :  { %35918 = vmatmul.mubr.msk.f32.vlgmr.msra.gmra.mrb[8].mxu1 %vm155_vm1, %v35912_v15 }
 0x791   :  { %25687 = vmatpush1.msra.mxu1 %v43731_v41  ;;  %25604 = vmatprep.mubr.f32.mxu1 %v46885_v61 }
 0x792   :  { %25763 = vmatprep.subr.mxu1 %v43737_v12 }
 0x794   :  { %35919 = vmatmul.mubr.msk.f32.gmra.mrb[10].mxu1 %vm155_vm1, %v35913_v10 }
 0x795   :  { %25750 = vmatprep.mubr.f32.mxu1 %v46885_v61 }
 0x798   :  { %35922 = vmatmul.mubr.msk.f32.vlgmr.msra.gmra.mrb[12].mxu1 %vm155_vm1, %v35912_v15 }
 0x799   :  { %25764 = vmatpush1.msra.mxu1 %v43748_v33  ;;  %25756 = vmatprep.mubr.f32.mxu1 %v46885_v61 }
 0x79c   :  { %35923 = vmatmul.mubr.msk.f32.gmra.mrb[14].mxu1 %vm155_vm1, %v35913_v10 }
 0x79d   :  { %25827 = vmatprep.mubr.f32.mxu1 %v46885_v61 }
 0x7a0   :  { %35924 = vmatmul.mubr.msk.f32.vlgmr.msra.gmra.mrb[16].mxu1 %vm155_vm1, %v35912_v15 }
 0x7a1   :  { %25833 = vmatprep.mubr.f32.mxu1 %v46885_v61 }
 0x7a3   :  { %v43761_v29 = vpop.permute.xlu1 %26522 }
 0x7a4   :  { %46987 = vst [vmem:[#allocation104_spill] sm:$0xff] %v43761_v29  ;;  %v43763_v13 = vpop.permute.xlu0 %25370  ;;  %35925 = vmatmul.mubr.msk.f32.gmra.mrb[18].mxu1 %vm155_vm1, %v35913_v10 }
 0x7a5   :  { %46988 = vst [vmem:[#allocation105_spill] sm:$0xff] %v43763_v13  ;;  %v43769_v63 = vsel %vm46880_vm2, %v43644_v43, %v43763_v13  ;;  %25904 = vmatprep.mubr.f32.mxu1 %v46885_v61  ;;  %v43789_v43 = vsel %vm2954_vm4, %v43668_v57, %v43655_v20 }
 0x7a6   :  { %46989 = vst [vmem:[#allocation106_spill] sm:$0xff] %v43769_v63  ;;  %25840 = vmatprep.subr.mxu1 %v43769_v63 }
 0x7a7   :  { %25841 = vmatpush1.msra.mxu1 %v43774_v42  ;;  %v43778_v37 = vpop.permute.xlu1 %27098 }
 0x7a8   :  { %46991 = vst [vmem:[#allocation108_spill] sm:$0xff] %v43778_v37  ;;  %v19760_v32 = vpop.permute.xlu0 %19759  ;;  %35926 = vmatmul.mubr.msk.f32.vlgmr.msra.gmra.mrb[20].mxu1 %vm155_vm1, %v35912_v15 }
 0x7a9   :  { %v43783_v11 = vsel %vm2954_vm4, %v43655_v20, %v19760_v32  ;;  %25910 = vmatprep.mubr.f32.mxu1 %v46885_v61  ;;  %v43804_v20 = vld [vmem:[%s46738_s3 + $0xc0] sm:$0xff] }
 0x7aa   :  { %46992 = vst [vmem:[#allocation109_spill] sm:$0xff] %v43783_v11  ;;  %25956 = vmatprep.subr.mxu1 %v43783_v11 }
 0x7ab   :  { %25957 = vmatpush1.msra.mxu1 %v43789_v43  ;;  %v43793_v60 = vpop.permute.xlu1 %27674 }
 0x7ac   :  { %v19762_v63 = vpop.permute.xlu0 %19761  ;;  %35927 = vmatmul.mubr.msk.f32.gmra.mrb[22].mxu1 %vm155_vm1, %v35913_v10 }
 0x7ad   :  { %v43798_v15 = vsel %vm2954_vm4, %v19762_v63, %v43684_v31  ;;  %26020 = vmatprep.mubr.f32.mxu1 %v46885_v61  ;;  %v43810_v30 = vsel %vm2954_vm4, %v19760_v32, %v19762_v63  ;;  %v43829_v63 = vld [vmem:[%s46738_s3 + $0x10] sm:$0xff] }
 0x7ae   :  { %26033 = vmatprep.subr.mxu1 %v43798_v15  ;;  %46993 = vst [vmem:[#allocation110_spill] sm:$0xff] %v43810_v30 }
 0x7af   :  { %v43807_v13 = vpop.permute.xlu1 %28250 }
 0x7b0   :  { %v19766_v51 = vpop.permute.xlu0 %19765  ;;  %35930 = vmatmul.mubr.msk.f32.vlgmr.msra.gmra.mrb[24].mxu1 %vm155_vm1, %v43804_v20 }
 0x7b1   :  { %26034 = vmatpush1.msra.mxu1 %v43810_v30  ;;  %v43817_v10 = vsel %vm2954_vm4, %v19766_v51, %v43695_v14  ;;  %26026 = vmatprep.mubr.f32.mxu1 %v46885_v61 }
 0x7b2   :  { %26110 = vmatprep.subr.mxu1 %v43817_v10 }
 0x7b3   :  { %v18607_v32 = vpop.permute.xlu1 %18606 }
 0x7b4   :  { %v18636_v49 = vsel %vm46880_vm2, %v18607_v32, %v43309_v25  ;;  %v19774_v54 = vpop.permute.xlu0 %19773  ;;  %35931 = vmatmul.mubr.msk.f32.gmra.mrb[26].mxu1 %vm155_vm1, %v43823_v52  ;;  %v43844_v25 = vld [vmem:[%s46738_s3 + $0x18] sm:$0xff]  ;;  %v43848_v32 = vsel %vm2954_vm4, %v43684_v31, %v19766_v51 }
 0x7b5   :  { %18671 = vmatpush1.msra.mxu0 %v18636_v49  ;;  %26097 = vmatprep.mubr.f32.mxu1 %v46885_v61 }
 0x7b6   :  { %35740 = vmatmul.mubr.msk.f32.vlgmr.msra.gmra.mrb[12].mxu0 %vm155_vm1, %v43829_v63  ;;  %18747 = vmatprep.subr.mxu0 %v43692_v48 }
 0x7b7   :  { %18748 = vmatpush1.msra.mxu0 %v43661_v5  ;;  %18740 = vmatprep.mubr.f32.mxu0 %v46885_v61  ;;  %v43858_v5 = vsel %vm2954_vm4, %v19774_v54, %v43709_v40  ;;  %v18623_v51 = vpop.permute.xlu1 %18622 }
 0x7b8   :  { %v43850_v49 = vpop.permute.xlu0 %19771  ;;  %18824 = vmatprep.subr.mxu0 %v43713_v19  ;;  %35932 = vmatmul.mubr.msk.f32.vlgmr.msra.gmra.mrb[28].mxu1 %vm155_vm1, %v43804_v20  ;;  %v43873_v19 = vsel %vm46880_vm2, %v43617_v44, %v18623_v51  ;;  %v43905_v44 = vsel %vm2954_vm4, %v43709_v40, %v43726_v28  ;;  %v43930_v40 = vsel %vm46880_vm2, %v18623_v51, %v43715_v2 }
 0x7b9   :  { %26111 = vmatpush1.msra.mxu1 %v43848_v32  ;;  %26103 = vmatprep.mubr.f32.mxu1 %v46885_v61  ;;  %46994 = vst [vmem:[#allocation111_spill] sm:$0xff] %v43873_v19  ;;  %v43878_v48 = vsel %vm2954_vm4, %v43850_v49, %v19774_v54  ;;  %v43967_v51 = vsel %vm20413_vm3, %v43757_v3, %v43751_v56 }
 0x7ba   :  { %35741 = vmatmul.mubr.msk.f32.gmra.mrb[14].mxu0 %vm155_vm1, %v43844_v25  ;;  %26262 = vmatprep.subr.mxu1 %v43858_v5 }
 0x7bb   :  { %18811 = vmatprep.mubr.f32.mxu0 %v46885_v61 }
 0x7bc   :  { %v19780_v31 = vpop.permute.xlu0 %19779  ;;  %35933 = vmatmul.mubr.msk.f32.gmra.mrb[30].mxu1 %vm155_vm1, %v43823_v52 }
 0x7bd   :  { %26174 = vmatprep.mubr.f32.mxu1 %v46885_v61 }
 0x7be   :  { %35742 = vmatmul.mubr.msk.f32.vlgmr.msra.gmra.mrb[16].mxu0 %vm155_vm1, %v43829_v63 }
 0x7bf   :  { %18825 = vmatpush1.msra.mxu0 %v43679_v55  ;;  %18817 = vmatprep.mubr.f32.mxu0 %v46885_v61  ;;  %v43888_v55 = vsel %vm2954_vm4, %v43726_v28, %v19780_v31 }
 0x7c0   :  { %18901 = vmatprep.subr.mxu0 %v43873_v19  ;;  %v43881_v58 = vpop.permute.xlu0 %25946  ;;  %35934 = vmatmul.mubr.msk.f32.vlgmr.msra.gmra.mrb[8].mxu1 %vm155_vm1, %v43804_v20 }
 0x7c1   :  { %46995 = vst [vmem:[#allocation112_spill] sm:$0xff] %v43881_v58  ;;  %26263 = vmatpush1.msra.mxu1 %v43878_v48  ;;  %26180 = vmatprep.mubr.f32.mxu1 %v46885_v61 }
 0x7c2   :  { %35743 = vmatmul.mubr.msk.f32.gmra.mrb[18].mxu0 %vm155_vm1, %v43844_v25  ;;  %26339 = vmatprep.subr.mxu1 %v43888_v55 }
 0x7c3   :  { %18888 = vmatprep.mubr.f32.mxu0 %v46885_v61 }
 0x7c4   :  { %v20390_v54 = vpop.permute.xlu0 %20389  ;;  %35935 = vmatmul.mubr.msk.f32.gmra.mrb[10].mxu1 %vm155_vm1, %v43823_v52 }
 0x7c5   :  { %26326 = vmatprep.mubr.f32.mxu1 %v46885_v61  ;;  %v43948_v2 = vsel %vm20413_vm3, %v43751_v56, %v20390_v54 }
 0x7c6   :  { %35744 = vmatmul.mubr.msk.f32.vlgmr.msra.gmra.mrb[20].mxu0 %vm155_vm1, %v43829_v63 }
 0x7c7   :  { %18902 = vmatpush1.msra.mxu0 %v43700_v0  ;;  %18894 = vmatprep.mubr.f32.mxu0 %v46885_v61  ;;  %v43916_v0 = vsel %vm2954_vm4, %v43741_v6, %v43881_v58 }
 0x7c8   :  { %18976 = vmatprep.subr.mxu0 %v43731_v41  ;;  %v43908_v19 = vpop.permute.xlu0 %20397  ;;  %35938 = vmatmul.mubr.msk.f32.vlgmr.msra.gmra.mrb[12].mxu1 %vm155_vm1, %v43804_v20  ;;  %46996 = vst [vmem:[#allocation113_spill] sm:$0xff] %v43916_v0 }
 0x7c9   :  { %26340 = vmatpush1.msra.mxu1 %v43905_v44  ;;  %26332 = vmatprep.mubr.f32.mxu1 %v46885_v61 }
 0x7ca   :  { %35745 = vmatmul.mubr.msk.f32.gmra.mrb[22].mxu0 %vm155_vm1, %v43844_v25  ;;  %26416 = vmatprep.subr.mxu1 %v43916_v0  ;;  %v43938_v0 = vsel %vm2954_vm4, %v19780_v31, %v43741_v6 }
 0x7cb   :  { %18965 = vmatprep.mubr.f32.mxu0 %v46885_v61  ;;  %46997 = vst [vmem:[#allocation114_spill] sm:$0xff] %v43938_v0 }
 0x7cc   :  { %v43923_v28 = vpop.permute.xlu0 %21028  ;;  %35939 = vmatmul.mubr.msk.f32.gmra.mrb[14].mxu1 %vm155_vm1, %v43823_v52 }
 0x7cd   :  { %26403 = vmatprep.mubr.f32.mxu1 %v46885_v61 }
 0x7ce   :  { %35746 = vmatmul.mubr.msk.f32.vlgmr.msra.gmra.mrb[24].mxu0 %vm155_vm1, %v43829_v63 }
 0x7cf   :  { %18977 = vmatpush1.msra.mxu0 %v43930_v40  ;;  %18970 = vmatprep.mubr.f32.mxu0 %v46885_v61 }
 0x7d0   :  { %19053 = vmatprep.subr.mxu0 %v43748_v33  ;;  %v43941_v58 = vpop.permute.xlu0 %21659  ;;  %35940 = vmatmul.mubr.msk.f32.vlgmr.msra.gmra.mrb[16].mxu1 %vm155_vm1, %v43804_v20  ;;  %v46998_v33 = vld [vmem:[#allocation6_spill] sm:$0xff] }
 0x7d1   :  { %26417 = vmatpush1.msra.mxu1 %v43938_v0  ;;  %26409 = vmatprep.mubr.f32.mxu1 %v46885_v61  ;;  %v44007_v41 = vsel %vm20413_vm3, %v46998_v33, %v43908_v19 }
 0x7d2   :  { %35747 = vmatmul.mubr.msk.f32.gmra.mrb[26].mxu0 %vm155_vm1, %v43844_v25  ;;  %26532 = vmatprep.subr.mxu1 %v43948_v2 }
 0x7d3   :  { %19040 = vmatprep.mubr.f32.mxu0 %v46885_v61 }
 0x7d4   :  { %v43955_v6 = vpop.permute.xlu0 %22289  ;;  %35941 = vmatmul.mubr.msk.f32.gmra.mrb[18].mxu1 %vm155_vm1, %v43823_v52 }
 0x7d5   :  { %26480 = vmatprep.mubr.f32.mxu1 %v46885_v61 }
 0x7d6   :  { %35748 = vmatmul.mubr.msk.f32.vlgmr.msra.gmra.mrb[28].mxu0 %vm155_vm1, %v43829_v63 }
 0x7d7   :  { %19054 = vmatpush1.msra.mxu0 %v43721_v46  ;;  %19046 = vmatprep.mubr.f32.mxu0 %v46885_v61 }
 0x7d8   :  { %19130 = vmatprep.subr.mxu0 %v43774_v42  ;;  %v43970_v31 = vpop.permute.xlu0 %22919  ;;  %35942 = vmatmul.mubr.msk.f32.vlgmr.msra.gmra.mrb[20].mxu1 %vm155_vm1, %v43804_v20  ;;  %v43988_v42 = vld [vmem:[%s46738_s3 + $0xd0] sm:$0xff] }
 0x7d9   :  { %26533 = vmatpush1.msra.mxu1 %v43967_v51  ;;  %26486 = vmatprep.mubr.f32.mxu1 %v46885_v61 }
 0x7da   :  { %35749 = vmatmul.mubr.msk.f32.gmra.mrb[30].mxu0 %vm155_vm1, %v43844_v25  ;;  %26609 = vmatprep.subr.mxu1 %v42600_v9  ;;  %v43996_v9 = vsel %vm20413_vm3, %v20390_v54, %v42592_v62  ;;  %v44013_v62 = vld [vmem:[%s46738_s3 + $0xd8] sm:$0xff] }
 0x7db   :  { %19117 = vmatprep.mubr.f32.mxu0 %v46885_v61  ;;  %v46999_v54 = vld [vmem:[#allocation7_spill] sm:$0xff] }
 0x7dc   :  { %v43980_v56 = vpop.permute.xlu0 %28826  ;;  %35943 = vmatmul.mubr.msk.f32.gmra.mrb[22].mxu1 %vm155_vm1, %v43823_v52 }
 0x7dd   :  { %26596 = vmatprep.mubr.f32.mxu1 %v46885_v61 }
 0x7de   :  { %35750 = vmatmul.mubr.msk.f32.vlgmr.msra.gmra.mrb[32].mxu0 %vm155_vm1, %v43829_v63 }
 0x7df   :  { %19131 = vmatpush1.msra.mxu0 %v43737_v12  ;;  %19123 = vmatprep.mubr.f32.mxu0 %v46885_v61  ;;  %v47000_v12 = vld [vmem:[#allocation13_spill] sm:$0xff] }
 0x7e0   :  { %19213 = vmatprep.subr.mxu0 %v42486_v39  ;;  %v43999_v46 = vpop.permute.xlu0 %23549  ;;  %35946 = vmatmul.mubr.msk.f32.vlgmr.msra.gmra.mrb[24].mxu1 %vm155_vm1, %v43988_v42 }
 0x7e1   :  { %26610 = vmatpush1.msra.mxu1 %v43996_v9  ;;  %26602 = vmatprep.mubr.f32.mxu1 %v46885_v61 }
 0x7e2   :  { %35751 = vmatmul.mubr.msk.f32.gmra.mrb[34].mxu0 %vm155_vm1, %v43844_v25  ;;  %26686 = vmatprep.subr.mxu1 %v44007_v41 }
 0x7e3   :  { %19194 = vmatprep.mubr.f32.mxu0 %v46885_v61 }
 0x7e4   :  { %v44019_v39 = vpop.permute.xlu0 %24180  ;;  %35947 = vmatmul.mubr.msk.f32.gmra.mrb[26].mxu1 %vm155_vm1, %v44013_v62 }
 0x7e5   :  { %26673 = vmatprep.mubr.f32.mxu1 %v46885_v61 }
 0x7e6   :  { %35752 = vmatmul.mubr.msk.f32.vlgmr.msra.gmra.mrb[36].mxu0 %vm155_vm1, %v43829_v63 }
 0x7e7   :  { %19214 = vmatpush1.msra.mxu0 %v42495_v59  ;;  %19200 = vmatprep.mubr.f32.mxu0 %v46885_v61  ;;  %v44042_v59 = vld [vmem:[%s46738_s3] sm:$0xff] }
 0x7e8   :  { %19290 = vmatprep.subr.mxu0 %v42500_v21  ;;  %v44029_v33 = vpop.permute.xlu0 %19753  ;;  %35948 = vmatmul.mubr.msk.f32.vlgmr.msra.gmra.mrb[28].mxu1 %vm155_vm1, %v43988_v42 }
 0x7e9   :  { %26687 = vmatpush1.msra.mxu1 %v46999_v54  ;;  %26679 = vmatprep.mubr.f32.mxu1 %v46885_v61 }
 0x7ea   :  { %35753 = vmatmul.mubr.msk.f32.gmra.mrb[38].mxu0 %vm155_vm1, %v43844_v25  ;;  %26838 = vmatprep.subr.mxu1 %v47000_v12  ;;  %v44057_v12 = vld [vmem:[%s46738_s3 + $0x8] sm:$0xff] }
 0x7eb   :  { %19277 = vmatprep.mubr.f32.mxu0 %v46885_v61 }
 0x7ec   :  { %v18534_v63 = vpop.permute.xlu0 %18533  ;;  %35949 = vmatmul.mubr.msk.f32.gmra.mrb[30].mxu1 %vm155_vm1, %v44013_v62 }
 0x7ed   :  { %v18551_v54 = vsel %vm3691_vm5, %v43510_v18, %v18534_v63  ;;  %26750 = vmatprep.mubr.f32.mxu1 %v46885_v61  ;;  %v47002_v18 = vld [vmem:[#allocation16_spill] sm:$0xff]  ;;  %v47004_v63 = vld [vmem:[#allocation14_spill] sm:$0xff] }
 0x7ee   :  { %v18585_v25 = vmax.f32 %v43228_v45, %v18551_v54  ;;  %35754 = vmatmul.mubr.msk.f32.vlgmr.msra.gmra.mrb[12].mxu0 %vm155_vm1, %v44042_v59  ;;  %v47001_v45 = vld [vmem:[#allocation9_spill] sm:$0xff]  ;;  %v47003_v54 = vld [vmem:[#allocation12_spill] sm:$0xff] }
 0x7ef   :  { %19291 = vmatpush1.msra.mxu0 %v42489_v23  ;;  %19283 = vmatprep.mubr.f32.mxu0 %v46885_v61 }
 0x7f0   :  { %19367 = vmatprep.subr.mxu0 %v42421_v38  ;;  %31703 = vrot.lane.b32.xlu1 %v18585_v25, %s39030_s15 }
 0x7f1   :  { %31127 = vrot.lane.b32.xlu0 %v18585_v25, %s39028_s13  ;;  %35950 = vmatmul.mubr.msk.f32.vlgmr.msra.gmra.mrb[8].mxu1 %vm155_vm1, %v43988_v42 }
 0x7f2   :  { %26839 = vmatpush1.msra.mxu1 %v47001_v45  ;;  %35755 = vmatmul.mubr.msk.f32.gmra.mrb[14].mxu0 %vm155_vm1, %v44057_v12 }
 0x7f3   :  { %26915 = vmatprep.subr.mxu1 %v47002_v18  ;;  %26756 = vmatprep.mubr.f32.mxu1 %v46885_v61  ;;  %v47011_v18 = vld [vmem:[#allocation19_spill] sm:$0xff] }
 0x7f4   :  { %32855 = vrot.lane.b32.xlu1 %v18585_v25, %s39048_s17  ;;  %19354 = vmatprep.mubr.f32.mxu0 %v46885_v61  ;;  %s39053_s17 = smov 40  }
 0x7f5   :  { %32279 = vrot.lane.b32.xlu0 %v18585_v25, %s39047_s1  ;;  %35951 = vmatmul.mubr.msk.f32.gmra.mrb[10].mxu1 %vm155_vm1, %v44013_v62  ;;  %v44088_v25 = vsel %vm20413_vm3, %v47004_v63, %v43761_v29  ;;  %v47006_v63 = vld [vmem:[#allocation15_spill] sm:$0xff] }
 0x7f6   :  { %35756 = vmatmul.mubr.msk.f32.vlgmr.msra.gmra.mrb[16].mxu0 %vm155_vm1, %v44042_v59  ;;  %26902 = vmatprep.mubr.f32.mxu1 %v46885_v61  ;;  %47005 = vst [vmem:[#allocation6_spill] sm:$0xff] %v44088_v25  ;;  %v47009_v29 = vld [vmem:[#allocation23_spill] sm:$0xff] }
 0x7f7   :  { %19368 = vmatpush1.msra.mxu0 %v42433_v35  ;;  %19360 = vmatprep.mubr.f32.mxu0 %v46885_v61 }
 0x7f8   :  { %19444 = vmatprep.subr.mxu0 %v42919_v17 }
 0x7f9   :  { %35954 = vmatmul.mubr.msk.f32.vlgmr.msra.gmra.mrb[12].mxu1 %vm155_vm1, %v43988_v42 }
 0x7fa   :  { %26916 = vmatpush1.msra.mxu1 %v47003_v54  ;;  %35757 = vmatmul.mubr.msk.f32.gmra.mrb[18].mxu0 %vm155_vm1, %v44057_v12  ;;  %v44151_v54 = vld [vmem:[%s46738_s3 + $0xe8] sm:$0xff] }
 0x7fb   :  { %26992 = vmatprep.subr.mxu1 %v44088_v25  ;;  %26908 = vmatprep.mubr.f32.mxu1 %v46885_v61  ;;  %v47007_v25 = vld [vmem:[#allocation20_spill] sm:$0xff] }
 0x7fc   :  { %19431 = vmatprep.mubr.f32.mxu0 %v46885_v61 }
 0x7fd   :  { %35955 = vmatmul.mubr.msk.f32.gmra.mrb[14].mxu1 %vm155_vm1, %v44013_v62 }
 0x7fe   :  { %35758 = vmatmul.mubr.msk.f32.vlgmr.msra.gmra.mrb[20].mxu0 %vm155_vm1, %v44042_v59  ;;  %26979 = vmatprep.mubr.f32.mxu1 %v46885_v61 }
 0x7ff   :  { %19445 = vmatpush1.msra.mxu0 %v42431_v47  ;;  %19437 = vmatprep.mubr.f32.mxu0 %v46885_v61 }
 0x800   :  { %19519 = vmatprep.subr.mxu0 %v42441_v22 }
 0x801   :  { %35956 = vmatmul.mubr.msk.f32.vlgmr.msra.gmra.mrb[16].mxu1 %vm155_vm1, %v43988_v42 }
 0x802   :  { %26993 = vmatpush1.msra.mxu1 %v47006_v63  ;;  %35759 = vmatmul.mubr.msk.f32.gmra.mrb[22].mxu0 %vm155_vm1, %v44057_v12  ;;  %v44146_v63 = vsel %vm21044_vm11, %v47011_v18, %v43923_v28  ;;  %v47012_v18 = vld [vmem:[#allocation21_spill] sm:$0xff] }
 0x803   :  { %27108 = vmatprep.subr.mxu1 %v47007_v25  ;;  %26985 = vmatprep.mubr.f32.mxu1 %v46885_v61  ;;  %v47008_v25 = vld [vmem:[#allocation17_spill] sm:$0xff] }
 0x804   :  { %19508 = vmatprep.mubr.f32.mxu0 %v46885_v61 }
 0x805   :  { %35957 = vmatmul.mubr.msk.f32.gmra.mrb[18].mxu1 %vm155_vm1, %v44013_v62 }
 0x806   :  { %35760 = vmatmul.mubr.msk.f32.vlgmr.msra.gmra.mrb[40].mxu0 %vm155_vm1, %v44042_v59  ;;  %27056 = vmatprep.mubr.f32.mxu1 %v46885_v61 }
 0x807   :  { %19520 = vmatpush1.msra.mxu0 %v42453_v50  ;;  %19513 = vmatprep.mubr.f32.mxu0 %v46885_v61 }
 0x808   :  { %19596 = vmatprep.subr.mxu0 %v42459_v36 }
 0x809   :  { %35958 = vmatmul.mubr.msk.f32.vlgmr.msra.gmra.mrb[20].mxu1 %vm155_vm1, %v43988_v42 }
 0x80a   :  { %27109 = vmatpush1.msra.mxu1 %v47008_v25  ;;  %35761 = vmatmul.mubr.msk.f32.gmra.mrb[42].mxu0 %vm155_vm1, %v44057_v12  ;;  %v44133_v25 = vld [vmem:[%s46738_s3 + $0xe0] sm:$0xff] }
 0x80b   :  { %27185 = vmatprep.subr.mxu1 %v47009_v29  ;;  %27062 = vmatprep.mubr.f32.mxu1 %v46885_v61  ;;  %v47010_v29 = vld [vmem:[#allocation18_spill] sm:$0xff] }
 0x80c   :  { %19583 = vmatprep.mubr.f32.mxu0 %v46885_v61 }
 0x80d   :  { %35959 = vmatmul.mubr.msk.f32.gmra.mrb[22].mxu1 %vm155_vm1, %v44013_v62 }
 0x80e   :  { %35762 = vmatmul.mubr.msk.f32.vlgmr.msra.gmra.mrb[28].mxu0 %vm155_vm1, %v44042_v59  ;;  %27172 = vmatprep.mubr.f32.mxu1 %v46885_v61 }
 0x80f   :  { %19597 = vmatpush1.msra.mxu0 %v42445_v34  ;;  %19589 = vmatprep.mubr.f32.mxu0 %v46885_v61 }
 0x810   :  { %19673 = vmatprep.subr.mxu0 %v42470_v4 }
 0x811   :  { %35962 = vmatmul.mubr.msk.f32.vlgmr.msra.gmra.mrb[24].mxu1 %vm155_vm1, %v44133_v25 }
 0x812   :  { %27186 = vmatpush1.msra.mxu1 %v47010_v29  ;;  %35763 = vmatmul.mubr.msk.f32.gmra.mrb[30].mxu0 %vm155_vm1, %v44057_v12  ;;  %v47013_v29 = vld [vmem:[#allocation28_spill] sm:$0xff] }
 0x813   :  { %27262 = vmatprep.subr.mxu1 %v44146_v63  ;;  %27178 = vmatprep.mubr.f32.mxu1 %v46885_v61 }
 0x814   :  { %19660 = vmatprep.mubr.f32.mxu0 %v46885_v61 }
 0x815   :  { %35963 = vmatmul.mubr.msk.f32.gmra.mrb[26].mxu1 %vm155_vm1, %v44151_v54 }
 0x816   :  { %35764 = vmatmul.mubr.msk.f32.vlgmr.msra.gmra.mrb[32].mxu0 %vm155_vm1, %v44042_v59  ;;  %27249 = vmatprep.mubr.f32.mxu1 %v46885_v61 }
 0x817   :  { %19674 = vmatpush1.msra.mxu0 %v42465_v53  ;;  %19666 = vmatprep.mubr.f32.mxu0 %v46885_v61 }
 0x818   :  { %19817 = vmatprep.subr.mxu0 %v43789_v43  ;;  %v19783_v43 = vsel %vm2954_vm4, %v44029_v33, %v43668_v57  ;;  %v47015_v57 = vld [vmem:[#allocation32_spill] sm:$0xff] }
 0x819   :  { %35964 = vmatmul.mubr.msk.f32.vlgmr.msra.gmra.mrb[28].mxu1 %vm155_vm1, %v44133_v25  ;;  %v44194_v33 = vld [vmem:[%s46738_s3 + $0x20] sm:$0xff] }
 0x81a   :  { %27263 = vmatpush1.msra.mxu1 %v47012_v18  ;;  %35765 = vmatmul.mubr.msk.f32.gmra.mrb[34].mxu0 %vm155_vm1, %v44057_v12  ;;  %v47014_v18 = vld [vmem:[#allocation24_spill] sm:$0xff] }
 0x81b   :  { %27414 = vmatprep.subr.mxu1 %v47013_v29  ;;  %27255 = vmatprep.mubr.f32.mxu1 %v46885_v61  ;;  %v44181_v29 = vpop.permute.xlu1 %29402 }
 0x81c   :  { %19737 = vmatprep.mubr.f32.mxu0 %v46885_v61 }
 0x81d   :  { %35965 = vmatmul.mubr.msk.f32.gmra.mrb[30].mxu1 %vm155_vm1, %v44151_v54 }
 0x81e   :  { %35766 = vmatmul.mubr.msk.f32.vlgmr.msra.gmra.mrb[36].mxu0 %vm155_vm1, %v44042_v59  ;;  %27326 = vmatprep.mubr.f32.mxu1 %v46885_v61 }
 0x81f   :  { %19818 = vmatpush1.msra.mxu0 %v19783_v43  ;;  %19743 = vmatprep.mubr.f32.mxu0 %v46885_v61  ;;  %v44199_v59 = vpop.permute.xlu1 %29978  ;;  %v47016_v43 = vld [vmem:[#allocation27_spill] sm:$0xff] }
 0x820   :  { %19894 = vmatprep.subr.mxu0 %v43810_v30 }
 0x821   :  { %35966 = vmatmul.mubr.msk.f32.vlgmr.msra.gmra.mrb[8].mxu1 %vm155_vm1, %v44133_v25 }
 0x822   :  { %27415 = vmatpush1.msra.mxu1 %v47014_v18  ;;  %35767 = vmatmul.mubr.msk.f32.gmra.mrb[38].mxu0 %vm155_vm1, %v44057_v12  ;;  %v44209_v12 = vld [vmem:[%s46738_s3 + $0x28] sm:$0xff] }
 0x823   :  { %27491 = vmatprep.subr.mxu1 %v47015_v57  ;;  %27332 = vmatprep.mubr.f32.mxu1 %v46885_v61  ;;  %v47017_v57 = vld [vmem:[#allocation25_spill] sm:$0xff]  ;;  %v19770_v30 = vpop.permute.xlu1 %19769 }
 0x824   :  { %19881 = vmatprep.mubr.f32.mxu0 %v46885_v61 }
 0x825   :  { %35967 = vmatmul.mubr.msk.f32.gmra.mrb[10].mxu1 %vm155_vm1, %v44151_v54 }
 0x826   :  { %35770 = vmatmul.mubr.msk.f32.vlgmr.msra.gmra.mrb[12].mxu0 %vm155_vm1, %v44194_v33  ;;  %27478 = vmatprep.mubr.f32.mxu1 %v46885_v61 }
 0x827   :  { %19895 = vmatpush1.msra.mxu0 %v43783_v11  ;;  %19887 = vmatprep.mubr.f32.mxu0 %v46885_v61  ;;  %v44220_v11 = vsel %vm21044_vm11, %v47017_v57, %v43778_v37  ;;  %v44233_v57 = vsel %vm2954_vm4, %v43695_v14, %v19770_v30  ;;  %v47020_v37 = vld [vmem:[#allocation36_spill] sm:$0xff]  ;;  %v47022_v14 = vld [vmem:[#allocation39_spill] sm:$0xff] }
 0x828   :  { %19971 = vmatprep.subr.mxu0 %v43848_v32  ;;  %47018 = vst [vmem:[#allocation9_spill] sm:$0xff] %v44220_v11 }
 0x829   :  { %35970 = vmatmul.mubr.msk.f32.vlgmr.msra.gmra.mrb[12].mxu1 %vm155_vm1, %v44133_v25 }
 0x82a   :  { %27492 = vmatpush1.msra.mxu1 %v47016_v43  ;;  %35771 = vmatmul.mubr.msk.f32.gmra.mrb[14].mxu0 %vm155_vm1, %v44209_v12  ;;  %v44291_v43 = vld [vmem:[%s46738_s3 + $0xf8] sm:$0xff] }
 0x82b   :  { %27568 = vmatprep.subr.mxu1 %v44220_v11  ;;  %27484 = vmatprep.mubr.f32.mxu1 %v46885_v61  ;;  %v47019_v11 = vld [vmem:[#allocation30_spill] sm:$0xff] }
 0x82c   :  { %19958 = vmatprep.mubr.f32.mxu0 %v46885_v61 }
 0x82d   :  { %35971 = vmatmul.mubr.msk.f32.gmra.mrb[14].mxu1 %vm155_vm1, %v44151_v54 }
 0x82e   :  { %35772 = vmatmul.mubr.msk.f32.vlgmr.msra.gmra.mrb[16].mxu0 %vm155_vm1, %v44194_v33  ;;  %27555 = vmatprep.mubr.f32.mxu1 %v46885_v61 }
 0x82f   :  { %19972 = vmatpush1.msra.mxu0 %v43798_v15  ;;  %19964 = vmatprep.mubr.f32.mxu0 %v46885_v61 }
 0x830   :  { %20048 = vmatprep.subr.mxu0 %v44233_v57 }
 0x831   :  { %35972 = vmatmul.mubr.msk.f32.vlgmr.msra.gmra.mrb[16].mxu1 %vm155_vm1, %v44133_v25 }
 0x832   :  { %27569 = vmatpush1.msra.mxu1 %v47019_v11  ;;  %35773 = vmatmul.mubr.msk.f32.gmra.mrb[18].mxu0 %vm155_vm1, %v44209_v12  ;;  %v44265_v11 = vsel %vm2954_vm4, %v19770_v30, %v43850_v49  ;;  %v47023_v30 = vld [vmem:[#allocation35_spill] sm:$0xff]  ;;  %v47024_v49 = vld [vmem:[#allocation29_spill] sm:$0xff] }
 0x833   :  { %27684 = vmatprep.subr.mxu1 %v47020_v37  ;;  %27561 = vmatprep.mubr.f32.mxu1 %v46885_v61  ;;  %v47021_v37 = vld [vmem:[#allocation33_spill] sm:$0xff] }
 0x834   :  { %20035 = vmatprep.mubr.f32.mxu0 %v46885_v61 }
 0x835   :  { %35973 = vmatmul.mubr.msk.f32.gmra.mrb[18].mxu1 %vm155_vm1, %v44151_v54 }
 0x836   :  { %35774 = vmatmul.mubr.msk.f32.vlgmr.msra.gmra.mrb[20].mxu0 %vm155_vm1, %v44194_v33  ;;  %27632 = vmatprep.mubr.f32.mxu1 %v46885_v61 }
 0x837   :  { %20049 = vmatpush1.msra.mxu0 %v43817_v10  ;;  %20041 = vmatprep.mubr.f32.mxu0 %v46885_v61 }
 0x838   :  { %20123 = vmatprep.subr.mxu0 %v43878_v48 }
 0x839   :  { %35974 = vmatmul.mubr.msk.f32.vlgmr.msra.gmra.mrb[20].mxu1 %vm155_vm1, %v44133_v25 }
 0x83a   :  { %27685 = vmatpush1.msra.mxu1 %v47021_v37  ;;  %35775 = vmatmul.mubr.msk.f32.gmra.mrb[22].mxu0 %vm155_vm1, %v44209_v12  ;;  %v44273_v37 = vld [vmem:[%s46738_s3 + $0xf0] sm:$0xff] }
 0x83b   :  { %27761 = vmatprep.subr.mxu1 %v47022_v14  ;;  %27638 = vmatprep.mubr.f32.mxu1 %v46885_v61  ;;  %v44286_v14 = vsel %vm7376_vm10, %v47024_v49, %v43941_v58  ;;  %v47026_v49 = vld [vmem:[#allocation45_spill] sm:$0xff] }
 0x83c   :  { %20112 = vmatprep.mubr.f32.mxu0 %v46885_v61 }
 0x83d   :  { %35975 = vmatmul.mubr.msk.f32.gmra.mrb[22].mxu1 %vm155_vm1, %v44151_v54 }
 0x83e   :  { %35776 = vmatmul.mubr.msk.f32.vlgmr.msra.gmra.mrb[44].mxu0 %vm155_vm1, %v44194_v33  ;;  %27748 = vmatprep.mubr.f32.mxu1 %v46885_v61 }
 0x83f   :  { %20124 = vmatpush1.msra.mxu0 %v44265_v11  ;;  %20117 = vmatprep.mubr.f32.mxu0 %v46885_v61 }
 0x840   :  { %20200 = vmatprep.subr.mxu0 %v43905_v44 }
 0x841   :  { %35978 = vmatmul.mubr.msk.f32.vlgmr.msra.gmra.mrb[24].mxu1 %vm155_vm1, %v44273_v37 }
 0x842   :  { %27762 = vmatpush1.msra.mxu1 %v47023_v30  ;;  %35777 = vmatmul.mubr.msk.f32.gmra.mrb[46].mxu0 %vm155_vm1, %v44209_v12  ;;  %v47025_v30 = vld [vmem:[#allocation37_spill] sm:$0xff] }
 0x843   :  { %27838 = vmatprep.subr.mxu1 %v44286_v14  ;;  %27754 = vmatprep.mubr.f32.mxu1 %v46885_v61 }
 0x844   :  { %20187 = vmatprep.mubr.f32.mxu0 %v46885_v61 }
 0x845   :  { %35979 = vmatmul.mubr.msk.f32.gmra.mrb[26].mxu1 %vm155_vm1, %v44291_v43 }
 0x846   :  { %35778 = vmatmul.mubr.msk.f32.vlgmr.msra.gmra.mrb[28].mxu0 %vm155_vm1, %v44194_v33  ;;  %27825 = vmatprep.mubr.f32.mxu1 %v46885_v61 }
 0x847   :  { %20201 = vmatpush1.msra.mxu0 %v43858_v5  ;;  %20193 = vmatprep.mubr.f32.mxu0 %v46885_v61 }
 0x848   :  { %20277 = vmatprep.subr.mxu0 %v43938_v0  ;;  %v47028_v0 = vld [vmem:[#allocation47_spill] sm:$0xff] }
 0x849   :  { %35980 = vmatmul.mubr.msk.f32.vlgmr.msra.gmra.mrb[28].mxu1 %vm155_vm1, %v44273_v37 }
 0x84a   :  { %27839 = vmatpush1.msra.mxu1 %v47025_v30  ;;  %35779 = vmatmul.mubr.msk.f32.gmra.mrb[30].mxu0 %vm155_vm1, %v44209_v12  ;;  %v47027_v30 = vld [vmem:[#allocation40_spill] sm:$0xff] }
 0x84b   :  { %27990 = vmatprep.subr.mxu1 %v47026_v49  ;;  %27831 = vmatprep.mubr.f32.mxu1 %v46885_v61  ;;  %v20384_v49 = vpop.permute.xlu1 %20383 }
 0x84c   :  { %20264 = vmatprep.mubr.f32.mxu0 %v46885_v61 }
 0x84d   :  { %35981 = vmatmul.mubr.msk.f32.gmra.mrb[30].mxu1 %vm155_vm1, %v44291_v43 }
 0x84e   :  { %35780 = vmatmul.mubr.msk.f32.vlgmr.msra.gmra.mrb[32].mxu0 %vm155_vm1, %v44194_v33  ;;  %27902 = vmatprep.mubr.f32.mxu1 %v46885_v61 }
 0x84f   :  { %20278 = vmatpush1.msra.mxu0 %v43888_v55  ;;  %20270 = vmatprep.mubr.f32.mxu0 %v46885_v61 }
 0x850   :  { %20448 = vmatprep.subr.mxu0 %v43967_v51  ;;  %v20414_v51 = vsel %vm20413_vm3, %v20384_v49, %v43757_v3  ;;  %v47030_v3 = vld [vmem:[#allocation34_spill] sm:$0xff] }
 0x851   :  { %35982 = vmatmul.mubr.msk.f32.vlgmr.msra.gmra.mrb[8].mxu1 %vm155_vm1, %v44273_v37  ;;  %v47032_v49 = vld [vmem:[#allocation46_spill] sm:$0xff] }
 0x852   :  { %27991 = vmatpush1.msra.mxu1 %v47027_v30  ;;  %35781 = vmatmul.mubr.msk.f32.gmra.mrb[34].mxu0 %vm155_vm1, %v44209_v12  ;;  %v27676_v30 = vsel %vm7376_vm10, %v47030_v3, %v43793_v60 }
 0x853   :  { %28067 = vmatprep.subr.mxu1 %v47028_v0  ;;  %27908 = vmatprep.mubr.f32.mxu1 %v46885_v61  ;;  %v47029_v0 = vld [vmem:[#allocation43_spill] sm:$0xff] }
 0x854   :  { %20341 = vmatprep.mubr.f32.mxu0 %v46885_v61 }
 0x855   :  { %35983 = vmatmul.mubr.msk.f32.gmra.mrb[10].mxu1 %vm155_vm1, %v44291_v43 }
 0x856   :  { %35782 = vmatmul.mubr.msk.f32.vlgmr.msra.gmra.mrb[36].mxu0 %vm155_vm1, %v44194_v33  ;;  %28054 = vmatprep.mubr.f32.mxu1 %v46885_v61  ;;  %v38984_v33 = vld [vmem:[%s46738_s3 + $0x30] sm:$0xff] }
 0x857   :  { %20449 = vmatpush1.msra.mxu0 %v20414_v51  ;;  %20347 = vmatprep.mubr.f32.mxu0 %v46885_v61  ;;  %v38985_v51 = vld [vmem:[%s46738_s3 + $0x38] sm:$0xff] }
 0x858   :  { %20525 = vmatprep.subr.mxu0 %v43996_v9 }
 0x859   :  { %35986 = vmatmul.mubr.msk.f32.vlgmr.msra.gmra.mrb[12].mxu1 %vm155_vm1, %v44273_v37 }
 0x85a   :  { %28068 = vmatpush1.msra.mxu1 %v47029_v0  ;;  %35783 = vmatmul.mubr.msk.f32.gmra.mrb[38].mxu0 %vm155_vm1, %v44209_v12  ;;  %v47031_v12 = vld [vmem:[#allocation10_spill] sm:$0xff]  ;;  %v47033_v0 = vld [vmem:[#allocation51_spill] sm:$0xff] }
 0x85b   :  { %28144 = vmatprep.subr.mxu1 %v27676_v30  ;;  %28060 = vmatprep.mubr.f32.mxu1 %v46885_v61  ;;  %v44358_v60 = vsel %vm20413_vm3, %v43908_v19, %v47031_v12  ;;  %v47034_v19 = vld [vmem:[#allocation22_spill] sm:$0xff]  ;;  %v47035_v30 = vld [vmem:[#allocation48_spill] sm:$0xff]  ;;  %v47036_v12 = vld [vmem:[#allocation53_spill] sm:$0xff] }
 0x85c   :  { %20512 = vmatprep.mubr.f32.mxu0 %v46885_v61  ;;  %v44380_v3 = vsel %vm21044_vm11, %v43923_v28, %v47034_v19  ;;  %v44398_v28 = vld [vmem:[%s46738_s3 + $0x100] sm:$0xff]  ;;  %v47039_v19 = vld [vmem:[#allocation38_spill] sm:$0xff] }
 0x85d   :  { %35987 = vmatmul.mubr.msk.f32.gmra.mrb[14].mxu1 %vm155_vm1, %v44291_v43 }
 0x85e   :  { %35786 = vmatmul.mubr.msk.f32.vlgmr.msra.gmra.mrb[12].mxu0 %vm155_vm1, %v38984_v33  ;;  %28131 = vmatprep.mubr.f32.mxu1 %v46885_v61 }
 0x85f   :  { %20526 = vmatpush1.msra.mxu0 %v43948_v2  ;;  %20518 = vmatprep.mubr.f32.mxu0 %v46885_v61 }
 0x860   :  { %20679 = vmatprep.subr.mxu0 %v44358_v60 }
 0x861   :  { %35988 = vmatmul.mubr.msk.f32.vlgmr.msra.gmra.mrb[16].mxu1 %vm155_vm1, %v44273_v37 }
 0x862   :  { %28145 = vmatpush1.msra.mxu1 %v47032_v49  ;;  %35787 = vmatmul.mubr.msk.f32.gmra.mrb[14].mxu0 %vm155_vm1, %v38985_v51  ;;  %v47037_v49 = vld [vmem:[#allocation31_spill] sm:$0xff] }
 0x863   :  { %28260 = vmatprep.subr.mxu1 %v47033_v0  ;;  %28137 = vmatprep.mubr.f32.mxu1 %v46885_v61  ;;  %v44404_v0 = vsel %vm7376_vm10, %v43941_v58, %v47037_v49  ;;  %v44418_v58 = vld [vmem:[%s46738_s3 + $0x108] sm:$0xff]  ;;  %vm33669_vm10 = vcmask 162816  }
 0x864   :  { %20589 = vmatprep.mubr.f32.mxu0 %v46885_v61 }
 0x865   :  { %35989 = vmatmul.mubr.msk.f32.gmra.mrb[18].mxu1 %vm155_vm1, %v44291_v43 }
 0x866   :  { %35788 = vmatmul.mubr.msk.f32.vlgmr.msra.gmra.mrb[16].mxu0 %vm155_vm1, %v38984_v33  ;;  %28208 = vmatprep.mubr.f32.mxu1 %v46885_v61 }
 0x867   :  { %20680 = vmatpush1.msra.mxu0 %v44007_v41  ;;  %20595 = vmatprep.mubr.f32.mxu0 %v46885_v61 }
 0x868   :  { %21310 = vmatprep.subr.mxu0 %v44380_v3 }
 0x869   :  { %35990 = vmatmul.mubr.msk.f32.vlgmr.msra.gmra.mrb[20].mxu1 %vm155_vm1, %v44273_v37 }
 0x86a   :  { %28261 = vmatpush1.msra.mxu1 %v47035_v30  ;;  %35789 = vmatmul.mubr.msk.f32.gmra.mrb[18].mxu0 %vm155_vm1, %v38985_v51  ;;  %v22311_v30 = vsel %vm8850_vm12, %v47039_v19, %v43955_v6  ;;  %v38987_v19 = vld [vmem:[%s46738_s3 + $0x48] sm:$0xff] }
 0x86b   :  { %28337 = vmatprep.subr.mxu1 %v47036_v12  ;;  %28214 = vmatprep.mubr.f32.mxu1 %v46885_v61  ;;  %v47040_v12 = vld [vmem:[#allocation41_spill] sm:$0xff] }
 0x86c   :  { %20743 = vmatprep.mubr.f32.mxu0 %v46885_v61  ;;  %v44433_v49 = vsel %vm8850_vm12, %v43955_v6, %v47040_v12  ;;  %v38988_v6 = vld [vmem:[%s46738_s3 + $0x50] sm:$0xff] }
 0x86d   :  { %35991 = vmatmul.mubr.msk.f32.gmra.mrb[22].mxu1 %vm155_vm1, %v44291_v43  ;;  %v47043_v12 = vld [vmem:[#allocation54_spill] sm:$0xff] }
 0x86e   :  { %35792 = vmatmul.mubr.msk.f32.vlgmr.msra.gmra.mrb[48].mxu0 %vm155_vm1, %v38984_v33  ;;  %28324 = vmatprep.mubr.f32.mxu1 %v46885_v61  ;;  %v47038_v33 = vld [vmem:[#allocation49_spill] sm:$0xff] }
 0x86f   :  { %21311 = vmatpush1.msra.mxu0 %v44146_v63  ;;  %20748 = vmatprep.mubr.f32.mxu0 %v46885_v61 }
 0x870   :  { %21940 = vmatprep.subr.mxu0 %v44404_v0 }
 0x871   :  { %35994 = vmatmul.mubr.msk.f32.vlgmr.msra.gmra.mrb[24].mxu1 %vm155_vm1, %v44398_v28 }
 0x872   :  { %28338 = vmatpush1.msra.mxu1 %v47038_v33  ;;  %35793 = vmatmul.mubr.msk.f32.gmra.mrb[50].mxu0 %vm155_vm1, %v38985_v51  ;;  %v38986_v51 = vld [vmem:[%s46738_s3 + $0x40] sm:$0xff] }
 0x873   :  { %28414 = vmatprep.subr.mxu1 %v22311_v30  ;;  %28330 = vmatprep.mubr.f32.mxu1 %v46885_v61  ;;  %v47041_v33 = vld [vmem:[#allocation52_spill] sm:$0xff] }
 0x874   :  { %21374 = vmatprep.mubr.f32.mxu0 %v46885_v61 }
 0x875   :  { %35995 = vmatmul.mubr.msk.f32.gmra.mrb[26].mxu1 %vm155_vm1, %v44418_v58 }
 0x876   :  { %35808 = vmatmul.mubr.msk.f32.vlgmr.msra.gmra.mrb[52].mxu0 %vm155_vm1, %v38986_v51  ;;  %28401 = vmatprep.mubr.f32.mxu1 %v46885_v61  ;;  %v44457_v51 = vsel %vm46883_vm14, %v43970_v31, %v43044_v27  ;;  %v22941_v27 = vsel %vm46883_vm14, %v43026_v8, %v43970_v31  ;;  %v47045_v8 = vld [vmem:[#allocation56_spill] sm:$0xff]  ;;  %v38991_v31 = vld [vmem:[%s46738_s3 + $0x68] sm:$0xff] }
 0x877   :  { %21941 = vmatpush1.msra.mxu0 %v44286_v14  ;;  %21379 = vmatprep.mubr.f32.mxu0 %v46885_v61  ;;  %v47042_v14 = vld [vmem:[#allocation57_spill] sm:$0xff] }
 0x878   :  { %22570 = vmatprep.subr.mxu0 %v44433_v49 }
 0x879   :  { %35996 = vmatmul.mubr.msk.f32.vlgmr.msra.gmra.mrb[28].mxu1 %vm155_vm1, %v44398_v28 }
 0x87a   :  { %28415 = vmatpush1.msra.mxu1 %v47041_v33  ;;  %35809 = vmatmul.mubr.msk.f32.gmra.mrb[54].mxu0 %vm155_vm1, %v38987_v19  ;;  %v38989_v33 = vld [vmem:[%s46738_s3 + $0x58] sm:$0xff]  ;;  %v38990_v19 = vld [vmem:[%s46738_s3 + $0x60] sm:$0xff] }
 0x87b   :  { %28566 = vmatprep.subr.mxu1 %v47042_v14  ;;  %28407 = vmatprep.mubr.f32.mxu1 %v46885_v61  ;;  %v44484_v14 = vsel %vm23565_vm0, %v43999_v46, %v43158_v26 }
 0x87c   :  { %22004 = vmatprep.mubr.f32.mxu0 %v46885_v61 }
 0x87d   :  { %35997 = vmatmul.mubr.msk.f32.gmra.mrb[30].mxu1 %vm155_vm1, %v44418_v58 }
 0x87e   :  { %35824 = vmatmul.mubr.msk.f32.vlgmr.msra.gmra.mrb[56].mxu0 %vm155_vm1, %v38988_v6  ;;  %28478 = vmatprep.mubr.f32.mxu1 %v46885_v61  ;;  %v47046_v6 = vld [vmem:[#allocation44_spill] sm:$0xff] }
 0x87f   :  { %22571 = vmatpush1.msra.mxu0 %v22311_v30  ;;  %22009 = vmatprep.mubr.f32.mxu0 %v46885_v61  ;;  %v47044_v30 = vld [vmem:[#allocation60_spill] sm:$0xff]  ;;  %v28252_v26 = vsel %vm8850_vm12, %v47046_v6, %v43807_v13  ;;  %v44516_v13 = vsel %vm24196_vm13, %v44019_v39, %v43258_v1  ;;  %v44535_v1 = vsel %vm24196_vm13, %v43459_v7, %v44019_v39  ;;  %v38995_v7 = vld [vmem:[%s46738_s3 + $0x88] sm:$0xff] }
 0x880   :  { %23200 = vmatprep.subr.mxu0 %v44457_v51  ;;  %v47049_v39 = vld [vmem:[#allocation64_spill] sm:$0xff] }
 0x881   :  { %35998 = vmatmul.mubr.msk.f32.vlgmr.msra.gmra.mrb[8].mxu1 %vm155_vm1, %v44398_v28  ;;  %v38997_v6 = vld [vmem:[%s46738_s3 + $0x98] sm:$0xff] }
 0x882   :  { %28567 = vmatpush1.msra.mxu1 %v47043_v12  ;;  %35825 = vmatmul.mubr.msk.f32.gmra.mrb[58].mxu0 %vm155_vm1, %v38989_v33  ;;  %v44505_v12 = vsel %vm23565_vm0, %v43136_v16, %v43999_v46  ;;  %v38992_v33 = vld [vmem:[%s46738_s3 + $0x70] sm:$0xff]  ;;  %v38993_v46 = vld [vmem:[%s46738_s3 + $0x78] sm:$0xff] }
 0x883   :  { %28643 = vmatprep.subr.mxu1 %v47044_v30  ;;  %28484 = vmatprep.mubr.f32.mxu1 %v46885_v61  ;;  %v47047_v16 = vld [vmem:[#allocation58_spill] sm:$0xff]  ;;  %v38994_v30 = vld [vmem:[%s46738_s3 + $0x80] sm:$0xff] }
 0x884   :  { %22634 = vmatprep.mubr.f32.mxu0 %v46885_v61 }
 0x885   :  { %35999 = vmatmul.mubr.msk.f32.gmra.mrb[10].mxu1 %vm155_vm1, %v44418_v58 }
 0x886   :  { %35840 = vmatmul.mubr.msk.f32.vlgmr.msra.gmra.mrb[60].mxu0 %vm155_vm1, %v38990_v19  ;;  %28630 = vmatprep.mubr.f32.mxu1 %v46885_v61  ;;  %v38996_v19 = vld [vmem:[%s46738_s3 + $0x90] sm:$0xff] }
 0x887   :  { %23201 = vmatpush1.msra.mxu0 %v22941_v27  ;;  %22639 = vmatprep.mubr.f32.mxu0 %v46885_v61 }
 0x888   :  { %23831 = vmatprep.subr.mxu0 %v44484_v14 }
 0x889   :  { %36002 = vmatmul.mubr.msk.f32.vlgmr.msra.gmra.mrb[12].mxu1 %vm155_vm1, %v44398_v28 }
 0x88a   :  { %28644 = vmatpush1.msra.mxu1 %v47045_v8  ;;  %35841 = vmatmul.mubr.msk.f32.gmra.mrb[62].mxu0 %vm155_vm1, %v38991_v31  ;;  %v44565_v8 = vld [vmem:[%s46738_s3 + $0x110] sm:$0xff] }
 0x88b   :  { %28720 = vmatprep.subr.mxu1 %v28252_v26  ;;  %28636 = vmatprep.mubr.f32.mxu1 %v46885_v61  ;;  %v47050_v31 = vld [vmem:[#allocation62_spill] sm:$0xff]  ;;  %v44580_v26 = vld [vmem:[%s46738_s3 + $0x118] sm:$0xff] }
 0x88c   :  { %23264 = vmatprep.mubr.f32.mxu0 %v46885_v61 }
 0x88d   :  { %36003 = vmatmul.mubr.msk.f32.gmra.mrb[14].mxu1 %vm155_vm1, %v44418_v58 }
 0x88e   :  { %35856 = vmatmul.mubr.msk.f32.vlgmr.msra.gmra.mrb[64].mxu0 %vm155_vm1, %v38992_v33  ;;  %28707 = vmatprep.mubr.f32.mxu1 %v46885_v61  ;;  %v38998_v33 = vld [vmem:[%s46738_s3 + $0xa0] sm:$0xff] }
 0x88f   :  { %23832 = vmatpush1.msra.mxu0 %v44505_v12  ;;  %23269 = vmatprep.mubr.f32.mxu0 %v46885_v61 }
 0x890   :  { %24462 = vmatprep.subr.mxu0 %v44516_v13 }
 0x891   :  { %36004 = vmatmul.mubr.msk.f32.vlgmr.msra.gmra.mrb[16].mxu1 %vm155_vm1, %v44398_v28 }
 0x892   :  { %28721 = vmatpush1.msra.mxu1 %v47047_v16  ;;  %35857 = vmatmul.mubr.msk.f32.gmra.mrb[66].mxu0 %vm155_vm1, %v38993_v46  ;;  %v47051_v16 = vld [vmem:[#allocation111_spill] sm:$0xff]  ;;  %v38999_v46 = vld [vmem:[%s46738_s3 + $0xa8] sm:$0xff] }
 0x893   :  { %28836 = vmatprep.subr.mxu1 %v43255_v24  ;;  %28713 = vmatprep.mubr.f32.mxu1 %v46885_v61  ;;  %v47048_v24 = vld [vmem:[#allocation61_spill] sm:$0xff] }
 0x894   :  { %23895 = vmatprep.mubr.f32.mxu0 %v46885_v61 }
 0x895   :  { %36005 = vmatmul.mubr.msk.f32.gmra.mrb[18].mxu1 %vm155_vm1, %v44418_v58 }
 0x896   :  { %35872 = vmatmul.mubr.msk.f32.vlgmr.msra.gmra.mrb[68].mxu0 %vm155_vm1, %v38994_v30  ;;  %28784 = vmatprep.mubr.f32.mxu1 %v46885_v61  ;;  %v47053_v30 = vld [vmem:[#allocation69_spill] sm:$0xff] }
 0x897   :  { %24463 = vmatpush1.msra.mxu0 %v44535_v1  ;;  %23900 = vmatprep.mubr.f32.mxu0 %v46885_v61 }
 0x898   :  { %25034 = vmatprep.subr.mxu0 %v42453_v50 }
 0x899   :  { %36006 = vmatmul.mubr.msk.f32.vlgmr.msra.gmra.mrb[20].mxu1 %vm155_vm1, %v44398_v28 }
 0x89a   :  { %28837 = vmatpush1.msra.mxu1 %v47048_v24  ;;  %35873 = vmatmul.mubr.msk.f32.gmra.mrb[70].mxu0 %vm155_vm1, %v38995_v7  ;;  %v39000_v24 = vld [vmem:[%s46738_s3 + $0xb0] sm:$0xff] }
 0x89b   :  { %28913 = vmatprep.subr.mxu1 %v47049_v39  ;;  %28790 = vmatprep.mubr.f32.mxu1 %v46885_v61  ;;  %v47054_v7 = vld [vmem:[#allocation11_spill] sm:$0xff]  ;;  %v47055_v39 = vld [vmem:[#allocation66_spill] sm:$0xff] }
 0x89c   :  { %24526 = vmatprep.mubr.f32.mxu0 %v46885_v61 }
 0x89d   :  { %36007 = vmatmul.mubr.msk.f32.gmra.mrb[22].mxu1 %vm155_vm1, %v44418_v58 }
 0x89e   :  { %35888 = vmatmul.mubr.msk.f32.vlgmr.msra.gmra.mrb[72].mxu0 %vm155_vm1, %v38996_v19  ;;  %28900 = vmatprep.mubr.f32.mxu1 %v46885_v61  ;;  %v39001_v19 = vld [vmem:[%s46738_s3 + $0xb8] sm:$0xff] }
 0x89f   :  { %25035 = vmatpush1.msra.mxu0 %v42919_v17  ;;  %24531 = vmatprep.mubr.f32.mxu0 %v46885_v61 }
 0x8a0   :  { %25611 = vmatprep.subr.mxu0 %v43930_v40 }
 0x8a1   :  { %36010 = vmatmul.mubr.msk.f32.vlgmr.msra.gmra.mrb[24].mxu1 %vm155_vm1, %v44565_v8 }
 0x8a2   :  { %28914 = vmatpush1.msra.mxu1 %v47050_v31  ;;  %35889 = vmatmul.mubr.msk.f32.gmra.mrb[74].mxu0 %vm155_vm1, %v38997_v6  ;;  %v47056_v31 = vld [vmem:[#allocation71_spill] sm:$0xff]  ;;  %v47057_v6 = vld [vmem:[#allocation26_spill] sm:$0xff] }
 0x8a3   :  { %28990 = vmatprep.subr.mxu1 %v22941_v27  ;;  %28906 = vmatprep.mubr.f32.mxu1 %v46885_v61  ;;  %v47052_v27 = vld [vmem:[#allocation63_spill] sm:$0xff] }
 0x8a4   :  { %25098 = vmatprep.mubr.f32.mxu0 %v46885_v61 }
 0x8a5   :  { %36011 = vmatmul.mubr.msk.f32.gmra.mrb[26].mxu1 %vm155_vm1, %v44580_v26 }
 0x8a6   :  { %35904 = vmatmul.mubr.msk.f32.vlgmr.msra.gmra.mrb[76].mxu0 %vm155_vm1, %v38998_v33  ;;  %28977 = vmatprep.mubr.f32.mxu1 %v46885_v61  ;;  %v47058_v33 = vld [vmem:[#allocation68_spill] sm:$0xff] }
 0x8a7   :  { %25612 = vmatpush1.msra.mxu0 %v47051_v16  ;;  %25103 = vmatprep.mubr.f32.mxu0 %v46885_v61 }
 0x8a8   :  { %26187 = vmatprep.subr.mxu0 %v44265_v11 }
 0x8a9   :  { %36012 = vmatmul.mubr.msk.f32.vlgmr.msra.gmra.mrb[28].mxu1 %vm155_vm1, %v44565_v8 }
 0x8aa   :  { %28991 = vmatpush1.msra.mxu1 %v47052_v27  ;;  %35905 = vmatmul.mubr.msk.f32.gmra.mrb[78].mxu0 %vm155_vm1, %v38999_v46  ;;  %v47059_v27 = vld [vmem:[#allocation50_spill] sm:$0xff] }
 0x8ab   :  { %29142 = vmatprep.subr.mxu1 %v47053_v30  ;;  %28983 = vmatprep.mubr.f32.mxu1 %v46885_v61  ;;  %v47062_v46 = vld [vmem:[#allocation74_spill] sm:$0xff]  ;;  %v47065_v30 = vld [vmem:[#allocation76_spill] sm:$0xff] }
 0x8ac   :  { %25675 = vmatprep.mubr.f32.mxu0 %v46885_v61 }
 0x8ad   :  { %36013 = vmatmul.mubr.msk.f32.gmra.mrb[30].mxu1 %vm155_vm1, %v44580_v26 }
 0x8ae   :  { %35920 = vmatmul.mubr.msk.f32.vlgmr.msra.gmra.mrb[80].mxu0 %vm155_vm1, %v39000_v24  ;;  %29054 = vmatprep.mubr.f32.mxu1 %v46885_v61 }
 0x8af   :  { %26188 = vmatpush1.msra.mxu0 %v44233_v57  ;;  %25680 = vmatprep.mubr.f32.mxu0 %v46885_v61 }
 0x8b0   :  { %26763 = vmatprep.subr.mxu0 %v47054_v7 }
 0x8b1   :  { %36014 = vmatmul.mubr.msk.f32.vlgmr.msra.gmra.mrb[8].mxu1 %vm155_vm1, %v44565_v8 }
 0x8b2   :  { %29143 = vmatpush1.msra.mxu1 %v47055_v39  ;;  %35921 = vmatmul.mubr.msk.f32.gmra.mrb[82].mxu0 %vm155_vm1, %v39001_v19  ;;  %v47074_v19 = vld [vmem:[#allocation79_spill] sm:$0xff] }
 0x8b3   :  { %29219 = vmatprep.subr.mxu1 %v47056_v31  ;;  %29060 = vmatprep.mubr.f32.mxu1 %v46885_v61  ;;  %v47075_v31 = vld [vmem:[#allocation59_spill] sm:$0xff] }
 0x8b4   :  { %26251 = vmatprep.mubr.f32.mxu0 %v46885_v61 }
 0x8b5   :  { %36015 = vmatmul.mubr.msk.f32.gmra.mrb[10].mxu1 %vm155_vm1, %v44580_v26 }
 0x8b6   :  { %35936 = vmatmul.mubr.msk.f32.vlgmr.msra.gmra.mrb[84].mxu0 %vm155_vm1, %v43804_v20  ;;  %29206 = vmatprep.mubr.f32.mxu1 %v46885_v61  ;;  %v28828_v20 = vsel %vm46883_vm14, %v47059_v27, %v43980_v56  ;;  %v47061_v56 = vld [vmem:[#allocation70_spill] sm:$0xff] }
 0x8b7   :  { %26764 = vmatpush1.msra.mxu0 %v44358_v60  ;;  %26256 = vmatprep.mubr.f32.mxu0 %v46885_v61 }
 0x8b8   :  { %27339 = vmatprep.subr.mxu0 %v47057_v6 }
 0x8b9   :  { %36018 = vmatmul.mubr.msk.f32.vlgmr.msra.gmra.mrb[12].mxu1 %vm155_vm1, %v44565_v8 }
 0x8ba   :  { %29220 = vmatpush1.msra.mxu1 %v47058_v33  ;;  %35937 = vmatmul.mubr.msk.f32.gmra.mrb[86].mxu0 %vm155_vm1, %v43823_v52  ;;  %v47060_v52 = vld [vmem:[#allocation42_spill] sm:$0xff]  ;;  %v29404_v33 = vsel %vm23565_vm0, %v47075_v31, %v44181_v29 }
 0x8bb   :  { %29296 = vmatprep.subr.mxu1 %v28828_v20  ;;  %29212 = vmatprep.mubr.f32.mxu1 %v46885_v61  ;;  %v33428_v20 = vld [vmem:[%s46739_s4] sm:$0xff] }
 0x8bc   :  { %26827 = vmatprep.mubr.f32.mxu0 %v46885_v61  ;;  %33432 = vperm.xlu0 %38787, %v33428_v20   ;;  %v47087_v20 = vld [vmem:[#allocation65_spill] sm:$0xff] }
 0x8bd   :  { %36019 = vmatmul.mubr.msk.f32.gmra.mrb[14].mxu1 %vm155_vm1, %v44580_v26 }
 0x8be   :  { %35952 = vmatmul.mubr.msk.f32.vlgmr.msra.gmra.mrb[88].mxu0 %vm155_vm1, %v43988_v42  ;;  %29283 = vmatprep.mubr.f32.mxu1 %v46885_v61  ;;  %v47063_v42 = vld [vmem:[#allocation55_spill] sm:$0xff] }
 0x8bf   :  { %27340 = vmatpush1.msra.mxu0 %v44380_v3  ;;  %26832 = vmatprep.mubr.f32.mxu0 %v46885_v61 }
 0x8c0   :  { %27915 = vmatprep.subr.mxu0 %v47060_v52 }
 0x8c1   :  { %36020 = vmatmul.mubr.msk.f32.vlgmr.msra.gmra.mrb[16].mxu1 %vm155_vm1, %v44565_v8 }
 0x8c2   :  { %29297 = vmatpush1.msra.mxu1 %v47061_v56  ;;  %35953 = vmatmul.mubr.msk.f32.gmra.mrb[90].mxu0 %vm155_vm1, %v44013_v62  ;;  %v47064_v62 = vld [vmem:[#allocation72_spill] sm:$0xff] }
 0x8c3   :  { %29412 = vmatprep.subr.mxu1 %v47062_v46  ;;  %29289 = vmatprep.mubr.f32.mxu1 %v46885_v61  ;;  %v44772_v46 = vld [vmem:[%s46738_s3 + $0x138] sm:$0xff] }
 0x8c4   :  { %27403 = vmatprep.mubr.f32.mxu0 %v46885_v61 }
 0x8c5   :  { %36021 = vmatmul.mubr.msk.f32.gmra.mrb[18].mxu1 %vm155_vm1, %v44580_v26 }
 0x8c6   :  { %35968 = vmatmul.mubr.msk.f32.vlgmr.msra.gmra.mrb[92].mxu0 %vm155_vm1, %v44133_v25  ;;  %29360 = vmatprep.mubr.f32.mxu1 %v46885_v61  ;;  %v44682_v25 = vld [vmem:[%s46738_s3 + $0x120] sm:$0xff] }
 0x8c7   :  { %27916 = vmatpush1.msra.mxu0 %v44404_v0  ;;  %27408 = vmatprep.mubr.f32.mxu0 %v46885_v61  ;;  %v47067_v0 = vld [vmem:[#allocation73_spill] sm:$0xff] }
 0x8c8   :  { %28491 = vmatprep.subr.mxu0 %v47063_v42  ;;  %v47076_v42 = vld [vmem:[#allocation101_spill] sm:$0xff] }
 0x8c9   :  { %36022 = vmatmul.mubr.msk.f32.vlgmr.msra.gmra.mrb[20].mxu1 %vm155_vm1, %v44565_v8 }
 0x8ca   :  { %29413 = vmatpush1.msra.mxu1 %v47064_v62  ;;  %35969 = vmatmul.mubr.msk.f32.gmra.mrb[94].mxu0 %vm155_vm1, %v44151_v54  ;;  %v47066_v54 = vld [vmem:[#allocation67_spill] sm:$0xff]  ;;  %v47077_v62 = vld [vmem:[#allocation81_spill] sm:$0xff] }
 0x8cb   :  { %29489 = vmatprep.subr.mxu1 %v47065_v30  ;;  %29366 = vmatprep.mubr.f32.mxu1 %v46885_v61  ;;  %v47078_v30 = vld [vmem:[#allocation85_spill] sm:$0xff] }
 0x8cc   :  { %27979 = vmatprep.mubr.f32.mxu0 %v46885_v61 }
 0x8cd   :  { %36023 = vmatmul.mubr.msk.f32.gmra.mrb[22].mxu1 %vm155_vm1, %v44580_v26 }
 0x8ce   :  { %35984 = vmatmul.mubr.msk.f32.vlgmr.msra.gmra.mrb[96].mxu0 %vm155_vm1, %v44273_v37  ;;  %29476 = vmatprep.mubr.f32.mxu1 %v46885_v61  ;;  %v44695_v37 = vld [vmem:[%s46738_s3 + $0x128] sm:$0xff] }
 0x8cf   :  { %28492 = vmatpush1.msra.mxu0 %v44433_v49  ;;  %27984 = vmatprep.mubr.f32.mxu0 %v46885_v61  ;;  %v47069_v49 = vld [vmem:[#allocation75_spill] sm:$0xff] }
 0x8d0   :  { %29067 = vmatprep.subr.mxu0 %v47066_v54  ;;  %v44798_v54 = vld [vmem:[%s46738_s3 + $0x148] sm:$0xff] }
 0x8d1   :  { %36026 = vmatmul.mubr.msk.f32.vlgmr.msra.gmra.mrb[24].mxu1 %vm155_vm1, %v44682_v25 }
 0x8d2   :  { %29490 = vmatpush1.msra.mxu1 %v47067_v0  ;;  %35985 = vmatmul.mubr.msk.f32.gmra.mrb[98].mxu0 %vm155_vm1, %v44291_v43  ;;  %v47068_v43 = vld [vmem:[#allocation78_spill] sm:$0xff]  ;;  %v47079_v0 = vld [vmem:[#allocation83_spill] sm:$0xff] }
 0x8d3   :  { %29566 = vmatprep.subr.mxu1 %v44505_v12  ;;  %29482 = vmatprep.mubr.f32.mxu1 %v46885_v61  ;;  %v47070_v12 = vld [vmem:[#allocation80_spill] sm:$0xff] }
 0x8d4   :  { %28555 = vmatprep.mubr.f32.mxu0 %v46885_v61 }
 0x8d5   :  { %36027 = vmatmul.mubr.msk.f32.gmra.mrb[26].mxu1 %vm155_vm1, %v44695_v37 }
 0x8d6   :  { %36000 = vmatmul.mubr.msk.f32.vlgmr.msra.gmra.mrb[100].mxu0 %vm155_vm1, %v44398_v28  ;;  %29553 = vmatprep.mubr.f32.mxu1 %v46885_v61  ;;  %v47071_v28 = vld [vmem:[#allocation90_spill] sm:$0xff] }
 0x8d7   :  { %29068 = vmatpush1.msra.mxu0 %v44457_v51  ;;  %28560 = vmatprep.mubr.f32.mxu0 %v46885_v61  ;;  %v47073_v51 = vld [vmem:[#allocation82_spill] sm:$0xff] }
 0x8d8   :  { %29643 = vmatprep.subr.mxu0 %v47068_v43  ;;  %v47080_v43 = vld [vmem:[#allocation87_spill] sm:$0xff] }
 0x8d9   :  { %36028 = vmatmul.mubr.msk.f32.vlgmr.msra.gmra.mrb[28].mxu1 %vm155_vm1, %v44682_v25 }
 0x8da   :  { %29567 = vmatpush1.msra.mxu1 %v47069_v49  ;;  %36001 = vmatmul.mubr.msk.f32.gmra.mrb[102].mxu0 %vm155_vm1, %v44418_v58  ;;  %v47072_v58 = vld [vmem:[#allocation77_spill] sm:$0xff]  ;;  %v47083_v49 = vld [vmem:[#allocation92_spill] sm:$0xff] }
 0x8db   :  { %29718 = vmatprep.subr.mxu1 %v47070_v12  ;;  %29559 = vmatprep.mubr.f32.mxu1 %v46885_v61 }
 0x8dc   :  { %29131 = vmatprep.mubr.f32.mxu0 %v46885_v61 }
 0x8dd   :  { %36029 = vmatmul.mubr.msk.f32.gmra.mrb[30].mxu1 %vm155_vm1, %v44695_v37 }
 0x8de   :  { %36016 = vmatmul.mubr.msk.f32.vlgmr.msra.gmra.mrb[104].mxu0 %vm155_vm1, %v44565_v8  ;;  %29630 = vmatprep.mubr.f32.mxu1 %v46885_v61 }
 0x8df   :  { %29644 = vmatpush1.msra.mxu0 %v44484_v14  ;;  %29136 = vmatprep.mubr.f32.mxu0 %v46885_v61  ;;  %v18967_v14 = vpop.f32.mrb[24].mxu0 }
 0x8e0   :  { %30219 = vmatprep.subr.mxu0 %v47071_v28  ;;  %v18969_v8 = vpop.f32.mrb[25].mxu0 }
 0x8e1   :  { %36030 = vmatmul.mubr.msk.f32.vlgmr.msra.gmra.mrb[8].mxu1 %vm155_vm1, %v44682_v25 }
 0x8e2   :  { %29719 = vmatpush1.msra.mxu1 %v47072_v58  ;;  %36017 = vmatmul.mubr.msk.f32.gmra.mrb[106].mxu0 %vm155_vm1, %v44580_v26  ;;  %v18972_v26 = vpop.f32.mrb[26].mxu0  ;;  %v44884_v58 = vld [vmem:[%s46738_s3 + $0x178] sm:$0xff] }
 0x8e3   :  { %29795 = vmatprep.subr.mxu1 %v47073_v51  ;;  %29636 = vmatprep.mubr.f32.mxu1 %v46885_v61  ;;  %v18974_v24 = vpop.f32.mrb[27].mxu0 }
 0x8e4   :  { %29707 = vmatprep.mubr.f32.mxu0 %v46885_v61  ;;  %v19510_v39 = vpop.f32.mrb[40].mxu0  ;;  %v44899_v24 = vld [vmem:[%s46738_s3 + $0x180] sm:$0xff] }
 0x8e5   :  { %36031 = vmatmul.mubr.msk.f32.gmra.mrb[10].mxu1 %vm155_vm1, %v44695_v37  ;;  %v44754_v27 = vadd.f32 %v19510_v39, %v18967_v14  ;;  %v47084_v14 = vld [vmem:[#allocation88_spill] sm:$0xff] }
 0x8e6   :  { %36032 = vmatmul.mubr.msk.f32.vlgmr.msra.gmra.mrb[108].mxu0 %vm155_vm1, %v44682_v25  ;;  %29782 = vmatprep.mubr.f32.mxu1 %v46885_v61 }
 0x8e7   :  { %30220 = vmatpush1.msra.mxu0 %v44516_v13  ;;  %29712 = vmatprep.mubr.f32.mxu0 %v46885_v61  ;;  %v19512_v13 = vpop.f32.mrb[41].mxu0 }
 0x8e8   :  { %30791 = vmatprep.subr.mxu0 %v42441_v22  ;;  %v44752_v22 = vld [vmem:[%s46738_s3 + $0x130] sm:$0xff]  ;;  %v19515_v52 = vpop.f32.mrb[42].mxu0 }
 0x8e9   :  { %36034 = vmatmul.mubr.msk.f32.vlgmr.msra.gmra.mrb[12].mxu1 %vm155_vm1, %v44682_v25  ;;  %v44760_v29 = vadd.f32 %v19515_v52, %v18972_v26  ;;  %v19517_v56 = vpop.f32.mrb[43].mxu0  ;;  %v47085_v26 = vld [vmem:[#allocation94_spill] sm:$0xff]  ;;  %v29980_v52 = vsel %vm24196_vm13, %v47087_v20, %v44199_v59 }
 0x8ea   :  { %29796 = vmatpush1.msra.mxu1 %v47074_v19  ;;  %36033 = vmatmul.mubr.msk.f32.gmra.mrb[110].mxu0 %vm155_vm1, %v44695_v37 }
 0x8eb   :  { %29872 = vmatprep.subr.mxu1 %v29404_v33  ;;  %29788 = vmatprep.mubr.f32.mxu1 %v46885_v61  ;;  %v44914_v33 = vld [vmem:[%s46738_s3 + $0x188] sm:$0xff] }
 0x8ec   :  { %30283 = vmatprep.mubr.f32.mxu0 %v46885_v61 }
 0x8ed   :  { %36035 = vmatmul.mubr.msk.f32.gmra.mrb[14].mxu1 %vm155_vm1, %v44695_v37 }
 0x8ee   :  { %36048 = vmatmul.mubr.msk.f32.vlgmr.msra.gmra.mrb[112].mxu0 %vm155_vm1, %v44752_v22  ;;  %29859 = vmatprep.mubr.f32.mxu1 %v46885_v61 }
 0x8ef   :  { %30792 = vmatpush1.msra.mxu0 %v42453_v50  ;;  %30288 = vmatprep.mubr.f32.mxu0 %v46885_v61  ;;  %v44785_v50 = vld [vmem:[%s46738_s3 + $0x140] sm:$0xff] }
 0x8f0   :  { %31368 = vmatprep.subr.mxu0 %v47076_v42 }
 0x8f1   :  { %36036 = vmatmul.mubr.msk.f32.vlgmr.msra.gmra.mrb[16].mxu1 %vm155_vm1, %v44682_v25 }
 0x8f2   :  { %29873 = vmatpush1.msra.mxu1 %v47077_v62  ;;  %36049 = vmatmul.mubr.msk.f32.gmra.mrb[114].mxu0 %vm155_vm1, %v44772_v46  ;;  %v47088_v62 = vld [vmem:[#allocation93_spill] sm:$0xff] }
 0x8f3   :  { %29988 = vmatprep.subr.mxu1 %v47078_v30  ;;  %29865 = vmatprep.mubr.f32.mxu1 %v46885_v61 }
 0x8f4   :  { %30855 = vmatprep.mubr.f32.mxu0 %v46885_v61 }
 0x8f5   :  { %36037 = vmatmul.mubr.msk.f32.gmra.mrb[18].mxu1 %vm155_vm1, %v44695_v37 }
 0x8f6   :  { %36064 = vmatmul.mubr.msk.f32.vlgmr.msra.gmra.mrb[116].mxu0 %vm155_vm1, %v44785_v50  ;;  %29936 = vmatprep.mubr.f32.mxu1 %v46885_v61 }
 0x8f7   :  { %31369 = vmatpush1.msra.mxu0 %v43930_v40  ;;  %30860 = vmatprep.mubr.f32.mxu0 %v46885_v61  ;;  %v44811_v40 = vld [vmem:[%s46738_s3 + $0x150] sm:$0xff] }
 0x8f8   :  { %31944 = vmatprep.subr.mxu0 %v43878_v48  ;;  %v44824_v48 = vld [vmem:[%s46738_s3 + $0x158] sm:$0xff] }
 0x8f9   :  { %36038 = vmatmul.mubr.msk.f32.vlgmr.msra.gmra.mrb[20].mxu1 %vm155_vm1, %v44682_v25  ;;  %v47081_v25 = vld [vmem:[#allocation84_spill] sm:$0xff] }
 0x8fa   :  { %29989 = vmatpush1.msra.mxu1 %v47079_v0  ;;  %36065 = vmatmul.mubr.msk.f32.gmra.mrb[118].mxu0 %vm155_vm1, %v44798_v54 }
 0x8fb   :  { %30065 = vmatprep.subr.mxu1 %v47080_v43  ;;  %29942 = vmatprep.mubr.f32.mxu1 %v46885_v61 }
 0x8fc   :  { %31432 = vmatprep.mubr.f32.mxu0 %v46885_v61 }
 0x8fd   :  { %36039 = vmatmul.mubr.msk.f32.gmra.mrb[22].mxu1 %vm155_vm1, %v44695_v37  ;;  %v47082_v37 = vld [vmem:[#allocation86_spill] sm:$0xff] }
 0x8fe   :  { %36080 = vmatmul.mubr.msk.f32.vlgmr.msra.gmra.mrb[120].mxu0 %vm155_vm1, %v44811_v40  ;;  %30052 = vmatprep.mubr.f32.mxu1 %v46885_v61 }
 0x8ff   :  { %31945 = vmatpush1.msra.mxu0 %v44265_v11  ;;  %31437 = vmatprep.mubr.f32.mxu0 %v46885_v61  ;;  %v44837_v11 = vld [vmem:[%s46738_s3 + $0x160] sm:$0xff] }
 0x900   :  { %32520 = vmatprep.subr.mxu0 %v47001_v45  ;;  %v44850_v45 = vld [vmem:[%s46738_s3 + $0x168] sm:$0xff] }
 0x901   :  { %36042 = vmatmul.mubr.msk.f32.vlgmr.msra.gmra.mrb[24].mxu1 %vm155_vm1, %v44752_v22 }
 0x902   :  { %30066 = vmatpush1.msra.mxu1 %v47081_v25  ;;  %36081 = vmatmul.mubr.msk.f32.gmra.mrb[122].mxu0 %vm155_vm1, %v44824_v48 }
 0x903   :  { %30142 = vmatprep.subr.mxu1 %v44535_v1  ;;  %30058 = vmatprep.mubr.f32.mxu1 %v46885_v61 }
 0x904   :  { %32008 = vmatprep.mubr.f32.mxu0 %v46885_v61 }
 0x905   :  { %36043 = vmatmul.mubr.msk.f32.gmra.mrb[26].mxu1 %vm155_vm1, %v44772_v46 }
 0x906   :  { %36096 = vmatmul.mubr.msk.f32.vlgmr.msra.gmra.mrb[124].mxu0 %vm155_vm1, %v44837_v11  ;;  %30129 = vmatprep.mubr.f32.mxu1 %v46885_v61 }
 0x907   :  { %32521 = vmatpush1.msra.mxu0 %v47054_v7  ;;  %32013 = vmatprep.mubr.f32.mxu0 %v46885_v61 }
 0x908   :  { %33096 = vmatprep.subr.mxu0 %v47014_v18  ;;  %v44867_v18 = vld [vmem:[%s46738_s3 + $0x170] sm:$0xff] }
 0x909   :  { %36044 = vmatmul.mubr.msk.f32.vlgmr.msra.gmra.mrb[28].mxu1 %vm155_vm1, %v44752_v22  ;;  %v44855_v1 = vpop.f32.mrb[20].mxu0 }
 0x90a   :  { %30143 = vmatpush1.msra.mxu1 %v47082_v37  ;;  %36097 = vmatmul.mubr.msk.f32.gmra.mrb[126].mxu0 %vm155_vm1, %v44850_v45  ;;  %v44860_v7 = vpop.f32.mrb[21].mxu0 }
 0x90b   :  { %30294 = vmatprep.subr.mxu1 %v47083_v49  ;;  %30135 = vmatprep.mubr.f32.mxu1 %v46885_v61 }
 0x90c   :  { %32584 = vmatprep.mubr.f32.mxu0 %v46885_v61 }
 0x90d   :  { %36045 = vmatmul.mubr.msk.f32.gmra.mrb[30].mxu1 %vm155_vm1, %v44772_v46  ;;  %v44872_v12 = vpop.f32.mrb[22].mxu0 }
 0x90e   :  { %36112 = vmatmul.mubr.msk.f32.vlgmr.msra.gmra.mrb[128].mxu0 %vm155_vm1, %v44867_v18  ;;  %30206 = vmatprep.mubr.f32.mxu1 %v46885_v61  ;;  %v44877_v28 = vpop.f32.mrb[23].mxu0 }
 0x90f   :  { %33097 = vmatpush1.msra.mxu0 %v47057_v6  ;;  %32589 = vmatprep.mubr.f32.mxu0 %v46885_v61 }
 0x911   :  { %36046 = vmatmul.mubr.msk.f32.vlgmr.msra.gmra.mrb[8].mxu1 %vm155_vm1, %v44752_v22  ;;  %v20114_v51 = vpop.f32.mrb[44].mxu0 }
 0x912   :  { %30295 = vmatpush1.msra.mxu1 %v47084_v14  ;;  %36113 = vmatmul.mubr.msk.f32.gmra.mrb[130].mxu0 %vm155_vm1, %v44884_v58  ;;  %v44892_v8 = vadd.f32 %v20114_v51, %v44754_v27  ;;  %v20116_v6 = vpop.f32.mrb[45].mxu0  ;;  %v47086_v27 = vld [vmem:[#allocation91_spill] sm:$0xff] }
 0x913   :  { %30371 = vmatprep.subr.mxu1 %v47085_v26  ;;  %30212 = vmatprep.mubr.f32.mxu1 %v46885_v61 }
 0x914   :  { %33160 = vmatprep.mubr.f32.mxu0 %v46885_v61 }
 0x915   :  { %36047 = vmatmul.mubr.msk.f32.gmra.mrb[10].mxu1 %vm155_vm1, %v44772_v46  ;;  %v20119_v39 = vpop.f32.mrb[46].mxu0 }
 0x916   :  { %36128 = vmatmul.mubr.msk.f32.vlgmr.msra.gmra.mrb[132].mxu0 %vm155_vm1, %v44899_v24  ;;  %30358 = vmatprep.mubr.f32.mxu1 %v46885_v61  ;;  %v44908_v19 = vadd.f32 %v20119_v39, %v44760_v29  ;;  %v20121_v31 = vpop.f32.mrb[47].mxu0 }
 0x917   :  { %33165 = vmatprep.mubr.f32.mxu0 %v46885_v61 }
 0x919   :  { %36050 = vmatmul.mubr.msk.f32.vlgmr.msra.gmra.mrb[12].mxu1 %vm155_vm1, %v44752_v22  ;;  %v44918_v13 = vpop.f32.mrb[28].mxu0 }
 0x91a   :  { %30372 = vmatpush1.msra.mxu1 %v47086_v27  ;;  %36129 = vmatmul.mubr.msk.f32.gmra.mrb[134].mxu0 %vm155_vm1, %v44914_v33  ;;  %v44926_v29 = vpop.f32.mrb[29].mxu0 }
 0x91b   :  { %30448 = vmatprep.subr.mxu1 %v29980_v52  ;;  %30364 = vmatprep.mubr.f32.mxu1 %v46885_v61 }
 0x91d   :  { %36051 = vmatmul.mubr.msk.f32.gmra.mrb[14].mxu1 %vm155_vm1, %v44772_v46  ;;  %v44931_v56 = vpop.f32.mrb[30].mxu0 }
 0x91e   :  { %30435 = vmatprep.mubr.f32.mxu1 %v46885_v61  ;;  %v44934_v42 = vpop.f32.mrb[31].mxu0 }
 0x921   :  { %36052 = vmatmul.mubr.msk.f32.vlgmr.msra.gmra.mrb[16].mxu1 %vm155_vm1, %v44752_v22  ;;  %v44938_v59 = vpop.f32.mrb[32].mxu0 }
 0x922   :  { %30449 = vmatpush1.msra.mxu1 %v47088_v62  ;;  %30441 = vmatprep.mubr.f32.mxu1 %v46885_v61  ;;  %v44942_v30 = vpop.f32.mrb[33].mxu0 }
 0x923   :  { %30560 = vmatprep.subr.mxu1 %v42500_v21 }
 0x925   :  { %36053 = vmatmul.mubr.msk.f32.gmra.mrb[18].mxu1 %vm155_vm1, %v44772_v46  ;;  %v44947_v0 = vpop.f32.mrb[34].mxu0 }
 0x926   :  { %30512 = vmatprep.mubr.f32.mxu1 %v46885_v61  ;;  %v44950_v43 = vpop.f32.mrb[35].mxu0 }
 0x929   :  { %36054 = vmatmul.mubr.msk.f32.vlgmr.msra.gmra.mrb[20].mxu1 %vm155_vm1, %v44752_v22  ;;  %v44954_v25 = vpop.f32.mrb[36].mxu0 }
 0x92a   :  { %30561 = vmatpush1.msra.mxu1 %v42489_v23  ;;  %30518 = vmatprep.mubr.f32.mxu1 %v46885_v61  ;;  %v44958_v37 = vpop.f32.mrb[37].mxu0 }
 0x92b   :  { %30637 = vmatprep.subr.mxu1 %v42421_v38 }
 0x92d   :  { %36055 = vmatmul.mubr.msk.f32.gmra.mrb[22].mxu1 %vm155_vm1, %v44772_v46  ;;  %v44963_v21 = vpop.f32.mrb[38].mxu0 }
 0x92e   :  { %30624 = vmatprep.mubr.f32.mxu1 %v46885_v61  ;;  %v44966_v49 = vpop.f32.mrb[39].mxu0 }
 0x931   :  { %36058 = vmatmul.mubr.msk.f32.vlgmr.msra.gmra.mrb[24].mxu1 %vm155_vm1, %v44785_v50  ;;  %v44970_v22 = vpop.f32.mrb[12].mxu0 }
 0x932   :  { %30638 = vmatpush1.msra.mxu1 %v42433_v35  ;;  %30630 = vmatprep.mubr.f32.mxu1 %v46885_v61  ;;  %v44974_v23 = vpop.f32.mrb[13].mxu0 }
 0x933   :  { %30714 = vmatprep.subr.mxu1 %v42919_v17 }
 0x935   :  { %36059 = vmatmul.mubr.msk.f32.gmra.mrb[26].mxu1 %vm155_vm1, %v44798_v54  ;;  %v44979_v38 = vpop.f32.mrb[14].mxu0 }
 0x936   :  { %30701 = vmatprep.mubr.f32.mxu1 %v46885_v61  ;;  %v44982_v46 = vpop.f32.mrb[15].mxu0 }
 0x939   :  { %36060 = vmatmul.mubr.msk.f32.vlgmr.msra.gmra.mrb[28].mxu1 %vm155_vm1, %v44785_v50  ;;  %v44986_v51 = vpop.f32.mrb[16].mxu0 }
 0x93a   :  { %30715 = vmatpush1.msra.mxu1 %v42431_v47  ;;  %30707 = vmatprep.mubr.f32.mxu1 %v46885_v61  ;;  %v44990_v35 = vpop.f32.mrb[17].mxu0 }
 0x93b   :  { %30866 = vmatprep.subr.mxu1 %v42459_v36 }
 0x93d   :  { %36061 = vmatmul.mubr.msk.f32.gmra.mrb[30].mxu1 %vm155_vm1, %v44798_v54  ;;  %v44995_v17 = vpop.f32.mrb[18].mxu0 }
 0x93e   :  { %30778 = vmatprep.mubr.f32.mxu1 %v46885_v61  ;;  %v44998_v14 = vpop.f32.mrb[19].mxu0 }
 0x941   :  { %36062 = vmatmul.mubr.msk.f32.vlgmr.msra.gmra.mrb[8].mxu1 %vm155_vm1, %v44785_v50  ;;  %v20745_v6 = vpop.f32.mrb[48].mxu0 }
 0x942   :  { %30867 = vmatpush1.msra.mxu1 %v42445_v34  ;;  %30784 = vmatprep.mubr.f32.mxu1 %v46885_v61  ;;  %v20991_v47 = vadd.f32 %v20745_v6, %v44892_v8  ;;  %v20747_v36 = vpop.f32.mrb[49].mxu0  ;;  %v47090_v6 = vld [vmem:[#allocation5_spill] sm:$0xff] }
 0x943   :  { %30943 = vmatprep.subr.mxu1 %v42470_v4  ;;  %v47089_v4 = vld [vmem:[#allocation89_spill] sm:$0xff] }
 0x944   :  { %v47091_v36 = vld [vmem:[#allocation97_spill] sm:$0xff] }
 0x945   :  { %36063 = vmatmul.mubr.msk.f32.gmra.mrb[10].mxu1 %vm155_vm1, %v44798_v54  ;;  %v20750_v26 = vpop.f32.mrb[50].mxu0 }
 0x946   :  { %30930 = vmatprep.mubr.f32.mxu1 %v46885_v61  ;;  %v21004_v39 = vadd.f32 %v20750_v26, %v44908_v19  ;;  %v20752_v31 = vpop.f32.mrb[51].mxu0 }
 0x949   :  { %36066 = vmatmul.mubr.msk.f32.vlgmr.msra.gmra.mrb[12].mxu1 %vm155_vm1, %v44785_v50  ;;  %v21376_v34 = vpop.f32.mrb[52].mxu0 }
 0x94a   :  { %30944 = vmatpush1.msra.mxu1 %v42465_v53  ;;  %30936 = vmatprep.mubr.f32.mxu1 %v46885_v61  ;;  %v21622_v8 = vadd.f32 %v21376_v34, %v20991_v47  ;;  %v21378_v27 = vpop.f32.mrb[53].mxu0 }
 0x94b   :  { %31020 = vmatprep.subr.mxu1 %v47089_v4  ;;  %v47092_v27 = vld [vmem:[#allocation95_spill] sm:$0xff] }
 0x94d   :  { %36067 = vmatmul.mubr.msk.f32.gmra.mrb[14].mxu1 %vm155_vm1, %v44798_v54  ;;  %v21381_v20 = vpop.f32.mrb[54].mxu0 }
 0x94e   :  { %31007 = vmatprep.mubr.f32.mxu1 %v46885_v61  ;;  %v21635_v19 = vadd.f32 %v21381_v20, %v21004_v39  ;;  %v21383_v52 = vpop.f32.mrb[55].mxu0  ;;  %v47093_v20 = vld [vmem:[#allocation99_spill] sm:$0xff] }
 0x951   :  { %36068 = vmatmul.mubr.msk.f32.vlgmr.msra.gmra.mrb[16].mxu1 %vm155_vm1, %v44785_v50  ;;  %v22006_v62 = vpop.f32.mrb[56].mxu0 }
 0x952   :  { %31021 = vmatpush1.msra.mxu1 %v47090_v6  ;;  %31013 = vmatprep.mubr.f32.mxu1 %v46885_v61  ;;  %v22252_v53 = vadd.f32 %v22006_v62, %v21622_v8  ;;  %v22008_v47 = vpop.f32.mrb[57].mxu0  ;;  %v47094_v6 = vld [vmem:[#allocation96_spill] sm:$0xff] }
 0x953   :  { %31137 = vmatprep.subr.mxu1 %v47091_v36 }
 0x955   :  { %36069 = vmatmul.mubr.msk.f32.gmra.mrb[18].mxu1 %vm155_vm1, %v44798_v54  ;;  %v22011_v26 = vpop.f32.mrb[58].mxu0 }
 0x956   :  { %31084 = vmatprep.mubr.f32.mxu1 %v46885_v61  ;;  %v22265_v39 = vadd.f32 %v22011_v26, %v21635_v19  ;;  %v22013_v31 = vpop.f32.mrb[59].mxu0 }
 0x957   :  { %v47095_v31 = vld [vmem:[#allocation98_spill] sm:$0xff] }
 0x959   :  { %36070 = vmatmul.mubr.msk.f32.vlgmr.msra.gmra.mrb[20].mxu1 %vm155_vm1, %v44785_v50  ;;  %v22636_v34 = vpop.f32.mrb[60].mxu0 }
 0x95a   :  { %31138 = vmatpush1.msra.mxu1 %v47092_v27  ;;  %31090 = vmatprep.mubr.f32.mxu1 %v46885_v61  ;;  %v22882_v8 = vadd.f32 %v22636_v34, %v22252_v53  ;;  %v22638_v4 = vpop.f32.mrb[61].mxu0 }
 0x95b   :  { %31214 = vmatprep.subr.mxu1 %v47093_v20 }
 0x95d   :  { %36071 = vmatmul.mubr.msk.f32.gmra.mrb[22].mxu1 %vm155_vm1, %v44798_v54  ;;  %v22641_v52 = vpop.f32.mrb[62].mxu0 }
 0x95e   :  { %31201 = vmatprep.mubr.f32.mxu1 %v46885_v61  ;;  %v22895_v19 = vadd.f32 %v22641_v52, %v22265_v39  ;;  %v22643_v62 = vpop.f32.mrb[63].mxu0 }
 0x961   :  { %36074 = vmatmul.mubr.msk.f32.vlgmr.msra.gmra.mrb[24].mxu1 %vm155_vm1, %v44811_v40  ;;  %v23266_v50 = vpop.f32.mrb[64].mxu0 }
 0x962   :  { %31215 = vmatpush1.msra.mxu1 %v47094_v6  ;;  %31207 = vmatprep.mubr.f32.mxu1 %v46885_v61  ;;  %v23512_v53 = vadd.f32 %v23266_v50, %v22882_v8  ;;  %v23268_v47 = vpop.f32.mrb[65].mxu0  ;;  %v47096_v8 = vld [vmem:[#allocation103_spill] sm:$0xff] }
 0x963   :  { %31291 = vmatprep.subr.mxu1 %v47051_v16  ;;  %v47098_v6 = vld [vmem:[#allocation107_spill] sm:$0xff] }
 0x965   :  { %36075 = vmatmul.mubr.msk.f32.gmra.mrb[26].mxu1 %vm155_vm1, %v44824_v48  ;;  %v23271_v54 = vpop.f32.mrb[66].mxu0 }
 0x966   :  { %31278 = vmatprep.mubr.f32.mxu1 %v46885_v61  ;;  %v23525_v36 = vadd.f32 %v23271_v54, %v22895_v19  ;;  %v23273_v26 = vpop.f32.mrb[67].mxu0  ;;  %v47097_v19 = vld [vmem:[#allocation100_spill] sm:$0xff] }
 0x969   :  { %36076 = vmatmul.mubr.msk.f32.vlgmr.msra.gmra.mrb[28].mxu1 %vm155_vm1, %v44811_v40  ;;  %v23897_v39 = vpop.f32.mrb[68].mxu0 }
 0x96a   :  { %31292 = vmatpush1.msra.mxu1 %v47095_v31  ;;  %31284 = vmatprep.mubr.f32.mxu1 %v46885_v61  ;;  %v24143_v34 = vadd.f32 %v23897_v39, %v23512_v53  ;;  %v23899_v27 = vpop.f32.mrb[69].mxu0  ;;  %v47099_v39 = vld [vmem:[#allocation102_spill] sm:$0xff]  ;;  %v47100_v31 = vld [vmem:[#allocation105_spill] sm:$0xff] }
 0x96b   :  { %31443 = vmatprep.subr.mxu1 %v47096_v8 }
 0x96d   :  { %36077 = vmatmul.mubr.msk.f32.gmra.mrb[30].mxu1 %vm155_vm1, %v44824_v48  ;;  %v23902_v16 = vpop.f32.mrb[70].mxu0 }
 0x96e   :  { %31355 = vmatprep.mubr.f32.mxu1 %v46885_v61  ;;  %v24156_v4 = vadd.f32 %v23902_v16, %v23525_v36  ;;  %v23904_v20 = vpop.f32.mrb[71].mxu0  ;;  %v31128_v36 = vpop.permute.xlu0 %31127 }
 0x971   :  { %36078 = vmatmul.mubr.msk.f32.vlgmr.msra.gmra.mrb[8].mxu1 %vm155_vm1, %v44811_v40  ;;  %v24528_v52 = vpop.f32.mrb[72].mxu0 }
 0x972   :  { %31444 = vmatpush1.msra.mxu1 %v47097_v19  ;;  %31361 = vmatprep.mubr.f32.mxu1 %v46885_v61  ;;  %v24774_v62 = vadd.f32 %v24528_v52, %v24143_v34  ;;  %v24530_v50 = vpop.f32.mrb[73].mxu0  ;;  %v31129_v34 = vsel %vm46880_vm2, %v47100_v31, %v31128_v36  ;;  %v47101_v19 = vld [vmem:[#allocation106_spill] sm:$0xff] }
 0x973   :  { %31520 = vmatprep.subr.mxu1 %v47098_v6  ;;  %v47102_v6 = vld [vmem:[#allocation110_spill] sm:$0xff] }
 0x975   :  { %36079 = vmatmul.mubr.msk.f32.gmra.mrb[10].mxu1 %vm155_vm1, %v44824_v48  ;;  %v24533_v53 = vpop.f32.mrb[74].mxu0 }
 0x976   :  { %31507 = vmatprep.mubr.f32.mxu1 %v46885_v61  ;;  %v24787_v47 = vadd.f32 %v24533_v53, %v24156_v4  ;;  %v24535_v54 = vpop.f32.mrb[75].mxu0 }
 0x979   :  { %36082 = vmatmul.mubr.msk.f32.vlgmr.msra.gmra.mrb[12].mxu1 %vm155_vm1, %v44811_v40  ;;  %v25100_v26 = vpop.f32.mrb[76].mxu0 }
 0x97a   :  { %31521 = vmatpush1.msra.mxu1 %v47099_v39  ;;  %31513 = vmatprep.mubr.f32.mxu1 %v46885_v61  ;;  %v25346_v27 = vadd.f32 %v25100_v26, %v24774_v62  ;;  %v25102_v8 = vpop.f32.mrb[77].mxu0  ;;  %v47103_v26 = vld [vmem:[#allocation109_spill] sm:$0xff] }
 0x97b   :  { %31597 = vmatprep.subr.mxu1 %v31129_v34 }
 0x97d   :  { %36083 = vmatmul.mubr.msk.f32.gmra.mrb[14].mxu1 %vm155_vm1, %v44824_v48  ;;  %v25105_v16 = vpop.f32.mrb[78].mxu0 }
 0x97e   :  { %31584 = vmatprep.mubr.f32.mxu1 %v46885_v61  ;;  %v25359_v4 = vadd.f32 %v25105_v16, %v24787_v47  ;;  %v25107_v20 = vpop.f32.mrb[79].mxu0 }
 0x981   :  { %36084 = vmatmul.mubr.msk.f32.vlgmr.msra.gmra.mrb[16].mxu1 %vm155_vm1, %v44811_v40  ;;  %v25677_v52 = vpop.f32.mrb[80].mxu0 }
 0x982   :  { %31598 = vmatpush1.msra.mxu1 %v47101_v19  ;;  %31590 = vmatprep.mubr.f32.mxu1 %v46885_v61  ;;  %v25923_v50 = vadd.f32 %v25677_v52, %v25346_v27  ;;  %v25679_v62 = vpop.f32.mrb[81].mxu0 }
 0x983   :  { %31713 = vmatprep.subr.mxu1 %v47102_v6 }
 0x985   :  { %36085 = vmatmul.mubr.msk.f32.gmra.mrb[18].mxu1 %vm155_vm1, %v44824_v48  ;;  %v25682_v53 = vpop.f32.mrb[82].mxu0 }
 0x986   :  { %31661 = vmatprep.mubr.f32.mxu1 %v46885_v61  ;;  %v25936_v47 = vadd.f32 %v25682_v53, %v25359_v4  ;;  %v25684_v54 = vpop.f32.mrb[83].mxu0 }
 0x989   :  { %36086 = vmatmul.mubr.msk.f32.vlgmr.msra.gmra.mrb[20].mxu1 %vm155_vm1, %v44811_v40  ;;  %v26253_v36 = vpop.f32.mrb[84].mxu0 }
 0x98a   :  { %31714 = vmatpush1.msra.mxu1 %v47103_v26  ;;  %31667 = vmatprep.mubr.f32.mxu1 %v46885_v61  ;;  %v26499_v39 = vadd.f32 %v26253_v36, %v25923_v50  ;;  %v26255_v31 = vpop.f32.mrb[85].mxu0  ;;  %v31704_v26 = vpop.permute.xlu1 %31703 }
 0x98b   :  { %31790 = vmatprep.subr.mxu1 %v43848_v32 }
 0x98d   :  { %36087 = vmatmul.mubr.msk.f32.gmra.mrb[22].mxu1 %vm155_vm1, %v44824_v48  ;;  %v26258_v34 = vpop.f32.mrb[86].mxu0 }
 0x98e   :  { %31777 = vmatprep.mubr.f32.mxu1 %v46885_v61  ;;  %v26512_v27 = vadd.f32 %v26258_v34, %v25936_v47  ;;  %v26260_v8 = vpop.f32.mrb[87].mxu0  ;;  %v47104_v47 = vld [vmem:[#allocation114_spill] sm:$0xff] }
 0x991   :  { %36090 = vmatmul.mubr.msk.f32.vlgmr.msra.gmra.mrb[24].mxu1 %vm155_vm1, %v44837_v11  ;;  %v26829_v40 = vpop.f32.mrb[88].mxu0 }
 0x992   :  { %31791 = vmatpush1.msra.mxu1 %v43798_v15  ;;  %31783 = vmatprep.mubr.f32.mxu1 %v46885_v61  ;;  %v27075_v16 = vadd.f32 %v26829_v40, %v26499_v39  ;;  %v26831_v4 = vpop.f32.mrb[89].mxu0 }
 0x993   :  { %31867 = vmatprep.subr.mxu1 %v44233_v57  ;;  %v47106_v4 = vld [vmem:[#allocation113_spill] sm:$0xff] }
 0x995   :  { %36091 = vmatmul.mubr.msk.f32.gmra.mrb[26].mxu1 %vm155_vm1, %v44850_v45  ;;  %v26834_v32 = vpop.f32.mrb[90].mxu0 }
 0x996   :  { %31854 = vmatprep.mubr.f32.mxu1 %v46885_v61  ;;  %v27088_v48 = vadd.f32 %v26834_v32, %v26512_v27  ;;  %v26836_v20 = vpop.f32.mrb[91].mxu0 }
 0x999   :  { %36092 = vmatmul.mubr.msk.f32.vlgmr.msra.gmra.mrb[28].mxu1 %vm155_vm1, %v44837_v11  ;;  %v27405_v52 = vpop.f32.mrb[92].mxu0 }
 0x99a   :  { %31868 = vmatpush1.msra.mxu1 %v43817_v10  ;;  %31860 = vmatprep.mubr.f32.mxu1 %v46885_v61  ;;  %v27651_v15 = vadd.f32 %v27405_v52, %v27075_v16  ;;  %v27407_v19 = vpop.f32.mrb[93].mxu0 }
 0x99b   :  { %32019 = vmatprep.subr.mxu1 %v43905_v44 }
 0x99d   :  { %36093 = vmatmul.mubr.msk.f32.gmra.mrb[30].mxu1 %vm155_vm1, %v44850_v45  ;;  %v27410_v57 = vpop.f32.mrb[94].mxu0 }
 0x99e   :  { %31931 = vmatprep.mubr.f32.mxu1 %v46885_v61  ;;  %v27664_v50 = vadd.f32 %v27410_v57, %v27088_v48  ;;  %v27412_v62 = vpop.f32.mrb[95].mxu0 }
 0x99f   :  { %v47107_v62 = vld [vmem:[#allocation7_spill] sm:$0xff] }
 0x9a1   :  { %36094 = vmatmul.mubr.msk.f32.vlgmr.msra.gmra.mrb[8].mxu1 %vm155_vm1, %v44837_v11  ;;  %v27981_v6 = vpop.f32.mrb[96].mxu0 }
 0x9a2   :  { %32020 = vmatpush1.msra.mxu1 %v43858_v5  ;;  %31937 = vmatprep.mubr.f32.mxu1 %v46885_v61  ;;  %v28227_v10 = vadd.f32 %v27981_v6, %v27651_v15  ;;  %v27983_v53 = vpop.f32.mrb[97].mxu0  ;;  %v47105_v5 = vld [vmem:[#allocation112_spill] sm:$0xff] }
 0x9a3   :  { %32096 = vmatprep.subr.mxu1 %v47104_v47  ;;  %v31705_v31 = vsel %vm2954_vm4, %v47105_v5, %v31704_v26  ;;  %v47108_v53 = vld [vmem:[#allocation8_spill] sm:$0xff] }
 0x9a4   :  { %v47109_v5 = vld [vmem:[#allocation12_spill] sm:$0xff] }
 0x9a5   :  { %36095 = vmatmul.mubr.msk.f32.gmra.mrb[10].mxu1 %vm155_vm1, %v44850_v45  ;;  %v27986_v44 = vpop.f32.mrb[98].mxu0 }
 0x9a6   :  { %32083 = vmatprep.mubr.f32.mxu1 %v46885_v61  ;;  %v28240_v54 = vadd.f32 %v27986_v44, %v27664_v50  ;;  %v27988_v36 = vpop.f32.mrb[99].mxu0 }
 0x9a9   :  { %36098 = vmatmul.mubr.msk.f32.vlgmr.msra.gmra.mrb[12].mxu1 %vm155_vm1, %v44837_v11  ;;  %v28557_v39 = vpop.f32.mrb[100].mxu0 }
 0x9aa   :  { %32097 = vmatpush1.msra.mxu1 %v43888_v55  ;;  %32089 = vmatprep.mubr.f32.mxu1 %v46885_v61  ;;  %v28803_v34 = vadd.f32 %v28557_v39, %v28227_v10  ;;  %v28559_v27 = vpop.f32.mrb[101].mxu0 }
 0x9ab   :  { %32173 = vmatprep.subr.mxu1 %v31705_v31 }
 0x9ad   :  { %36099 = vmatmul.mubr.msk.f32.gmra.mrb[14].mxu1 %vm155_vm1, %v44850_v45  ;;  %v28562_v8 = vpop.f32.mrb[102].mxu0 }
 0x9ae   :  { %32160 = vmatprep.mubr.f32.mxu1 %v46885_v61  ;;  %v28816_v40 = vadd.f32 %v28562_v8, %v28240_v54  ;;  %v28564_v16 = vpop.f32.mrb[103].mxu0  ;;  %v47110_v8 = vld [vmem:[#allocation13_spill] sm:$0xff] }
 0x9af   :  { %v47111_v16 = vld [vmem:[#allocation15_spill] sm:$0xff] }
 0x9b1   :  { %36100 = vmatmul.mubr.msk.f32.vlgmr.msra.gmra.mrb[16].mxu1 %vm155_vm1, %v44837_v11  ;;  %v29133_v55 = vpop.f32.mrb[104].mxu0 }
 0x9b2   :  { %32174 = vmatpush1.msra.mxu1 %v47106_v4  ;;  %32166 = vmatprep.mubr.f32.mxu1 %v46885_v61  ;;  %v29379_v32 = vadd.f32 %v29133_v55, %v28803_v34  ;;  %v29135_v48 = vpop.f32.mrb[105].mxu0 }
 0x9b3   :  { %32289 = vmatprep.subr.mxu1 %v43996_v9  ;;  %v32280_v48 = vpop.permute.xlu0 %32279 }
 0x9b5   :  { %36101 = vmatmul.mubr.msk.f32.gmra.mrb[18].mxu1 %vm155_vm1, %v44850_v45  ;;  %v29138_v20 = vpop.f32.mrb[106].mxu0 }
 0x9b6   :  { %32237 = vmatprep.mubr.f32.mxu1 %v46885_v61  ;;  %v29392_v52 = vadd.f32 %v29138_v20, %v28816_v40  ;;  %v29140_v15 = vpop.f32.mrb[107].mxu0 }
 0x9b7   :  { %v47112_v15 = vld [vmem:[#allocation16_spill] sm:$0xff] }
 0x9b9   :  { %36102 = vmatmul.mubr.msk.f32.vlgmr.msra.gmra.mrb[20].mxu1 %vm155_vm1, %v44837_v11  ;;  %v29709_v19 = vpop.f32.mrb[108].mxu0 }
 0x9ba   :  { %32290 = vmatpush1.msra.mxu1 %v43948_v2  ;;  %32243 = vmatprep.mubr.f32.mxu1 %v46885_v61  ;;  %v29955_v57 = vadd.f32 %v29709_v19, %v29379_v32  ;;  %v29711_v50 = vpop.f32.mrb[109].mxu0  ;;  %v47113_v19 = vld [vmem:[#allocation104_spill] sm:$0xff] }
 0x9bb   :  { %32366 = vmatprep.subr.mxu1 %v47107_v62 }
 0x9bd   :  { %36103 = vmatmul.mubr.msk.f32.gmra.mrb[22].mxu1 %vm155_vm1, %v44850_v45  ;;  %v29714_v9 = vpop.f32.mrb[110].mxu0 }
 0x9be   :  { %32353 = vmatprep.mubr.f32.mxu1 %v46885_v61  ;;  %v29968_v6 = vadd.f32 %v29714_v9, %v29392_v52  ;;  %v29716_v10 = vpop.f32.mrb[111].mxu0 }
 0x9c1   :  { %36106 = vmatmul.mubr.msk.f32.vlgmr.msra.gmra.mrb[24].mxu1 %vm155_vm1, %v44867_v18  ;;  %v30285_v11 = vpop.f32.mrb[112].mxu0 }
 0x9c2   :  { %32367 = vmatpush1.msra.mxu1 %v47108_v53  ;;  %32359 = vmatprep.mubr.f32.mxu1 %v46885_v61  ;;  %v30531_v2 = vadd.f32 %v30285_v11, %v29955_v57  ;;  %v30287_v47 = vpop.f32.mrb[113].mxu0  ;;  %v32281_v57 = vsel %vm20413_vm3, %v47113_v19, %v32280_v48  ;;  %v47114_v53 = vld [vmem:[#allocation6_spill] sm:$0xff] }
 0x9c3   :  { %32443 = vmatprep.subr.mxu1 %v44358_v60  ;;  %v47115_v47 = vld [vmem:[#allocation18_spill] sm:$0xff] }
 0x9c5   :  { %36107 = vmatmul.mubr.msk.f32.gmra.mrb[26].mxu1 %vm155_vm1, %v44884_v58  ;;  %v30290_v45 = vpop.f32.mrb[114].mxu0 }
 0x9c6   :  { %32430 = vmatprep.mubr.f32.mxu1 %v46885_v61  ;;  %v30544_v44 = vadd.f32 %v30290_v45, %v29968_v6  ;;  %v30292_v54 = vpop.f32.mrb[115].mxu0 }
 0x9c9   :  { %36108 = vmatmul.mubr.msk.f32.vlgmr.msra.gmra.mrb[28].mxu1 %vm155_vm1, %v44867_v18  ;;  %v30857_v36 = vpop.f32.mrb[116].mxu0 }
 0x9ca   :  { %32444 = vmatpush1.msra.mxu1 %v44007_v41  ;;  %32436 = vmatprep.mubr.f32.mxu1 %v46885_v61  ;;  %v31103_v26 = vadd.f32 %v30857_v36, %v30531_v2  ;;  %v30859_v39 = vpop.f32.mrb[117].mxu0 }
 0x9cb   :  { %32595 = vmatprep.subr.mxu1 %v47109_v5 }
 0x9cd   :  { %36109 = vmatmul.mubr.msk.f32.gmra.mrb[30].mxu1 %vm155_vm1, %v44884_v58  ;;  %v30862_v60 = vpop.f32.mrb[118].mxu0 }
 0x9ce   :  { %32507 = vmatprep.mubr.f32.mxu1 %v46885_v61  ;;  %v31116_v31 = vadd.f32 %v30862_v60, %v30544_v44  ;;  %v30864_v34 = vpop.f32.mrb[119].mxu0  ;;  %v47117_v60 = vld [vmem:[#allocation21_spill] sm:$0xff] }
 0x9d1   :  { %36110 = vmatmul.mubr.msk.f32.vlgmr.msra.gmra.mrb[8].mxu1 %vm155_vm1, %v44867_v18  ;;  %v31434_v27 = vpop.f32.mrb[120].mxu0 }
 0x9d2   :  { %32596 = vmatpush1.msra.mxu1 %v47110_v8  ;;  %v31680_v41 = vadd.f32 %v31434_v27, %v31103_v26  ;;  %32513 = vmatprep.mubr.f32.mxu1 %v46885_v61  ;;  %v31436_v40 = vpop.f32.mrb[121].mxu0  ;;  %v47116_v26 = vld [vmem:[#allocation20_spill] sm:$0xff]  ;;  %v47121_v8 = vld [vmem:[#allocation30_spill] sm:$0xff] }
 0x9d3   :  { %32672 = vmatprep.subr.mxu1 %v47111_v16  ;;  %v47123_v40 = vld [vmem:[#allocation108_spill] sm:$0xff] }
 0x9d5   :  { %36111 = vmatmul.mubr.msk.f32.gmra.mrb[10].mxu1 %vm155_vm1, %v44884_v58  ;;  %v31439_v55 = vpop.f32.mrb[122].mxu0 }
 0x9d6   :  { %v31693_v4 = vadd.f32 %v31439_v55, %v31116_v31  ;;  %v31441_v32 = vpop.f32.mrb[123].mxu0  ;;  %32659 = vmatprep.mubr.f32.mxu1 %v46885_v61  ;;  %v47124_v55 = vld [vmem:[#allocation9_spill] sm:$0xff] }
 0x9d9   :  { %v32010_v20 = vpop.f32.mrb[124].mxu0  ;;  %36114 = vmatmul.mubr.msk.f32.vlgmr.msra.gmra.mrb[12].mxu1 %vm155_vm1, %v44867_v18 }
 0x9da   :  { %v32256_v52 = vadd.f32 %v32010_v20, %v31680_v41  ;;  %32673 = vmatpush1.msra.mxu1 %v47112_v15  ;;  %v32012_v50 = vpop.f32.mrb[125].mxu0  ;;  %32665 = vmatprep.mubr.f32.mxu1 %v46885_v61  ;;  %v47122_v41 = vld [vmem:[#allocation32_spill] sm:$0xff]  ;;  %v45231_v20 = vpop.permute.xlu0 %33432 }
 0x9db   :  { %32749 = vmatprep.subr.mxu1 %v32281_v57 }
 0x9dd   :  { %v32015_v62 = vpop.f32.mrb[126].mxu0  ;;  %36115 = vmatmul.mubr.msk.f32.gmra.mrb[14].mxu1 %vm155_vm1, %v44884_v58 }
 0x9de   :  { %v32269_v9 = vadd.f32 %v32015_v62, %v31693_v4  ;;  %v32017_v6 = vpop.f32.mrb[127].mxu0  ;;  %32736 = vmatprep.mubr.f32.mxu1 %v46885_v61 }
 0x9e1   :  { %v32586_v10 = vpop.f32.mrb[128].mxu0  ;;  %36116 = vmatmul.mubr.msk.f32.vlgmr.msra.gmra.mrb[16].mxu1 %vm155_vm1, %v44867_v18 }
 0x9e2   :  { %v32832_v11 = vadd.f32 %v32586_v10, %v32256_v52  ;;  %32750 = vmatpush1.msra.mxu1 %v47114_v53  ;;  %v32588_v2 = vpop.f32.mrb[129].mxu0  ;;  %32742 = vmatprep.mubr.f32.mxu1 %v46885_v61 }
 0x9e3   :  { %32865 = vmatprep.subr.mxu1 %v47115_v47 }
 0x9e5   :  { %v32591_v45 = vpop.f32.mrb[130].mxu0  ;;  %36117 = vmatmul.mubr.msk.f32.gmra.mrb[18].mxu1 %vm155_vm1, %v44884_v58 }
 0x9e6   :  { %v32845_v44 = vadd.f32 %v32591_v45, %v32269_v9  ;;  %v32593_v54 = vpop.f32.mrb[131].mxu0  ;;  %32813 = vmatprep.mubr.f32.mxu1 %v46885_v61 }
 0x9e9   :  { %36118 = vmatmul.mubr.msk.f32.vlgmr.msra.gmra.mrb[20].mxu1 %vm155_vm1, %v44867_v18  ;;  %v33162_v36 = vpop.f32.mrb[132].mxu0  ;;  %v47118_v18 = vld [vmem:[#allocation23_spill] sm:$0xff] }
 0x9ea   :  { %32866 = vmatpush1.msra.mxu1 %v47116_v26  ;;  %v45176_v39 = vadd.f32 %v33162_v36, %v32832_v11  ;;  %32819 = vmatprep.mubr.f32.mxu1 %v46885_v61  ;;  %v33164_v5 = vpop.f32.mrb[133].mxu0 }
 0x9eb   :  { %32942 = vmatprep.subr.mxu1 %v47117_v60 }
 0x9ed   :  { %36119 = vmatmul.mubr.msk.f32.gmra.mrb[22].mxu1 %vm155_vm1, %v44884_v58  ;;  %v33167_v31 = vpop.f32.mrb[134].mxu0  ;;  %v47119_v58 = vld [vmem:[#allocation27_spill] sm:$0xff] }
 0x9ee   :  { %v45182_v34 = vadd.f32 %v33167_v31, %v32845_v44  ;;  %32929 = vmatprep.mubr.f32.mxu1 %v46885_v61  ;;  %v33169_v27 = vpop.f32.mrb[135].mxu0 }
 0x9f1   :  { %36122 = vmatmul.mubr.msk.f32.vlgmr.msra.gmra.mrb[24].mxu1 %vm155_vm1, %v44899_v24 }
 0x9f2   :  { %32943 = vmatpush1.msra.mxu1 %v47118_v18  ;;  %32935 = vmatprep.mubr.f32.mxu1 %v46885_v61 }
 0x9f3   :  { %33019 = vmatprep.subr.mxu1 %v44380_v3  ;;  %v47120_v3 = vld [vmem:[#allocation28_spill] sm:$0xff] }
 0x9f5   :  { %36123 = vmatmul.mubr.msk.f32.gmra.mrb[26].mxu1 %vm155_vm1, %v44914_v33 }
 0x9f6   :  { %33006 = vmatprep.mubr.f32.mxu1 %v46885_v61 }
 0x9f9   :  { %36124 = vmatmul.mubr.msk.f32.vlgmr.msra.gmra.mrb[28].mxu1 %vm155_vm1, %v44899_v24 }
 0x9fa   :  { %33020 = vmatpush1.msra.mxu1 %v44146_v63  ;;  %33012 = vmatprep.mubr.f32.mxu1 %v46885_v61  ;;  %v32856_v63 = vpop.permute.xlu1 %32855 }
 0x9fb   :  { %33171 = vmatprep.subr.mxu1 %v47119_v58  ;;  %v32857_v16 = vsel %vm21044_vm11, %v47123_v40, %v32856_v63 }
 0x9fd   :  { %36125 = vmatmul.mubr.msk.f32.gmra.mrb[30].mxu1 %vm155_vm1, %v44914_v33 }
 0x9fe   :  { %33083 = vmatprep.mubr.f32.mxu1 %v46885_v61 }
 0xa01   :  { %36126 = vmatmul.mubr.msk.f32.vlgmr.msra.gmra.mrb[8].mxu1 %vm155_vm1, %v44899_v24 }
 0xa02   :  { %33172 = vmatpush1.msra.mxu1 %v47120_v3  ;;  %33089 = vmatprep.mubr.f32.mxu1 %v46885_v61 }
 0xa03   :  { %33248 = vmatprep.subr.mxu1 %v47121_v8 }
 0xa05   :  { %36127 = vmatmul.mubr.msk.f32.gmra.mrb[10].mxu1 %vm155_vm1, %v44914_v33 }
 0xa06   :  { %33235 = vmatprep.mubr.f32.mxu1 %v46885_v61 }
 0xa09   :  { %36130 = vmatmul.mubr.msk.f32.vlgmr.msra.gmra.mrb[12].mxu1 %vm155_vm1, %v44899_v24 }
 0xa0a   :  { %33249 = vmatpush1.msra.mxu1 %v47122_v41  ;;  %33241 = vmatprep.mubr.f32.mxu1 %v46885_v61 }
 0xa0b   :  { %33325 = vmatprep.subr.mxu1 %v32857_v16 }
 0xa0d   :  { %36131 = vmatmul.mubr.msk.f32.gmra.mrb[14].mxu1 %vm155_vm1, %v44914_v33 }
 0xa0e   :  { %33312 = vmatprep.mubr.f32.mxu1 %v46885_v61 }
 0xa11   :  { %36132 = vmatmul.mubr.msk.f32.vlgmr.msra.gmra.mrb[16].mxu1 %vm155_vm1, %v44899_v24 }
 0xa12   :  { %33326 = vmatpush1.msra.mxu1 %v47124_v55  ;;  %33318 = vmatprep.mubr.f32.mxu1 %v46885_v61 }
 0xa15   :  { %36133 = vmatmul.mubr.msk.f32.gmra.mrb[18].mxu1 %vm155_vm1, %v44914_v33 }
 0xa16   :  { %33389 = vmatprep.mubr.f32.mxu1 %v46885_v61 }
 0xa19   :  { %36134 = vmatmul.mubr.msk.f32.vlgmr.msra.gmra.mrb[20].mxu1 %vm155_vm1, %v44899_v24 }
 0xa1a   :  { %33395 = vmatprep.mubr.f32.mxu1 %v46885_v61 }
 0xa1d   :  { %36135 = vmatmul.mubr.msk.f32.gmra.mrb[22].mxu1 %vm155_vm1, %v44914_v33  ;;  %vm46881_vm1 = vmmov 0  }
 0xa1e   :  { %36717 = vmatprep.mubr.msk.f32.mxu0 %vm46881_vm1, %v46885_v61 }
 0xac4   :  { %v32931_v4 = vpop.f32.mrb[24].mxu1 }
 0xac5   :  { %v37749_v32 = vadd.f32 %v32931_v4, %v44970_v22  ;;  %v32933_v48 = vpop.f32.mrb[25].mxu1 }
 0xac6   :  { %v37750_v52 = vadd.f32 %v32933_v48, %v44974_v23 }
 0xac7   :  { %v45235_v15 = vadd.f32 %v37749_v32, %v45231_v20 }
 0xac8   :  { %v45238_v19 = vadd.f32 %v37750_v52, %v45231_v20  ;;  %v32937_v24 = vpop.f32.mrb[26].mxu1 }
 0xac9   :  { %v45241_v57 = vadd.f32 %v32937_v24, %v44979_v38  ;;  %v32939_v50 = vpop.f32.mrb[27].mxu1 }
 0xaca   :  { %v38788_v33 = vpack.i.bf16 %v45238_v19, %v45235_v15  ;;  %v45246_v22 = vadd.f32 %v32939_v50, %v44982_v46  ;;  %v33446_v50 = vadd.f32 %v45231_v20, %v45176_v39 }
 0xacc   :  { %v33008_v62 = vpop.f32.mrb[28].mxu1  ;;  %38789 = vrot.lane.b32.xlu1 %v38788_v33, %s39028_s13 }
 0xacd   :  { %v37753_v23 = vadd.f32 %v33008_v62, %v44986_v51  ;;  %v33010_v9 = vpop.f32.mrb[29].mxu1 }
 0xace   :  { %v37754_v6 = vadd.f32 %v33010_v9, %v44990_v35 }
 0xacf   :  { %v45252_v10 = vadd.f32 %v37753_v23, %v45231_v20 }
 0xad0   :  { %v45255_v38 = vadd.f32 %v37754_v6, %v45231_v20  ;;  %v33014_v11 = vpop.f32.mrb[30].mxu1 }
 0xad1   :  { %v45258_v53 = vadd.f32 %v33014_v11, %v44995_v17  ;;  %v33016_v46 = vpop.f32.mrb[31].mxu1 }
 0xad2   :  { %v38793_v2 = vpack.i.bf16 %v45255_v38, %v45252_v10  ;;  %v45263_v47 = vadd.f32 %v33016_v46, %v44998_v14 }
 0xad4   :  { %v33085_v51 = vpop.f32.mrb[8].mxu1  ;;  %38794 = vrot.lane.b32.xlu1 %v38793_v2, %s39028_s13 }
 0xad5   :  { %v37757_v35 = vadd.f32 %v33085_v51, %v44855_v1  ;;  %v33087_v45 = vpop.f32.mrb[9].mxu1 }
 0xad6   :  { %v37758_v44 = vadd.f32 %v33087_v45, %v44860_v7 }
 0xad7   :  { %v45269_v54 = vadd.f32 %v37757_v35, %v45231_v20 }
 0xad8   :  { %v45272_v17 = vadd.f32 %v37758_v44, %v45231_v20  ;;  %v33091_v36 = vpop.f32.mrb[10].mxu1 }
 0xad9   :  { %v45275_v26 = vadd.f32 %v33091_v36, %v44872_v12  ;;  %v33093_v14 = vpop.f32.mrb[11].mxu1 }
 0xada   :  { %v38798_v5 = vpack.i.bf16 %v45272_v17, %v45269_v54  ;;  %v45280_v60 = vadd.f32 %v33093_v14, %v44877_v28  ;;  %v36136_v14 = vld [vmem:[%s46740_s5 + $0x80] sm:$0xff] }
 0xadc   :  { %v33237_v1 = vpop.f32.mrb[12].mxu1  ;;  %38799 = vrot.lane.b32.xlu0 %v38798_v5, %s39028_s13  ;;  %v36137_v5 = vld [vmem:[%s46740_s5 + $0x88] sm:$0xff] }
 0xadd   :  { %v37761_v7 = vadd.f32 %v33237_v1, %v44918_v13  ;;  %v33239_v31 = vpop.f32.mrb[13].mxu1  ;;  %v37316_v1 = vpack.c.bf16 %v36137_v5, %v36136_v14 }
 0xade   :  { %v37762_v27 = vadd.f32 %v33239_v31, %v44926_v29  ;;  %v39051_v31 = vmov 0.0|0.0  }
 0xadf   :  { %v45286_v18 = vadd.f32 %v37761_v7, %v45231_v20  ;;  %37315 = vmatprep.subr.bf16.mxu0 %v39051_v31 }
 0xae0   :  { %v45289_v12 = vadd.f32 %v37762_v27, %v45231_v20  ;;  %v33243_v58 = vpop.f32.mrb[14].mxu1  ;;  %37317 = vmatpush3.bf16.msra.mxu0 %v37316_v1  ;;  %v36138_v27 = vld [vmem:[%s46740_s5 + $0x90] sm:$0xff] }
 0xae1   :  { %v45292_v3 = vadd.f32 %v33243_v58, %v44931_v56  ;;  %v33245_v28 = vpop.f32.mrb[15].mxu1  ;;  %37318 = vmatprep.subr.bf16.mxu0 %v39051_v31  ;;  %v36139_v58 = vld [vmem:[%s46740_s5 + $0x98] sm:$0xff] }
 0xae2   :  { %v38803_v8 = vpack.i.bf16 %v45289_v12, %v45286_v18  ;;  %v45297_v63 = vadd.f32 %v33245_v28, %v44934_v42 }
 0xae4   :  { %v33314_v13 = vpop.f32.mrb[16].mxu1  ;;  %38804 = vrot.lane.b32.xlu1 %v38803_v8, %s39028_s13 }
 0xae5   :  { %v37765_v29 = vadd.f32 %v33314_v13, %v44938_v59  ;;  %v33316_v41 = vpop.f32.mrb[17].mxu1  ;;  %v37319_v13 = vpack.c.bf16 %v36139_v58, %v36138_v27 }
 0xae6   :  { %v37766_v40 = vadd.f32 %v33316_v41, %v44942_v30 }
 0xae7   :  { %v45303_v16 = vadd.f32 %v37765_v29, %v45231_v20  ;;  %37320 = vmatpush3.bf16.msra.mxu0 %v37319_v13 }
 0xae8   :  { %v45306_v56 = vadd.f32 %v37766_v40, %v45231_v20  ;;  %v33320_v55 = vpop.f32.mrb[18].mxu1  ;;  %v36140_v40 = vld [vmem:[%s46740_s5 + $0xa0] sm:$0xff]  ;;  %37321 = vmatprep.subr.bf16.mxu0 %v39051_v31 }
 0xae9   :  { %v45309_v4 = vadd.f32 %v33320_v55, %v44947_v0  ;;  %v33322_v42 = vpop.f32.mrb[19].mxu1  ;;  %v36141_v55 = vld [vmem:[%s46740_s5 + $0xa8] sm:$0xff] }
 0xaea   :  { %v38808_v32 = vpack.i.bf16 %v45306_v56, %v45303_v16  ;;  %v45314_v48 = vadd.f32 %v33322_v42, %v44950_v43  ;;  %v37322_v42 = vpack.c.bf16 %v36141_v55, %v36140_v40  ;;  %v36150_v40 = vld [vmem:[%s46740_s5 + $0xf0] sm:$0xff]  ;;  %v36151_v55 = vld [vmem:[%s46740_s5 + $0xf8] sm:$0xff] }
 0xaec   :  { %v33391_v59 = vpop.f32.mrb[20].mxu1  ;;  %38809 = vrot.lane.b32.xlu0 %v38808_v32, %s39028_s13  ;;  %37323 = vmatpush3.bf16.msra.mxu0 %v37322_v42 }
 0xaed   :  { %v37769_v30 = vadd.f32 %v33391_v59, %v44954_v25  ;;  %v33393_v52 = vpop.f32.mrb[21].mxu1  ;;  %37324 = vmatprep.subr.bf16.mxu0 %v39051_v31 }
 0xaee   :  { %v37770_v24 = vadd.f32 %v33393_v52, %v44958_v37 }
 0xaef   :  { %v45322_v0 = vadd.f32 %v37769_v30, %v45231_v20 }
 0xaf0   :  { %v45325_v33 = vadd.f32 %v37770_v24, %v45231_v20  ;;  %v33397_v62 = vpop.f32.mrb[22].mxu1 }
 0xaf1   :  { %v38813_v43 = vpack.i.bf16 %v45322_v0, %v33446_v50  ;;  %v45329_v23 = vadd.f32 %v33397_v62, %v44963_v21  ;;  %v33399_v9 = vpop.f32.mrb[23].mxu1 }
 0xaf2   :  { %v45332_v25 = vadd.f32 %v33399_v9, %v44966_v49  ;;  %33516 = vrot.lane.b32.xlu0 %v45325_v33, %s39028_s13  ;;  %v36144_v9 = vld [vmem:[%s46740_s5 + $0xc0] sm:$0xff] }
 0xaf3   :  { %38814 = vrot.lane.b32.xlu1 %v38813_v43, %s39028_s13 }
 0xb3e   :  { %v38790_v37 = vpop.permute.xlu1 %38789 }
 0xb3f   :  { %v38792_v39 = vunpack.i.h.bf16 %v38790_v37  ;;  %v38791_v6 = vunpack.i.l.bf16 %v38790_v37  ;;  %v36145_v37 = vld [vmem:[%s46740_s5 + $0xc8] sm:$0xff] }
 0xb41   :  { %v33544_v11 = vsel %vm46880_vm2, %v38791_v6, %v38792_v39 }
 0xb42   :  { %v33590_v49 = vmax.f32 %v45235_v15, %v33544_v11  ;;  %v36147_v11 = vld [vmem:[%s46740_s5 + $0xd8] sm:$0xff] }
 0xb46   :  { %v38795_v20 = vpop.permute.xlu1 %38794 }
 0xb47   :  { %v38797_v46 = vunpack.i.h.bf16 %v38795_v20  ;;  %v38796_v2 = vunpack.i.l.bf16 %v38795_v20  ;;  %v36146_v20 = vld [vmem:[%s46740_s5 + $0xd0] sm:$0xff] }
 0xb49   :  { %v33545_v21 = vsel %vm46880_vm2, %v38792_v39, %v38796_v2  ;;  %v33546_v51 = vsel %vm46880_vm2, %v38796_v2, %v38797_v46  ;;  %v37328_v39 = vpack.c.bf16 %v36145_v37, %v36144_v9 }
 0xb4a   :  { %v33591_v35 = vmax.f32 %v45238_v19, %v33545_v21  ;;  %v33592_v45 = vmax.f32 %v45252_v10, %v33546_v51  ;;  %v37331_v51 = vpack.c.bf16 %v36147_v11, %v36146_v20 }
 0xb4c   :  { %v45343_v44 = vmax.f32 %v33590_v49, %v33591_v35  ;;  %v33615_v36 = vmax.f32 %v33591_v35, %v33592_v45 }
 0xb4e   :  { %v45351_v7 = vpop.permute.xlu0 %38799  ;;  %v38818_v15 = vpack.i.bf16 %v33615_v36, %v45343_v44 }
 0xb4f   :  { %v38802_v19 = vunpack.i.h.bf16 %v45351_v7  ;;  %v38801_v10 = vunpack.i.l.bf16 %v45351_v7  ;;  %v37337_v7 = vpack.c.bf16 %v36151_v55, %v36150_v40 }
 0xb50   :  { %38819 = vrot.lane.b32.xlu1 %v38818_v15, %s39052_s20  ;;  %v36148_v15 = vld [vmem:[%s46740_s5 + $0xe0] sm:$0xff] }
 0xb51   :  { %v33547_v28 = vsel %vm46880_vm2, %v38797_v46, %v38801_v10  ;;  %v33548_v8 = vsel %vm46880_vm2, %v38801_v10, %v38802_v19  ;;  %v36149_v10 = vld [vmem:[%s46740_s5 + $0xe8] sm:$0xff] }
 0xb52   :  { %v33593_v29 = vmax.f32 %v45255_v38, %v33547_v28  ;;  %v45371_v41 = vmax.f32 %v45269_v54, %v33548_v8  ;;  %v36142_v38 = vld [vmem:[%s46740_s5 + $0xb0] sm:$0xff]  ;;  %v36143_v54 = vld [vmem:[%s46740_s5 + $0xb8] sm:$0xff] }
 0xb53   :  { %v37325_v52 = vpack.c.bf16 %v36143_v54, %v36142_v38 }
 0xb54   :  { %v33616_v32 = vmax.f32 %v33592_v45, %v33593_v29  ;;  %v45387_v59 = vmax.f32 %v33593_v29, %v45371_v41 }
 0xb55   :  { %37326 = vmatpush3.bf16.msra.mxu0 %v37325_v52 }
 0xb56   :  { %v38823_v30 = vpack.i.bf16 %v33616_v32, %v33615_v36  ;;  %v38805_v24 = vpop.permute.xlu1 %38804  ;;  %v38828_v50 = vpack.i.bf16 %v45387_v59, %v33616_v32  ;;  %37327 = vmatprep.subr.bf16.mxu0 %v39051_v31 }
 0xb57   :  { %v38807_v62 = vunpack.i.h.bf16 %v38805_v24  ;;  %v38806_v43 = vunpack.i.l.bf16 %v38805_v24 }
 0xb58   :  { %38824 = vrot.lane.b32.xlu0 %v38823_v30, %s39053_s17 }
 0xb59   :  { %v33550_v46 = vsel %vm46880_vm2, %v38806_v43, %v38807_v62  ;;  %37329 = vmatpush3.bf16.msra.mxu0 %v37328_v39 }
 0xb5a   :  { %37330 = vmatprep.subr.bf16.mxu0 %v39051_v31  ;;  %v33596_v45 = vmax.f32 %v45286_v18, %v33550_v46 }
 0xb5c   :  { %38829 = vrot.lane.b32.xlu0 %v38828_v50, %s39040_s27  ;;  %v33634_v50 = vlaneseq }
 0xb5d   :  { %37332 = vmatpush3.bf16.msra.mxu0 %v37331_v51 }
 0xb5e   :  { %v38810_v6 = vpop.permute.xlu0 %38809  ;;  %37333 = vmatprep.subr.bf16.mxu0 %v39051_v31 }
 0xb5f   :  { %v38812_v2 = vunpack.i.h.bf16 %v38810_v6  ;;  %v38811_v21 = vunpack.i.l.bf16 %v38810_v6 }
 0xb61   :  { %v33551_v49 = vsel %vm46880_vm2, %v38807_v62, %v38811_v21  ;;  %v33552_v35 = vsel %vm46880_vm2, %v38811_v21, %v38812_v2 }
 0xb62   :  { %v33597_v36 = vmax.f32 %v45289_v12, %v33551_v49  ;;  %v33598_v14 = vmax.f32 %v45303_v16, %v33552_v35  ;;  %v37334_v16 = vpack.c.bf16 %v36149_v10, %v36148_v15  ;;  %v36266_v35 = vld [vmem:[%s46740_s5 + $0x490] sm:$0xff] }
 0xb64   :  { %v45413_v5 = vmax.f32 %v33596_v45, %v33597_v36  ;;  %v33620_v1 = vmax.f32 %v33597_v36, %v33598_v14  ;;  %v33517_v28 = vpop.permute.xlu0 %33516  ;;  %37335 = vmatpush3.bf16.msra.mxu0 %v37334_v16  ;;  %v36267_v36 = vld [vmem:[%s46740_s5 + $0x498] sm:$0xff] }
 0xb65   :  { %v38815_v27 = vpop.permute.xlu1 %38814  ;;  %37336 = vmatprep.subr.bf16.mxu0 %v39051_v31 }
 0xb66   :  { %v38817_v18 = vunpack.i.h.bf16 %v38815_v27  ;;  %v38816_v58 = vunpack.i.l.bf16 %v38815_v27  ;;  %v38838_v12 = vpack.i.bf16 %v33620_v1, %v45413_v5 }
 0xb68   :  { %v33553_v8 = vsel %vm46880_vm2, %v38812_v2, %v38817_v18  ;;  %v33554_v13 = vsel %vm46880_vm2, %v38817_v18, %v33517_v28  ;;  %v33549_v29 = vsel %vm46880_vm2, %v38802_v19, %v38816_v58  ;;  %38839 = vrot.lane.b32.xlu1 %v38838_v12, %s39052_s20  ;;  %v33601_v19 = vmax.f32 %v45325_v33, %v33517_v28 }
 0xb69   :  { %v33599_v42 = vmax.f32 %v45306_v56, %v33553_v8  ;;  %v33600_v32 = vmax.f32 %v45322_v0, %v33554_v13  ;;  %v33595_v38 = vmax.f32 %v45272_v17, %v33549_v29  ;;  %37338 = vmatpush3.bf16.msra.mxu0 %v37337_v7 }
 0xb6a   :  { %37339 = vmatprep.subr.bf16.mxu0 %v39051_v31 }
 0xb6b   :  { %v33621_v54 = vmax.f32 %v33598_v14, %v33599_v42  ;;  %v33618_v30 = vmax.f32 %v45371_v41, %v33595_v38  ;;  %v33622_v52 = vmax.f32 %v33599_v42, %v33600_v32  ;;  %v33623_v24 = vmax.f32 %v33600_v32, %v33601_v19  ;;  %v33429_v41 = vld [vmem:[%s46739_s4 + $0x8] sm:$0xff]  ;;  %v36264_v38 = vld [vmem:[%s46740_s5 + $0x480] sm:$0xff] }
 0xb6d   :  { %v38843_v56 = vpack.i.bf16 %v33621_v54, %v33620_v1  ;;  %v38833_v0 = vpack.i.bf16 %v33618_v30, %v45387_v59  ;;  %v38848_v17 = vpack.i.bf16 %v33622_v52, %v33621_v54  ;;  %v38853_v33 = vpack.i.bf16 %v33623_v24, %v33622_v52  ;;  %v36265_v52 = vld [vmem:[%s46740_s5 + $0x488] sm:$0xff] }
 0xb6e   :  { %v33635_v59 = vand.u32 127, %v33634_v50 }
 0xb6f   :  { %38844 = vrot.lane.b32.xlu1 %v38843_v56, %s39053_s17  ;;  %38834 = vrot.lane.b32.xlu0 %v38833_v0, %s39055_s18 }
 0xb70   :  { %v33637_v43 = vand.u32 1023, %v33635_v59  ;;  %v33636_v37 = vadd.s32 1024, %v33635_v59 }
 0xb72   :  { %vm33639_vm4 = vcmp.ge.s32.totalorder %v33637_v43, 20  ;;  %vm33641_vm5 = vcmp.lt.s32.totalorder %v33637_v43, 40  ;;  %v33638_v11 = vand.u32 1023, %v33636_v37  ;;  %vm33682_vm12 = vcmp.ge.s32.totalorder %v33637_v43, 40 }
 0xb73   :  { %38849 = vrot.lane.b32.xlu1 %v38848_v17, %s39040_s27  ;;  %38854 = vrot.lane.b32.xlu0 %v38853_v33, %s39055_s18  ;;  %vm33684_vm15 = vcmp.lt.s32.totalorder %v33637_v43, 60  ;;  %vm45452_vm7 = vmand %vm33639_vm4, %vm33641_vm5  ;;  %vm33721_vm8 = vcmp.ge.s32.totalorder %v33637_v43, 60  ;;  %vm33723_vm9 = vcmp.lt.s32.totalorder %v33637_v43, 80  ;;  %vm33759_vm0 = vcmp.ge.s32.totalorder %v33637_v43, 80  ;;  %v33803_v33 = vld [vmem:[%s46740_s5] sm:$0xff] }
 0xb74   :  { %vm33640_vm3 = vcmp.ge.s32.totalorder %v33638_v11, 20  ;;  %vm33642_vm11 = vcmp.lt.s32.totalorder %v33638_v11, 40  ;;  %vm33761_vm13 = vcmp.lt.s32.totalorder %v33637_v43, 100  ;;  %vm45458_vm2 = vmand %vm33682_vm12, %vm33684_vm15  ;;  %vm33683_vm4 = vcmp.ge.s32.totalorder %v33638_v11, 40 }
 0xb75   :  { %vm45466_vm5 = vmand %vm33721_vm8, %vm33723_vm9  ;;  %vm33685_vm1 = vcmp.lt.s32.totalorder %v33638_v11, 60  ;;  %vm33785_vm12 = vcmask 654336   ;;  %vm33722_vm8 = vcmp.ge.s32.totalorder %v33638_v11, 60  ;;  %vm33724_vm9 = vcmp.lt.s32.totalorder %v33638_v11, 80 }
 0xb76   :  { %vm45473_vm15 = vmand %vm33759_vm0, %vm33761_vm13  ;;  %vm33762_vm0 = vcmp.lt.s32.totalorder %v33638_v11, 100 }
 0xb77   :  { %33437 = vperm.xlu1 %38786, %v33429_v41   ;;  %vm45491_vm13 = vmand %vm33683_vm4, %vm33685_vm1  ;;  %v33804_v41 = vld [vmem:[%s46740_s5 + $0x8] sm:$0xff]  ;;  %vm33801_vm4 = vcmask 1040384  }
 0xbc2   :  { %v38820_v9 = vpop.permute.xlu1 %38819 }
 0xbc3   :  { %v38822_v39 = vunpack.i.h.bf16 %v38820_v9  ;;  %v38821_v6 = vunpack.i.l.bf16 %v38820_v9 }
 0xbc5   :  { %v33670_v45 = vsel %vm33669_vm10, %v38821_v6, %v38822_v39  ;;  %v37340_v6 = vpack.c.bf16 %v33804_v41, %v33803_v33 }
 0xbc6   :  { %v33678_v10 = vsel %vm45452_vm7, %v33670_v45, %v45343_v44 }
 0xbca   :  { %v38825_v62 = vpop.permute.xlu0 %38824 }
 0xbcb   :  { %v38827_v46 = vunpack.i.h.bf16 %v38825_v62  ;;  %v38826_v2 = vunpack.i.l.bf16 %v38825_v62 }
 0xbcd   :  { %v33709_v14 = vsel %vm46884_vm6, %v38826_v2, %v38827_v46  ;;  %vm45483_vm6 = vmand %vm33640_vm3, %vm33642_vm11  ;;  %vm47143_vm11 = vcmask 490496  }
 0xbce   :  { %v38830_v20 = vpop.permute.xlu0 %38829  ;;  %v33717_v29 = vsel %vm45458_vm2, %v33709_v14, %v33678_v10  ;;  %vm45500_vm3 = vmand %vm33722_vm8, %vm33724_vm9  ;;  %vm47144_vm8 = vmmov 0   ;;  %vm47145_vm9 = vcmask 1031168  }
 0xbcf   :  { %v38832_v21 = vunpack.i.h.bf16 %v38830_v20  ;;  %v38831_v51 = vunpack.i.l.bf16 %v38830_v20  ;;  %v33805_v20 = vld [vmem:[%s46740_s5 + $0x10] sm:$0xff] }
 0xbd1   :  { %v33747_v18 = vsel %vm46883_vm14, %v38831_v51, %v38832_v21  ;;  %vm47137_vm14 = vcmask 326656  }
 0xbd2   :  { %v33755_v40 = vsel %vm45466_vm5, %v33747_v18, %v33717_v29 }
 0xbda   :  { %v38840_v49 = vpop.permute.xlu1 %38839 }
 0xbdb   :  { %v38842_v1 = vunpack.i.h.bf16 %v38840_v49  ;;  %v38841_v15 = vunpack.i.l.bf16 %v38840_v49 }
 0xbdd   :  { %v33671_v42 = vsel %vm33669_vm10, %v38841_v15, %v38842_v1 }
 0xbde   :  { %v33679_v50 = vsel %vm45483_vm6, %v33671_v42, %v45413_v5 }
 0xbe1   :  { %v38845_v58 = vpop.permute.xlu1 %38844  ;;  %v38835_v12 = vpop.permute.xlu0 %38834 }
 0xbe2   :  { %v38847_v16 = vunpack.i.h.bf16 %v38845_v58  ;;  %v38846_v28 = vunpack.i.l.bf16 %v38845_v58  ;;  %v38837_v13 = vunpack.i.h.bf16 %v38835_v12  ;;  %v38836_v44 = vunpack.i.l.bf16 %v38835_v12 }
 0xbe4   :  { %v33786_v32 = vsel %vm33785_vm12, %v38836_v44, %v38837_v13  ;;  %v33710_v7 = vsel %vm47137_vm14, %v38846_v28, %v38847_v16  ;;  %vm47140_vm14 = vcmp.ge.s32.totalorder %v33638_v11, 80  ;;  %v33806_v11 = vld [vmem:[%s46740_s5 + $0x18] sm:$0xff]  ;;  %v33807_v16 = vld [vmem:[%s46740_s5 + $0x20] sm:$0xff]  ;;  %v33808_v28 = vld [vmem:[%s46740_s5 + $0x28] sm:$0xff] }
 0xbe5   :  { %v45498_v19 = vsel %vm45473_vm15, %v33786_v32, %v33755_v40  ;;  %v38850_v54 = vpop.permute.xlu1 %38849  ;;  %v38855_v30 = vpop.permute.xlu0 %38854  ;;  %vm45514_vm1 = vmand %vm47140_vm14, %vm33762_vm0  ;;  %v33718_v62 = vsel %vm45491_vm13, %v33710_v7, %v33679_v50  ;;  %v37343_v18 = vpack.c.bf16 %v33806_v11, %v33805_v20  ;;  %v37346_v42 = vpack.c.bf16 %v33808_v28, %v33807_v16  ;;  %v33809_v32 = vld [vmem:[%s46740_s5 + $0x30] sm:$0xff]  ;;  %v33810_v7 = vld [vmem:[%s46740_s5 + $0x38] sm:$0xff] }
 0xbe6   :  { %v38852_v24 = vunpack.i.h.bf16 %v38850_v54  ;;  %v38851_v56 = vunpack.i.l.bf16 %v38850_v54  ;;  %v38857_v0 = vunpack.i.h.bf16 %v38855_v30  ;;  %v38856_v17 = vunpack.i.l.bf16 %v38855_v30  ;;  %v33811_v30 = vld [vmem:[%s46740_s5 + $0x40] sm:$0xff]  ;;  %v36157_v16 = vld [vmem:[%s46740_s5 + $0x128] sm:$0xff]  ;;  %vm47146_vm0 = vmmov %vm47145_vm9 }
 0xbe7   :  { %v33820_v39 = vrot.slane %v45498_v19, 1  ;;  %v34073_v46 = vrot.slane %v45498_v19, 3  ;;  %v34166_v2 = vrot.slane %v45498_v19, 4  ;;  %v34259_v49 = vrot.slane %v45498_v19, 5  ;;  %vm47147_vm14 = vmmov %vm47146_vm0 }
 0xbe8   :  { %v33748_v43 = vsel %vm47143_vm11, %v38851_v56, %v38852_v24  ;;  %v33787_v9 = vsel %vm33785_vm12, %v38856_v17, %v38857_v0  ;;  %v34352_v45 = vrot.slane %v45498_v19, 6  ;;  %v34445_v12 = vrot.slane %v45498_v19, 7  ;;  %v33812_v24 = vld [vmem:[%s46740_s5 + $0x48] sm:$0xff]  ;;  %vm47148_vm11 = vmmov %vm47146_vm0 }
 0xbe9   :  { %v33756_v37 = vsel %vm45500_vm3, %v33748_v43, %v33718_v62  ;;  %v37349_v54 = vpack.c.bf16 %v33810_v7, %v33809_v32  ;;  %v37352_v50 = vpack.c.bf16 %v33812_v24, %v33811_v30  ;;  %v36159_v32 = vld [vmem:[%s46740_s5 + $0x138] sm:$0xff]  ;;  %v36161_v30 = vld [vmem:[%s46740_s5 + $0x148] sm:$0xff] }
 0xbea   :  { %v45527_v5 = vsel %vm45514_vm1, %v33787_v9, %v33756_v37 }
 0xbeb   :  { %v33822_v21 = vsel %vm33801_vm4, %v33820_v39, %v45527_v5  ;;  %v34075_v51 = vrot.slane %v45527_v5, 2  ;;  %v34168_v14 = vrot.slane %v45527_v5, 3  ;;  %v34261_v1 = vrot.slane %v45527_v5, 4 }
 0xbec   :  { %36718 = vmatmul.mubr.f32.vlgmr.msra.gmra.mrb[136].mxu0 %v33822_v21  ;;  %v34354_v15 = vrot.slane %v45527_v5, 5  ;;  %v34447_v10 = vrot.slane %v45527_v5, 6 }
 0xbed   :  { %37341 = vmatpush3.bf16.msra.mxu0 %v37340_v6  ;;  %36752 = vmatprep.mubr.msk.f32.mxu0 %vm47144_vm8, %v46885_v61  ;;  %v45549_v58 = vsel %vm33801_vm4, %v34073_v46, %v34075_v51  ;;  %v45560_v13 = vsel %vm33801_vm4, %v34166_v2, %v34168_v14  ;;  %v45563_v44 = vsel %vm33801_vm4, %v34259_v49, %v34261_v1  ;;  %v33817_v46 = vld [vmem:[%s46740_s5 + $0x70] sm:$0xff]  ;;  %v33818_v2 = vld [vmem:[%s46740_s5 + $0x78] sm:$0xff]  ;;  %v36152_v49 = vld [vmem:[%s46740_s5 + $0x100] sm:$0xff]  ;;  %v33799_v14 = vrot.slane %v45527_v5, 7 }
 0xbee   :  { %37342 = vmatprep.subr.bf16.mxu0 %v39051_v31  ;;  %v45566_v29 = vsel %vm33801_vm4, %v34352_v45, %v34354_v15  ;;  %v45569_v40 = vsel %vm33801_vm4, %v34445_v12, %v34447_v10  ;;  %v37361_v51 = vpack.c.bf16 %v33818_v2, %v33817_v46  ;;  %v36153_v45 = vld [vmem:[%s46740_s5 + $0x108] sm:$0xff]  ;;  %v36155_v15 = vld [vmem:[%s46740_s5 + $0x118] sm:$0xff]  ;;  %v36156_v12 = vld [vmem:[%s46740_s5 + $0x120] sm:$0xff] }
 0xbef   :  { %v37364_v1 = vpack.c.bf16 %v36153_v45, %v36152_v49  ;;  %v33802_v10 = vsel %vm33801_vm4, %v45498_v19, %v33799_v14  ;;  %v37370_v28 = vpack.c.bf16 %v36157_v16, %v36156_v12  ;;  %v36170_v46 = vld [vmem:[%s46740_s5 + $0x190] sm:$0xff]  ;;  %v36171_v2 = vld [vmem:[%s46740_s5 + $0x198] sm:$0xff] }
 0xbf0   :  { %v36174_v45 = vld [vmem:[%s46740_s5 + $0x1b0] sm:$0xff]  ;;  %v36175_v14 = vld [vmem:[%s46740_s5 + $0x1b8] sm:$0xff] }
 0xbf1   :  { %37344 = vmatpush3.bf16.msra.mxu0 %v37343_v18  ;;  %v36179_v12 = vld [vmem:[%s46740_s5 + $0x1d8] sm:$0xff] }
 0xbf2   :  { %37345 = vmatprep.subr.bf16.mxu0 %v39051_v31 }
 0xbf5   :  { %37347 = vmatpush3.bf16.msra.mxu0 %v37346_v42  ;;  %v36158_v42 = vld [vmem:[%s46740_s5 + $0x130] sm:$0xff] }
 0xbf6   :  { %v33438_v56 = vpop.permute.xlu1 %33437  ;;  %37348 = vmatprep.subr.bf16.mxu0 %v39051_v31  ;;  %v37373_v7 = vpack.c.bf16 %v36159_v32, %v36158_v42  ;;  %v36181_v42 = vld [vmem:[%s46740_s5 + $0x1e8] sm:$0xff] }
 0xbf7   :  { %v45586_v0 = vadd.f32 %v45309_v4, %v33438_v56  ;;  %v45589_v17 = vadd.f32 %v45314_v48, %v33438_v56  ;;  %v45592_v33 = vadd.f32 %v45292_v3, %v33438_v56  ;;  %v45595_v41 = vadd.f32 %v45297_v63, %v33438_v56 }
 0xbf8   :  { %v45598_v62 = vadd.f32 %v45246_v22, %v33438_v56  ;;  %v45601_v43 = vadd.f32 %v45258_v53, %v33438_v56  ;;  %v45608_v3 = vadd.f32 %v45241_v57, %v33438_v56  ;;  %v45611_v63 = vadd.f32 %v45329_v23, %v33438_v56  ;;  %v33813_v22 = vld [vmem:[%s46740_s5 + $0x50] sm:$0xff]  ;;  %v33814_v53 = vld [vmem:[%s46740_s5 + $0x58] sm:$0xff] }
 0xbf9   :  { %37350 = vmatpush3.bf16.msra.mxu0 %v37349_v54  ;;  %v38863_v4 = vpack.i.bf16 %v45589_v17, %v45586_v0  ;;  %v38858_v48 = vpack.i.bf16 %v45595_v41, %v45592_v33  ;;  %v37355_v9 = vpack.c.bf16 %v33814_v53, %v33813_v22  ;;  %v45623_v57 = vadd.f32 %v45275_v26, %v33438_v56  ;;  %v33815_v26 = vld [vmem:[%s46740_s5 + $0x60] sm:$0xff]  ;;  %v36165_v22 = vld [vmem:[%s46740_s5 + $0x168] sm:$0xff] }
 0xbfa   :  { %37351 = vmatprep.subr.bf16.mxu0 %v39051_v31  ;;  %v45626_v23 = vadd.f32 %v45280_v60, %v33438_v56  ;;  %v38873_v37 = vpack.i.bf16 %v45601_v43, %v45598_v62  ;;  %v38868_v39 = vpack.i.bf16 %v45608_v3, %v45611_v63  ;;  %v45633_v6 = vadd.f32 %v45263_v47, %v33438_v56  ;;  %v33816_v60 = vld [vmem:[%s46740_s5 + $0x68] sm:$0xff]  ;;  %v36160_v54 = vld [vmem:[%s46740_s5 + $0x140] sm:$0xff] }
 0xbfb   :  { %38864 = vrot.lane.b32.xlu1 %v38863_v4, %s39028_s13  ;;  %38859 = vrot.lane.b32.xlu0 %v38858_v48, %s39028_s13  ;;  %v45636_v20 = vadd.f32 %v45332_v25, %v33438_v56  ;;  %v37358_v11 = vpack.c.bf16 %v33816_v60, %v33815_v26  ;;  %v33459_v21 = vadd.f32 %v33438_v56, %v45182_v34  ;;  %v36154_v34 = vld [vmem:[%s46740_s5 + $0x110] sm:$0xff]  ;;  %v36164_v48 = vld [vmem:[%s46740_s5 + $0x160] sm:$0xff] }
 0xbfc   :  { %v38883_v47 = vpack.i.bf16 %v45626_v23, %v45623_v57  ;;  %v37367_v18 = vpack.c.bf16 %v36155_v15, %v36154_v34  ;;  %v37376_v24 = vpack.c.bf16 %v36161_v30, %v36160_v54  ;;  %v36162_v56 = vld [vmem:[%s46740_s5 + $0x150] sm:$0xff]  ;;  %v37382_v53 = vpack.c.bf16 %v36165_v22, %v36164_v48  ;;  %v36168_v26 = vld [vmem:[%s46740_s5 + $0x180] sm:$0xff]  ;;  %v36169_v60 = vld [vmem:[%s46740_s5 + $0x188] sm:$0xff] }
 0xbfd   :  { %37353 = vmatpush3.bf16.msra.mxu0 %v37352_v50  ;;  %v38878_v25 = vpack.i.bf16 %v45636_v20, %v45633_v6  ;;  %v36163_v50 = vld [vmem:[%s46740_s5 + $0x158] sm:$0xff]  ;;  %v36176_v34 = vld [vmem:[%s46740_s5 + $0x1c0] sm:$0xff]  ;;  %v36177_v15 = vld [vmem:[%s46740_s5 + $0x1c8] sm:$0xff] }
 0xbfe   :  { %37354 = vmatprep.subr.bf16.mxu0 %v39051_v31  ;;  %v37379_v4 = vpack.c.bf16 %v36163_v50, %v36162_v56  ;;  %v36183_v54 = vld [vmem:[%s46740_s5 + $0x1f8] sm:$0xff]  ;;  %v36185_v56 = vld [vmem:[%s46740_s5 + $0x208] sm:$0xff] }
 0xbff   :  { %38874 = vrot.lane.b32.xlu1 %v38873_v37, %s39028_s13  ;;  %38869 = vrot.lane.b32.xlu0 %v38868_v39, %s39028_s13  ;;  %v36167_v37 = vld [vmem:[%s46740_s5 + $0x178] sm:$0xff] }
 0xc00   :  { %v36187_v48 = vld [vmem:[%s46740_s5 + $0x218] sm:$0xff] }
 0xc01   :  { %37356 = vmatpush3.bf16.msra.mxu0 %v37355_v9  ;;  %v36166_v9 = vld [vmem:[%s46740_s5 + $0x170] sm:$0xff] }
 0xc02   :  { %37357 = vmatprep.subr.bf16.mxu0 %v39051_v31  ;;  %v37385_v39 = vpack.c.bf16 %v36167_v37, %v36166_v9  ;;  %v36189_v9 = vld [vmem:[%s46740_s5 + $0x228] sm:$0xff] }
 0xc03   :  { %38884 = vrot.lane.b32.xlu1 %v38883_v47, %s39028_s13  ;;  %38879 = vrot.lane.b32.xlu0 %v38878_v25, %s39028_s13  ;;  %v33982_v47 = vrot.slane %v45527_v5, 1  ;;  %v33980_v25 = vrot.slane %v45498_v19, 2  ;;  %v36172_v19 = vld [vmem:[%s46740_s5 + $0x1a0] sm:$0xff]  ;;  %v36173_v5 = vld [vmem:[%s46740_s5 + $0x1a8] sm:$0xff] }
 0xc04   :  { %v37394_v49 = vpack.c.bf16 %v36173_v5, %v36172_v19  ;;  %v36198_v5 = vld [vmem:[%s46740_s5 + $0x270] sm:$0xff] }
 0xc05   :  { %37359 = vmatpush3.bf16.msra.mxu0 %v37358_v11  ;;  %v37388_v11 = vpack.c.bf16 %v36169_v60, %v36168_v26  ;;  %v36192_v60 = vld [vmem:[%s46740_s5 + $0x240] sm:$0xff] }
 0xc06   :  { %37360 = vmatprep.subr.bf16.mxu0 %v39051_v31 }
 0xc07   :  { %33530 = vrot.lane.b32.xlu0 %v33459_v21, %s39028_s13  ;;  %v33984_v21 = vsel %vm33801_vm4, %v33980_v25, %v33982_v47  ;;  %v36193_v47 = vld [vmem:[%s46740_s5 + $0x248] sm:$0xff] }
 0xc08   :  { %v37424_v25 = vpack.c.bf16 %v36193_v47, %v36192_v60  ;;  %v36206_v60 = vld [vmem:[%s46740_s5 + $0x2b0] sm:$0xff] }
 0xc09   :  { %37362 = vmatpush3.bf16.msra.mxu0 %v37361_v51  ;;  %v37391_v51 = vpack.c.bf16 %v36171_v2, %v36170_v46  ;;  %v36195_v46 = vld [vmem:[%s46740_s5 + $0x258] sm:$0xff] }
 0xc0a   :  { %37363 = vmatprep.subr.bf16.mxu0 %v39051_v31 }
 0xc0c   :  { %36753 = vmatmul.mubr.f32.vlgmr.msra.gmra.mrb[138].mxu0 %v33802_v10  ;;  %v37400_v10 = vpack.c.bf16 %v36177_v15, %v36176_v34  ;;  %v36202_v15 = vld [vmem:[%s46740_s5 + $0x290] sm:$0xff] }
 0xc0d   :  { %37365 = vmatpush3.bf16.msra.mxu0 %v37364_v1  ;;  %36787 = vmatprep.mubr.msk.f32.mxu0 %vm47144_vm8, %v46885_v61  ;;  %v37397_v1 = vpack.c.bf16 %v36175_v14, %v36174_v45  ;;  %v36200_v14 = vld [vmem:[%s46740_s5 + $0x280] sm:$0xff] }
 0xc0e   :  { %37366 = vmatprep.subr.bf16.mxu0 %v39051_v31 }
 0xc11   :  { %37368 = vmatpush3.bf16.msra.mxu0 %v37367_v18  ;;  %v36178_v18 = vld [vmem:[%s46740_s5 + $0x1d0] sm:$0xff] }
 0xc12   :  { %37369 = vmatprep.subr.bf16.mxu0 %v39051_v31  ;;  %v37403_v16 = vpack.c.bf16 %v36179_v12, %v36178_v18 }
 0xc15   :  { %37371 = vmatpush3.bf16.msra.mxu0 %v37370_v28  ;;  %v36180_v28 = vld [vmem:[%s46740_s5 + $0x1e0] sm:$0xff] }
 0xc16   :  { %37372 = vmatprep.subr.bf16.mxu0 %v39051_v31  ;;  %v37406_v32 = vpack.c.bf16 %v36181_v42, %v36180_v28 }
 0xc19   :  { %37374 = vmatpush3.bf16.msra.mxu0 %v37373_v7  ;;  %v36182_v7 = vld [vmem:[%s46740_s5 + $0x1f0] sm:$0xff] }
 0xc1a   :  { %37375 = vmatprep.subr.bf16.mxu0 %v39051_v31  ;;  %v37409_v30 = vpack.c.bf16 %v36183_v54, %v36182_v7  ;;  %v36204_v54 = vld [vmem:[%s46740_s5 + $0x2a0] sm:$0xff] }
 0xc1d   :  { %37377 = vmatpush3.bf16.msra.mxu0 %v37376_v24  ;;  %v36184_v24 = vld [vmem:[%s46740_s5 + $0x200] sm:$0xff] }
 0xc1e   :  { %37378 = vmatprep.subr.bf16.mxu0 %v39051_v31  ;;  %v37412_v50 = vpack.c.bf16 %v36185_v56, %v36184_v24 }
 0xc21   :  { %37380 = vmatpush3.bf16.msra.mxu0 %v37379_v4  ;;  %v36186_v4 = vld [vmem:[%s46740_s5 + $0x210] sm:$0xff] }
 0xc22   :  { %37381 = vmatprep.subr.bf16.mxu0 %v39051_v31  ;;  %v37415_v22 = vpack.c.bf16 %v36187_v48, %v36186_v4 }
 0xc25   :  { %37383 = vmatpush3.bf16.msra.mxu0 %v37382_v53  ;;  %v36188_v53 = vld [vmem:[%s46740_s5 + $0x220] sm:$0xff] }
 0xc26   :  { %37384 = vmatprep.subr.bf16.mxu0 %v39051_v31  ;;  %v37418_v37 = vpack.c.bf16 %v36189_v9, %v36188_v53 }
 0xc29   :  { %37386 = vmatpush3.bf16.msra.mxu0 %v37385_v39  ;;  %v36191_v39 = vld [vmem:[%s46740_s5 + $0x238] sm:$0xff] }
 0xc2a   :  { %37387 = vmatprep.subr.bf16.mxu0 %v39051_v31 }
 0xc2c   :  { %36788 = vmatmul.mubr.f32.vlgmr.msra.gmra.mrb[140].mxu0 %v33984_v21  ;;  %v36196_v21 = vld [vmem:[%s46740_s5 + $0x260] sm:$0xff] }
 0xc2d   :  { %37389 = vmatpush3.bf16.msra.mxu0 %v37388_v11  ;;  %36822 = vmatprep.mubr.msk.f32.mxu0 %vm47144_vm8, %v46885_v61  ;;  %v36194_v11 = vld [vmem:[%s46740_s5 + $0x250] sm:$0xff] }
 0xc2e   :  { %37390 = vmatprep.subr.bf16.mxu0 %v39051_v31  ;;  %v37427_v2 = vpack.c.bf16 %v36195_v46, %v36194_v11 }
 0xc31   :  { %37392 = vmatpush3.bf16.msra.mxu0 %v37391_v51  ;;  %v36197_v51 = vld [vmem:[%s46740_s5 + $0x268] sm:$0xff] }
 0xc32   :  { %37393 = vmatprep.subr.bf16.mxu0 %v39051_v31  ;;  %v37430_v19 = vpack.c.bf16 %v36197_v51, %v36196_v21 }
 0xc35   :  { %37395 = vmatpush3.bf16.msra.mxu0 %v37394_v49  ;;  %v36199_v49 = vld [vmem:[%s46740_s5 + $0x278] sm:$0xff] }
 0xc36   :  { %37396 = vmatprep.subr.bf16.mxu0 %v39051_v31  ;;  %v37433_v45 = vpack.c.bf16 %v36199_v49, %v36198_v5 }
 0xc39   :  { %37398 = vmatpush3.bf16.msra.mxu0 %v37397_v1  ;;  %v36201_v1 = vld [vmem:[%s46740_s5 + $0x288] sm:$0xff] }
 0xc3a   :  { %37399 = vmatprep.subr.bf16.mxu0 %v39051_v31  ;;  %v37436_v34 = vpack.c.bf16 %v36201_v1, %v36200_v14  ;;  %v36208_v1 = vld [vmem:[%s46740_s5 + $0x2c0] sm:$0xff] }
 0xc3d   :  { %37401 = vmatpush3.bf16.msra.mxu0 %v37400_v10  ;;  %v36203_v10 = vld [vmem:[%s46740_s5 + $0x298] sm:$0xff] }
 0xc3e   :  { %37402 = vmatprep.subr.bf16.mxu0 %v39051_v31 }
 0xc41   :  { %37404 = vmatpush3.bf16.msra.mxu0 %v37403_v16  ;;  %v37439_v16 = vpack.c.bf16 %v36203_v10, %v36202_v15 }
 0xc42   :  { %37405 = vmatprep.subr.bf16.mxu0 %v39051_v31 }
 0xc45   :  { %37407 = vmatpush3.bf16.msra.mxu0 %v37406_v32 }
 0xc46   :  { %37408 = vmatprep.subr.bf16.mxu0 %v39051_v31 }
 0xc49   :  { %37410 = vmatpush3.bf16.msra.mxu0 %v37409_v30 }
 0xc4a   :  { %37411 = vmatprep.subr.bf16.mxu0 %v39051_v31 }
 0xc4c   :  { %36823 = vmatmul.mubr.f32.vlgmr.msra.gmra.mrb[142].mxu0 %v45549_v58  ;;  %v36190_v58 = vld [vmem:[%s46740_s5 + $0x230] sm:$0xff] }
 0xc4d   :  { %37413 = vmatpush3.bf16.msra.mxu0 %v37412_v50  ;;  %36857 = vmatprep.mubr.msk.f32.mxu0 %vm47144_vm8, %v46885_v61  ;;  %v37421_v26 = vpack.c.bf16 %v36191_v39, %v36190_v58 }
 0xc4e   :  { %37414 = vmatprep.subr.bf16.mxu0 %v39051_v31 }
 0xc51   :  { %37416 = vmatpush3.bf16.msra.mxu0 %v37415_v22 }
 0xc52   :  { %37417 = vmatprep.subr.bf16.mxu0 %v39051_v31 }
 0xc55   :  { %37419 = vmatpush3.bf16.msra.mxu0 %v37418_v37 }
 0xc56   :  { %37420 = vmatprep.subr.bf16.mxu0 %v39051_v31 }
 0xc59   :  { %37422 = vmatpush3.bf16.msra.mxu0 %v37421_v26 }
 0xc5a   :  { %37423 = vmatprep.subr.bf16.mxu0 %v39051_v31 }
 0xc5d   :  { %37425 = vmatpush3.bf16.msra.mxu0 %v37424_v25 }
 0xc5e   :  { %37426 = vmatprep.subr.bf16.mxu0 %v39051_v31 }
 0xc61   :  { %37428 = vmatpush3.bf16.msra.mxu0 %v37427_v2 }
 0xc62   :  { %37429 = vmatprep.subr.bf16.mxu0 %v39051_v31 }
 0xc65   :  { %37431 = vmatpush3.bf16.msra.mxu0 %v37430_v19 }
 0xc66   :  { %37432 = vmatprep.subr.bf16.mxu0 %v39051_v31 }
 0xc69   :  { %37434 = vmatpush3.bf16.msra.mxu0 %v37433_v45 }
 0xc6a   :  { %37435 = vmatprep.subr.bf16.mxu0 %v39051_v31 }
 0xc6c   :  { %36858 = vmatmul.mubr.f32.vlgmr.msra.gmra.mrb[144].mxu0 %v45560_v13  ;;  %v36205_v13 = vld [vmem:[%s46740_s5 + $0x2a8] sm:$0xff] }
 0xc6d   :  { %37437 = vmatpush3.bf16.msra.mxu0 %v37436_v34  ;;  %v38865_v18 = vpop.permute.xlu1 %38864  ;;  %v38860_v12 = vpop.permute.xlu0 %38859  ;;  %36892 = vmatprep.mubr.msk.f32.mxu0 %vm47144_vm8, %v46885_v61  ;;  %v37442_v9 = vpack.c.bf16 %v36205_v13, %v36204_v54 }
 0xc6e   :  { %v38867_v28 = vunpack.i.h.bf16 %v38865_v18  ;;  %v38866_v42 = vunpack.i.l.bf16 %v38865_v18  ;;  %v38862_v32 = vunpack.i.h.bf16 %v38860_v12  ;;  %v38861_v7 = vunpack.i.l.bf16 %v38860_v12  ;;  %37438 = vmatprep.subr.bf16.mxu0 %v39051_v31 }
 0xc70   :  { %v33563_v30 = vsel %vm47145_vm9, %v38866_v42, %v38867_v28  ;;  %v33562_v24 = vsel %vm47146_vm0, %v38862_v32, %v38866_v42  ;;  %v33561_v56 = vsel %vm47147_vm14, %v38861_v7, %v38862_v32  ;;  %vm47149_vm9 = vmmov %vm47146_vm0 }
 0xc71   :  { %v33610_v50 = vmax.f32 %v45586_v0, %v33563_v30  ;;  %v33609_v4 = vmax.f32 %v45595_v41, %v33562_v24  ;;  %v33608_v48 = vmax.f32 %v45592_v33, %v33561_v56  ;;  %37440 = vmatpush3.bf16.msra.mxu0 %v37439_v16  ;;  %v38875_v22 = vpop.permute.xlu1 %38874  ;;  %v38870_v53 = vpop.permute.xlu0 %38869  ;;  %v36207_v0 = vld [vmem:[%s46740_s5 + $0x2b8] sm:$0xff]  ;;  %vm47150_vm14 = vmmov %vm47146_vm0  ;;  %v36210_v30 = vld [vmem:[%s46740_s5 + $0x2d0] sm:$0xff] }
 0xc72   :  { %v38877_v37 = vunpack.i.h.bf16 %v38875_v22  ;;  %v38876_v58 = vunpack.i.l.bf16 %v38875_v22  ;;  %v38872_v39 = vunpack.i.h.bf16 %v38870_v53  ;;  %v38871_v26 = vunpack.i.l.bf16 %v38870_v53  ;;  %37441 = vmatprep.subr.bf16.mxu0 %v39051_v31 }
 0xc73   :  { %v33630_v41 = vmax.f32 %v33609_v4, %v33610_v50  ;;  %v45880_v33 = vmax.f32 %v33608_v48, %v33609_v4  ;;  %v37445_v19 = vpack.c.bf16 %v36207_v0, %v36206_v60  ;;  %v36214_v0 = vld [vmem:[%s46740_s5 + $0x2f0] sm:$0xff] }
 0xc74   :  { %v33556_v47 = vsel %vm47148_vm11, %v38876_v58, %v38877_v37  ;;  %v33555_v25 = vsel %vm47149_vm9, %v38872_v39, %v38876_v58  ;;  %v33564_v11 = vsel %vm47146_vm0, %v38867_v28, %v38871_v26  ;;  %vm47151_vm11 = vmmov %vm47146_vm0  ;;  %v36213_v58 = vld [vmem:[%s46740_s5 + $0x2e8] sm:$0xff] }
 0xc75   :  { %v33611_v46 = vmax.f32 %v45589_v17, %v33564_v11  ;;  %37443 = vmatpush3.bf16.msra.mxu0 %v37442_v9  ;;  %v38885_v2 = vpop.permute.xlu1 %38884  ;;  %v38880_v21 = vpop.permute.xlu0 %38879  ;;  %v38888_v51 = vpack.i.bf16 %v33630_v41, %v45880_v33  ;;  %v36209_v17 = vld [vmem:[%s46740_s5 + $0x2c8] sm:$0xff]  ;;  %v33603_v34 = vmax.f32 %v45598_v62, %v33556_v47  ;;  %v33602_v15 = vmax.f32 %v45608_v3, %v33555_v25  ;;  %vm47152_vm9 = vmmov %vm47146_vm0 }
 0xc76   :  { %v38887_v5 = vunpack.i.h.bf16 %v38885_v2  ;;  %v38886_v49 = vunpack.i.l.bf16 %v38885_v2  ;;  %v38882_v45 = vunpack.i.h.bf16 %v38880_v21  ;;  %v38881_v14 = vunpack.i.l.bf16 %v38880_v21  ;;  %37444 = vmatprep.subr.bf16.mxu0 %v39051_v31  ;;  %v36217_v2 = vld [vmem:[%s46740_s5 + $0x308] sm:$0xff] }
 0xc77   :  { %v33631_v10 = vmax.f32 %v33610_v50, %v33611_v46  ;;  %38889 = vrot.lane.b32.xlu1 %v38888_v51, %s39052_s20  ;;  %v37448_v7 = vpack.c.bf16 %v36209_v17, %v36208_v1  ;;  %v36218_v51 = vld [vmem:[%s46740_s5 + $0x310] sm:$0xff]  ;;  %v36223_v1 = vld [vmem:[%s46740_s5 + $0x338] sm:$0xff] }
 0xc78   :  { %v33557_v18 = vsel %vm47150_vm14, %v38877_v37, %v38881_v14  ;;  %v33558_v12 = vsel %vm47151_vm11, %v38881_v14, %v38886_v49  ;;  %v33565_v16 = vsel %vm47152_vm9, %v38871_v26, %v38882_v45  ;;  %v33559_v62 = vsel %vm47146_vm0, %v38886_v49, %v38887_v5  ;;  %vm47153_vm14 = vmmov %vm47146_vm0  ;;  %v36212_v37 = vld [vmem:[%s46740_s5 + $0x2e0] sm:$0xff] }
 0xc79   :  { %v33604_v28 = vmax.f32 %v45601_v43, %v33557_v18  ;;  %v33605_v42 = vmax.f32 %v45633_v6, %v33558_v12  ;;  %37446 = vmatpush3.bf16.msra.mxu0 %v37445_v19  ;;  %v33531_v32 = vpop.permute.xlu0 %33530  ;;  %v33613_v3 = vmax.f32 %v45636_v20, %v38882_v45  ;;  %v33612_v54 = vmax.f32 %v45611_v63, %v33565_v16  ;;  %v36211_v43 = vld [vmem:[%s46740_s5 + $0x2d8] sm:$0xff]  ;;  %v36220_v49 = vld [vmem:[%s46740_s5 + $0x320] sm:$0xff]  ;;  %v36221_v45 = vld [vmem:[%s46740_s5 + $0x328] sm:$0xff] }
 0xc7a   :  { %v38903_v13 = vpack.i.bf16 %v33631_v10, %v33630_v41  ;;  %37447 = vmatprep.subr.bf16.mxu0 %v39051_v31  ;;  %v45912_v6 = vmax.f32 %v33602_v15, %v33603_v34  ;;  %v33560_v56 = vsel %vm47153_vm14, %v38887_v5, %v33531_v32  ;;  %v33606_v20 = vmax.f32 %v45623_v57, %v33559_v62  ;;  %v36215_v41 = vld [vmem:[%s46740_s5 + $0x2f8] sm:$0xff]  ;;  %v36225_v15 = vld [vmem:[%s46740_s5 + $0x348] sm:$0xff]  ;;  %v36226_v18 = vld [vmem:[%s46740_s5 + $0x350] sm:$0xff] }
 0xc7b   :  { %v33625_v24 = vmax.f32 %v33603_v34, %v33604_v28  ;;  %v33632_v50 = vmax.f32 %v33611_v46, %v33612_v54  ;;  %v33626_v63 = vmax.f32 %v33604_v28, %v33605_v42  ;;  %v37451_v48 = vpack.c.bf16 %v36211_v43, %v36210_v30  ;;  %v36216_v46 = vld [vmem:[%s46740_s5 + $0x300] sm:$0xff]  ;;  %v36219_v19 = vld [vmem:[%s46740_s5 + $0x318] sm:$0xff]  ;;  %v36234_v43 = vld [vmem:[%s46740_s5 + $0x390] sm:$0xff] }
 0xc7c   :  { %38904 = vrot.lane.b32.xlu0 %v38903_v13, %s39053_s17  ;;  %v33633_v22 = vmax.f32 %v33612_v54, %v33613_v3  ;;  %v33607_v53 = vmax.f32 %v45626_v23, %v33560_v56  ;;  %v33627_v57 = vmax.f32 %v33605_v42, %v33606_v20  ;;  %v37454_v26 = vpack.c.bf16 %v36213_v58, %v36212_v37  ;;  %v36224_v34 = vld [vmem:[%s46740_s5 + $0x340] sm:$0xff]  ;;  %v36227_v12 = vld [vmem:[%s46740_s5 + $0x358] sm:$0xff]  ;;  %v36229_v42 = vld [vmem:[%s46740_s5 + $0x368] sm:$0xff] }
 0xc7d   :  { %37449 = vmatpush3.bf16.msra.mxu0 %v37448_v7  ;;  %v38893_v4 = vpack.i.bf16 %v33625_v24, %v45912_v6  ;;  %v38908_v9 = vpack.i.bf16 %v33632_v50, %v33631_v10  ;;  %v38898_v39 = vpack.i.bf16 %v33626_v63, %v33625_v24  ;;  %v37457_v25 = vpack.c.bf16 %v36215_v41, %v36214_v0  ;;  %v36228_v28 = vld [vmem:[%s46740_s5 + $0x360] sm:$0xff]  ;;  %v36230_v7 = vld [vmem:[%s46740_s5 + $0x370] sm:$0xff]  ;;  %v36231_v62 = vld [vmem:[%s46740_s5 + $0x378] sm:$0xff] }
 0xc7e   :  { %37450 = vmatprep.subr.bf16.mxu0 %v39051_v31  ;;  %v33628_v23 = vmax.f32 %v33606_v20, %v33607_v53  ;;  %v38913_v60 = vpack.i.bf16 %v33633_v22, %v33632_v50  ;;  %v38918_v47 = vpack.i.bf16 %v33627_v57, %v33626_v63  ;;  %v37460_v21 = vpack.c.bf16 %v36217_v2, %v36216_v46  ;;  %v36232_v54 = vld [vmem:[%s46740_s5 + $0x380] sm:$0xff]  ;;  %v36233_v13 = vld [vmem:[%s46740_s5 + $0x388] sm:$0xff]  ;;  %v36235_v24 = vld [vmem:[%s46740_s5 + $0x398] sm:$0xff] }
 0xc7f   :  { %38894 = vrot.lane.b32.xlu1 %v38893_v4, %s39052_s20  ;;  %v37463_v5 = vpack.c.bf16 %v36219_v19, %v36218_v51  ;;  %v37466_v14 = vpack.c.bf16 %v36221_v45, %v36220_v49  ;;  %v37472_v10 = vpack.c.bf16 %v36225_v15, %v36224_v34  ;;  %v37475_v16 = vpack.c.bf16 %v36227_v12, %v36226_v18  ;;  %v36236_v50 = vld [vmem:[%s46740_s5 + $0x3a0] sm:$0xff]  ;;  %v36237_v63 = vld [vmem:[%s46740_s5 + $0x3a8] sm:$0xff]  ;;  %v36239_v4 = vld [vmem:[%s46740_s5 + $0x3b8] sm:$0xff]  ;;  %s35481_s20 = sshll.u32 %s39056_s24, 4  ;;  %s35482_s20 = int_to_ptr.vmem [resolvable:$true] %s35481_s20 }
 0xc80   :  { %38909 = vrot.lane.b32.xlu0 %v38908_v9, %s39040_s27  ;;  %v38923_v11 = vpack.i.bf16 %v33628_v23, %v33627_v57  ;;  %v37478_v32 = vpack.c.bf16 %v36229_v42, %v36228_v28  ;;  %v37481_v3 = vpack.c.bf16 %v36231_v62, %v36230_v7  ;;  %v37484_v30 = vpack.c.bf16 %v36233_v13, %v36232_v54  ;;  %v36240_v22 = vld [vmem:[%s46740_s5 + $0x3c0] sm:$0xff]  ;;  %v36241_v53 = vld [vmem:[%s46740_s5 + $0x3c8] sm:$0xff]  ;;  %v36242_v37 = vld [vmem:[%s46740_s5 + $0x3d0] sm:$0xff]  ;;  %p39007_p1 = scmp.lt.s32.totalorder %s35482_s20, %s35482_s20 }
 0xc81   :  { %37452 = vmatpush3.bf16.msra.mxu0 %v37451_v48  ;;  %v37487_v56 = vpack.c.bf16 %v36235_v24, %v36234_v43  ;;  %v37490_v20 = vpack.c.bf16 %v36237_v63, %v36236_v50  ;;  %v37496_v9 = vpack.c.bf16 %v36241_v53, %v36240_v22  ;;  %v36243_v58 = vld [vmem:[%s46740_s5 + $0x3d8] sm:$0xff]  ;;  %v36246_v41 = vld [vmem:[%s46740_s5 + $0x3f0] sm:$0xff]  ;;  %v36249_v46 = vld [vmem:[%s46740_s5 + $0x408] sm:$0xff]  ;;  %vm47154_vm11 = vcmask 326656  }
 0xc82   :  { %37453 = vmatprep.subr.bf16.mxu0 %v39051_v31  ;;  %v37499_v57 = vpack.c.bf16 %v36243_v58, %v36242_v37  ;;  %v36251_v51 = vld [vmem:[%s46740_s5 + $0x418] sm:$0xff]  ;;  %v36253_v49 = vld [vmem:[%s46740_s5 + $0x428] sm:$0xff]  ;;  %v36258_v15 = vld [vmem:[%s46740_s5 + $0x450] sm:$0xff]  ;;  %vm47155_vm9 = vcmask 490496  }
 0xc83   :  { %38899 = vrot.lane.b32.xlu1 %v38898_v39, %s39053_s17  ;;  %v36244_v39 = vld [vmem:[%s46740_s5 + $0x3e0] sm:$0xff]  ;;  %v36262_v62 = vld [vmem:[%s46740_s5 + $0x470] sm:$0xff]  ;;  %vm47156_vm0 = vmmov %vm47154_vm11 }
 0xc84   :  { %38914 = vrot.lane.b32.xlu0 %v38913_v60, %s39055_s18  ;;  %v36260_v12 = vld [vmem:[%s46740_s5 + $0x460] sm:$0xff] }
 0xc85   :  { %37455 = vmatpush3.bf16.msra.mxu0 %v37454_v26  ;;  %v36245_v26 = vld [vmem:[%s46740_s5 + $0x3e8] sm:$0xff] }
 0xc86   :  { %37456 = vmatprep.subr.bf16.mxu0 %v39051_v31  ;;  %v37502_v0 = vpack.c.bf16 %v36245_v26, %v36244_v39 }
 0xc87   :  { %38919 = vrot.lane.b32.xlu1 %v38918_v47, %s39040_s27  ;;  %v36247_v47 = vld [vmem:[%s46740_s5 + $0x3f8] sm:$0xff] }
 0xc88   :  { %38924 = vrot.lane.b32.xlu0 %v38923_v11, %s39055_s18  ;;  %v36248_v11 = vld [vmem:[%s46740_s5 + $0x400] sm:$0xff] }
 0xc89   :  { %37458 = vmatpush3.bf16.msra.mxu0 %v37457_v25  ;;  %v37505_v25 = vpack.c.bf16 %v36247_v47, %v36246_v41  ;;  %v37508_v2 = vpack.c.bf16 %v36249_v46, %v36248_v11 }
 0xc8a   :  { %37459 = vmatprep.subr.bf16.mxu0 %v39051_v31 }
 0xc8c   :  { %36893 = vmatmul.mubr.f32.vlgmr.msra.gmra.mrb[146].mxu0 %v45563_v44  ;;  %v36222_v44 = vld [vmem:[%s46740_s5 + $0x330] sm:$0xff] }
 0xc8d   :  { %37461 = vmatpush3.bf16.msra.mxu0 %v37460_v21  ;;  %36927 = vmatprep.mubr.msk.f32.mxu0 %vm47144_vm8, %v46885_v61  ;;  %v37469_v17 = vpack.c.bf16 %v36223_v1, %v36222_v44  ;;  %v36250_v21 = vld [vmem:[%s46740_s5 + $0x410] sm:$0xff]  ;;  %v36256_v1 = vld [vmem:[%s46740_s5 + $0x440] sm:$0xff] }
 0xc8e   :  { %37462 = vmatprep.subr.bf16.mxu0 %v39051_v31  ;;  %v37511_v19 = vpack.c.bf16 %v36251_v51, %v36250_v21 }
 0xc91   :  { %37464 = vmatpush3.bf16.msra.mxu0 %v37463_v5  ;;  %v36252_v5 = vld [vmem:[%s46740_s5 + $0x420] sm:$0xff] }
 0xc92   :  { %37465 = vmatprep.subr.bf16.mxu0 %v39051_v31  ;;  %v37514_v45 = vpack.c.bf16 %v36253_v49, %v36252_v5 }
 0xc95   :  { %37467 = vmatpush3.bf16.msra.mxu0 %v37466_v14  ;;  %v36255_v14 = vld [vmem:[%s46740_s5 + $0x438] sm:$0xff] }
 0xc96   :  { %37468 = vmatprep.subr.bf16.mxu0 %v39051_v31 }
 0xc99   :  { %37470 = vmatpush3.bf16.msra.mxu0 %v37469_v17  ;;  %v36257_v17 = vld [vmem:[%s46740_s5 + $0x448] sm:$0xff] }
 0xc9a   :  { %37471 = vmatprep.subr.bf16.mxu0 %v39051_v31  ;;  %v37520_v34 = vpack.c.bf16 %v36257_v17, %v36256_v1  ;;  %v37532_v1 = vpack.c.bf16 %v36265_v52, %v36264_v38 }
 0xc9d   :  { %37473 = vmatpush3.bf16.msra.mxu0 %v37472_v10  ;;  %v36259_v10 = vld [vmem:[%s46740_s5 + $0x458] sm:$0xff] }
 0xc9e   :  { %37474 = vmatprep.subr.bf16.mxu0 %v39051_v31  ;;  %v37523_v18 = vpack.c.bf16 %v36259_v10, %v36258_v15 }
 0xca1   :  { %37476 = vmatpush3.bf16.msra.mxu0 %v37475_v16  ;;  %v36261_v16 = vld [vmem:[%s46740_s5 + $0x468] sm:$0xff] }
 0xca2   :  { %37477 = vmatprep.subr.bf16.mxu0 %v39051_v31  ;;  %v37526_v7 = vpack.c.bf16 %v36261_v16, %v36260_v12 }
 0xca5   :  { %37479 = vmatpush3.bf16.msra.mxu0 %v37478_v32 }
 0xca6   :  { %37480 = vmatprep.subr.bf16.mxu0 %v39051_v31 }
 0xca9   :  { %37482 = vmatpush3.bf16.msra.mxu0 %v37481_v3  ;;  %v36263_v3 = vld [vmem:[%s46740_s5 + $0x478] sm:$0xff] }
 0xcaa   :  { %37483 = vmatprep.subr.bf16.mxu0 %v39051_v31  ;;  %v37529_v54 = vpack.c.bf16 %v36263_v3, %v36262_v62  ;;  %v37535_v62 = vpack.c.bf16 %v36267_v36, %v36266_v35  ;;  %v36290_v35 = vld [vmem:[%s46740_s5 + $0x550] sm:$0xff]  ;;  %v36291_v36 = vld [vmem:[%s46740_s5 + $0x558] sm:$0xff] }
 0xcac   :  { %36928 = vmatmul.mubr.f32.vlgmr.msra.gmra.mrb[148].mxu0 %v45566_v29  ;;  %v36238_v29 = vld [vmem:[%s46740_s5 + $0x3b0] sm:$0xff] }
 0xcad   :  { %37485 = vmatpush3.bf16.msra.mxu0 %v37484_v30  ;;  %36962 = vmatprep.mubr.msk.f32.mxu0 %vm47144_vm8, %v46885_v61  ;;  %v37493_v48 = vpack.c.bf16 %v36239_v4, %v36238_v29 }
 0xcae   :  { %37486 = vmatprep.subr.bf16.mxu0 %v39051_v31 }
 0xcb1   :  { %37488 = vmatpush3.bf16.msra.mxu0 %v37487_v56 }
 0xcb2   :  { %37489 = vmatprep.subr.bf16.mxu0 %v39051_v31 }
 0xcb5   :  { %37491 = vmatpush3.bf16.msra.mxu0 %v37490_v20 }
 0xcb6   :  { %37492 = vmatprep.subr.bf16.mxu0 %v39051_v31 }
 0xcb9   :  { %37494 = vmatpush3.bf16.msra.mxu0 %v37493_v48 }
 0xcba   :  { %37495 = vmatprep.subr.bf16.mxu0 %v39051_v31 }
 0xcbd   :  { %37497 = vmatpush3.bf16.msra.mxu0 %v37496_v9 }
 0xcbe   :  { %37498 = vmatprep.subr.bf16.mxu0 %v39051_v31 }
 0xcbf   :  { %v33906_v23 = vpop.f32.mrb[136].mxu0 }
 0xcc0   :  { %v36719_v60 = vpop.f32.mrb[137].mxu0 }
 0xcc1   :  { %37500 = vmatpush3.bf16.msra.mxu0 %v37499_v57 }
 0xcc2   :  { %37501 = vmatprep.subr.bf16.mxu0 %v39051_v31 }
 0xcc5   :  { %37503 = vmatpush3.bf16.msra.mxu0 %v37502_v0 }
 0xcc6   :  { %37504 = vmatprep.subr.bf16.mxu0 %v39051_v31 }
 0xcc9   :  { %37506 = vmatpush3.bf16.msra.mxu0 %v37505_v25 }
 0xcca   :  { %37507 = vmatprep.subr.bf16.mxu0 %v39051_v31 }
 0xccc   :  { %36963 = vmatmul.mubr.f32.vlgmr.msra.gmra.mrb[150].mxu0 %v45569_v40  ;;  %v36254_v40 = vld [vmem:[%s46740_s5 + $0x430] sm:$0xff] }
 0xccd   :  { %37509 = vmatpush3.bf16.msra.mxu0 %v37508_v2  ;;  %36997 = vmatprep.mubr.msk.f32.mxu0 %vm47144_vm8, %v46885_v61  ;;  %v37517_v44 = vpack.c.bf16 %v36255_v14, %v36254_v40 }
 0xcce   :  { %37510 = vmatprep.subr.bf16.mxu0 %v39051_v31 }
 0xcd1   :  { %37512 = vmatpush3.bf16.msra.mxu0 %v37511_v19 }
 0xcd2   :  { %37513 = vmatprep.subr.bf16.mxu0 %v39051_v31 }
 0xcd5   :  { %37515 = vmatpush3.bf16.msra.mxu0 %v37514_v45 }
 0xcd6   :  { %37516 = vmatprep.subr.bf16.mxu0 %v39051_v31 }
 0xcd9   :  { %37518 = vmatpush3.bf16.msra.mxu0 %v37517_v44 }
 0xcda   :  { %37519 = vmatprep.subr.bf16.mxu0 %v39051_v31 }
 0xcdd   :  { %37521 = vmatpush3.bf16.msra.mxu0 %v37520_v34 }
 0xcde   :  { %37522 = vmatprep.subr.bf16.mxu0 %v39051_v31 }
 0xcdf   :  { %v33976_v28 = vpop.f32.mrb[138].mxu0 }
 0xce0   :  { %v46109_v42 = vadd.f32 %v33976_v28, %v33906_v23  ;;  %v36754_v32 = vpop.f32.mrb[139].mxu0 }
 0xce1   :  { %37524 = vmatpush3.bf16.msra.mxu0 %v37523_v18 }
 0xce2   :  { %37525 = vmatprep.subr.bf16.mxu0 %v39051_v31 }
 0xce5   :  { %37527 = vmatpush3.bf16.msra.mxu0 %v37526_v7 }
 0xce6   :  { %37528 = vmatprep.subr.bf16.mxu0 %v39051_v31 }
 0xce9   :  { %37530 = vmatpush3.bf16.msra.mxu0 %v37529_v54  ;;  %v38890_v13 = vpop.permute.xlu1 %38889 }
 0xcea   :  { %37531 = vmatprep.subr.bf16.mxu0 %v39051_v31  ;;  %v38892_v43 = vunpack.i.h.bf16 %v38890_v13  ;;  %v38891_v24 = vunpack.i.l.bf16 %v38890_v13  ;;  %v36268_v13 = vld [vmem:[%s46740_s5 + $0x4a0] sm:$0xff] }
 0xcec   :  { %v33673_v48 = vsel %vm33669_vm10, %v38891_v24, %v38892_v43 }
 0xced   :  { %v33681_v23 = vsel %vm45483_vm6, %v33673_v48, %v45880_v33  ;;  %v36272_v48 = vld [vmem:[%s46740_s5 + $0x4c0] sm:$0xff] }
 0xcee   :  { %v38905_v30 = vpop.permute.xlu0 %38904 }
 0xcef   :  { %v38907_v56 = vunpack.i.h.bf16 %v38905_v30  ;;  %v38906_v50 = vunpack.i.l.bf16 %v38905_v30  ;;  %v36269_v30 = vld [vmem:[%s46740_s5 + $0x4a8] sm:$0xff] }
 0xcf1   :  { %v38895_v63 = vpop.permute.xlu1 %38894  ;;  %v33712_v9 = vsel %vm47154_vm11, %v38906_v50, %v38907_v56 }
 0xcf2   :  { %v38910_v20 = vpop.permute.xlu0 %38909  ;;  %v38897_v22 = vunpack.i.h.bf16 %v38895_v63  ;;  %v38896_v53 = vunpack.i.l.bf16 %v38895_v63  ;;  %v33720_v41 = vsel %vm45491_vm13, %v33712_v9, %v33681_v23  ;;  %v37538_v63 = vpack.c.bf16 %v36269_v30, %v36268_v13  ;;  %v36274_v9 = vld [vmem:[%s46740_s5 + $0x4d0] sm:$0xff] }
 0xcf3   :  { %v38912_v29 = vunpack.i.h.bf16 %v38910_v20  ;;  %v38911_v4 = vunpack.i.l.bf16 %v38910_v20  ;;  %v36270_v20 = vld [vmem:[%s46740_s5 + $0x4b0] sm:$0xff] }
 0xcf4   :  { %v33672_v47 = vsel %vm33669_vm10, %v38896_v53, %v38897_v22  ;;  %vm47157_vm10 = vmmov %vm47155_vm9  ;;  %v36273_v22 = vld [vmem:[%s46740_s5 + $0x4c8] sm:$0xff]  ;;  %v36278_v23 = vld [vmem:[%s46740_s5 + $0x4f0] sm:$0xff] }
 0xcf5   :  { %v38900_v37 = vpop.permute.xlu1 %38899  ;;  %v33750_v58 = vsel %vm47155_vm9, %v38911_v4, %v38912_v29  ;;  %v33680_v19 = vsel %vm45452_vm7, %v33672_v47, %v45912_v6  ;;  %v36271_v29 = vld [vmem:[%s46740_s5 + $0x4b8] sm:$0xff]  ;;  %v37544_v53 = vpack.c.bf16 %v36273_v22, %v36272_v48  ;;  %v36281_v47 = vld [vmem:[%s46740_s5 + $0x508] sm:$0xff] }
 0xcf6   :  { %v38915_v57 = vpop.permute.xlu0 %38914  ;;  %v38902_v39 = vunpack.i.h.bf16 %v38900_v37  ;;  %v38901_v26 = vunpack.i.l.bf16 %v38900_v37  ;;  %v33758_v25 = vsel %vm45500_vm3, %v33750_v58, %v33720_v41  ;;  %v37541_v4 = vpack.c.bf16 %v36271_v29, %v36270_v20  ;;  %v36275_v37 = vld [vmem:[%s46740_s5 + $0x4d8] sm:$0xff]  ;;  %v36280_v41 = vld [vmem:[%s46740_s5 + $0x500] sm:$0xff]  ;;  %v36301_v20 = vld [vmem:[%s46740_s5 + $0x5a8] sm:$0xff] }
 0xcf7   :  { %v38917_v60 = vunpack.i.h.bf16 %v38915_v57  ;;  %v38916_v0 = vunpack.i.l.bf16 %v38915_v57  ;;  %v37547_v58 = vpack.c.bf16 %v36275_v37, %v36274_v9  ;;  %v36276_v57 = vld [vmem:[%s46740_s5 + $0x4e0] sm:$0xff]  ;;  %v36303_v48 = vld [vmem:[%s46740_s5 + $0x5b8] sm:$0xff]  ;;  %v36305_v9 = vld [vmem:[%s46740_s5 + $0x5c8] sm:$0xff] }
 0xcf8   :  { %v33711_v46 = vsel %vm47156_vm0, %v38901_v26, %v38902_v39  ;;  %v36277_v39 = vld [vmem:[%s46740_s5 + $0x4e8] sm:$0xff] }
 0xcf9   :  { %v33789_v11 = vsel %vm33785_vm12, %v38916_v0, %v38917_v60  ;;  %v38920_v2 = vpop.permute.xlu1 %38919  ;;  %v33719_v59 = vsel %vm45458_vm2, %v33711_v46, %v33680_v19  ;;  %v37550_v26 = vpack.c.bf16 %v36277_v39, %v36276_v57  ;;  %v36279_v60 = vld [vmem:[%s46740_s5 + $0x4f8] sm:$0xff]  ;;  %v36282_v46 = vld [vmem:[%s46740_s5 + $0x510] sm:$0xff]  ;;  %v36284_v19 = vld [vmem:[%s46740_s5 + $0x520] sm:$0xff] }
 0xcfa   :  { %v46135_v21 = vsel %vm45514_vm1, %v33789_v11, %v33758_v25  ;;  %v38925_v55 = vpop.permute.xlu0 %38924  ;;  %v38922_v33 = vunpack.i.h.bf16 %v38920_v2  ;;  %v38921_v51 = vunpack.i.l.bf16 %v38920_v2  ;;  %v37553_v0 = vpack.c.bf16 %v36279_v60, %v36278_v23  ;;  %v36283_v2 = vld [vmem:[%s46740_s5 + $0x518] sm:$0xff]  ;;  %v36309_v23 = vld [vmem:[%s46740_s5 + $0x5e8] sm:$0xff] }
 0xcfb   :  { %v38927_v5 = vunpack.i.h.bf16 %v38925_v55  ;;  %v38926_v49 = vunpack.i.l.bf16 %v38925_v55  ;;  %v34539_v44 = vrot.slane %v46135_v21, 7  ;;  %v34817_v6 = vrot.slane %v46135_v21, 2  ;;  %v36307_v57 = vld [vmem:[%s46740_s5 + $0x5d8] sm:$0xff] }
 0xcfc   :  { %v33749_v45 = vsel %vm47157_vm10, %v38921_v51, %v38922_v33  ;;  %v34910_v27 = vrot.slane %v46135_v21, 3  ;;  %v35003_v10 = vrot.slane %v46135_v21, 4  ;;  %v35096_v18 = vrot.slane %v46135_v21, 5 }
 0xcfd   :  { %v33788_v40 = vsel %vm33785_vm12, %v38926_v49, %v38927_v5  ;;  %v33757_v14 = vsel %vm45466_vm5, %v33749_v45, %v33719_v59  ;;  %v37556_v11 = vpack.c.bf16 %v36281_v47, %v36280_v41  ;;  %v37559_v52 = vpack.c.bf16 %v36283_v2, %v36282_v46  ;;  %v36285_v5 = vld [vmem:[%s46740_s5 + $0x528] sm:$0xff]  ;;  %v36286_v59 = vld [vmem:[%s46740_s5 + $0x530] sm:$0xff]  ;;  %v36287_v45 = vld [vmem:[%s46740_s5 + $0x538] sm:$0xff] }
 0xcfe   :  { %v46155_v17 = vsel %vm45473_vm15, %v33788_v40, %v33757_v14  ;;  %v37562_v49 = vpack.c.bf16 %v36285_v5, %v36284_v19  ;;  %v37565_v40 = vpack.c.bf16 %v36287_v45, %v36286_v59  ;;  %v36288_v14 = vld [vmem:[%s46740_s5 + $0x540] sm:$0xff]  ;;  %v36311_v41 = vld [vmem:[%s46740_s5 + $0x5f8] sm:$0xff]  ;;  %v36314_v2 = vld [vmem:[%s46740_s5 + $0x610] sm:$0xff] }
 0xcff   :  { %v34068_v34 = vpop.f32.mrb[140].mxu0  ;;  %v34541_v15 = vsel %vm33801_vm4, %v46155_v17, %v34539_v44  ;;  %v34815_v8 = vrot.slane %v46155_v17, 3  ;;  %v34908_v28 = vrot.slane %v46155_v17, 4  ;;  %v35001_v32 = vrot.slane %v46155_v17, 5  ;;  %v36289_v44 = vld [vmem:[%s46740_s5 + $0x548] sm:$0xff]  ;;  %v36316_v19 = vld [vmem:[%s46740_s5 + $0x620] sm:$0xff] }
 0xd00   :  { %v34072_v12 = vadd.f32 %v34068_v34, %v46109_v42  ;;  %v36789_v16 = vpop.f32.mrb[141].mxu0  ;;  %36998 = vmatmul.mubr.f32.vlgmr.msra.gmra.mrb[152].mxu0 %v34541_v15  ;;  %v35094_v7 = vrot.slane %v46155_v17, 6  ;;  %v35187_v54 = vrot.slane %v46155_v17, 7  ;;  %v35189_v42 = vrot.slane %v46135_v21, 6  ;;  %v36293_v34 = vld [vmem:[%s46740_s5 + $0x568] sm:$0xff]  ;;  %v36319_v59 = vld [vmem:[%s46740_s5 + $0x638] sm:$0xff] }
 0xd01   :  { %37533 = vmatpush3.bf16.msra.mxu0 %v37532_v1  ;;  %37032 = vmatprep.mubr.msk.f32.mxu0 %vm47144_vm8, %v46885_v61  ;;  %v46177_v3 = vsel %vm33801_vm4, %v34815_v8, %v34817_v6  ;;  %v46189_v43 = vsel %vm33801_vm4, %v34908_v28, %v34910_v27  ;;  %v46192_v24 = vsel %vm33801_vm4, %v35001_v32, %v35003_v10  ;;  %v34631_v25 = vrot.slane %v46155_v17, 1  ;;  %v36292_v27 = vld [vmem:[%s46740_s5 + $0x560] sm:$0xff]  ;;  %v36294_v8 = vld [vmem:[%s46740_s5 + $0x570] sm:$0xff]  ;;  %v36295_v10 = vld [vmem:[%s46740_s5 + $0x578] sm:$0xff] }
 0xd02   :  { %37534 = vmatprep.subr.bf16.mxu0 %v39051_v31  ;;  %v46195_v56 = vsel %vm33801_vm4, %v35094_v7, %v35096_v18  ;;  %v46198_v50 = vsel %vm33801_vm4, %v35187_v54, %v35189_v42  ;;  %v37568_v1 = vpack.c.bf16 %v36289_v44, %v36288_v14  ;;  %v37571_v6 = vpack.c.bf16 %v36291_v36, %v36290_v35  ;;  %v36297_v16 = vld [vmem:[%s46740_s5 + $0x588] sm:$0xff]  ;;  %v36299_v54 = vld [vmem:[%s46740_s5 + $0x598] sm:$0xff] }
 0xd03   :  { %v34633_v33 = vsel %vm33801_vm4, %v34631_v25, %v46135_v21  ;;  %v37574_v15 = vpack.c.bf16 %v36293_v34, %v36292_v27  ;;  %v37577_v18 = vpack.c.bf16 %v36295_v10, %v36294_v8  ;;  %v34722_v28 = vrot.slane %v46155_v17, 2  ;;  %v36312_v25 = vld [vmem:[%s46740_s5 + $0x600] sm:$0xff]  ;;  %v36317_v5 = vld [vmem:[%s46740_s5 + $0x628] sm:$0xff]  ;;  %v36323_v35 = vld [vmem:[%s46740_s5 + $0x658] sm:$0xff] }
 0xd04   :  { %v34724_v32 = vrot.slane %v46135_v21, 1  ;;  %v36300_v21 = vld [vmem:[%s46740_s5 + $0x5a0] sm:$0xff]  ;;  %v36321_v14 = vld [vmem:[%s46740_s5 + $0x648] sm:$0xff]  ;;  %v36327_v8 = vld [vmem:[%s46740_s5 + $0x678] sm:$0xff] }
 0xd05   :  { %37536 = vmatpush3.bf16.msra.mxu0 %v37535_v62  ;;  %v36298_v62 = vld [vmem:[%s46740_s5 + $0x590] sm:$0xff]  ;;  %v37586_v29 = vpack.c.bf16 %v36301_v20, %v36300_v21  ;;  %v36325_v27 = vld [vmem:[%s46740_s5 + $0x668] sm:$0xff]  ;;  %v36336_v20 = vld [vmem:[%s46740_s5 + $0x6c0] sm:$0xff] }
 0xd06   :  { %37537 = vmatprep.subr.bf16.mxu0 %v39051_v31  ;;  %v34726_v13 = vsel %vm33801_vm4, %v34722_v28, %v34724_v32  ;;  %v37583_v17 = vpack.c.bf16 %v36299_v54, %v36298_v62  ;;  %v36330_v28 = vld [vmem:[%s46740_s5 + $0x690] sm:$0xff]  ;;  %v36331_v32 = vld [vmem:[%s46740_s5 + $0x698] sm:$0xff] }
 0xd09   :  { %37539 = vmatpush3.bf16.msra.mxu0 %v37538_v63 }
 0xd0a   :  { %37540 = vmatprep.subr.bf16.mxu0 %v39051_v31 }
 0xd0d   :  { %37542 = vmatpush3.bf16.msra.mxu0 %v37541_v4  ;;  %v36302_v4 = vld [vmem:[%s46740_s5 + $0x5b0] sm:$0xff] }
 0xd0e   :  { %37543 = vmatprep.subr.bf16.mxu0 %v39051_v31  ;;  %v37589_v22 = vpack.c.bf16 %v36303_v48, %v36302_v4  ;;  %v36338_v48 = vld [vmem:[%s46740_s5 + $0x6d0] sm:$0xff] }
 0xd11   :  { %37545 = vmatpush3.bf16.msra.mxu0 %v37544_v53  ;;  %v36304_v53 = vld [vmem:[%s46740_s5 + $0x5c0] sm:$0xff] }
 0xd12   :  { %37546 = vmatprep.subr.bf16.mxu0 %v39051_v31  ;;  %v37592_v37 = vpack.c.bf16 %v36305_v9, %v36304_v53  ;;  %v36340_v9 = vld [vmem:[%s46740_s5 + $0x6e0] sm:$0xff] }
 0xd15   :  { %37548 = vmatpush3.bf16.msra.mxu0 %v37547_v58  ;;  %v36306_v58 = vld [vmem:[%s46740_s5 + $0x5d0] sm:$0xff] }
 0xd16   :  { %37549 = vmatprep.subr.bf16.mxu0 %v39051_v31  ;;  %v37595_v39 = vpack.c.bf16 %v36307_v57, %v36306_v58  ;;  %v36342_v57 = vld [vmem:[%s46740_s5 + $0x6f0] sm:$0xff] }
 0xd19   :  { %37551 = vmatpush3.bf16.msra.mxu0 %v37550_v26  ;;  %v36308_v26 = vld [vmem:[%s46740_s5 + $0x5e0] sm:$0xff] }
 0xd1a   :  { %37552 = vmatprep.subr.bf16.mxu0 %v39051_v31  ;;  %v37598_v60 = vpack.c.bf16 %v36309_v23, %v36308_v26  ;;  %v36344_v23 = vld [vmem:[%s46740_s5 + $0x700] sm:$0xff] }
 0xd1d   :  { %37554 = vmatpush3.bf16.msra.mxu0 %v37553_v0  ;;  %v36310_v0 = vld [vmem:[%s46740_s5 + $0x5f0] sm:$0xff] }
 0xd1e   :  { %37555 = vmatprep.subr.bf16.mxu0 %v39051_v31  ;;  %v37601_v47 = vpack.c.bf16 %v36311_v41, %v36310_v0  ;;  %v36346_v41 = vld [vmem:[%s46740_s5 + $0x710] sm:$0xff] }
 0xd1f   :  { %v34161_v55 = vpop.f32.mrb[142].mxu0 }
 0xd20   :  { %v34165_v51 = vadd.f32 %v34161_v55, %v34072_v12  ;;  %v36824_v38 = vpop.f32.mrb[143].mxu0  ;;  %37033 = vmatmul.mubr.f32.vlgmr.msra.gmra.mrb[154].mxu0 %v34633_v33  ;;  %v36296_v12 = vld [vmem:[%s46740_s5 + $0x580] sm:$0xff]  ;;  %v36315_v55 = vld [vmem:[%s46740_s5 + $0x618] sm:$0xff] }
 0xd21   :  { %37557 = vmatpush3.bf16.msra.mxu0 %v37556_v11  ;;  %37067 = vmatprep.mubr.msk.f32.mxu0 %vm47144_vm8, %v46885_v61  ;;  %v37580_v7 = vpack.c.bf16 %v36297_v16, %v36296_v12  ;;  %v36313_v11 = vld [vmem:[%s46740_s5 + $0x608] sm:$0xff] }
 0xd22   :  { %37558 = vmatprep.subr.bf16.mxu0 %v39051_v31  ;;  %v37604_v46 = vpack.c.bf16 %v36313_v11, %v36312_v25  ;;  %v36329_v12 = vld [vmem:[%s46740_s5 + $0x688] sm:$0xff] }
 0xd25   :  { %37560 = vmatpush3.bf16.msra.mxu0 %v37559_v52  ;;  %v37607_v52 = vpack.c.bf16 %v36315_v55, %v36314_v2  ;;  %v36348_v55 = vld [vmem:[%s46740_s5 + $0x720] sm:$0xff] }
 0xd26   :  { %37561 = vmatprep.subr.bf16.mxu0 %v39051_v31 }
 0xd29   :  { %37563 = vmatpush3.bf16.msra.mxu0 %v37562_v49  ;;  %v37610_v49 = vpack.c.bf16 %v36317_v5, %v36316_v19  ;;  %v36352_v19 = vld [vmem:[%s46740_s5 + $0x740] sm:$0xff]  ;;  %v36353_v5 = vld [vmem:[%s46740_s5 + $0x748] sm:$0xff] }
 0xd2a   :  { %37564 = vmatprep.subr.bf16.mxu0 %v39051_v31 }
 0xd2d   :  { %37566 = vmatpush3.bf16.msra.mxu0 %v37565_v40  ;;  %v36320_v40 = vld [vmem:[%s46740_s5 + $0x640] sm:$0xff] }
 0xd2e   :  { %37567 = vmatprep.subr.bf16.mxu0 %v39051_v31  ;;  %v37616_v44 = vpack.c.bf16 %v36321_v14, %v36320_v40  ;;  %v36356_v40 = vld [vmem:[%s46740_s5 + $0x760] sm:$0xff]  ;;  %v36357_v14 = vld [vmem:[%s46740_s5 + $0x768] sm:$0xff] }
 0xd31   :  { %37569 = vmatpush3.bf16.msra.mxu0 %v37568_v1  ;;  %v36322_v1 = vld [vmem:[%s46740_s5 + $0x650] sm:$0xff] }
 0xd32   :  { %37570 = vmatprep.subr.bf16.mxu0 %v39051_v31  ;;  %v37619_v36 = vpack.c.bf16 %v36323_v35, %v36322_v1  ;;  %v36358_v1 = vld [vmem:[%s46740_s5 + $0x770] sm:$0xff]  ;;  %v36359_v35 = vld [vmem:[%s46740_s5 + $0x778] sm:$0xff] }
 0xd35   :  { %37572 = vmatpush3.bf16.msra.mxu0 %v37571_v6  ;;  %v36324_v6 = vld [vmem:[%s46740_s5 + $0x660] sm:$0xff] }
 0xd36   :  { %37573 = vmatprep.subr.bf16.mxu0 %v39051_v31  ;;  %v37622_v34 = vpack.c.bf16 %v36325_v27, %v36324_v6  ;;  %v36360_v6 = vld [vmem:[%s46740_s5 + $0x780] sm:$0xff]  ;;  %v36361_v27 = vld [vmem:[%s46740_s5 + $0x788] sm:$0xff] }
 0xd39   :  { %37575 = vmatpush3.bf16.msra.mxu0 %v37574_v15  ;;  %v36326_v15 = vld [vmem:[%s46740_s5 + $0x670] sm:$0xff] }
 0xd3a   :  { %37576 = vmatprep.subr.bf16.mxu0 %v39051_v31  ;;  %v37625_v10 = vpack.c.bf16 %v36327_v8, %v36326_v15  ;;  %v36362_v15 = vld [vmem:[%s46740_s5 + $0x790] sm:$0xff]  ;;  %v36363_v8 = vld [vmem:[%s46740_s5 + $0x798] sm:$0xff] }
 0xd3d   :  { %37578 = vmatpush3.bf16.msra.mxu0 %v37577_v18  ;;  %v36328_v18 = vld [vmem:[%s46740_s5 + $0x680] sm:$0xff] }
 0xd3e   :  { %37579 = vmatprep.subr.bf16.mxu0 %v39051_v31  ;;  %v37628_v16 = vpack.c.bf16 %v36329_v12, %v36328_v18  ;;  %v36364_v18 = vld [vmem:[%s46740_s5 + $0x7a0] sm:$0xff]  ;;  %v36365_v12 = vld [vmem:[%s46740_s5 + $0x7a8] sm:$0xff] }
 0xd3f   :  { %v34254_v42 = vpop.f32.mrb[144].mxu0 }
 0xd40   :  { %v34258_v30 = vadd.f32 %v34254_v42, %v34165_v51  ;;  %v36859_v63 = vpop.f32.mrb[145].mxu0  ;;  %37068 = vmatmul.mubr.f32.vlgmr.msra.gmra.mrb[156].mxu0 %v34726_v13  ;;  %v37631_v42 = vpack.c.bf16 %v36331_v32, %v36330_v28  ;;  %v36332_v13 = vld [vmem:[%s46740_s5 + $0x6a0] sm:$0xff]  ;;  %v36367_v28 = vld [vmem:[%s46740_s5 + $0x7b8] sm:$0xff] }
 0xd41   :  { %37581 = vmatpush3.bf16.msra.mxu0 %v37580_v7  ;;  %37102 = vmatprep.mubr.msk.f32.mxu0 %vm47144_vm8, %v46885_v61 }
 0xd42   :  { %37582 = vmatprep.subr.bf16.mxu0 %v39051_v31 }
 0xd45   :  { %37584 = vmatpush3.bf16.msra.mxu0 %v37583_v17  ;;  %v36335_v17 = vld [vmem:[%s46740_s5 + $0x6b8] sm:$0xff] }
 0xd46   :  { %37585 = vmatprep.subr.bf16.mxu0 %v39051_v31 }
 0xd49   :  { %37587 = vmatpush3.bf16.msra.mxu0 %v37586_v29  ;;  %v36337_v29 = vld [vmem:[%s46740_s5 + $0x6c8] sm:$0xff] }
 0xd4a   :  { %37588 = vmatprep.subr.bf16.mxu0 %v39051_v31  ;;  %v37640_v4 = vpack.c.bf16 %v36337_v29, %v36336_v20 }
 0xd4d   :  { %37590 = vmatpush3.bf16.msra.mxu0 %v37589_v22  ;;  %v36339_v22 = vld [vmem:[%s46740_s5 + $0x6d8] sm:$0xff] }
 0xd4e   :  { %37591 = vmatprep.subr.bf16.mxu0 %v39051_v31  ;;  %v37643_v53 = vpack.c.bf16 %v36339_v22, %v36338_v48  ;;  %v36375_v48 = vld [vmem:[%s46740_s5 + $0x7f8] sm:$0xff] }
 0xd51   :  { %37593 = vmatpush3.bf16.msra.mxu0 %v37592_v37  ;;  %v36341_v37 = vld [vmem:[%s46740_s5 + $0x6e8] sm:$0xff] }
 0xd52   :  { %37594 = vmatprep.subr.bf16.mxu0 %v39051_v31  ;;  %v37646_v58 = vpack.c.bf16 %v36341_v37, %v36340_v9 }
 0xd55   :  { %37596 = vmatpush3.bf16.msra.mxu0 %v37595_v39  ;;  %v36343_v39 = vld [vmem:[%s46740_s5 + $0x6f8] sm:$0xff] }
 0xd56   :  { %37597 = vmatprep.subr.bf16.mxu0 %v39051_v31  ;;  %v37649_v26 = vpack.c.bf16 %v36343_v39, %v36342_v57 }
 0xd59   :  { %37599 = vmatpush3.bf16.msra.mxu0 %v37598_v60  ;;  %v36345_v60 = vld [vmem:[%s46740_s5 + $0x708] sm:$0xff] }
 0xd5a   :  { %37600 = vmatprep.subr.bf16.mxu0 %v39051_v31  ;;  %v37652_v0 = vpack.c.bf16 %v36345_v60, %v36344_v23  ;;  %v35289_v23 = vld [vmem:[%s46742_s7 + $0x8] sm:$0xff] }
 0xd5d   :  { %37602 = vmatpush3.bf16.msra.mxu0 %v37601_v47  ;;  %v36347_v47 = vld [vmem:[%s46740_s5 + $0x718] sm:$0xff] }
 0xd5e   :  { %37603 = vmatprep.subr.bf16.mxu0 %v39051_v31  ;;  %v37655_v2 = vpack.c.bf16 %v36347_v47, %v36346_v41  ;;  %v35292_v47 = vld [vmem:[%s46742_s7 + $0x20] sm:$0xff] }
 0xd5f   :  { %v34347_v33 = vpop.f32.mrb[146].mxu0 }
 0xd60   :  { %v34351_v51 = vadd.f32 %v34347_v33, %v34258_v30  ;;  %v36894_v38 = vpop.f32.mrb[147].mxu0  ;;  %37103 = vmatmul.mubr.f32.vlgmr.msra.gmra.mrb[158].mxu0 %v46177_v3  ;;  %v36318_v3 = vld [vmem:[%s46740_s5 + $0x630] sm:$0xff]  ;;  %v36333_v30 = vld [vmem:[%s46740_s5 + $0x6a8] sm:$0xff] }
 0xd61   :  { %37605 = vmatpush3.bf16.msra.mxu0 %v37604_v46  ;;  %37137 = vmatprep.mubr.msk.f32.mxu0 %vm47144_vm8, %v46885_v61  ;;  %v37613_v45 = vpack.c.bf16 %v36319_v59, %v36318_v3  ;;  %v37634_v63 = vpack.c.bf16 %v36333_v30, %v36332_v13  ;;  %v36349_v33 = vld [vmem:[%s46740_s5 + $0x728] sm:$0xff]  ;;  %v36351_v38 = vld [vmem:[%s46740_s5 + $0x738] sm:$0xff]  ;;  %v36354_v3 = vld [vmem:[%s46740_s5 + $0x750] sm:$0xff] }
 0xd62   :  { %37606 = vmatprep.subr.bf16.mxu0 %v39051_v31  ;;  %v36355_v59 = vld [vmem:[%s46740_s5 + $0x758] sm:$0xff] }
 0xd63   :  { %v36371_v13 = vld [vmem:[%s46740_s5 + $0x7d8] sm:$0xff] }
 0xd65   :  { %37608 = vmatpush3.bf16.msra.mxu0 %v37607_v52 }
 0xd66   :  { %37609 = vmatprep.subr.bf16.mxu0 %v39051_v31 }
 0xd69   :  { %37611 = vmatpush3.bf16.msra.mxu0 %v37610_v49  ;;  %v37664_v49 = vpack.c.bf16 %v36353_v5, %v36352_v19  ;;  %v35300_v5 = vld [vmem:[%s46742_s7 + $0x60] sm:$0xff] }
 0xd6a   :  { %37612 = vmatprep.subr.bf16.mxu0 %v39051_v31 }
 0xd6d   :  { %37614 = vmatpush3.bf16.msra.mxu0 %v37613_v45  ;;  %v37667_v45 = vpack.c.bf16 %v36355_v59, %v36354_v3 }
 0xd6e   :  { %37615 = vmatprep.subr.bf16.mxu0 %v39051_v31 }
 0xd71   :  { %37617 = vmatpush3.bf16.msra.mxu0 %v37616_v44  ;;  %v37670_v44 = vpack.c.bf16 %v36357_v14, %v36356_v40  ;;  %v35302_v14 = vld [vmem:[%s46742_s7 + $0x70] sm:$0xff] }
 0xd72   :  { %37618 = vmatprep.subr.bf16.mxu0 %v39051_v31 }
 0xd75   :  { %37620 = vmatpush3.bf16.msra.mxu0 %v37619_v36  ;;  %v37673_v36 = vpack.c.bf16 %v36359_v35, %v36358_v1 }
 0xd76   :  { %37621 = vmatprep.subr.bf16.mxu0 %v39051_v31 }
 0xd79   :  { %37623 = vmatpush3.bf16.msra.mxu0 %v37622_v34  ;;  %v37676_v34 = vpack.c.bf16 %v36361_v27, %v36360_v6 }
 0xd7a   :  { %37624 = vmatprep.subr.bf16.mxu0 %v39051_v31 }
 0xd7d   :  { %37626 = vmatpush3.bf16.msra.mxu0 %v37625_v10  ;;  %v37679_v10 = vpack.c.bf16 %v36363_v8, %v36362_v15 }
 0xd7e   :  { %37627 = vmatprep.subr.bf16.mxu0 %v39051_v31 }
 0xd7f   :  { %v34440_v7 = vpop.f32.mrb[148].mxu0 }
 0xd80   :  { %v34444_v62 = vadd.f32 %v34440_v7, %v34351_v51  ;;  %v36929_v54 = vpop.f32.mrb[149].mxu0  ;;  %37138 = vmatmul.mubr.f32.vlgmr.msra.gmra.mrb[160].mxu0 %v46189_v43  ;;  %v36334_v43 = vld [vmem:[%s46740_s5 + $0x6b0] sm:$0xff]  ;;  %v37658_v51 = vpack.c.bf16 %v36349_v33, %v36348_v55  ;;  %v36368_v7 = vld [vmem:[%s46740_s5 + $0x7c0] sm:$0xff] }
 0xd81   :  { %37629 = vmatpush3.bf16.msra.mxu0 %v37628_v16  ;;  %37172 = vmatprep.mubr.msk.f32.mxu0 %vm47144_vm8, %v46885_v61  ;;  %v37637_v21 = vpack.c.bf16 %v36335_v17, %v36334_v43  ;;  %v37682_v16 = vpack.c.bf16 %v36365_v12, %v36364_v18  ;;  %v36373_v43 = vld [vmem:[%s46740_s5 + $0x7e8] sm:$0xff]  ;;  %v35296_v33 = vld [vmem:[%s46742_s7 + $0x40] sm:$0xff] }
 0xd82   :  { %37630 = vmatprep.subr.bf16.mxu0 %v39051_v31  ;;  %v35381_v12 = vld [vmem:[%s46744_s9] sm:$0xff] }
 0xd85   :  { %37632 = vmatpush3.bf16.msra.mxu0 %v37631_v42  ;;  %v36370_v42 = vld [vmem:[%s46740_s5 + $0x7d0] sm:$0xff] }
 0xd86   :  { %37633 = vmatprep.subr.bf16.mxu0 %v39051_v31  ;;  %v37691_v30 = vpack.c.bf16 %v36371_v13, %v36370_v42  ;;  %v35383_v42 = vld [vmem:[%s46744_s9 + $0x10] sm:$0xff]  ;;  %v35384_v13 = vld [vmem:[%s46744_s9 + $0x18] sm:$0xff] }
 0xd89   :  { %37635 = vmatpush3.bf16.msra.mxu0 %v37634_v63  ;;  %v36372_v63 = vld [vmem:[%s46740_s5 + $0x7e0] sm:$0xff] }
 0xd8a   :  { %37636 = vmatprep.subr.bf16.mxu0 %v39051_v31  ;;  %v37694_v29 = vpack.c.bf16 %v36373_v43, %v36372_v63  ;;  %v35385_v63 = vld [vmem:[%s46744_s9 + $0x20] sm:$0xff]  ;;  %v35386_v43 = vld [vmem:[%s46744_s9 + $0x28] sm:$0xff] }
 0xd8d   :  { %37638 = vmatpush3.bf16.msra.mxu0 %v37637_v21 }
 0xd8e   :  { %37639 = vmatprep.subr.bf16.mxu0 %v39051_v31 }
 0xd91   :  { %37641 = vmatpush3.bf16.msra.mxu0 %v37640_v4  ;;  %v36374_v4 = vld [vmem:[%s46740_s5 + $0x7f0] sm:$0xff] }
 0xd92   :  { %37642 = vmatprep.subr.bf16.mxu0 %v39051_v31  ;;  %v37697_v22 = vpack.c.bf16 %v36375_v48, %v36374_v4  ;;  %v35390_v4 = vld [vmem:[%s46744_s9 + $0x48] sm:$0xff] }
 0xd95   :  { %37644 = vmatpush3.bf16.msra.mxu0 %v37643_v53 }
 0xd96   :  { %37645 = vmatprep.subr.bf16.mxu0 %v39051_v31 }
 0xd99   :  { %37647 = vmatpush3.bf16.msra.mxu0 %v37646_v58 }
 0xd9a   :  { %37648 = vmatprep.subr.bf16.mxu0 %v39051_v31 }
 0xd9d   :  { %37650 = vmatpush3.bf16.msra.mxu0 %v37649_v26  ;;  %v35288_v26 = vld [vmem:[%s46742_s7] sm:$0xff] }
 0xd9e   :  { %37651 = vmatprep.subr.bf16.mxu0 %v39051_v31  ;;  %v37700_v60 = vpack.c.bf16 %v35289_v23, %v35288_v26  ;;  %v35396_v26 = vld [vmem:[%s46744_s9 + $0x78] sm:$0xff] }
 0xd9f   :  { %v34533_v25 = vpop.f32.mrb[150].mxu0 }
 0xda0   :  { %v46489_v11 = vadd.f32 %v34533_v25, %v34444_v62  ;;  %v36964_v46 = vpop.f32.mrb[151].mxu0  ;;  %37173 = vmatmul.mubr.f32.vlgmr.msra.gmra.mrb[162].mxu0 %v46192_v24  ;;  %v36350_v24 = vld [vmem:[%s46740_s5 + $0x730] sm:$0xff]  ;;  %v36369_v62 = vld [vmem:[%s46740_s5 + $0x7c8] sm:$0xff] }
 0xda1   :  { %37653 = vmatpush3.bf16.msra.mxu0 %v37652_v0  ;;  %37207 = vmatprep.mubr.msk.f32.mxu0 %vm47144_vm8, %v46885_v61  ;;  %v37661_v52 = vpack.c.bf16 %v36351_v38, %v36350_v24  ;;  %v37688_v54 = vpack.c.bf16 %v36369_v62, %v36368_v7  ;;  %v35291_v0 = vld [vmem:[%s46742_s7 + $0x18] sm:$0xff]  ;;  %v35293_v25 = vld [vmem:[%s46742_s7 + $0x28] sm:$0xff]  ;;  %v35294_v46 = vld [vmem:[%s46742_s7 + $0x30] sm:$0xff] }
 0xda2   :  { %37654 = vmatprep.subr.bf16.mxu0 %v39051_v31  ;;  %v35298_v38 = vld [vmem:[%s46742_s7 + $0x50] sm:$0xff] }
 0xda5   :  { %37656 = vmatpush3.bf16.msra.mxu0 %v37655_v2  ;;  %v35295_v2 = vld [vmem:[%s46742_s7 + $0x38] sm:$0xff] }
 0xda6   :  { %37657 = vmatprep.subr.bf16.mxu0 %v39051_v31  ;;  %v37709_v55 = vpack.c.bf16 %v35295_v2, %v35294_v46 }
 0xda9   :  { %37659 = vmatpush3.bf16.msra.mxu0 %v37658_v51  ;;  %v35297_v51 = vld [vmem:[%s46742_s7 + $0x48] sm:$0xff] }
 0xdaa   :  { %37660 = vmatprep.subr.bf16.mxu0 %v39051_v31  ;;  %v37712_v24 = vpack.c.bf16 %v35297_v51, %v35296_v33 }
 0xdad   :  { %37662 = vmatpush3.bf16.msra.mxu0 %v37661_v52  ;;  %v35299_v52 = vld [vmem:[%s46742_s7 + $0x58] sm:$0xff] }
 0xdae   :  { %37663 = vmatprep.subr.bf16.mxu0 %v39051_v31  ;;  %v37715_v19 = vpack.c.bf16 %v35299_v52, %v35298_v38 }
 0xdb1   :  { %37665 = vmatpush3.bf16.msra.mxu0 %v37664_v49  ;;  %v35301_v49 = vld [vmem:[%s46742_s7 + $0x68] sm:$0xff] }
 0xdb2   :  { %37666 = vmatprep.subr.bf16.mxu0 %v39051_v31  ;;  %v37718_v3 = vpack.c.bf16 %v35301_v49, %v35300_v5 }
 0xdb5   :  { %37668 = vmatpush3.bf16.msra.mxu0 %v37667_v45 }
 0xdb6   :  { %37669 = vmatprep.subr.bf16.mxu0 %v39051_v31 }
 0xdb9   :  { %37671 = vmatpush3.bf16.msra.mxu0 %v37670_v44  ;;  %v35303_v44 = vld [vmem:[%s46742_s7 + $0x78] sm:$0xff] }
 0xdba   :  { %37672 = vmatprep.subr.bf16.mxu0 %v39051_v31  ;;  %v37721_v1 = vpack.c.bf16 %v35303_v44, %v35302_v14 }
 0xdbd   :  { %37674 = vmatpush3.bf16.msra.mxu0 %v37673_v36 }
 0xdbe   :  { %37675 = vmatprep.subr.bf16.mxu0 %v39051_v31 }
 0xdc0   :  { %37208 = vmatmul.mubr.f32.vlgmr.msra.gmra.mrb[164].mxu0 %v46195_v56  ;;  %v36366_v56 = vld [vmem:[%s46740_s5 + $0x7b0] sm:$0xff] }
 0xdc1   :  { %37677 = vmatpush3.bf16.msra.mxu0 %v37676_v34  ;;  %37242 = vmatprep.mubr.msk.f32.mxu0 %vm47144_vm8, %v46885_v61  ;;  %v37685_v32 = vpack.c.bf16 %v36367_v28, %v36366_v56  ;;  %v36376_v28 = vld [vmem:[%s46741_s6] ss:$0 sm:$0xff] }
 0xdc2   :  { %37678 = vmatprep.subr.bf16.mxu0 %v39051_v31 }
 0xdc5   :  { %37680 = vmatpush3.bf16.msra.mxu0 %v37679_v10 }
 0xdc6   :  { %37681 = vmatprep.subr.bf16.mxu0 %v39051_v31 }
 0xdc9   :  { %37683 = vmatpush3.bf16.msra.mxu0 %v37682_v16  ;;  %v35382_v16 = vld [vmem:[%s46744_s9 + $0x8] sm:$0xff] }
 0xdca   :  { %37684 = vmatprep.subr.bf16.mxu0 %v39051_v31  ;;  %v37724_v62 = vpack.c.bf16 %v35382_v16, %v35381_v12 }
 0xdcd   :  { %37686 = vmatpush3.bf16.msra.mxu0 %v37685_v32 }
 0xdce   :  { %37687 = vmatprep.subr.bf16.mxu0 %v39051_v31 }
 0xdd1   :  { %37689 = vmatpush3.bf16.msra.mxu0 %v37688_v54 }
 0xdd2   :  { %37690 = vmatprep.subr.bf16.mxu0 %v39051_v31 }
 0xdd3   :  { %v34625_v17 = vpop.f32.mrb[152].mxu0 }
 0xdd4   :  { %v34629_v21 = vadd.f32 %v34625_v17, %v46489_v11  ;;  %v36999_v20 = vpop.f32.mrb[153].mxu0  ;;  %v37706_v11 = vpack.c.bf16 %v35293_v25, %v35292_v47  ;;  %v37730_v17 = vpack.c.bf16 %v35386_v43, %v35385_v63 }
 0xdd5   :  { %37692 = vmatpush3.bf16.msra.mxu0 %v37691_v30  ;;  %v37727_v30 = vpack.c.bf16 %v35384_v13, %v35383_v42 }
 0xdd6   :  { %37693 = vmatprep.subr.bf16.mxu0 %v39051_v31 }
 0xdd9   :  { %37695 = vmatpush3.bf16.msra.mxu0 %v37694_v29  ;;  %v35389_v29 = vld [vmem:[%s46744_s9 + $0x40] sm:$0xff] }
 0xdda   :  { %37696 = vmatprep.subr.bf16.mxu0 %v39051_v31  ;;  %v37736_v48 = vpack.c.bf16 %v35390_v4, %v35389_v29 }
 0xddd   :  { %37698 = vmatpush3.bf16.msra.mxu0 %v37697_v22  ;;  %v35391_v22 = vld [vmem:[%s46744_s9 + $0x50] sm:$0xff] }
 0xdde   :  { %37699 = vmatprep.subr.bf16.mxu0 %v39051_v31 }
 0xde0   :  { %37243 = vmatmul.mubr.f32.vlgmr.msra.gmra.mrb[166].mxu0 %v46198_v50  ;;  %v35290_v50 = vld [vmem:[%s46742_s7 + $0x10] sm:$0xff] }
 0xde1   :  { %37277 = vmatprep.mubr.msk.f32.mxu0 %vm47144_vm8, %v46885_v61  ;;  %37701 = vmatpush3.bf16.msra.mxu0 %v37700_v60  ;;  %v37703_v41 = vpack.c.bf16 %v35291_v0, %v35290_v50  ;;  %v36377_v50 = vld [vmem:[%s46743_s8] ss:$0 sm:$0xff] }
 0xde2   :  { %37702 = vmatprep.subr.bf16.mxu0 %v39051_v31 }
 0xde5   :  { %37704 = vmatpush3.bf16.msra.mxu0 %v37703_v41 }
 0xde6   :  { %37705 = vmatprep.subr.bf16.mxu0 %v39051_v31 }
 0xde9   :  { %37707 = vmatpush3.bf16.msra.mxu0 %v37706_v11 }
 0xdea   :  { %37708 = vmatprep.subr.bf16.mxu0 %v39051_v31 }
 0xded   :  { %37710 = vmatpush3.bf16.msra.mxu0 %v37709_v55 }
 0xdee   :  { %37711 = vmatprep.subr.bf16.mxu0 %v39051_v31 }
 0xdf1   :  { %37713 = vmatpush3.bf16.msra.mxu0 %v37712_v24 }
 0xdf2   :  { %37714 = vmatprep.subr.bf16.mxu0 %v39051_v31 }
 0xdf3   :  { %v34717_v53 = vpop.f32.mrb[154].mxu0 }
 0xdf4   :  { %v34721_v9 = vadd.f32 %v34717_v53, %v34629_v21  ;;  %v37034_v37 = vpop.f32.mrb[155].mxu0  ;;  %v35387_v21 = vld [vmem:[%s46744_s9 + $0x30] sm:$0xff]  ;;  %v35392_v53 = vld [vmem:[%s46744_s9 + $0x58] sm:$0xff] }
 0xdf5   :  { %37716 = vmatpush3.bf16.msra.mxu0 %v37715_v19  ;;  %v35393_v37 = vld [vmem:[%s46744_s9 + $0x60] sm:$0xff] }
 0xdf6   :  { %37717 = vmatprep.subr.bf16.mxu0 %v39051_v31 }
 0xdf9   :  { %37719 = vmatpush3.bf16.msra.mxu0 %v37718_v3 }
 0xdfa   :  { %37720 = vmatprep.subr.bf16.mxu0 %v39051_v31 }
 0xdfd   :  { %37722 = vmatpush3.bf16.msra.mxu0 %v37721_v1 }
 0xdfe   :  { %37723 = vmatprep.subr.bf16.mxu0 %v39051_v31 }
 0xe13   :  { %v34810_v58 = vpop.f32.mrb[156].mxu0 }
 0xe14   :  { %v34814_v57 = vadd.f32 %v34810_v58, %v34721_v9  ;;  %v37069_v39 = vpop.f32.mrb[157].mxu0  ;;  %v37739_v9 = vpack.c.bf16 %v35392_v53, %v35391_v22  ;;  %v35394_v58 = vld [vmem:[%s46744_s9 + $0x68] sm:$0xff] }
 0xe15   :  { %v35395_v39 = vld [vmem:[%s46744_s9 + $0x70] sm:$0xff] }
 0xe16   :  { %v37745_v23 = vpack.c.bf16 %v35396_v26, %v35395_v39 }
 0xe33   :  { %v34903_v59 = vpop.f32.mrb[158].mxu0 }
 0xe34   :  { %v34907_v45 = vadd.f32 %v34903_v59, %v34814_v57  ;;  %v37104_v40 = vpop.f32.mrb[159].mxu0  ;;  %v37742_v57 = vpack.c.bf16 %v35394_v58, %v35393_v37 }
 0xe53   :  { %v34996_v35 = vpop.f32.mrb[160].mxu0 }
 0xe54   :  { %v35000_v36 = vadd.f32 %v34996_v35, %v34907_v45  ;;  %v37139_v6 = vpop.f32.mrb[161].mxu0 }
 0xe73   :  { %v35089_v27 = vpop.f32.mrb[162].mxu0 }
 0xe74   :  { %v35093_v34 = vadd.f32 %v35089_v27, %v35000_v36  ;;  %v37174_v15 = vpop.f32.mrb[163].mxu0 }
 0xe93   :  { %v35182_v8 = vpop.f32.mrb[164].mxu0 }
 0xe94   :  { %v35186_v10 = vadd.f32 %v35182_v8, %v35093_v34  ;;  %v37209_v18 = vpop.f32.mrb[165].mxu0 }
 0xeb3   :  { %v35275_v56 = vpop.f32.mrb[166].mxu0 }
 0xeb4   :  { %v35279_v32 = vadd.f32 %v35275_v56, %v35186_v10  ;;  %v37244_v7 = vpop.f32.mrb[167].mxu0 }
 0xeb6   :  { %v35287_v54 = vadd.f32 %v36376_v28, %v35279_v32 }
 0xeb8   :  { %37278 = vmatmul.mubr.f32.vlgmr.msra.gmra.mrb[168].mxu0 %v35287_v54 }
 0xeb9   :  { %37725 = vmatpush3.bf16.msra.mxu0 %v37724_v62  ;;  %37312 = vmatprep.mubr.msk.f32.mxu0 %vm47144_vm8, %v46885_v61  ;;  %v35388_v61 = vld [vmem:[%s46744_s9 + $0x38] sm:$0xff]  ;;  %s39002_s9 = scalar_lea.vmem %s35482_s20, 32 }
 0xeba   :  { %37726 = vmatprep.subr.bf16.mxu0 %v39051_v31  ;;  %v37733_v20 = vpack.c.bf16 %v35388_v61, %v35387_v21  ;;  %p39003_p0 = scmp.ne.s32.totalorder %s35482_s20, %s39002_s9  ;;  %p39008_p2 = scmp.lt.s32.totalorder %s39002_s9, %s39002_s9 }
 0xebc   :  { %p39009_p3 = por %p39008_p2, %p39007_p1 }
 0xebd   :  { %37728 = vmatpush3.bf16.msra.mxu0 %v37727_v30 }
 0xebe   :  { %37729 = vmatprep.subr.bf16.mxu0 %v39051_v31  ;;  %p39010_p4 = pnand %p39009_p3, %p39003_p0 }
 0xec1   :  { %37731 = vmatpush3.bf16.msra.mxu0 %v37730_v17 }
 0xec2   :  { %37732 = vmatprep.subr.bf16.mxu0 %v39051_v31 }
 0xec5   :  { %37734 = vmatpush3.bf16.msra.mxu0 %v37733_v20 }
 0xec6   :  { %37735 = vmatprep.subr.bf16.mxu0 %v39051_v31 }
 0xec9   :  { %37737 = vmatpush3.bf16.msra.mxu0 %v37736_v48 }
 0xeca   :  { %37738 = vmatprep.subr.bf16.mxu0 %v39051_v31 }
 0xecd   :  { %37740 = vmatpush3.bf16.msra.mxu0 %v37739_v9 }
 0xece   :  { %37741 = vmatprep.subr.bf16.mxu0 %v39051_v31 }
 0xed1   :  { %37743 = vmatpush3.bf16.msra.mxu0 %v37742_v57 }
 0xed2   :  { %37744 = vmatprep.subr.bf16.mxu0 %v39051_v31  ;;  %v36378_v31 = vld [vmem:[%s46745_s10] ss:$0 sm:$0xff] }
 0xed5   :  { %37746 = vmatpush3.bf16.msra.mxu0 %v37745_v23 }
 0xf8b   :  { %v35377_v60 = vpop.f32.mrb[168].mxu0 }
 0xf8c   :  { %v35378_v0 = vadd.f32 %v36377_v50, %v35377_v60  ;;  %v37279_v41 = vpop.f32.mrb[169].mxu0 }
 0xf8e   :  { %37313 = vmatmul.mubr.f32.vlgmr.msra.gmra.mrb[170].mxu0 %v35378_v0 }
0x1061   :  { %v35470_v47 = vpop.f32.mrb[170].mxu0 }
0x1062   :  { %v35471_v25 = vadd.f32 %v36378_v31, %v35470_v47  ;;  %v37314_v11 = vpop.f32.mrb[171].mxu0 }
0x1064   :  { %35474 = vst [vmem:[#allocation2] sm:$0x3] %v35471_v25 }
0x1065   :  { %39013 = shalt.err (!%p39010_p4)
}
0x1066   :  { %s39014_s2 = scalar_lea.hbm %s46746_s11, 32 }
0x1067   :  { %p39015_p5 = scmp.ne.s32.totalorder %s46746_s11, %s39014_s2  ;;  %p39018_p6 = scmp.lt.u32.totalorder %s39014_s2, %s46746_s11 }
0x1069   :  { %p39020_p7 = pnand %p39018_p6, %p39015_p5 }
0x106b   :  { %39023 = shalt.err (!%p39020_p7)
}
0x106c   :  { %35484 = dma.vmem_to_hbm [thread:$0]  %s35482_s20, 32, %s46746_s11, [#allocation3]  }
0x106d   :  { %39024 = dma.done.wait [#allocation3], 32  }
0x106e   :  { %39025 = vsyncadd [#allocation3], 4294967264 }
0x106f   :  { %35488 = vsyncpa [#allocation3], 1 }

</bundles_post_ra>
